<compile_context>
chip_gen: v6e
topology: v6e:2x2x1
jax: 0.10.0
libtpu: 0.0.40
codegen_flags: <defaults>
</compile_context>

<pallas_src>
import jax
import jax.numpy as jnp
from jax import lax
from jax.experimental import pallas as pl
from jax.experimental.pallas import tpu as pltpu

_EPS = 1e-5  # eps of both InstanceNorm2d and BatchNorm2d


def _zero_halo(pad_ref):
    """Zero only the 1-pixel border of an (N, Hp, Wp, C) padded VMEM scratch."""
    N, Hp, Wp, C = pad_ref.shape
    z_row = jnp.zeros((N, 1, Wp, C), jnp.float32)
    z_col = jnp.zeros((N, Hp, 1, C), jnp.float32)
    pad_ref[:, 0:1, :, :] = z_row
    pad_ref[:, Hp - 1:Hp, :, :] = z_row
    pad_ref[:, :, 0:1, :] = z_col
    pad_ref[:, :, Wp - 1:Wp, :] = z_col


def _conv3x3_in_relu(pad_ref, w_kxo, gamma, beta):
    """3x3 conv (single im2col matmul, slab built in registers) + InstanceNorm + ReLU.

    pad_ref : VMEM scratch (N, H+2, W+2, Cin), zero halo, valid interior.
    w_kxo   : (9*Cin, Cout) conv weight flattened in (kh, kw, cin) order.
    gamma, beta : (1, Cout) InstanceNorm affine parameters.
    Returns (N, H*W, Cout) float32.
    """
    N, Hp, Wp, Cin = pad_ref.shape
    H, W = Hp - 2, Wp - 2
    M = N * H * W

    # Nine shifted windows, each a free sublane-collapse reshape (W is a multiple
    # of 8), lane-concatenated into the im2col slab as a register value.
    pieces = [
        pad_ref[:, kh:kh + H, kw:kw + W, :].reshape(M, Cin)
        for kh in range(3) for kw in range(3)
    ]
    cols = jnp.concatenate(pieces, axis=-1)                       # (M, 9*Cin)

    acc = jnp.dot(cols, w_kxo, preferred_element_type=jnp.float32)  # (M, Cout)
    cout = acc.shape[1]
    acc = acc.reshape(N, H * W, cout)

    # InstanceNorm2d: per-(sample, channel) stats over spatial dims, single pass,
    # biased variance (clamped against cancellation).
    mean = jnp.mean(acc, axis=1, keepdims=True)
    meansq = jnp.mean(acc * acc, axis=1, keepdims=True)
    var = jnp.maximum(meansq - mean * mean, 0.0)
    scale = lax.rsqrt(var + _EPS) * gamma
    return jnp.maximum((acc - mean) * scale + beta, 0.0)           # ReLU


def down_kernel(x_ref,
                w1_ref, g1_ref, b1_ref,
                w2_ref, g2_ref, b2_ref,
                caw1_ref, cab1_ref, cabng_ref, cabnb_ref,
                cawh_ref, cabh_ref, caww_ref, cabw_ref,
                o_ref,
                pad1_ref, pad2_ref):
    N, H, W, Cin = x_ref.shape
    H2, W2 = H // 2, W // 2
    Cout = g1_ref.shape[1]

    # ---- MaxPool2d(2), whole batch at once, single interior store -----------
    xs = x_ref[...].reshape(N, H2, 2, W2, 2, Cin)
    pooled = jnp.max(jnp.max(xs, axis=4), axis=2)                  # (N, H2, W2, Cin)
    _zero_halo(pad1_ref)
    pad1_ref[:, 1:H2 + 1, 1:W2 + 1, :] = pooled

    # ---- conv1 -> InstanceNorm(affine) -> ReLU ----
    y1 = _conv3x3_in_relu(pad1_ref, w1_ref[...], g1_ref[...], b1_ref[...])

    # ---- conv2 -> InstanceNorm(affine) -> ReLU ----
    _zero_halo(pad2_ref)
    pad2_ref[:, 1:H2 + 1, 1:W2 + 1, :] = y1.reshape(N, H2, W2, Cout)
    y2 = _conv3x3_in_relu(pad2_ref, w2_ref[...], g2_ref[...], b2_ref[...])
    y4 = y2.reshape(N, H2, W2, Cout)

    # ---- CoordAttention ------------------------------------------------------
    # Directional average pools.
    xh = jnp.mean(y4, axis=2).reshape(N * H2, Cout)                # pool over W
    xw = jnp.mean(y4, axis=1).reshape(N * W2, Cout)                # pool over H

    # Shared 1x1 conv applied as two dots (no concat/split, same math).
    zh = jnp.dot(xh, caw1_ref[...],
                 preferred_element_type=jnp.float32) + cab1_ref[...]   # (N*H2, mip)
    zw = jnp.dot(xw, caw1_ref[...],
                 preferred_element_type=jnp.float32) + cab1_ref[...]   # (N*W2, mip)

    # BatchNorm2d (training-mode batch stats over the N*(H2+W2) positions),
    # combined analytically from the two partial slabs.
    cnt = float(N * (H2 + W2))
    s1 = jnp.sum(zh, axis=0, keepdims=True) + jnp.sum(zw, axis=0, keepdims=True)
    s2 = (jnp.sum(zh * zh, axis=0, keepdims=True)
          + jnp.sum(zw * zw, axis=0, keepdims=True))
    bmean = s1 / cnt
    bvar = jnp.maximum(s2 / cnt - bmean * bmean, 0.0)
    bscale = lax.rsqrt(bvar + _EPS) * cabng_ref[...]
    zh = jnp.maximum((zh - bmean) * bscale + cabnb_ref[...], 0.0)  # ReLU (per spec)
    zw = jnp.maximum((zw - bmean) * bscale + cabnb_ref[...], 0.0)

    # Per-direction 1x1 convs + sigmoid gates.
    ah = jax.nn.sigmoid(jnp.dot(zh, cawh_ref[...],
                                preferred_element_type=jnp.float32) + cabh_ref[...])
    aw = jax.nn.sigmoid(jnp.dot(zw, caww_ref[...],
                                preferred_element_type=jnp.float32) + cabw_ref[...])

    # out = identity * a_h * a_w, then emit channel-major (NCHW-flat) so the
    # output lane axis is H2*W2 (lane-dense at realistic sizes) instead of Cout.
    gated = y4 * ah.reshape(N, H2, 1, Cout) * aw.reshape(N, 1, W2, Cout)
    gated = gated.reshape(N, H2 * W2, Cout)
    for n in range(N):                       # N is small and static
        o_ref[n] = gated[n].T                # (Cout, H2*W2), 2-D XLU transpose


def down_forward(x_nchw, params):
    """Forward pass of `Down` (NCHW in -> NCHW out), one fused Pallas kernel."""
    N, Cin, H, W = x_nchw.shape
    assert H % 2 == 0 and W % 2 == 0, "MaxPool2d(2) path assumes even H and W"
    H2, W2 = H // 2, W // 2
    Cout = params["in1_g"].shape[0]
    mip = params["ca_bn_g"].shape[0]

    # Tiny trace-time parameter re-layouts (weights only, never activations):
    #  3x3 conv OIHW -> (9*Cin, Cout) im2col matrix flattened (kh, kw, cin)-major,
    #  1x1 conv weights -> plain (Cin, Cout) matrices, vectors -> row vectors.
    w1m = jnp.transpose(params["conv1_w"], (2, 3, 1, 0)).reshape(9 * Cin, Cout)
    w2m = jnp.transpose(params["conv2_w"], (2, 3, 1, 0)).reshape(9 * Cout, Cout)
    row = lambda v: v.reshape(1, -1)

    # NCHW -> NHWC for the input so channels sit on the lane axis inside the
    # conv path (tiny; the output side needs no transpose at all anymore).
    x = jnp.transpose(x_nchw, (0, 2, 3, 1)).astype(jnp.float32)

    def full(shape):
        zeros = (0,) * len(shape)
        return pl.BlockSpec(shape, lambda i: zeros)

    y_flat = pl.pallas_call(
        down_kernel,
        grid=(1,),
        in_specs=[
            full((N, H, W, Cin)),
            full((9 * Cin, Cout)), full((1, Cout)), full((1, Cout)),
            full((9 * Cout, Cout)), full((1, Cout)), full((1, Cout)),
            full((Cout, mip)), full((1, mip)), full((1, mip)), full((1, mip)),
            full((mip, Cout)), full((1, Cout)),
            full((mip, Cout)), full((1, Cout)),
        ],
        out_specs=full((N, Cout, H2 * W2)),
        out_shape=jax.ShapeDtypeStruct((N, Cout, H2 * W2), jnp.float32),
        scratch_shapes=[
            pltpu.VMEM((N, H2 + 2, W2 + 2, Cin), jnp.float32),   # padded pooled input
            pltpu.VMEM((N, H2 + 2, W2 + 2, Cout), jnp.float32),  # padded conv1 output
        ],
        compiler_params=pltpu.CompilerParams(
            dimension_semantics=("arbitrary",),
        ),
    )(x,
      w1m, row(params["in1_g"]), row(params["in1_b"]),
      w2m, row(params["in2_g"]), row(params["in2_b"]),
      params["ca_w1"].T, row(params["ca_b1"]),
      row(params["ca_bn_g"]), row(params["ca_bn_b"]),
      params["ca_wh"].T, row(params["ca_bh"]),
      params["ca_ww"].T, row(params["ca_bw"]))

    # Free metadata-only reshape (already channel-major / NCHW order).
    return y_flat.reshape(N, Cout, H2, W2)


def init_params(key, in_ch, out_ch):
    """Parameters in PyTorch-native shapes (OIHW convs, per-channel vectors)."""
    mip = max(8, out_ch // 32)
    ks = jax.random.split(key, 8)
    f32 = jnp.float32
    return {
        # DoubleConv: Conv2d(3x3, bias=False) + InstanceNorm2d(affine=True), x2
        "conv1_w": 0.1 * jax.random.normal(ks[0], (out_ch, in_ch, 3, 3), f32),
        "in1_g": jnp.ones((out_ch,), f32),
        "in1_b": jnp.zeros((out_ch,), f32),
        "conv2_w": 0.1 * jax.random.normal(ks[1], (out_ch, out_ch, 3, 3), f32),
        "in2_g": jnp.ones((out_ch,), f32),
        "in2_b": jnp.zeros((out_ch,), f32),
        # CoordAttention: 1x1 convs stored as (out, in) matrices + biases
        "ca_w1": 0.1 * jax.random.normal(ks[2], (mip, out_ch), f32),
        "ca_b1": 0.01 * jax.random.normal(ks[3], (mip,), f32),
        "ca_bn_g": jnp.ones((mip,), f32),
        "ca_bn_b": jnp.zeros((mip,), f32),
        "ca_wh": 0.1 * jax.random.normal(ks[4], (out_ch, mip), f32),
        "ca_bh": 0.01 * jax.random.normal(ks[5], (out_ch,), f32),
        "ca_ww": 0.1 * jax.random.normal(ks[6], (out_ch, mip), f32),
        "ca_bw": 0.01 * jax.random.normal(ks[7], (out_ch,), f32),
    }


if __name__ == "__main__":
    key = jax.random.PRNGKey(0)
    k_x, k_p = jax.random.split(key)

    in_ch, out_ch = 4, 8
    N, H, W = 2, 16, 16
    x = jax.random.normal(k_x, (N, in_ch, H, W), jnp.float32)  # NCHW like PyTorch
    params = init_params(k_p, in_ch, out_ch)

    out = jax.jit(down_forward)(x, params)
    out = jax.block_until_ready(out)
    assert out.shape == (N, out_ch, H // 2, W // 2), out.shape
    print("KERNEL_OK")
</pallas_src>

<mosaic_0001>
module attributes {stable_mosaic.version = 11 : i64} {
  func.func @down_kernel(%arg0: i32, %arg1: memref<2x16x16x4xf32, #tpu.memory_space<vmem>>, %arg2: memref<36x8xf32, #tpu.memory_space<vmem>>, %arg3: memref<1x8xf32, #tpu.memory_space<vmem>>, %arg4: memref<1x8xf32, #tpu.memory_space<vmem>>, %arg5: memref<72x8xf32, #tpu.memory_space<vmem>>, %arg6: memref<1x8xf32, #tpu.memory_space<vmem>>, %arg7: memref<1x8xf32, #tpu.memory_space<vmem>>, %arg8: memref<8x8xf32, #tpu.memory_space<vmem>>, %arg9: memref<1x8xf32, #tpu.memory_space<vmem>>, %arg10: memref<1x8xf32, #tpu.memory_space<vmem>>, %arg11: memref<1x8xf32, #tpu.memory_space<vmem>>, %arg12: memref<8x8xf32, #tpu.memory_space<vmem>>, %arg13: memref<1x8xf32, #tpu.memory_space<vmem>>, %arg14: memref<8x8xf32, #tpu.memory_space<vmem>>, %arg15: memref<1x8xf32, #tpu.memory_space<vmem>>, %arg16: memref<2x8x64xf32, #tpu.memory_space<vmem>>, %arg17: memref<2x10x10x4xf32, #tpu.memory_space<vmem>>, %arg18: memref<2x10x10x8xf32, #tpu.memory_space<vmem>>) attributes {dimension_semantics = [#tpu.dimension_semantics<arbitrary>], iteration_bounds = array<i64: 1>, scalar_prefetch = 0 : i64, scratch_operands = 2 : i64, tpu.core_type = #tpu.core_type<tc>, window_params = [{pipeline_mode = #tpu.pipeline_mode<synchronous>, transform_indices = @transform_0, window_bounds = array<i64: 2, 16, 16, 4>}, {pipeline_mode = #tpu.pipeline_mode<synchronous>, transform_indices = @transform_1, window_bounds = array<i64: 36, 8>}, {pipeline_mode = #tpu.pipeline_mode<synchronous>, transform_indices = @transform_2, window_bounds = array<i64: 1, 8>}, {pipeline_mode = #tpu.pipeline_mode<synchronous>, transform_indices = @transform_3, window_bounds = array<i64: 1, 8>}, {pipeline_mode = #tpu.pipeline_mode<synchronous>, transform_indices = @transform_4, window_bounds = array<i64: 72, 8>}, {pipeline_mode = #tpu.pipeline_mode<synchronous>, transform_indices = @transform_5, window_bounds = array<i64: 1, 8>}, {pipeline_mode = #tpu.pipeline_mode<synchronous>, transform_indices = @transform_6, window_bounds = array<i64: 1, 8>}, {pipeline_mode = #tpu.pipeline_mode<synchronous>, transform_indices = @transform_7, window_bounds = array<i64: 8, 8>}, {pipeline_mode = #tpu.pipeline_mode<synchronous>, transform_indices = @transform_8, window_bounds = array<i64: 1, 8>}, {pipeline_mode = #tpu.pipeline_mode<synchronous>, transform_indices = @transform_9, window_bounds = array<i64: 1, 8>}, {pipeline_mode = #tpu.pipeline_mode<synchronous>, transform_indices = @transform_10, window_bounds = array<i64: 1, 8>}, {pipeline_mode = #tpu.pipeline_mode<synchronous>, transform_indices = @transform_11, window_bounds = array<i64: 8, 8>}, {pipeline_mode = #tpu.pipeline_mode<synchronous>, transform_indices = @transform_12, window_bounds = array<i64: 1, 8>}, {pipeline_mode = #tpu.pipeline_mode<synchronous>, transform_indices = @transform_13, window_bounds = array<i64: 8, 8>}, {pipeline_mode = #tpu.pipeline_mode<synchronous>, transform_indices = @transform_14, window_bounds = array<i64: 1, 8>}, {pipeline_mode = #tpu.pipeline_mode<synchronous>, transform_indices = @transform_15, window_bounds = array<i64: 2, 8, 64>}]} {
    %c0 = arith.constant 0 : index
    %c0_0 = arith.constant 0 : index
    %c0_1 = arith.constant 0 : index
    %c0_2 = arith.constant 0 : index
    %0 = vector.load %arg1[%c0, %c0_0, %c0_1, %c0_2] : memref<2x16x16x4xf32, #tpu.memory_space<vmem>>, vector<2x16x16x4xf32>
    %1 = vector.shape_cast %0 : vector<2x16x16x4xf32> to vector<2x8x2x8x2x4xf32>
    %cst = arith.constant dense<0xFF800000> : vector<2x8x2x8x4xf32>
    %2 = vector.multi_reduction <maximumf>, %1, %cst [4] : vector<2x8x2x8x2x4xf32> to vector<2x8x2x8x4xf32>
    %cst_3 = arith.constant dense<0xFF800000> : vector<2x8x8x4xf32>
    %3 = vector.multi_reduction <maximumf>, %2, %cst_3 [2] : vector<2x8x2x8x4xf32> to vector<2x8x8x4xf32>
    %cst_4 = arith.constant 0.000000e+00 : f32
    %4 = vector.broadcast %cst_4 : f32 to vector<2x1x10x4xf32>
    %cst_5 = arith.constant 0.000000e+00 : f32
    %5 = vector.broadcast %cst_5 : f32 to vector<2x10x1x4xf32>
    %c0_6 = arith.constant 0 : index
    %c0_7 = arith.constant 0 : index
    %c0_8 = arith.constant 0 : index
    %c0_9 = arith.constant 0 : index
    %6 = vector.load %arg17[%c0_6, %c0_7, %c0_8, %c0_9] : memref<2x10x10x4xf32, #tpu.memory_space<vmem>>, vector<2x1x10x4xf32>
    tpu.vector_store %arg17[%c0_6, %c0_7, %c0_8, %c0_9], %4 {strides = array<i32>} : memref<2x10x10x4xf32, #tpu.memory_space<vmem>>, vector<2x1x10x4xf32>,
    %c0_10 = arith.constant 0 : index
    %c9 = arith.constant 9 : index
    %c0_11 = arith.constant 0 : index
    %c0_12 = arith.constant 0 : index
    %7 = vector.load %arg17[%c0_10, %c9, %c0_11, %c0_12] : memref<2x10x10x4xf32, #tpu.memory_space<vmem>>, vector<2x1x10x4xf32>
    tpu.vector_store %arg17[%c0_10, %c9, %c0_11, %c0_12], %4 {strides = array<i32>} : memref<2x10x10x4xf32, #tpu.memory_space<vmem>>, vector<2x1x10x4xf32>,
    %c0_13 = arith.constant 0 : index
    %c0_14 = arith.constant 0 : index
    %c0_15 = arith.constant 0 : index
    %c0_16 = arith.constant 0 : index
    %8 = vector.load %arg17[%c0_13, %c0_14, %c0_15, %c0_16] : memref<2x10x10x4xf32, #tpu.memory_space<vmem>>, vector<2x10x1x4xf32>
    tpu.vector_store %arg17[%c0_13, %c0_14, %c0_15, %c0_16], %5 {strides = array<i32>} : memref<2x10x10x4xf32, #tpu.memory_space<vmem>>, vector<2x10x1x4xf32>,
    %c0_17 = arith.constant 0 : index
    %c0_18 = arith.constant 0 : index
    %c9_19 = arith.constant 9 : index
    %c0_20 = arith.constant 0 : index
    %9 = vector.load %arg17[%c0_17, %c0_18, %c9_19, %c0_20] : memref<2x10x10x4xf32, #tpu.memory_space<vmem>>, vector<2x10x1x4xf32>
    tpu.vector_store %arg17[%c0_17, %c0_18, %c9_19, %c0_20], %5 {strides = array<i32>} : memref<2x10x10x4xf32, #tpu.memory_space<vmem>>, vector<2x10x1x4xf32>,
    %c0_21 = arith.constant 0 : index
    %c1 = arith.constant 1 : index
    %c1_22 = arith.constant 1 : index
    %c0_23 = arith.constant 0 : index
    %10 = vector.load %arg17[%c0_21, %c1, %c1_22, %c0_23] : memref<2x10x10x4xf32, #tpu.memory_space<vmem>>, vector<2x8x8x4xf32>
    tpu.vector_store %arg17[%c0_21, %c1, %c1_22, %c0_23], %3 {strides = array<i32>} : memref<2x10x10x4xf32, #tpu.memory_space<vmem>>, vector<2x8x8x4xf32>,
    %c0_24 = arith.constant 0 : index
    %c0_25 = arith.constant 0 : index
    %11 = vector.load %arg2[%c0_24, %c0_25] : memref<36x8xf32, #tpu.memory_space<vmem>>, vector<36x8xf32>
    %c0_26 = arith.constant 0 : index
    %c0_27 = arith.constant 0 : index
    %12 = vector.load %arg3[%c0_26, %c0_27] : memref<1x8xf32, #tpu.memory_space<vmem>>, vector<1x8xf32>
    %c0_28 = arith.constant 0 : index
    %c0_29 = arith.constant 0 : index
    %13 = vector.load %arg4[%c0_28, %c0_29] : memref<1x8xf32, #tpu.memory_space<vmem>>, vector<1x8xf32>
    %c0_30 = arith.constant 0 : index
    %c0_31 = arith.constant 0 : index
    %c0_32 = arith.constant 0 : index
    %c0_33 = arith.constant 0 : index
    %14 = vector.load %arg17[%c0_30, %c0_31, %c0_32, %c0_33] : memref<2x10x10x4xf32, #tpu.memory_space<vmem>>, vector<2x8x8x4xf32>
    %15 = vector.shape_cast %14 : vector<2x8x8x4xf32> to vector<128x4xf32>
    %c0_34 = arith.constant 0 : index
    %c0_35 = arith.constant 0 : index
    %c1_36 = arith.constant 1 : index
    %c0_37 = arith.constant 0 : index
    %16 = vector.load %arg17[%c0_34, %c0_35, %c1_36, %c0_37] : memref<2x10x10x4xf32, #tpu.memory_space<vmem>>, vector<2x8x8x4xf32>
    %17 = vector.shape_cast %16 : vector<2x8x8x4xf32> to vector<128x4xf32>
    %c0_38 = arith.constant 0 : index
    %c0_39 = arith.constant 0 : index
    %c2 = arith.constant 2 : index
    %c0_40 = arith.constant 0 : index
    %18 = vector.load %arg17[%c0_38, %c0_39, %c2, %c0_40] : memref<2x10x10x4xf32, #tpu.memory_space<vmem>>, vector<2x8x8x4xf32>
    %19 = vector.shape_cast %18 : vector<2x8x8x4xf32> to vector<128x4xf32>
    %c0_41 = arith.constant 0 : index
    %c1_42 = arith.constant 1 : index
    %c0_43 = arith.constant 0 : index
    %c0_44 = arith.constant 0 : index
    %20 = vector.load %arg17[%c0_41, %c1_42, %c0_43, %c0_44] : memref<2x10x10x4xf32, #tpu.memory_space<vmem>>, vector<2x8x8x4xf32>
    %21 = vector.shape_cast %20 : vector<2x8x8x4xf32> to vector<128x4xf32>
    %c0_45 = arith.constant 0 : index
    %c1_46 = arith.constant 1 : index
    %c1_47 = arith.constant 1 : index
    %c0_48 = arith.constant 0 : index
    %22 = vector.load %arg17[%c0_45, %c1_46, %c1_47, %c0_48] : memref<2x10x10x4xf32, #tpu.memory_space<vmem>>, vector<2x8x8x4xf32>
    %23 = vector.shape_cast %22 : vector<2x8x8x4xf32> to vector<128x4xf32>
    %c0_49 = arith.constant 0 : index
    %c1_50 = arith.constant 1 : index
    %c2_51 = arith.constant 2 : index
    %c0_52 = arith.constant 0 : index
    %24 = vector.load %arg17[%c0_49, %c1_50, %c2_51, %c0_52] : memref<2x10x10x4xf32, #tpu.memory_space<vmem>>, vector<2x8x8x4xf32>
    %25 = vector.shape_cast %24 : vector<2x8x8x4xf32> to vector<128x4xf32>
    %c0_53 = arith.constant 0 : index
    %c2_54 = arith.constant 2 : index
    %c0_55 = arith.constant 0 : index
    %c0_56 = arith.constant 0 : index
    %26 = vector.load %arg17[%c0_53, %c2_54, %c0_55, %c0_56] : memref<2x10x10x4xf32, #tpu.memory_space<vmem>>, vector<2x8x8x4xf32>
    %27 = vector.shape_cast %26 : vector<2x8x8x4xf32> to vector<128x4xf32>
    %c0_57 = arith.constant 0 : index
    %c2_58 = arith.constant 2 : index
    %c1_59 = arith.constant 1 : index
    %c0_60 = arith.constant 0 : index
    %28 = vector.load %arg17[%c0_57, %c2_58, %c1_59, %c0_60] : memref<2x10x10x4xf32, #tpu.memory_space<vmem>>, vector<2x8x8x4xf32>
    %29 = vector.shape_cast %28 : vector<2x8x8x4xf32> to vector<128x4xf32>
    %c0_61 = arith.constant 0 : index
    %c2_62 = arith.constant 2 : index
    %c2_63 = arith.constant 2 : index
    %c0_64 = arith.constant 0 : index
    %30 = vector.load %arg17[%c0_61, %c2_62, %c2_63, %c0_64] : memref<2x10x10x4xf32, #tpu.memory_space<vmem>>, vector<2x8x8x4xf32>
    %31 = vector.shape_cast %30 : vector<2x8x8x4xf32> to vector<128x4xf32>
    %32 = tpu.concatenate %15, %17, %19, %21, %23, %25, %27, %29, %31 in 1 : vector<128x4xf32>, vector<128x4xf32>, vector<128x4xf32>, vector<128x4xf32>, vector<128x4xf32>, vector<128x4xf32>, vector<128x4xf32>, vector<128x4xf32>, vector<128x4xf32> -> vector<128x36xf32>
    %cst_65 = arith.constant dense<0.000000e+00> : vector<128x8xf32>
    %33 = tpu.matmul %32, %11, %cst_65 {dimension_numbers = #tpu.dot_dimension_numbers<[1], [0], [0], [1], [0, 0, 1, 1], [], []>} : vector<128x36xf32>, vector<36x8xf32>, vector<128x8xf32> -> vector<128x8xf32>
    %34 = vector.shape_cast %33 : vector<128x8xf32> to vector<2x64x8xf32>
    %cst_66 = arith.constant dense<0.000000e+00> : vector<2x8xf32>
    %35 = vector.multi_reduction <add>, %34, %cst_66 [1] : vector<2x64x8xf32> to vector<2x8xf32>
    %36 = vector.shape_cast %35 : vector<2x8xf32> to vector<2x1x8xf32>
    %cst_67 = arith.constant 6.400000e+01 : f32
    %37 = vector.broadcast %cst_67 : f32 to vector<2x1x8xf32>
    %38 = arith.divf %36, %37 : vector<2x1x8xf32>
    %39 = arith.mulf %34, %34 : vector<2x64x8xf32>
    %cst_68 = arith.constant dense<0.000000e+00> : vector<2x8xf32>
    %40 = vector.multi_reduction <add>, %39, %cst_68 [1] : vector<2x64x8xf32> to vector<2x8xf32>
    %41 = vector.shape_cast %40 : vector<2x8xf32> to vector<2x1x8xf32>
    %cst_69 = arith.constant 6.400000e+01 : f32
    %42 = vector.broadcast %cst_69 : f32 to vector<2x1x8xf32>
    %43 = arith.divf %41, %42 : vector<2x1x8xf32>
    %44 = arith.mulf %38, %38 : vector<2x1x8xf32>
    %45 = arith.subf %43, %44 : vector<2x1x8xf32>
    %cst_70 = arith.constant 0.000000e+00 : f32
    %46 = vector.broadcast %cst_70 : f32 to vector<2x1x8xf32>
    %47 = arith.maximumf %45, %46 : vector<2x1x8xf32>
    %cst_71 = arith.constant 9.99999974E-6 : f32
    %48 = vector.broadcast %cst_71 : f32 to vector<2x1x8xf32>
    %49 = arith.addf %47, %48 : vector<2x1x8xf32>
    %50 = math.rsqrt %49 : vector<2x1x8xf32>
    %51 = vector.shape_cast %12 : vector<1x8xf32> to vector<1x1x8xf32>
    %52 = vector.broadcast %51 : vector<1x1x8xf32> to vector<2x1x8xf32>
    %53 = arith.mulf %50, %52 : vector<2x1x8xf32>
    %54 = vector.broadcast %38 : vector<2x1x8xf32> to vector<2x64x8xf32>
    %55 = arith.subf %34, %54 : vector<2x64x8xf32>
    %56 = vector.broadcast %53 : vector<2x1x8xf32> to vector<2x64x8xf32>
    %57 = arith.mulf %55, %56 : vector<2x64x8xf32>
    %58 = vector.shape_cast %13 : vector<1x8xf32> to vector<1x1x8xf32>
    %59 = vector.broadcast %58 : vector<1x1x8xf32> to vector<2x64x8xf32>
    %60 = arith.addf %57, %59 : vector<2x64x8xf32>
    %cst_72 = arith.constant 0.000000e+00 : f32
    %61 = vector.broadcast %cst_72 : f32 to vector<2x64x8xf32>
    %62 = arith.maximumf %60, %61 : vector<2x64x8xf32>
    %cst_73 = arith.constant 0.000000e+00 : f32
    %63 = vector.broadcast %cst_73 : f32 to vector<2x1x10x8xf32>
    %cst_74 = arith.constant 0.000000e+00 : f32
    %64 = vector.broadcast %cst_74 : f32 to vector<2x10x1x8xf32>
    %c0_75 = arith.constant 0 : index
    %c0_76 = arith.constant 0 : index
    %c0_77 = arith.constant 0 : index
    %c0_78 = arith.constant 0 : index
    %65 = vector.load %arg18[%c0_75, %c0_76, %c0_77, %c0_78] : memref<2x10x10x8xf32, #tpu.memory_space<vmem>>, vector<2x1x10x8xf32>
    tpu.vector_store %arg18[%c0_75, %c0_76, %c0_77, %c0_78], %63 {strides = array<i32>} : memref<2x10x10x8xf32, #tpu.memory_space<vmem>>, vector<2x1x10x8xf32>,
    %c0_79 = arith.constant 0 : index
    %c9_80 = arith.constant 9 : index
    %c0_81 = arith.constant 0 : index
    %c0_82 = arith.constant 0 : index
    %66 = vector.load %arg18[%c0_79, %c9_80, %c0_81, %c0_82] : memref<2x10x10x8xf32, #tpu.memory_space<vmem>>, vector<2x1x10x8xf32>
    tpu.vector_store %arg18[%c0_79, %c9_80, %c0_81, %c0_82], %63 {strides = array<i32>} : memref<2x10x10x8xf32, #tpu.memory_space<vmem>>, vector<2x1x10x8xf32>,
    %c0_83 = arith.constant 0 : index
    %c0_84 = arith.constant 0 : index
    %c0_85 = arith.constant 0 : index
    %c0_86 = arith.constant 0 : index
    %67 = vector.load %arg18[%c0_83, %c0_84, %c0_85, %c0_86] : memref<2x10x10x8xf32, #tpu.memory_space<vmem>>, vector<2x10x1x8xf32>
    tpu.vector_store %arg18[%c0_83, %c0_84, %c0_85, %c0_86], %64 {strides = array<i32>} : memref<2x10x10x8xf32, #tpu.memory_space<vmem>>, vector<2x10x1x8xf32>,
    %c0_87 = arith.constant 0 : index
    %c0_88 = arith.constant 0 : index
    %c9_89 = arith.constant 9 : index
    %c0_90 = arith.constant 0 : index
    %68 = vector.load %arg18[%c0_87, %c0_88, %c9_89, %c0_90] : memref<2x10x10x8xf32, #tpu.memory_space<vmem>>, vector<2x10x1x8xf32>
    tpu.vector_store %arg18[%c0_87, %c0_88, %c9_89, %c0_90], %64 {strides = array<i32>} : memref<2x10x10x8xf32, #tpu.memory_space<vmem>>, vector<2x10x1x8xf32>,
    %69 = vector.shape_cast %62 : vector<2x64x8xf32> to vector<2x8x8x8xf32>
    %c0_91 = arith.constant 0 : index
    %c1_92 = arith.constant 1 : index
    %c1_93 = arith.constant 1 : index
    %c0_94 = arith.constant 0 : index
    %70 = vector.load %arg18[%c0_91, %c1_92, %c1_93, %c0_94] : memref<2x10x10x8xf32, #tpu.memory_space<vmem>>, vector<2x8x8x8xf32>
    tpu.vector_store %arg18[%c0_91, %c1_92, %c1_93, %c0_94], %69 {strides = array<i32>} : memref<2x10x10x8xf32, #tpu.memory_space<vmem>>, vector<2x8x8x8xf32>,
    %c0_95 = arith.constant 0 : index
    %c0_96 = arith.constant 0 : index
    %71 = vector.load %arg5[%c0_95, %c0_96] : memref<72x8xf32, #tpu.memory_space<vmem>>, vector<72x8xf32>
    %c0_97 = arith.constant 0 : index
    %c0_98 = arith.constant 0 : index
    %72 = vector.load %arg6[%c0_97, %c0_98] : memref<1x8xf32, #tpu.memory_space<vmem>>, vector<1x8xf32>
    %c0_99 = arith.constant 0 : index
    %c0_100 = arith.constant 0 : index
    %73 = vector.load %arg7[%c0_99, %c0_100] : memref<1x8xf32, #tpu.memory_space<vmem>>, vector<1x8xf32>
    %c0_101 = arith.constant 0 : index
    %c0_102 = arith.constant 0 : index
    %c0_103 = arith.constant 0 : index
    %c0_104 = arith.constant 0 : index
    %74 = vector.load %arg18[%c0_101, %c0_102, %c0_103, %c0_104] : memref<2x10x10x8xf32, #tpu.memory_space<vmem>>, vector<2x8x8x8xf32>
    %75 = vector.shape_cast %74 : vector<2x8x8x8xf32> to vector<128x8xf32>
    %c0_105 = arith.constant 0 : index
    %c0_106 = arith.constant 0 : index
    %c1_107 = arith.constant 1 : index
    %c0_108 = arith.constant 0 : index
    %76 = vector.load %arg18[%c0_105, %c0_106, %c1_107, %c0_108] : memref<2x10x10x8xf32, #tpu.memory_space<vmem>>, vector<2x8x8x8xf32>
    %77 = vector.shape_cast %76 : vector<2x8x8x8xf32> to vector<128x8xf32>
    %c0_109 = arith.constant 0 : index
    %c0_110 = arith.constant 0 : index
    %c2_111 = arith.constant 2 : index
    %c0_112 = arith.constant 0 : index
    %78 = vector.load %arg18[%c0_109, %c0_110, %c2_111, %c0_112] : memref<2x10x10x8xf32, #tpu.memory_space<vmem>>, vector<2x8x8x8xf32>
    %79 = vector.shape_cast %78 : vector<2x8x8x8xf32> to vector<128x8xf32>
    %c0_113 = arith.constant 0 : index
    %c1_114 = arith.constant 1 : index
    %c0_115 = arith.constant 0 : index
    %c0_116 = arith.constant 0 : index
    %80 = vector.load %arg18[%c0_113, %c1_114, %c0_115, %c0_116] : memref<2x10x10x8xf32, #tpu.memory_space<vmem>>, vector<2x8x8x8xf32>
    %81 = vector.shape_cast %80 : vector<2x8x8x8xf32> to vector<128x8xf32>
    %c0_117 = arith.constant 0 : index
    %c1_118 = arith.constant 1 : index
    %c1_119 = arith.constant 1 : index
    %c0_120 = arith.constant 0 : index
    %82 = vector.load %arg18[%c0_117, %c1_118, %c1_119, %c0_120] : memref<2x10x10x8xf32, #tpu.memory_space<vmem>>, vector<2x8x8x8xf32>
    %83 = vector.shape_cast %82 : vector<2x8x8x8xf32> to vector<128x8xf32>
    %c0_121 = arith.constant 0 : index
    %c1_122 = arith.constant 1 : index
    %c2_123 = arith.constant 2 : index
    %c0_124 = arith.constant 0 : index
    %84 = vector.load %arg18[%c0_121, %c1_122, %c2_123, %c0_124] : memref<2x10x10x8xf32, #tpu.memory_space<vmem>>, vector<2x8x8x8xf32>
    %85 = vector.shape_cast %84 : vector<2x8x8x8xf32> to vector<128x8xf32>
    %c0_125 = arith.constant 0 : index
    %c2_126 = arith.constant 2 : index
    %c0_127 = arith.constant 0 : index
    %c0_128 = arith.constant 0 : index
    %86 = vector.load %arg18[%c0_125, %c2_126, %c0_127, %c0_128] : memref<2x10x10x8xf32, #tpu.memory_space<vmem>>, vector<2x8x8x8xf32>
    %87 = vector.shape_cast %86 : vector<2x8x8x8xf32> to vector<128x8xf32>
    %c0_129 = arith.constant 0 : index
    %c2_130 = arith.constant 2 : index
    %c1_131 = arith.constant 1 : index
    %c0_132 = arith.constant 0 : index
    %88 = vector.load %arg18[%c0_129, %c2_130, %c1_131, %c0_132] : memref<2x10x10x8xf32, #tpu.memory_space<vmem>>, vector<2x8x8x8xf32>
    %89 = vector.shape_cast %88 : vector<2x8x8x8xf32> to vector<128x8xf32>
    %c0_133 = arith.constant 0 : index
    %c2_134 = arith.constant 2 : index
    %c2_135 = arith.constant 2 : index
    %c0_136 = arith.constant 0 : index
    %90 = vector.load %arg18[%c0_133, %c2_134, %c2_135, %c0_136] : memref<2x10x10x8xf32, #tpu.memory_space<vmem>>, vector<2x8x8x8xf32>
    %91 = vector.shape_cast %90 : vector<2x8x8x8xf32> to vector<128x8xf32>
    %92 = tpu.concatenate %75, %77, %79, %81, %83, %85, %87, %89, %91 in 1 : vector<128x8xf32>, vector<128x8xf32>, vector<128x8xf32>, vector<128x8xf32>, vector<128x8xf32>, vector<128x8xf32>, vector<128x8xf32>, vector<128x8xf32>, vector<128x8xf32> -> vector<128x72xf32>
    %cst_137 = arith.constant dense<0.000000e+00> : vector<128x8xf32>
    %93 = tpu.matmul %92, %71, %cst_137 {dimension_numbers = #tpu.dot_dimension_numbers<[1], [0], [0], [1], [0, 0, 1, 1], [], []>} : vector<128x72xf32>, vector<72x8xf32>, vector<128x8xf32> -> vector<128x8xf32>
    %94 = vector.shape_cast %93 : vector<128x8xf32> to vector<2x64x8xf32>
    %cst_138 = arith.constant dense<0.000000e+00> : vector<2x8xf32>
    %95 = vector.multi_reduction <add>, %94, %cst_138 [1] : vector<2x64x8xf32> to vector<2x8xf32>
    %96 = vector.shape_cast %95 : vector<2x8xf32> to vector<2x1x8xf32>
    %cst_139 = arith.constant 6.400000e+01 : f32
    %97 = vector.broadcast %cst_139 : f32 to vector<2x1x8xf32>
    %98 = arith.divf %96, %97 : vector<2x1x8xf32>
    %99 = arith.mulf %94, %94 : vector<2x64x8xf32>
    %cst_140 = arith.constant dense<0.000000e+00> : vector<2x8xf32>
    %100 = vector.multi_reduction <add>, %99, %cst_140 [1] : vector<2x64x8xf32> to vector<2x8xf32>
    %101 = vector.shape_cast %100 : vector<2x8xf32> to vector<2x1x8xf32>
    %cst_141 = arith.constant 6.400000e+01 : f32
    %102 = vector.broadcast %cst_141 : f32 to vector<2x1x8xf32>
    %103 = arith.divf %101, %102 : vector<2x1x8xf32>
    %104 = arith.mulf %98, %98 : vector<2x1x8xf32>
    %105 = arith.subf %103, %104 : vector<2x1x8xf32>
    %cst_142 = arith.constant 0.000000e+00 : f32
    %106 = vector.broadcast %cst_142 : f32 to vector<2x1x8xf32>
    %107 = arith.maximumf %105, %106 : vector<2x1x8xf32>
    %cst_143 = arith.constant 9.99999974E-6 : f32
    %108 = vector.broadcast %cst_143 : f32 to vector<2x1x8xf32>
    %109 = arith.addf %107, %108 : vector<2x1x8xf32>
    %110 = math.rsqrt %109 : vector<2x1x8xf32>
    %111 = vector.shape_cast %72 : vector<1x8xf32> to vector<1x1x8xf32>
    %112 = vector.broadcast %111 : vector<1x1x8xf32> to vector<2x1x8xf32>
    %113 = arith.mulf %110, %112 : vector<2x1x8xf32>
    %114 = vector.broadcast %98 : vector<2x1x8xf32> to vector<2x64x8xf32>
    %115 = arith.subf %94, %114 : vector<2x64x8xf32>
    %116 = vector.broadcast %113 : vector<2x1x8xf32> to vector<2x64x8xf32>
    %117 = arith.mulf %115, %116 : vector<2x64x8xf32>
    %118 = vector.shape_cast %73 : vector<1x8xf32> to vector<1x1x8xf32>
    %119 = vector.broadcast %118 : vector<1x1x8xf32> to vector<2x64x8xf32>
    %120 = arith.addf %117, %119 : vector<2x64x8xf32>
    %cst_144 = arith.constant 0.000000e+00 : f32
    %121 = vector.broadcast %cst_144 : f32 to vector<2x64x8xf32>
    %122 = arith.maximumf %120, %121 : vector<2x64x8xf32>
    %123 = vector.shape_cast %122 : vector<2x64x8xf32> to vector<2x8x8x8xf32>
    %cst_145 = arith.constant dense<0.000000e+00> : vector<2x8x8xf32>
    %124 = vector.multi_reduction <add>, %123, %cst_145 [2] : vector<2x8x8x8xf32> to vector<2x8x8xf32>
    %cst_146 = arith.constant 8.000000e+00 : f32
    %125 = vector.broadcast %cst_146 : f32 to vector<2x8x8xf32>
    %126 = arith.divf %124, %125 : vector<2x8x8xf32>
    %127 = vector.shape_cast %126 : vector<2x8x8xf32> to vector<16x8xf32>
    %cst_147 = arith.constant dense<0.000000e+00> : vector<2x8x8xf32>
    %128 = vector.multi_reduction <add>, %123, %cst_147 [1] : vector<2x8x8x8xf32> to vector<2x8x8xf32>
    %cst_148 = arith.constant 8.000000e+00 : f32
    %129 = vector.broadcast %cst_148 : f32 to vector<2x8x8xf32>
    %130 = arith.divf %128, %129 : vector<2x8x8xf32>
    %131 = vector.shape_cast %130 : vector<2x8x8xf32> to vector<16x8xf32>
    %c0_149 = arith.constant 0 : index
    %c0_150 = arith.constant 0 : index
    %132 = vector.load %arg8[%c0_149, %c0_150] : memref<8x8xf32, #tpu.memory_space<vmem>>, vector<8x8xf32>
    %cst_151 = arith.constant dense<0.000000e+00> : vector<16x8xf32>
    %133 = tpu.matmul %127, %132, %cst_151 {dimension_numbers = #tpu.dot_dimension_numbers<[1], [0], [0], [1], [0, 0, 1, 1], [], []>} : vector<16x8xf32>, vector<8x8xf32>, vector<16x8xf32> -> vector<16x8xf32>
    %c0_152 = arith.constant 0 : index
    %c0_153 = arith.constant 0 : index
    %134 = vector.load %arg9[%c0_152, %c0_153] : memref<1x8xf32, #tpu.memory_space<vmem>>, vector<1x8xf32>
    %135 = vector.broadcast %134 : vector<1x8xf32> to vector<16x8xf32>
    %136 = arith.addf %133, %135 : vector<16x8xf32>
    %c0_154 = arith.constant 0 : index
    %c0_155 = arith.constant 0 : index
    %137 = vector.load %arg8[%c0_154, %c0_155] : memref<8x8xf32, #tpu.memory_space<vmem>>, vector<8x8xf32>
    %cst_156 = arith.constant dense<0.000000e+00> : vector<16x8xf32>
    %138 = tpu.matmul %131, %137, %cst_156 {dimension_numbers = #tpu.dot_dimension_numbers<[1], [0], [0], [1], [0, 0, 1, 1], [], []>} : vector<16x8xf32>, vector<8x8xf32>, vector<16x8xf32> -> vector<16x8xf32>
    %c0_157 = arith.constant 0 : index
    %c0_158 = arith.constant 0 : index
    %139 = vector.load %arg9[%c0_157, %c0_158] : memref<1x8xf32, #tpu.memory_space<vmem>>, vector<1x8xf32>
    %140 = vector.broadcast %139 : vector<1x8xf32> to vector<16x8xf32>
    %141 = arith.addf %138, %140 : vector<16x8xf32>
    %cst_159 = arith.constant dense<0.000000e+00> : vector<8xf32>
    %142 = vector.multi_reduction <add>, %136, %cst_159 [0] : vector<16x8xf32> to vector<8xf32>
    %143 = vector.shape_cast %142 : vector<8xf32> to vector<1x8xf32>
    %cst_160 = arith.constant dense<0.000000e+00> : vector<8xf32>
    %144 = vector.multi_reduction <add>, %141, %cst_160 [0] : vector<16x8xf32> to vector<8xf32>
    %145 = vector.shape_cast %144 : vector<8xf32> to vector<1x8xf32>
    %146 = arith.addf %143, %145 : vector<1x8xf32>
    %147 = arith.mulf %136, %136 : vector<16x8xf32>
    %cst_161 = arith.constant dense<0.000000e+00> : vector<8xf32>
    %148 = vector.multi_reduction <add>, %147, %cst_161 [0] : vector<16x8xf32> to vector<8xf32>
    %149 = vector.shape_cast %148 : vector<8xf32> to vector<1x8xf32>
    %150 = arith.mulf %141, %141 : vector<16x8xf32>
    %cst_162 = arith.constant dense<0.000000e+00> : vector<8xf32>
    %151 = vector.multi_reduction <add>, %150, %cst_162 [0] : vector<16x8xf32> to vector<8xf32>
    %152 = vector.shape_cast %151 : vector<8xf32> to vector<1x8xf32>
    %153 = arith.addf %149, %152 : vector<1x8xf32>
    %cst_163 = arith.constant 3.200000e+01 : f32
    %154 = vector.broadcast %cst_163 : f32 to vector<1x8xf32>
    %155 = arith.divf %146, %154 : vector<1x8xf32>
    %cst_164 = arith.constant 3.200000e+01 : f32
    %156 = vector.broadcast %cst_164 : f32 to vector<1x8xf32>
    %157 = arith.divf %153, %156 : vector<1x8xf32>
    %158 = arith.mulf %155, %155 : vector<1x8xf32>
    %159 = arith.subf %157, %158 : vector<1x8xf32>
    %cst_165 = arith.constant 0.000000e+00 : f32
    %160 = vector.broadcast %cst_165 : f32 to vector<1x8xf32>
    %161 = arith.maximumf %159, %160 : vector<1x8xf32>
    %cst_166 = arith.constant 9.99999974E-6 : f32
    %162 = vector.broadcast %cst_166 : f32 to vector<1x8xf32>
    %163 = arith.addf %161, %162 : vector<1x8xf32>
    %164 = math.rsqrt %163 : vector<1x8xf32>
    %c0_167 = arith.constant 0 : index
    %c0_168 = arith.constant 0 : index
    %165 = vector.load %arg10[%c0_167, %c0_168] : memref<1x8xf32, #tpu.memory_space<vmem>>, vector<1x8xf32>
    %166 = arith.mulf %164, %165 : vector<1x8xf32>
    %167 = vector.broadcast %155 : vector<1x8xf32> to vector<16x8xf32>
    %168 = arith.subf %136, %167 : vector<16x8xf32>
    %169 = vector.broadcast %166 : vector<1x8xf32> to vector<16x8xf32>
    %170 = arith.mulf %168, %169 : vector<16x8xf32>
    %c0_169 = arith.constant 0 : index
    %c0_170 = arith.constant 0 : index
    %171 = vector.load %arg11[%c0_169, %c0_170] : memref<1x8xf32, #tpu.memory_space<vmem>>, vector<1x8xf32>
    %172 = vector.broadcast %171 : vector<1x8xf32> to vector<16x8xf32>
    %173 = arith.addf %170, %172 : vector<16x8xf32>
    %cst_171 = arith.constant 0.000000e+00 : f32
    %174 = vector.broadcast %cst_171 : f32 to vector<16x8xf32>
    %175 = arith.maximumf %173, %174 : vector<16x8xf32>
    %176 = vector.broadcast %155 : vector<1x8xf32> to vector<16x8xf32>
    %177 = arith.subf %141, %176 : vector<16x8xf32>
    %178 = vector.broadcast %166 : vector<1x8xf32> to vector<16x8xf32>
    %179 = arith.mulf %177, %178 : vector<16x8xf32>
    %c0_172 = arith.constant 0 : index
    %c0_173 = arith.constant 0 : index
    %180 = vector.load %arg11[%c0_172, %c0_173] : memref<1x8xf32, #tpu.memory_space<vmem>>, vector<1x8xf32>
    %181 = vector.broadcast %180 : vector<1x8xf32> to vector<16x8xf32>
    %182 = arith.addf %179, %181 : vector<16x8xf32>
    %cst_174 = arith.constant 0.000000e+00 : f32
    %183 = vector.broadcast %cst_174 : f32 to vector<16x8xf32>
    %184 = arith.maximumf %182, %183 : vector<16x8xf32>
    %c0_175 = arith.constant 0 : index
    %c0_176 = arith.constant 0 : index
    %185 = vector.load %arg12[%c0_175, %c0_176] : memref<8x8xf32, #tpu.memory_space<vmem>>, vector<8x8xf32>
    %cst_177 = arith.constant dense<0.000000e+00> : vector<16x8xf32>
    %186 = tpu.matmul %175, %185, %cst_177 {dimension_numbers = #tpu.dot_dimension_numbers<[1], [0], [0], [1], [0, 0, 1, 1], [], []>} : vector<16x8xf32>, vector<8x8xf32>, vector<16x8xf32> -> vector<16x8xf32>
    %c0_178 = arith.constant 0 : index
    %c0_179 = arith.constant 0 : index
    %187 = vector.load %arg13[%c0_178, %c0_179] : memref<1x8xf32, #tpu.memory_space<vmem>>, vector<1x8xf32>
    %188 = vector.broadcast %187 : vector<1x8xf32> to vector<16x8xf32>
    %189 = arith.addf %186, %188 : vector<16x8xf32>
    %190 = arith.negf %189 : vector<16x8xf32>
    %191 = math.exp %190 : vector<16x8xf32>
    %cst_180 = arith.constant 1.000000e+00 : f32
    %192 = vector.broadcast %cst_180 : f32 to vector<16x8xf32>
    %193 = arith.addf %192, %191 : vector<16x8xf32>
    %194 = arith.divf %192, %193 : vector<16x8xf32>
    %c0_181 = arith.constant 0 : index
    %c0_182 = arith.constant 0 : index
    %195 = vector.load %arg14[%c0_181, %c0_182] : memref<8x8xf32, #tpu.memory_space<vmem>>, vector<8x8xf32>
    %cst_183 = arith.constant dense<0.000000e+00> : vector<16x8xf32>
    %196 = tpu.matmul %184, %195, %cst_183 {dimension_numbers = #tpu.dot_dimension_numbers<[1], [0], [0], [1], [0, 0, 1, 1], [], []>} : vector<16x8xf32>, vector<8x8xf32>, vector<16x8xf32> -> vector<16x8xf32>
    %c0_184 = arith.constant 0 : index
    %c0_185 = arith.constant 0 : index
    %197 = vector.load %arg15[%c0_184, %c0_185] : memref<1x8xf32, #tpu.memory_space<vmem>>, vector<1x8xf32>
    %198 = vector.broadcast %197 : vector<1x8xf32> to vector<16x8xf32>
    %199 = arith.addf %196, %198 : vector<16x8xf32>
    %200 = arith.negf %199 : vector<16x8xf32>
    %201 = math.exp %200 : vector<16x8xf32>
    %cst_186 = arith.constant 1.000000e+00 : f32
    %202 = vector.broadcast %cst_186 : f32 to vector<16x8xf32>
    %203 = arith.addf %202, %201 : vector<16x8xf32>
    %204 = arith.divf %202, %203 : vector<16x8xf32>
    %205 = vector.shape_cast %194 : vector<16x8xf32> to vector<2x8x1x8xf32>
    %206 = vector.broadcast %205 : vector<2x8x1x8xf32> to vector<2x8x8x8xf32>
    %207 = arith.mulf %123, %206 : vector<2x8x8x8xf32>
    %208 = vector.shape_cast %204 : vector<16x8xf32> to vector<2x1x8x8xf32>
    %209 = vector.broadcast %208 : vector<2x1x8x8xf32> to vector<2x8x8x8xf32>
    %210 = arith.mulf %207, %209 : vector<2x8x8x8xf32>
    %211 = vector.shape_cast %210 : vector<2x8x8x8xf32> to vector<2x64x8xf32>
    %212 = vector.extract_strided_slice %211 {offsets = [0, 0, 0], sizes = [1, 64, 8], strides = [1, 1, 1]} : vector<2x64x8xf32> to vector<1x64x8xf32>
    %213 = vector.shape_cast %212 : vector<1x64x8xf32> to vector<64x8xf32>
    %214 = tpu.transpose %213, [1, 0] : vector<64x8xf32> -> vector<8x64xf32>
    %c0_187 = arith.constant 0 : index
    %c0_188 = arith.constant 0 : index
    %c0_189 = arith.constant 0 : index
    %215 = vector.load %arg16[%c0_187, %c0_188, %c0_189] : memref<2x8x64xf32, #tpu.memory_space<vmem>>, vector<1x8x64xf32>
    %216 = vector.shape_cast %215 : vector<1x8x64xf32> to vector<8x64xf32>
    %217 = vector.shape_cast %214 : vector<8x64xf32> to vector<1x8x64xf32>
    tpu.vector_store %arg16[%c0_187, %c0_188, %c0_189], %217 {strides = array<i32>} : memref<2x8x64xf32, #tpu.memory_space<vmem>>, vector<1x8x64xf32>,
    %218 = vector.extract_strided_slice %211 {offsets = [1, 0, 0], sizes = [1, 64, 8], strides = [1, 1, 1]} : vector<2x64x8xf32> to vector<1x64x8xf32>
    %219 = vector.shape_cast %218 : vector<1x64x8xf32> to vector<64x8xf32>
    %220 = tpu.transpose %219, [1, 0] : vector<64x8xf32> -> vector<8x64xf32>
    %c1_190 = arith.constant 1 : index
    %c0_191 = arith.constant 0 : index
    %c0_192 = arith.constant 0 : index
    %221 = vector.load %arg16[%c1_190, %c0_191, %c0_192] : memref<2x8x64xf32, #tpu.memory_space<vmem>>, vector<1x8x64xf32>
    %222 = vector.shape_cast %221 : vector<1x8x64xf32> to vector<8x64xf32>
    %223 = vector.shape_cast %220 : vector<8x64xf32> to vector<1x8x64xf32>
    tpu.vector_store %arg16[%c1_190, %c0_191, %c0_192], %223 {strides = array<i32>} : memref<2x8x64xf32, #tpu.memory_space<vmem>>, vector<1x8x64xf32>,
    return
  }
  func.func @transform_0(%arg0: i32) -> (i32, i32, i32, i32) {
    %c0_i32 = arith.constant 0 : i32
    %c0_i32_0 = arith.constant 0 : i32
    %c0_i32_1 = arith.constant 0 : i32
    %c0_i32_2 = arith.constant 0 : i32
    %c0_i32_3 = arith.constant 0 : i32
    return %c0_i32, %c0_i32_0, %c0_i32_1, %c0_i32_2 : i32, i32, i32, i32
  }
  func.func @transform_1(%arg0: i32) -> (i32, i32) {
    %c0_i32 = arith.constant 0 : i32
    %c0_i32_0 = arith.constant 0 : i32
    %c0_i32_1 = arith.constant 0 : i32
    return %c0_i32, %c0_i32_0 : i32, i32
  }
  func.func @transform_2(%arg0: i32) -> (i32, i32) {
    %c0_i32 = arith.constant 0 : i32
    %c0_i32_0 = arith.constant 0 : i32
    %c0_i32_1 = arith.constant 0 : i32
    return %c0_i32, %c0_i32_0 : i32, i32
  }
  func.func @transform_3(%arg0: i32) -> (i32, i32) {
    %c0_i32 = arith.constant 0 : i32
    %c0_i32_0 = arith.constant 0 : i32
    %c0_i32_1 = arith.constant 0 : i32
    return %c0_i32, %c0_i32_0 : i32, i32
  }
  func.func @transform_4(%arg0: i32) -> (i32, i32) {
    %c0_i32 = arith.constant 0 : i32
    %c0_i32_0 = arith.constant 0 : i32
    %c0_i32_1 = arith.constant 0 : i32
    return %c0_i32, %c0_i32_0 : i32, i32
  }
  func.func @transform_5(%arg0: i32) -> (i32, i32) {
    %c0_i32 = arith.constant 0 : i32
    %c0_i32_0 = arith.constant 0 : i32
    %c0_i32_1 = arith.constant 0 : i32
    return %c0_i32, %c0_i32_0 : i32, i32
  }
  func.func @transform_6(%arg0: i32) -> (i32, i32) {
    %c0_i32 = arith.constant 0 : i32
    %c0_i32_0 = arith.constant 0 : i32
    %c0_i32_1 = arith.constant 0 : i32
    return %c0_i32, %c0_i32_0 : i32, i32
  }
  func.func @transform_7(%arg0: i32) -> (i32, i32) {
    %c0_i32 = arith.constant 0 : i32
    %c0_i32_0 = arith.constant 0 : i32
    %c0_i32_1 = arith.constant 0 : i32
    return %c0_i32, %c0_i32_0 : i32, i32
  }
  func.func @transform_8(%arg0: i32) -> (i32, i32) {
    %c0_i32 = arith.constant 0 : i32
    %c0_i32_0 = arith.constant 0 : i32
    %c0_i32_1 = arith.constant 0 : i32
    return %c0_i32, %c0_i32_0 : i32, i32
  }
  func.func @transform_9(%arg0: i32) -> (i32, i32) {
    %c0_i32 = arith.constant 0 : i32
    %c0_i32_0 = arith.constant 0 : i32
    %c0_i32_1 = arith.constant 0 : i32
    return %c0_i32, %c0_i32_0 : i32, i32
  }
  func.func @transform_10(%arg0: i32) -> (i32, i32) {
    %c0_i32 = arith.constant 0 : i32
    %c0_i32_0 = arith.constant 0 : i32
    %c0_i32_1 = arith.constant 0 : i32
    return %c0_i32, %c0_i32_0 : i32, i32
  }
  func.func @transform_11(%arg0: i32) -> (i32, i32) {
    %c0_i32 = arith.constant 0 : i32
    %c0_i32_0 = arith.constant 0 : i32
    %c0_i32_1 = arith.constant 0 : i32
    return %c0_i32, %c0_i32_0 : i32, i32
  }
  func.func @transform_12(%arg0: i32) -> (i32, i32) {
    %c0_i32 = arith.constant 0 : i32
    %c0_i32_0 = arith.constant 0 : i32
    %c0_i32_1 = arith.constant 0 : i32
    return %c0_i32, %c0_i32_0 : i32, i32
  }
  func.func @transform_13(%arg0: i32) -> (i32, i32) {
    %c0_i32 = arith.constant 0 : i32
    %c0_i32_0 = arith.constant 0 : i32
    %c0_i32_1 = arith.constant 0 : i32
    return %c0_i32, %c0_i32_0 : i32, i32
  }
  func.func @transform_14(%arg0: i32) -> (i32, i32) {
    %c0_i32 = arith.constant 0 : i32
    %c0_i32_0 = arith.constant 0 : i32
    %c0_i32_1 = arith.constant 0 : i32
    return %c0_i32, %c0_i32_0 : i32, i32
  }
  func.func @transform_15(%arg0: i32) -> (i32, i32, i32) {
    %c0_i32 = arith.constant 0 : i32
    %c0_i32_0 = arith.constant 0 : i32
    %c0_i32_1 = arith.constant 0 : i32
    %c0_i32_2 = arith.constant 0 : i32
    return %c0_i32, %c0_i32_0, %c0_i32_1 : i32, i32, i32
  }
}

</mosaic_0001>

<bundles_post_ra>
// kernel: down_forward.1
= control target key start
LH: loop header
LB: loop body
LE: loop exit
PB: predicated region body
PF: predicated region fallthrough
CT: control target
= control target key end

     0   :  { %vm1522_vm0 = vcmask 25600   ;;  %vm3315_vm1 = vcmask 31744   ;;  %vm3709_vm2 = vcmask 24576   ;;  %v11787_v0 = vmov 0.0   ;;  %s7702_s16 = smov 4   ;;  %s7703_s17 = smov 8   ;;  %s11771_s0 = inlined_call_operand.vmem [shape: f32[2,16,16,4], index: 0, kind: input, shape index: {}]   ;;  %s11772_s1 = inlined_call_operand.vmem [shape: f32[36,8], index: 1, kind: input, shape index: {}]   ;;  %s11773_s2 = inlined_call_operand.vmem [shape: f32[1,8], index: 2, kind: input, shape index: {}]   ;;  %s11774_s3 = inlined_call_operand.vmem [shape: f32[1,8], index: 3, kind: input, shape index: {}]   ;;  %s11775_s4 = inlined_call_operand.vmem [shape: f32[72,8], index: 4, kind: input, shape index: {}]   ;;  %s11776_s5 = inlined_call_operand.vmem [shape: f32[1,8], index: 5, kind: input, shape index: {}]   ;;  %s11777_s6 = inlined_call_operand.vmem [shape: f32[1,8], index: 6, kind: input, shape index: {}]   ;;  %s11778_s7 = inlined_call_operand.vmem [shape: f32[8,8], index: 7, kind: input, shape index: {}]   ;;  %s11779_s13 = inlined_call_operand.vmem [shape: f32[8,8], index: 13, kind: input, shape index: {}]   ;;  %s11780_s11 = inlined_call_operand.vmem [shape: f32[8,8], index: 11, kind: input, shape index: {}]   ;;  %s11781_s8 = inlined_call_operand.vmem [shape: f32[1,8], index: 8, kind: input, shape index: {}]   ;;  %s11782_s9 = inlined_call_operand.vmem [shape: f32[1,8], index: 9, kind: input, shape index: {}]   ;;  %s11783_s10 = inlined_call_operand.vmem [shape: f32[1,8], index: 10, kind: input, shape index: {}]   ;;  %s11784_s12 = inlined_call_operand.vmem [shape: f32[1,8], index: 12, kind: input, shape index: {}]   ;;  %s11785_s14 = inlined_call_operand.vmem [shape: f32[1,8], index: 14, kind: input, shape index: {}]   ;;  %s11786_s15 = inlined_call_operand.vmem [shape: f32[2,8,64], index: 15, kind: output, shape index: {}]  }
   0x1   :  { %3700 = vst.msk [vmem:[#allocation2] sm:$0xff] %vm3315_vm1, %v11787_v0  ;;  %3702 = vst.msk [vmem:[#allocation2 + $0xa0] sm:$0xff] %vm3315_vm1, %v11787_v0  ;;  %v50_v1 = vld [vmem:[%s11771_s0] sm:$0xff]  ;;  %v51_v2 = vld [vmem:[%s11771_s0 + $0x8] sm:$0xff]  ;;  %v182_v4 = vlaneseq  ;;  %v7701_v6 = vmov 1983009808  }
   0x2   :  { %3701 = vst.msk [vmem:[#allocation2 + $0x8] sm:$0x3] %vm1522_vm0, %v11787_v0  ;;  %3703 = vst.msk [vmem:[#allocation2 + $0xa8] sm:$0x3] %vm1522_vm0, %v11787_v0  ;;  %v52_v3 = vld [vmem:[%s11771_s0 + $0x10] sm:$0xff]  ;;  %v53_v5 = vld [vmem:[%s11771_s0 + $0x18] sm:$0xff]  ;;  %v180_v7 = vunpack.c.l.s4 %v7701_v6  ;;  %v178_v13 = vcombine.high %v50_v1, %v50_v1  ;;  %v195_v15 = vcombine.high %v51_v2, %v51_v2 }
   0x3   :  { %3705 = vst.msk [vmem:[#allocation2 + $0x90] sm:$0xff] %vm3315_vm1, %v11787_v0  ;;  %3707 = vst.msk [vmem:[#allocation2 + $0x130] sm:$0xff] %vm3315_vm1, %v11787_v0  ;;  %v7906_v8 = vld [vmem:[%s11771_s0 + $0x20] sm:$0xff]  ;;  %v7911_v9 = vld [vmem:[%s11771_s0 + $0x28] sm:$0xff]  ;;  %v7913_v10 = vshrl.u32 %v182_v4, 7  ;;  %v212_v16 = vcombine.high %v52_v3, %v52_v3  ;;  %v229_v20 = vcombine.high %v53_v5, %v53_v5  ;;  %vm3878_vm3 = vcmask 1041409  }
   0x4   :  { %3706 = vst.msk [vmem:[#allocation2 + $0x98] sm:$0x3] %vm1522_vm0, %v11787_v0  ;;  %3708 = vst.msk [vmem:[#allocation2 + $0x138] sm:$0x3] %vm1522_vm0, %v11787_v0  ;;  %v7918_v11 = vld [vmem:[%s11771_s0 + $0x30] sm:$0xff]  ;;  %v7923_v12 = vld [vmem:[%s11771_s0 + $0x38] sm:$0xff]  ;;  %v181_v14 = vunpack.c.0.s8 %v180_v7  ;;  %v246_v21 = vcombine.high %v7906_v8, %v7906_v8  ;;  %v263_v22 = vcombine.high %v7911_v9, %v7911_v9 }
   0x5   :  { %3711 = vst.msk [vmem:[#allocation2 + $0x10] sm:$0x1] %vm3709_vm2, %v11787_v0  ;;  %3712 = vst.msk [vmem:[#allocation2 + $0x20] sm:$0x1] %vm3709_vm2, %v11787_v0  ;;  %v7928_v17 = vld [vmem:[%s11771_s0 + $0x40] sm:$0xff]  ;;  %v7933_v18 = vld [vmem:[%s11771_s0 + $0x48] sm:$0xff]  ;;  %v280_v23 = vcombine.high %v7918_v11, %v7918_v11  ;;  %v297_v28 = vcombine.high %v7923_v12, %v7923_v12 }
   0x6   :  { %3713 = vst.msk [vmem:[#allocation2 + $0x30] sm:$0x1] %vm3709_vm2, %v11787_v0  ;;  %3714 = vst.msk [vmem:[#allocation2 + $0x40] sm:$0x1] %vm3709_vm2, %v11787_v0  ;;  %v7938_v19 = vld [vmem:[%s11771_s0 + $0x50] sm:$0xff]  ;;  %v7949_v24 = vld [vmem:[%s11771_s0 + $0x58] sm:$0xff]  ;;  %v7962_v27 = vsub.s32 %v181_v14, %v7913_v10  ;;  %v314_v29 = vcombine.high %v7928_v17, %v7928_v17  ;;  %v331_v30 = vcombine.high %v7933_v18, %v7933_v18 }
   0x7   :  { %3715 = vst.msk [vmem:[#allocation2 + $0x50] sm:$0x1] %vm3709_vm2, %v11787_v0  ;;  %3716 = vst.msk [vmem:[#allocation2 + $0x60] sm:$0x1] %vm3709_vm2, %v11787_v0  ;;  %v7954_v25 = vld [vmem:[%s11771_s0 + $0x60] sm:$0xff]  ;;  %v7959_v26 = vld [vmem:[%s11771_s0 + $0x68] sm:$0xff]  ;;  %v348_v31 = vcombine.high %v7938_v19, %v7938_v19  ;;  %v365_v32 = vcombine.high %v7949_v24, %v7949_v24 }
   0x8   :  { %3717 = vst.msk [vmem:[#allocation2 + $0x70] sm:$0x1] %vm3709_vm2, %v11787_v0  ;;  %3718 = vst.msk [vmem:[#allocation2 + $0x80] sm:$0x1] %vm3709_vm2, %v11787_v0  ;;  %v185_v36 = vrot.slane %v50_v1, %v7962_v27  ;;  %v192_v37 = vrot.slane %v178_v13, %v7962_v27  ;;  %v202_v38 = vrot.slane %v51_v2, %v7962_v27  ;;  %vm3880_vm4 = vcmask 1042434   ;;  %s7704_s18 = smov 12  }
   0x9   :  { %3721 = vst.msk [vmem:[#allocation2 + $0xb0] sm:$0x1] %vm3709_vm2, %v11787_v0  ;;  %3722 = vst.msk [vmem:[#allocation2 + $0xc0] sm:$0x1] %vm3709_vm2, %v11787_v0  ;;  %v4053_v35 = vld [vmem:[#allocation2 + $0x1] sm:$0xff]  ;;  %v209_v39 = vrot.slane %v195_v15, %v7962_v27  ;;  %v7984_v41 = vrot.slane %v52_v3, %v7962_v27  ;;  %v7987_v42 = vrot.slane %v212_v16, %v7962_v27  ;;  %vm3882_vm5 = vcmask 1043459  }
   0xa   :  { %3723 = vst.msk [vmem:[#allocation2 + $0xd0] sm:$0x1] %vm3709_vm2, %v11787_v0  ;;  %3724 = vst.msk [vmem:[#allocation2 + $0xe0] sm:$0x1] %vm3709_vm2, %v11787_v0  ;;  %4198 = vrot.lane.b32.xlu0 %v4053_v35, %s7702_s16  ;;  %v7990_v43 = vrot.slane %v53_v5, %v7962_v27  ;;  %v7993_v44 = vrot.slane %v229_v20, %v7962_v27  ;;  %v193_v45 = vcombine.high %v185_v36, %v185_v36  ;;  %vm3884_vm6 = vcmask 1044484   ;;  %s7705_s19 = smov 16  }
   0xb   :  { %3725 = vst.msk [vmem:[#allocation2 + $0xf0] sm:$0x1] %vm3709_vm2, %v11787_v0  ;;  %3726 = vst.msk [vmem:[#allocation2 + $0x100] sm:$0x1] %vm3709_vm2, %v11787_v0  ;;  %v194_v46 = vcombine.high %v192_v37, %v192_v37  ;;  %v210_v47 = vcombine.high %v202_v38, %v202_v38  ;;  %v211_v48 = vcombine.high %v209_v39, %v209_v39  ;;  %v1523_v53 = vsel %vm1522_vm0, %v185_v36, -inf  ;;  %s7706_s20 = smov 20  }
   0xc   :  { %3727 = vst.msk [vmem:[#allocation2 + $0x110] sm:$0x1] %vm3709_vm2, %v11787_v0  ;;  %3728 = vst.msk [vmem:[#allocation2 + $0x120] sm:$0x1] %vm3709_vm2, %v11787_v0  ;;  %v227_v49 = vcombine.high %v7984_v41, %v7984_v41  ;;  %v228_v50 = vcombine.high %v7987_v42, %v7987_v42  ;;  %v244_v51 = vcombine.high %v7990_v43, %v7990_v43  ;;  %v1530_v54 = vsel %vm1522_vm0, %v193_v45, -inf  ;;  %s7707_s21 = smov 24  }
   0xd   :  { %3731 = vst.msk [vmem:[#allocation2 + $0x19] sm:$0x1] %vm3709_vm2, %v11787_v0  ;;  %3732 = vst.msk [vmem:[#allocation2 + $0x29] sm:$0x1] %vm3709_vm2, %v11787_v0  ;;  %v245_v52 = vcombine.high %v7993_v44, %v7993_v44  ;;  %v1537_v55 = vsel %vm1522_vm0, %v192_v37, -inf  ;;  %v1544_v56 = vsel %vm1522_vm0, %v194_v46, -inf }
   0xe   :  { %3733 = vst.msk [vmem:[#allocation2 + $0x39] sm:$0x1] %vm3709_vm2, %v11787_v0  ;;  %3734 = vst.msk [vmem:[#allocation2 + $0x49] sm:$0x1] %vm3709_vm2, %v11787_v0  ;;  %v1524_v57 = vrot.slane %v1523_v53, 4  ;;  %v1531_v58 = vrot.slane %v1530_v54, 4 }
   0xf   :  { %3735 = vst.msk [vmem:[#allocation2 + $0x59] sm:$0x1] %vm3709_vm2, %v11787_v0  ;;  %3736 = vst.msk [vmem:[#allocation2 + $0x69] sm:$0x1] %vm3709_vm2, %v11787_v0  ;;  %v1538_v59 = vrot.slane %v1537_v55, 4  ;;  %v1545_v60 = vrot.slane %v1544_v56, 4 }
  0x10   :  { %3737 = vst.msk [vmem:[#allocation2 + $0x79] sm:$0x1] %vm3709_vm2, %v11787_v0  ;;  %3738 = vst.msk [vmem:[#allocation2 + $0x89] sm:$0x1] %vm3709_vm2, %v11787_v0  ;;  %v1551_v61 = vsel %vm1522_vm0, %v202_v38, -inf  ;;  %v1558_v62 = vsel %vm1522_vm0, %v210_v47, -inf  ;;  %v1525_v2 = vmax.f32 %v1523_v53, %v1524_v57  ;;  %v1532_v3 = vmax.f32 %v1530_v54, %v1531_v58 }
  0x11   :  { %3741 = vst.msk [vmem:[#allocation2 + $0xb9] sm:$0x1] %vm3709_vm2, %v11787_v0  ;;  %3742 = vst.msk [vmem:[#allocation2 + $0xc9] sm:$0x1] %vm3709_vm2, %v11787_v0  ;;  %v1565_v63 = vsel %vm1522_vm0, %v209_v39, -inf  ;;  %v1572_v1 = vsel %vm1522_vm0, %v211_v48, -inf  ;;  %v1539_v4 = vmax.f32 %v1537_v55, %v1538_v59  ;;  %v1546_v5 = vmax.f32 %v1544_v56, %v1545_v60 }
  0x12   :  { %3743 = vst.msk [vmem:[#allocation2 + $0xd9] sm:$0x1] %vm3709_vm2, %v11787_v0  ;;  %3744 = vst.msk [vmem:[#allocation2 + $0xe9] sm:$0x1] %vm3709_vm2, %v11787_v0  ;;  %v1552_v6 = vrot.slane %v1551_v61, 4  ;;  %v1559_v7 = vrot.slane %v1558_v62, 4 }
  0x13   :  { %3745 = vst.msk [vmem:[#allocation2 + $0xf9] sm:$0x1] %vm3709_vm2, %v11787_v0  ;;  %3746 = vst.msk [vmem:[#allocation2 + $0x109] sm:$0x1] %vm3709_vm2, %v11787_v0  ;;  %v1566_v13 = vrot.slane %v1565_v63, 4  ;;  %v1573_v14 = vrot.slane %v1572_v1, 4 }
  0x14   :  { %3747 = vst.msk [vmem:[#allocation2 + $0x119] sm:$0x1] %vm3709_vm2, %v11787_v0  ;;  %3748 = vst.msk [vmem:[#allocation2 + $0x129] sm:$0x1] %vm3709_vm2, %v11787_v0  ;;  %v1526_v15 = vrot.slane %v1525_v2, 2  ;;  %v1533_v16 = vrot.slane %v1532_v3, 2  ;;  %v1553_v36 = vmax.f32 %v1551_v61, %v1552_v6  ;;  %v1560_v37 = vmax.f32 %v1558_v62, %v1559_v7 }
  0x15   :  { %3730 = vst.msk [vmem:[#allocation2 + $0x9] sm:$0x1] %vm3709_vm2, %v11787_v0  ;;  %3710 = vst.msk [vmem:[#allocation2] sm:$0x1] %vm3709_vm2, %v11787_v0  ;;  %v1540_v20 = vrot.slane %v1539_v4, 2  ;;  %v1547_v35 = vrot.slane %v1546_v5, 2  ;;  %v1567_v38 = vmax.f32 %v1565_v63, %v1566_v13 }
  0x16   :  { %3719 = vst.msk [vmem:[#allocation2 + $0x90] sm:$0x1] %vm3709_vm2, %v11787_v0  ;;  %3720 = vst.msk [vmem:[#allocation2 + $0xa0] sm:$0x1] %vm3709_vm2, %v11787_v0  ;;  %v1527_v45 = vmax.f32 %v1525_v2, %v1526_v15  ;;  %v1534_v39 = vmax.f32 %v1532_v3, %v1533_v16  ;;  %v1554_v48 = vrot.slane %v1553_v36, 2  ;;  %v1561_v53 = vrot.slane %v1560_v37, 2 }
  0x17   :  { %3729 = vst.msk [vmem:[#allocation2 + $0x130] sm:$0x1] %vm3709_vm2, %v11787_v0  ;;  %3739 = vst.msk [vmem:[#allocation2 + $0x99] sm:$0x1] %vm3709_vm2, %v11787_v0  ;;  %v1541_v46 = vmax.f32 %v1539_v4, %v1540_v20  ;;  %v1548_v47 = vmax.f32 %v1546_v5, %v1547_v35  ;;  %v1568_v54 = vrot.slane %v1567_v38, 2  ;;  %v1579_v6 = vsel %vm1522_vm0, %v7984_v41, -inf }
  0x18   :  { %3740 = vst.msk [vmem:[#allocation2 + $0xa9] sm:$0x1] %vm3709_vm2, %v11787_v0  ;;  %3749 = vst.msk [vmem:[#allocation2 + $0x139] sm:$0x1] %vm3709_vm2, %v11787_v0  ;;  %v1528_v56 = vrot.slane %v1527_v45, 1  ;;  %v1535_v57 = vrot.slane %v1534_v39, 1  ;;  %v1555_v60 = vmax.f32 %v1553_v36, %v1554_v48  ;;  %v1562_v0 = vmax.f32 %v1560_v37, %v1561_v53 }
  0x19   :  { %11805 = vst [vmem:[#allocation4_spill] sm:$0xff] %v7913_v10  ;;  %v1542_v58 = vrot.slane %v1541_v46, 1  ;;  %v1549_v59 = vrot.slane %v1548_v47, 1  ;;  %v1569_v34 = vmax.f32 %v1567_v38, %v1568_v54  ;;  %v1586_v7 = vsel %vm1522_vm0, %v227_v49, -inf  ;;  %s7708_s30 = smov 28   ;;  %s7709_s22 = smov 32  }
  0x1a   :  { %v8012_v61 = vmax.f32 %v1527_v45, %v1528_v56  ;;  %v8014_v62 = vmax.f32 %v1534_v39, %v1535_v57  ;;  %v1556_v2 = vrot.slane %v1555_v60, 1  ;;  %v1563_v3 = vrot.slane %v1562_v0, 1 }
  0x1b   :  { %v8016_v63 = vmax.f32 %v1541_v46, %v1542_v58  ;;  %v1570_v4 = vrot.slane %v1569_v34, 1  ;;  %v1593_v13 = vsel %vm1522_vm0, %v7987_v42, -inf  ;;  %v1580_v36 = vrot.slane %v1579_v6, 4 }
  0x1c   :  { %v4069_v40 = vld [vmem:[#allocation2 + $0x2] sm:$0xff]  ;;  %v8026_v15 = vmax.f32 %v1555_v60, %v1556_v2  ;;  %v8028_v16 = vmax.f32 %v1562_v0, %v1563_v3  ;;  %v1587_v37 = vrot.slane %v1586_v7, 4  ;;  %v1594_v38 = vrot.slane %v1593_v13, 4 }
  0x1d   :  { %4262 = vrot.lane.b32.xlu1 %v4069_v40, %s7703_s17  ;;  %v1574_v40 = vmax.f32 %v1572_v1, %v1573_v14  ;;  %v8018_v1 = vmax.f32 %v1548_v47, %v1549_v59  ;;  %v1600_v14 = vsel %vm1522_vm0, %v228_v50, -inf  ;;  %v8030_v20 = vmax.f32 %v1569_v34, %v1570_v4 }
  0x1e   :  { %v1607_v41 = vsel %vm1522_vm0, %v7990_v43, -inf  ;;  %v1614_v42 = vsel %vm1522_vm0, %v244_v51, -inf  ;;  %v1621_v0 = vsel %vm1522_vm0, %v7993_v44, -inf  ;;  %v1581_v34 = vmax.f32 %v1579_v6, %v1580_v36 }
  0x1f   :  { %v1575_v55 = vrot.slane %v1574_v40, 2  ;;  %v1588_v49 = vmax.f32 %v1586_v7, %v1587_v37  ;;  %v1595_v50 = vmax.f32 %v1593_v13, %v1594_v38  ;;  %v1608_v39 = vrot.slane %v1607_v41, 4 }
  0x20   :  { %v1615_v46 = vrot.slane %v1614_v42, 4  ;;  %v1622_v47 = vrot.slane %v1621_v0, 4  ;;  %v1582_v53 = vrot.slane %v1581_v34, 2  ;;  %vm3886_vm7 = vcmask 1045509  }
  0x21   :  { %v1576_v33 = vmax.f32 %v1574_v40, %v1575_v55  ;;  %v1601_v40 = vrot.slane %v1600_v14, 4  ;;  %v1589_v43 = vrot.slane %v1588_v49, 2  ;;  %v1596_v54 = vrot.slane %v1595_v50, 2 }
  0x22   :  { %v1609_v55 = vmax.f32 %v1607_v41, %v1608_v39  ;;  %v1616_v56 = vmax.f32 %v1614_v42, %v1615_v46  ;;  %v1623_v57 = vmax.f32 %v1621_v0, %v1622_v47  ;;  %v1583_v59 = vmax.f32 %v1581_v34, %v1582_v53 }
  0x23   :  { %v1577_v5 = vrot.slane %v1576_v33, 1  ;;  %v1602_v45 = vmax.f32 %v1600_v14, %v1601_v40  ;;  %v1590_v44 = vmax.f32 %v1588_v49, %v1589_v43  ;;  %v1597_v60 = vmax.f32 %v1595_v50, %v1596_v54 }
  0x24   :  { %v1610_v2 = vrot.slane %v1609_v55, 2  ;;  %v1617_v3 = vrot.slane %v1616_v56, 2  ;;  %v1624_v4 = vrot.slane %v1623_v57, 2  ;;  %v1584_v6 = vrot.slane %v1583_v59, 1 }
  0x25   :  { %v8032_v35 = vmax.f32 %v1576_v33, %v1577_v5  ;;  %v1628_v33 = vsel %vm1522_vm0, %v245_v52, -inf  ;;  %v1603_v51 = vrot.slane %v1602_v45, 2  ;;  %v1591_v7 = vrot.slane %v1590_v44, 1 }
  0x26   :  { %v1629_v48 = vrot.slane %v1628_v33, 4  ;;  %v1598_v13 = vrot.slane %v1597_v60, 1  ;;  %v1611_v36 = vmax.f32 %v1609_v55, %v1610_v2  ;;  %v1618_v37 = vmax.f32 %v1616_v56, %v1617_v3 }
  0x27   :  { %v1604_v52 = vmax.f32 %v1602_v45, %v1603_v51  ;;  %v1625_v38 = vmax.f32 %v1623_v57, %v1624_v4  ;;  %v1585_v41 = vmax.f32 %v1583_v59, %v1584_v6  ;;  %v1592_v42 = vmax.f32 %v1590_v44, %v1591_v7 }
  0x28   :  { %v1630_v58 = vmax.f32 %v1628_v33, %v1629_v48  ;;  %v1599_v0 = vmax.f32 %v1597_v60, %v1598_v13  ;;  %v1612_v34 = vrot.slane %v1611_v36, 1  ;;  %v1619_v49 = vrot.slane %v1618_v37, 1 }
  0x29   :  { %v1605_v14 = vrot.slane %v1604_v52, 1  ;;  %v1626_v50 = vrot.slane %v1625_v38, 1  ;;  %v3316_v39 = vsel %vm3315_vm1, %v8012_v61, -inf  ;;  %v3317_v46 = vsel %vm3315_vm1, %v1585_v41, -inf }
  0x2a   :  { %v1631_v5 = vrot.slane %v1630_v58, 2  ;;  %v3319_v47 = vsel %vm3315_vm1, %v8014_v62, -inf  ;;  %v3320_v48 = vsel %vm3315_vm1, %v1592_v42, -inf  ;;  %vm3888_vm8 = vcmask 1046534  }
  0x2b   :  { %v1606_v33 = vmax.f32 %v1604_v52, %v1605_v14  ;;  %v1613_v53 = vmax.f32 %v1611_v36, %v1612_v34  ;;  %v1620_v43 = vmax.f32 %v1618_v37, %v1619_v49  ;;  %v1627_v54 = vmax.f32 %v1625_v38, %v1626_v50 }
  0x2c   :  { %v1632_v40 = vmax.f32 %v1630_v58, %v1631_v5  ;;  %vm11796_vm9 = vcmask 1047559   ;;  %v3318_v55 = vmax.f32 %v3316_v39, %v3317_v46  ;;  %v3321_v56 = vmax.f32 %v3319_v47, %v3320_v48 }
  0x2d   :  { %v3322_v57 = vsel %vm3315_vm1, %v8016_v63, -inf  ;;  %v3323_v61 = vsel %vm3315_vm1, %v1599_v0, -inf  ;;  %v3325_v59 = vsel %vm3315_vm1, %v8018_v1, -inf  ;;  %v3326_v62 = vsel %vm3315_vm1, %v1606_v33, -inf }
  0x2e   :  { %v1633_v45 = vrot.slane %v1632_v40, 1  ;;  %v3324_v58 = vmax.f32 %v3322_v57, %v3323_v61  ;;  %v3328_v44 = vsel %vm3315_vm1, %v8026_v15, -inf  ;;  %v3327_v60 = vmax.f32 %v3325_v59, %v3326_v62 }
  0x2f   :  { %v3329_v52 = vsel %vm3315_vm1, %v1613_v53, -inf  ;;  %v3331_v2 = vsel %vm3315_vm1, %v8028_v16, -inf  ;;  %v3332_v3 = vsel %vm3315_vm1, %v1620_v43, -inf  ;;  %v3334_v5 = vsel %vm3315_vm1, %v8030_v20, -inf }
  0x30   :  { %v1634_v51 = vmax.f32 %v1632_v40, %v1633_v45  ;;  %v3330_v63 = vmax.f32 %v3328_v44, %v3329_v52  ;;  %v3333_v4 = vmax.f32 %v3331_v2, %v3332_v3  ;;  %v3335_v1 = vsel %vm3315_vm1, %v1627_v54, -inf }
  0x31   :  { %v3336_v6 = vmax.f32 %v3334_v5, %v3335_v1  ;;  %v3337_v7 = vsel %vm3315_vm1, %v8032_v35, -inf  ;;  %v3879_v13 = vsel %vm3878_vm3, %v3321_v56, %v3318_v55  ;;  %v253_v36 = vrot.slane %v7906_v8, %v7962_v27 }
  0x32   :  { %v3338_v15 = vsel %vm3315_vm1, %v1634_v51, -inf  ;;  %v3881_v16 = vsel %vm3880_vm4, %v3324_v58, %v3879_v13  ;;  %v260_v20 = vrot.slane %v246_v21, %v7962_v27  ;;  %v270_v35 = vrot.slane %v7911_v9, %v7962_v27 }
  0x33   :  { %v3339_v14 = vmax.f32 %v3337_v7, %v3338_v15  ;;  %v3883_v37 = vsel %vm3882_vm5, %v3327_v60, %v3881_v16  ;;  %v277_v38 = vrot.slane %v263_v22, %v7962_v27  ;;  %v8087_v40 = vrot.slane %v7918_v11, %v7962_v27 }
  0x34   :  { %v3885_v41 = vsel %vm3884_vm6, %v3330_v63, %v3883_v37  ;;  %v261_v42 = vcombine.high %v253_v36, %v253_v36  ;;  %v262_v0 = vcombine.high %v260_v20, %v260_v20  ;;  %v8094_v8 = vrot.slane %v280_v23, %v7962_v27 }
  0x35   :  { %v3887_v21 = vsel %vm3886_vm7, %v3333_v4, %v3885_v41  ;;  %v278_v33 = vcombine.high %v270_v35, %v270_v35  ;;  %v279_v34 = vcombine.high %v277_v38, %v277_v38  ;;  %v295_v9 = vcombine.high %v8087_v40, %v8087_v40 }
  0x36   :  { %v3889_v22 = vsel %vm3888_vm8, %v3336_v6, %v3887_v21  ;;  %v296_v49 = vcombine.high %v8094_v8, %v8094_v8  ;;  %v8104_v50 = vrot.slane %v7923_v12, %v7962_v27  ;;  %v8110_v11 = vrot.slane %v297_v28, %v7962_v27 }
  0x37   :  { %v3891_v23 = vsel %vm11796_vm9, %v3339_v14, %v3889_v22  ;;  %v1635_v45 = vsel %vm1522_vm0, %v253_v36, -inf  ;;  %v1642_v39 = vsel %vm1522_vm0, %v261_v42, -inf  ;;  %v1649_v46 = vsel %vm1522_vm0, %v260_v20, -inf }
  0x38   :  { %4014 = vst.msk [vmem:[#allocation2 + $0x11] sm:$0xff] %vm3315_vm1, %v3891_v23  ;;  %v312_v47 = vcombine.high %v8104_v50, %v8104_v50  ;;  %v313_v48 = vcombine.high %v8110_v11, %v8110_v11  ;;  %v1636_v53 = vrot.slane %v1635_v45, 4  ;;  %v1643_v12 = vrot.slane %v1642_v39, 4 }
  0x39   :  { %v1650_v28 = vrot.slane %v1649_v46, 4  ;;  %v1656_v43 = vsel %vm1522_vm0, %v262_v0, -inf  ;;  %v1663_v54 = vsel %vm1522_vm0, %v270_v35, -inf  ;;  %v1670_v51 = vsel %vm1522_vm0, %v278_v33, -inf }
  0x3a   :  { %v1637_v55 = vmax.f32 %v1635_v45, %v1636_v53  ;;  %v1644_v56 = vmax.f32 %v1642_v39, %v1643_v12  ;;  %v1657_v57 = vrot.slane %v1656_v43, 4  ;;  %v1664_v61 = vrot.slane %v1663_v54, 4 }
  0x3b   :  { %v1651_v58 = vmax.f32 %v1649_v46, %v1650_v28  ;;  %v1671_v59 = vrot.slane %v1670_v51, 4  ;;  %v1677_v62 = vsel %vm1522_vm0, %v277_v38, -inf  ;;  %v1684_v44 = vsel %vm1522_vm0, %v279_v34, -inf }
  0x3c   :  { %v1638_v60 = vrot.slane %v1637_v55, 2  ;;  %v1645_v52 = vrot.slane %v1644_v56, 2  ;;  %v1658_v2 = vmax.f32 %v1656_v43, %v1657_v57  ;;  %v1665_v3 = vmax.f32 %v1663_v54, %v1664_v61 }
  0x3d   :  { %v1652_v63 = vrot.slane %v1651_v58, 2  ;;  %v1672_v4 = vmax.f32 %v1670_v51, %v1671_v59  ;;  %v1678_v5 = vrot.slane %v1677_v62, 4  ;;  %v1685_v1 = vrot.slane %v1684_v44, 4 }
  0x3e   :  { %v1639_v6 = vmax.f32 %v1637_v55, %v1638_v60  ;;  %v1646_v7 = vmax.f32 %v1644_v56, %v1645_v52  ;;  %v1659_v15 = vrot.slane %v1658_v2, 2  ;;  %v1666_v13 = vrot.slane %v1665_v3, 2 }
  0x3f   :  { %v8126_v14 = vld [vmem:[#allocation2 + $0x12] sm:$0xff]  ;;  %v1653_v36 = vmax.f32 %v1651_v58, %v1652_v63  ;;  %v1673_v20 = vrot.slane %v1672_v4, 2  ;;  %v1679_v37 = vmax.f32 %v1677_v62, %v1678_v5  ;;  %v1686_v35 = vmax.f32 %v1684_v44, %v1685_v1 }
  0x40   :  { %v4054_v16 = vld [vmem:[#allocation2 + $0x11] sm:$0xff]  ;;  %4264 = vrot.lane.b32.xlu1 %v8126_v14, %s7703_s17  ;;  %v1640_v38 = vrot.slane %v1639_v6, 1  ;;  %v1647_v41 = vrot.slane %v1646_v7, 1  ;;  %v1660_v42 = vmax.f32 %v1658_v2, %v1659_v15  ;;  %v1667_v0 = vmax.f32 %v1665_v3, %v1666_v13 }
  0x41   :  { %4200 = vrot.lane.b32.xlu0 %v4054_v16, %s7702_s16  ;;  %v1654_v21 = vrot.slane %v1653_v36, 1  ;;  %v1674_v33 = vmax.f32 %v1672_v4, %v1673_v20  ;;  %v1680_v34 = vrot.slane %v1679_v37, 2  ;;  %v1687_v22 = vrot.slane %v1686_v35, 2  ;;  %v4085_v23 = vld [vmem:[#allocation2 + $0x10] sm:$0xff] }
  0x42   :  { %v8131_v45 = vmax.f32 %v1639_v6, %v1640_v38  ;;  %v8133_v39 = vmax.f32 %v1646_v7, %v1647_v41  ;;  %v1661_v46 = vrot.slane %v1660_v42, 1  ;;  %v1668_v53 = vrot.slane %v1667_v0, 1 }
  0x43   :  { %v8135_v12 = vmax.f32 %v1653_v36, %v1654_v21  ;;  %v1675_v28 = vrot.slane %v1674_v33, 1  ;;  %v1681_v43 = vmax.f32 %v1679_v37, %v1680_v34  ;;  %v1688_v54 = vmax.f32 %v1686_v35, %v1687_v22 }
  0x44   :  { %v8137_v51 = vmax.f32 %v1660_v42, %v1661_v46  ;;  %v8139_v55 = vmax.f32 %v1667_v0, %v1668_v53  ;;  %v1691_v56 = vsel %vm1522_vm0, %v8087_v40, -inf  ;;  %v1698_v57 = vsel %vm1522_vm0, %v295_v9, -inf }
  0x45   :  { %4326 = vrot.lane.b32.xlu0 %v4085_v23, %s7704_s18  ;;  %v8148_v61 = vmax.f32 %v1674_v33, %v1675_v28  ;;  %v1682_v58 = vrot.slane %v1681_v43, 1  ;;  %v1689_v59 = vrot.slane %v1688_v54, 1  ;;  %v1692_v62 = vrot.slane %v1691_v56, 4 }
  0x46   :  { %v1699_v44 = vrot.slane %v1698_v57, 4  ;;  %v1705_v60 = vsel %vm1522_vm0, %v8094_v8, -inf  ;;  %v1712_v52 = vsel %vm1522_vm0, %v296_v49, -inf  ;;  %v1719_v40 = vsel %vm1522_vm0, %v8104_v50, -inf }
  0x47   :  { %v8158_v9 = vmax.f32 %v1681_v43, %v1682_v58  ;;  %v8160_v2 = vmax.f32 %v1688_v54, %v1689_v59  ;;  %v1693_v3 = vmax.f32 %v1691_v56, %v1692_v62  ;;  %v1706_v63 = vrot.slane %v1705_v60, 4 }
  0x48   :  { %v1700_v4 = vmax.f32 %v1698_v57, %v1699_v44  ;;  %v1713_v5 = vrot.slane %v1712_v52, 4  ;;  %v1720_v1 = vrot.slane %v1719_v40, 4  ;;  %v1726_v6 = vsel %vm1522_vm0, %v312_v47, -inf }
  0x49   :  { %4390 = vrot.lane.b32.xlu0 %v4054_v16, %s7705_s19  ;;  %v1694_v8 = vrot.slane %v1693_v3, 2  ;;  %v1707_v49 = vmax.f32 %v1705_v60, %v1706_v63  ;;  %v1727_v7 = vrot.slane %v1726_v6, 4  ;;  %v1733_v15 = vsel %vm1522_vm0, %v8110_v11, -inf }
  0x4a   :  { %v1701_v13 = vrot.slane %v1700_v4, 2  ;;  %v1714_v36 = vmax.f32 %v1712_v52, %v1713_v5  ;;  %v1721_v20 = vmax.f32 %v1719_v40, %v1720_v1  ;;  %v1734_v37 = vrot.slane %v1733_v15, 4 }
  0x4b   :  { %v1695_v35 = vmax.f32 %v1693_v3, %v1694_v8  ;;  %v1708_v38 = vrot.slane %v1707_v49, 2  ;;  %v1728_v41 = vmax.f32 %v1726_v6, %v1727_v7  ;;  %v1740_v50 = vsel %vm1522_vm0, %v313_v48, -inf }
  0x4c   :  { %v1702_v47 = vmax.f32 %v1700_v4, %v1701_v13  ;;  %v1715_v16 = vrot.slane %v1714_v36, 2  ;;  %v1722_v42 = vrot.slane %v1721_v20, 2  ;;  %v1735_v0 = vmax.f32 %v1733_v15, %v1734_v37 }
  0x4d   :  { %v1696_v21 = vrot.slane %v1695_v35, 1  ;;  %v1709_v33 = vmax.f32 %v1707_v49, %v1708_v38  ;;  %v1729_v34 = vrot.slane %v1728_v41, 2  ;;  %v1741_v22 = vrot.slane %v1740_v50, 4 }
  0x4e   :  { %v1703_v23 = vrot.slane %v1702_v47, 1  ;;  %v1716_v46 = vmax.f32 %v1714_v36, %v1715_v16  ;;  %v1723_v53 = vmax.f32 %v1721_v20, %v1722_v42  ;;  %v1736_v28 = vrot.slane %v1735_v0, 2 }
  0x4f   :  { %v1697_v43 = vmax.f32 %v1695_v35, %v1696_v21  ;;  %v1710_v54 = vrot.slane %v1709_v33, 1  ;;  %v1730_v56 = vmax.f32 %v1728_v41, %v1729_v34  ;;  %v1742_v57 = vmax.f32 %v1740_v50, %v1741_v22 }
  0x50   :  { %v1704_v58 = vmax.f32 %v1702_v47, %v1703_v23  ;;  %v1717_v11 = vrot.slane %v1716_v46, 1  ;;  %v1724_v59 = vrot.slane %v1723_v53, 1  ;;  %v1737_v48 = vmax.f32 %v1735_v0, %v1736_v28 }
  0x51   :  { %v1711_v62 = vmax.f32 %v1709_v33, %v1710_v54  ;;  %v1731_v44 = vrot.slane %v1730_v56, 1  ;;  %v1743_v60 = vrot.slane %v1742_v57, 2  ;;  %v3340_v52 = vsel %vm3315_vm1, %v8131_v45, -inf }
  0x52   :  { %v1718_v40 = vmax.f32 %v1716_v46, %v1717_v11  ;;  %v1725_v3 = vmax.f32 %v1723_v53, %v1724_v59  ;;  %v1738_v63 = vrot.slane %v1737_v48, 1  ;;  %v3341_v4 = vsel %vm3315_vm1, %v1697_v43, -inf }
  0x53   :  { %v1732_v5 = vmax.f32 %v1730_v56, %v1731_v44  ;;  %v1744_v1 = vmax.f32 %v1742_v57, %v1743_v60  ;;  %v3342_v6 = vmax.f32 %v3340_v52, %v3341_v4  ;;  %v3343_v8 = vsel %vm3315_vm1, %v8133_v39, -inf }
  0x54   :  { %v1739_v49 = vmax.f32 %v1737_v48, %v1738_v63  ;;  %v3344_v7 = vsel %vm3315_vm1, %v1704_v58, -inf  ;;  %v3346_v15 = vsel %vm3315_vm1, %v8135_v12, -inf  ;;  %v3347_v13 = vsel %vm3315_vm1, %v1711_v62, -inf }
  0x55   :  { %v1745_v45 = vrot.slane %v1744_v1, 1  ;;  %v3345_v36 = vmax.f32 %v3343_v8, %v3344_v7  ;;  %v3348_v20 = vmax.f32 %v3346_v15, %v3347_v13  ;;  %v3349_v37 = vsel %vm3315_vm1, %v8137_v51, -inf }
  0x56   :  { %v3350_v35 = vsel %vm3315_vm1, %v1718_v40, -inf  ;;  %v3352_v38 = vsel %vm3315_vm1, %v8139_v55, -inf  ;;  %v3353_v39 = vsel %vm3315_vm1, %v1725_v3, -inf  ;;  %v3355_v41 = vsel %vm3315_vm1, %v8148_v61, -inf }
  0x57   :  { %v1746_v50 = vmax.f32 %v1744_v1, %v1745_v45  ;;  %v3351_v12 = vmax.f32 %v3349_v37, %v3350_v35  ;;  %v3354_v47 = vmax.f32 %v3352_v38, %v3353_v39  ;;  %v3356_v16 = vsel %vm3315_vm1, %v1732_v5, -inf }
  0x58   :  { %v3357_v42 = vmax.f32 %v3355_v41, %v3356_v16  ;;  %v3358_v0 = vsel %vm3315_vm1, %v8158_v9, -inf  ;;  %v3359_v51 = vsel %vm3315_vm1, %v1739_v49, -inf  ;;  %v3361_v21 = vsel %vm3315_vm1, %v8160_v2, -inf }
  0x59   :  { %v3360_v55 = vmax.f32 %v3358_v0, %v3359_v51  ;;  %v3362_v33 = vsel %vm3315_vm1, %v1746_v50, -inf  ;;  %v3892_v34 = vsel %vm3878_vm3, %v3345_v36, %v3342_v6  ;;  %v321_v61 = vrot.slane %v7928_v17, %v7962_v27 }
  0x5a   :  { %v3363_v22 = vmax.f32 %v3361_v21, %v3362_v33  ;;  %v3893_v23 = vsel %vm3880_vm4, %v3348_v20, %v3892_v34  ;;  %v328_v9 = vrot.slane %v314_v29, %v7962_v27  ;;  %v338_v46 = vrot.slane %v7933_v18, %v7962_v27 }
  0x5b   :  { %v3894_v2 = vsel %vm3882_vm5, %v3351_v12, %v3893_v23  ;;  %v329_v53 = vcombine.high %v321_v61, %v321_v61  ;;  %v345_v28 = vrot.slane %v331_v30, %v7962_v27  ;;  %v8214_v43 = vrot.slane %v7938_v19, %v7962_v27 }
  0x5c   :  { %v3895_v54 = vsel %vm3884_vm6, %v3354_v47, %v3894_v2  ;;  %v330_v56 = vcombine.high %v328_v9, %v328_v9  ;;  %v346_v17 = vcombine.high %v338_v46, %v338_v46  ;;  %v8221_v29 = vrot.slane %v348_v31, %v7962_v27 }
  0x5d   :  { %v3896_v57 = vsel %vm3886_vm7, %v3357_v42, %v3895_v54  ;;  %v347_v58 = vcombine.high %v345_v28, %v345_v28  ;;  %v363_v18 = vcombine.high %v8214_v43, %v8214_v43  ;;  %v8228_v30 = vrot.slane %v7949_v24, %v7962_v27 }
  0x5e   :  { %v3897_v11 = vsel %vm3888_vm8, %v3360_v55, %v3896_v57  ;;  %v364_v59 = vcombine.high %v8221_v29, %v8221_v29  ;;  %v8237_v19 = vrot.slane %v365_v32, %v7962_v27  ;;  %v1747_v31 = vsel %vm1522_vm0, %v321_v61, -inf }
  0x5f   :  { %v3898_v48 = vsel %vm11796_vm9, %v3363_v22, %v3897_v11  ;;  %v380_v62 = vcombine.high %v8228_v30, %v8228_v30  ;;  %v1748_v44 = vrot.slane %v1747_v31, 4  ;;  %v1754_v60 = vsel %vm1522_vm0, %v329_v53, -inf }
  0x60   :  { %4015 = vst.msk [vmem:[#allocation2 + $0x21] sm:$0xff] %vm3315_vm1, %v3898_v48  ;;  %v381_v52 = vcombine.high %v8237_v19, %v8237_v19  ;;  %v1755_v40 = vrot.slane %v1754_v60, 4  ;;  %v1761_v24 = vsel %vm1522_vm0, %v328_v9, -inf  ;;  %v1768_v32 = vsel %vm1522_vm0, %v330_v56, -inf }
  0x61   :  { %v1749_v3 = vmax.f32 %v1747_v31, %v1748_v44  ;;  %v1762_v63 = vrot.slane %v1761_v24, 4  ;;  %v1769_v4 = vrot.slane %v1768_v32, 4  ;;  %v1775_v5 = vsel %vm1522_vm0, %v338_v46, -inf }
  0x62   :  { %v1756_v1 = vmax.f32 %v1754_v60, %v1755_v40  ;;  %v1776_v6 = vrot.slane %v1775_v5, 4  ;;  %v1782_v8 = vsel %vm1522_vm0, %v346_v17, -inf  ;;  %v1789_v49 = vsel %vm1522_vm0, %v345_v28, -inf }
  0x63   :  { %v1750_v7 = vrot.slane %v1749_v3, 2  ;;  %v1763_v15 = vmax.f32 %v1761_v24, %v1762_v63  ;;  %v1770_v13 = vmax.f32 %v1768_v32, %v1769_v4  ;;  %v1783_v45 = vrot.slane %v1782_v8, 4 }
  0x64   :  { %v1757_v36 = vrot.slane %v1756_v1, 2  ;;  %v1777_v20 = vmax.f32 %v1775_v5, %v1776_v6  ;;  %v1790_v37 = vrot.slane %v1789_v49, 4  ;;  %v1796_v35 = vsel %vm1522_vm0, %v347_v58, -inf }
  0x65   :  { %v1751_v38 = vmax.f32 %v1749_v3, %v1750_v7  ;;  %v1764_v39 = vrot.slane %v1763_v15, 2  ;;  %v1771_v41 = vrot.slane %v1770_v13, 2  ;;  %v1784_v50 = vmax.f32 %v1782_v8, %v1783_v45 }
  0x66   :  { %v1758_v12 = vmax.f32 %v1756_v1, %v1757_v36  ;;  %v1778_v47 = vrot.slane %v1777_v20, 2  ;;  %v1791_v16 = vmax.f32 %v1789_v49, %v1790_v37  ;;  %v1797_v42 = vrot.slane %v1796_v35, 4 }
  0x67   :  { %v8253_v0 = vld [vmem:[#allocation2 + $0x20] sm:$0xff]  ;;  %v1752_v21 = vrot.slane %v1751_v38, 1  ;;  %v1765_v55 = vmax.f32 %v1763_v15, %v1764_v39  ;;  %v1772_v33 = vmax.f32 %v1770_v13, %v1771_v41  ;;  %v1785_v34 = vrot.slane %v1784_v50, 2 }
  0x68   :  { %v8255_v51 = vld [vmem:[#allocation2 + $0x21] sm:$0xff]  ;;  %4328 = vrot.lane.b32.xlu1 %v8253_v0, %s7704_s18  ;;  %v1759_v61 = vrot.slane %v1758_v12, 1  ;;  %v1779_v22 = vmax.f32 %v1777_v20, %v1778_v47  ;;  %v1792_v23 = vrot.slane %v1791_v16, 2  ;;  %v1798_v9 = vmax.f32 %v1796_v35, %v1797_v42 }
  0x69   :  { %4392 = vrot.lane.b32.xlu0 %v8255_v51, %s7705_s19  ;;  %v8261_v46 = vmax.f32 %v1751_v38, %v1752_v21  ;;  %v1766_v2 = vrot.slane %v1765_v55, 1  ;;  %v1773_v53 = vrot.slane %v1772_v33, 1  ;;  %v1786_v28 = vmax.f32 %v1784_v50, %v1785_v34  ;;  %v8299_v45 = vld [vmem:[#allocation2 + $0x22] sm:$0xff] }
  0x6a   :  { %v8263_v54 = vmax.f32 %v1758_v12, %v1759_v61  ;;  %v1780_v56 = vrot.slane %v1779_v22, 1  ;;  %v1793_v17 = vmax.f32 %v1791_v16, %v1792_v23  ;;  %v1799_v57 = vrot.slane %v1798_v9, 2 }
  0x6b   :  { %v8265_v58 = vmax.f32 %v1765_v55, %v1766_v2  ;;  %v8267_v11 = vmax.f32 %v1772_v33, %v1773_v53  ;;  %v1787_v31 = vrot.slane %v1786_v28, 1  ;;  %v1803_v48 = vsel %vm1522_vm0, %v8214_v43, -inf }
  0x6c   :  { %4202 = vrot.lane.b32.xlu1 %v8255_v51, %s7702_s16  ;;  %v8273_v44 = vmax.f32 %v1779_v22, %v1780_v56  ;;  %v1794_v60 = vrot.slane %v1793_v17, 1  ;;  %v1800_v40 = vmax.f32 %v1798_v9, %v1799_v57  ;;  %v1804_v24 = vrot.slane %v1803_v48, 4 }
  0x6d   :  { %v8275_v32 = vmax.f32 %v1786_v28, %v1787_v31  ;;  %v1810_v3 = vsel %vm1522_vm0, %v363_v18, -inf  ;;  %v1817_v63 = vsel %vm1522_vm0, %v8221_v29, -inf  ;;  %v1824_v4 = vsel %vm1522_vm0, %v364_v59, -inf }
  0x6e   :  { %v8287_v5 = vmax.f32 %v1793_v17, %v1794_v60  ;;  %v1801_v1 = vrot.slane %v1800_v40, 1  ;;  %v1805_v6 = vmax.f32 %v1803_v48, %v1804_v24  ;;  %v1811_v8 = vrot.slane %v1810_v3, 4 }
  0x6f   :  { %v1818_v49 = vrot.slane %v1817_v63, 4  ;;  %v1825_v7 = vrot.slane %v1824_v4, 4  ;;  %v1831_v43 = vsel %vm1522_vm0, %v8228_v30, -inf  ;;  %v1838_v18 = vsel %vm1522_vm0, %v380_v62, -inf }
  0x70   :  { %4454 = vrot.lane.b32.xlu1 %v8126_v14, %s7706_s20  ;;  %v8297_v29 = vmax.f32 %v1800_v40, %v1801_v1  ;;  %v1806_v59 = vrot.slane %v1805_v6, 2  ;;  %v1812_v15 = vmax.f32 %v1810_v3, %v1811_v8  ;;  %v1832_v13 = vrot.slane %v1831_v43, 4 }
  0x71   :  { %v1819_v36 = vmax.f32 %v1817_v63, %v1818_v49  ;;  %v1826_v20 = vmax.f32 %v1824_v4, %v1825_v7  ;;  %v1839_v37 = vrot.slane %v1838_v18, 4  ;;  %v1845_v35 = vsel %vm1522_vm0, %v8237_v19, -inf }
  0x72   :  { %v1807_v30 = vmax.f32 %v1805_v6, %v1806_v59  ;;  %v1813_v38 = vrot.slane %v1812_v15, 2  ;;  %v1833_v62 = vmax.f32 %v1831_v43, %v1832_v13  ;;  %v1846_v39 = vrot.slane %v1845_v35, 4 }
  0x73   :  { %v1820_v41 = vrot.slane %v1819_v36, 2  ;;  %v1827_v50 = vrot.slane %v1826_v20, 2  ;;  %v1840_v14 = vmax.f32 %v1838_v18, %v1839_v37  ;;  %v1852_v12 = vsel %vm1522_vm0, %v381_v52, -inf }
  0x74   :  { %4266 = vrot.lane.b32.xlu1 %v8299_v45, %s7703_s17  ;;  %v1808_v47 = vrot.slane %v1807_v30, 1  ;;  %v1814_v16 = vmax.f32 %v1812_v15, %v1813_v38  ;;  %v1834_v42 = vrot.slane %v1833_v62, 2  ;;  %v1847_v21 = vmax.f32 %v1845_v35, %v1846_v39 }
  0x75   :  { %v1821_v55 = vmax.f32 %v1819_v36, %v1820_v41  ;;  %v1828_v33 = vmax.f32 %v1826_v20, %v1827_v50  ;;  %v1841_v34 = vrot.slane %v1840_v14, 2  ;;  %v1853_v61 = vrot.slane %v1852_v12, 4  ;;  %v64_v50 = vld [vmem:[%s11771_s0 + $0x70] sm:$0xff] }
  0x76   :  { %v1809_v22 = vmax.f32 %v1807_v30, %v1808_v47  ;;  %v1815_v23 = vrot.slane %v1814_v16, 1  ;;  %v1835_v9 = vmax.f32 %v1833_v62, %v1834_v42  ;;  %v1848_v2 = vrot.slane %v1847_v21, 2 }
  0x77   :  { %v1822_v53 = vrot.slane %v1821_v55, 1  ;;  %v1829_v28 = vrot.slane %v1828_v33, 1  ;;  %v1842_v19 = vmax.f32 %v1840_v14, %v1841_v34  ;;  %v1854_v56 = vmax.f32 %v1852_v12, %v1853_v61 }
  0x78   :  { %v1816_v52 = vmax.f32 %v1814_v16, %v1815_v23  ;;  %v1836_v17 = vrot.slane %v1835_v9, 1  ;;  %v1849_v57 = vmax.f32 %v1847_v21, %v1848_v2  ;;  %v3364_v31 = vsel %vm3315_vm1, %v8261_v46, -inf  ;;  %4518 = vrot.lane.b32.xlu1 %v8253_v0, %s7707_s21 }
  0x79   :  { %v1823_v48 = vmax.f32 %v1821_v55, %v1822_v53  ;;  %v1830_v60 = vmax.f32 %v1828_v33, %v1829_v28  ;;  %v1843_v40 = vrot.slane %v1842_v19, 1  ;;  %v1855_v24 = vrot.slane %v1854_v56, 2  ;;  %v7699_v55 = vld.sshfl [vmem:[%s11771_s0 + $0x68] sm:$0xff pattern:$0x76325410] }
  0x7a   :  { %v1837_v3 = vmax.f32 %v1835_v9, %v1836_v17  ;;  %v1850_v63 = vrot.slane %v1849_v57, 1  ;;  %v3365_v4 = vsel %vm3315_vm1, %v1809_v22, -inf  ;;  %v3367_v1 = vsel %vm3315_vm1, %v8263_v54, -inf }
  0x7b   :  { %v1844_v6 = vmax.f32 %v1842_v19, %v1843_v40  ;;  %v1856_v8 = vmax.f32 %v1854_v56, %v1855_v24  ;;  %v3366_v49 = vmax.f32 %v3364_v31, %v3365_v4  ;;  %v3368_v46 = vsel %vm3315_vm1, %v1816_v52, -inf }
  0x7c   :  { %v1851_v7 = vmax.f32 %v1849_v57, %v1850_v63  ;;  %v3369_v43 = vmax.f32 %v3367_v1, %v3368_v46  ;;  %v3370_v0 = vsel %vm3315_vm1, %v8265_v58, -inf  ;;  %v3371_v18 = vsel %vm3315_vm1, %v1823_v48, -inf }
  0x7d   :  { %v1857_v59 = vrot.slane %v1856_v8, 1  ;;  %v3372_v15 = vmax.f32 %v3370_v0, %v3371_v18  ;;  %v3373_v13 = vsel %vm3315_vm1, %v8267_v11, -inf  ;;  %v3374_v36 = vsel %vm3315_vm1, %v1830_v60, -inf }
  0x7e   :  { %v3375_v54 = vmax.f32 %v3373_v13, %v3374_v36  ;;  %v3376_v20 = vsel %vm3315_vm1, %v8273_v44, -inf  ;;  %v3377_v37 = vsel %vm3315_vm1, %v1837_v3, -inf  ;;  %v3379_v35 = vsel %vm3315_vm1, %v8275_v32, -inf }
  0x7f   :  { %v1858_v30 = vmax.f32 %v1856_v8, %v1857_v59  ;;  %v3378_v58 = vmax.f32 %v3376_v20, %v3377_v37  ;;  %v3380_v38 = vsel %vm3315_vm1, %v1844_v6, -inf  ;;  %v3382_v62 = vsel %vm3315_vm1, %v8287_v5, -inf  ;;  %v7698_v5 = vld.sshfl [vmem:[%s11771_s0 + $0x60] sm:$0xff pattern:$0x76325410] }
  0x80   :  { %v3381_v39 = vmax.f32 %v3379_v35, %v3380_v38  ;;  %v3383_v11 = vsel %vm3315_vm1, %v1851_v7, -inf  ;;  %v3385_v41 = vsel %vm3315_vm1, %v8297_v29, -inf  ;;  %v3899_v44 = vsel %vm3878_vm3, %v3369_v43, %v3366_v49  ;;  %v65_v29 = vld [vmem:[%s11771_s0 + $0x78] sm:$0xff] }
  0x81   :  { %v3384_v32 = vmax.f32 %v3382_v62, %v3383_v11  ;;  %v3386_v14 = vsel %vm3315_vm1, %v1858_v30, -inf  ;;  %v3900_v12 = vsel %vm3880_vm4, %v3372_v15, %v3899_v44  ;;  %v11806_v42 = vcombine.high %v7954_v25, %v7954_v25 }
  0x82   :  { %v3387_v47 = vmax.f32 %v3385_v41, %v3386_v14  ;;  %v3901_v16 = vsel %vm3882_vm5, %v3375_v54, %v3900_v12  ;;  %v397_v34 = vcombine.high %v7698_v5, %v7698_v5  ;;  %v11807_v61 = vcombine.high %v7959_v26, %v7959_v26 }
  0x83   :  { %v396_v21 = vrot.slane %v11806_v42, %v7962_v27  ;;  %v3902_v33 = vsel %vm3884_vm6, %v3378_v58, %v3901_v16  ;;  %v416_v23 = vcombine.high %v64_v50, %v64_v50  ;;  %v414_v53 = vcombine.high %v7699_v55, %v7699_v55 }
  0x84   :  { %v413_v22 = vrot.slane %v11807_v61, %v7962_v27  ;;  %v3903_v9 = vsel %vm3886_vm7, %v3381_v39, %v3902_v33  ;;  %v8361_v25 = vrot.slane %v64_v50, %v7962_v27  ;;  %v433_v52 = vcombine.high %v65_v29, %v65_v29 }
  0x85   :  { %v398_v2 = vcombine.high %v396_v21, %v396_v21  ;;  %v3904_v28 = vsel %vm3888_vm8, %v3384_v32, %v3903_v9  ;;  %v8365_v56 = vrot.slane %v416_v23, %v7962_v27  ;;  %v8371_v57 = vrot.slane %v65_v29, %v7962_v27 }
  0x86   :  { %v415_v19 = vcombine.high %v413_v22, %v413_v22  ;;  %v3905_v17 = vsel %vm11796_vm9, %v3387_v47, %v3904_v28  ;;  %v431_v26 = vcombine.high %v8361_v25, %v8361_v25  ;;  %v1859_v31 = vsel %vm1522_vm0, %v7698_v5, -inf }
  0x87   :  { %4016 = vst.msk [vmem:[#allocation2 + $0x31] sm:$0xff] %vm3315_vm1, %v3905_v17  ;;  %v432_v48 = vcombine.high %v8365_v56, %v8365_v56  ;;  %v8378_v60 = vrot.slane %v433_v52, %v7962_v27  ;;  %v1860_v40 = vrot.slane %v1859_v31, 4  ;;  %v1866_v24 = vsel %vm1522_vm0, %v397_v34, -inf }
  0x88   :  { %v448_v3 = vcombine.high %v8371_v57, %v8371_v57  ;;  %v1867_v63 = vrot.slane %v1866_v24, 4  ;;  %v1873_v4 = vsel %vm1522_vm0, %v396_v21, -inf  ;;  %v1880_v1 = vsel %vm1522_vm0, %v398_v2, -inf }
  0x89   :  { %v449_v6 = vcombine.high %v8378_v60, %v8378_v60  ;;  %v1861_v8 = vmax.f32 %v1859_v31, %v1860_v40  ;;  %v1874_v49 = vrot.slane %v1873_v4, 4  ;;  %v1881_v46 = vrot.slane %v1880_v1, 4 }
  0x8a   :  { %v1868_v7 = vmax.f32 %v1866_v24, %v1867_v63  ;;  %v1887_v43 = vsel %vm1522_vm0, %v7699_v55, -inf  ;;  %v1894_v0 = vsel %vm1522_vm0, %v414_v53, -inf  ;;  %v1901_v18 = vsel %vm1522_vm0, %v413_v22, -inf }
  0x8b   :  { %v1862_v59 = vrot.slane %v1861_v8, 2  ;;  %v1875_v15 = vmax.f32 %v1873_v4, %v1874_v49  ;;  %v1882_v13 = vmax.f32 %v1880_v1, %v1881_v46  ;;  %v1888_v36 = vrot.slane %v1887_v43, 4 }
  0x8c   :  { %v1869_v54 = vrot.slane %v1868_v7, 2  ;;  %v1895_v20 = vrot.slane %v1894_v0, 4  ;;  %v1902_v37 = vrot.slane %v1901_v18, 4  ;;  %v1908_v35 = vsel %vm1522_vm0, %v415_v19, -inf }
  0x8d   :  { %v1863_v30 = vmax.f32 %v1861_v8, %v1862_v59  ;;  %v1876_v58 = vrot.slane %v1875_v15, 2  ;;  %v1883_v38 = vrot.slane %v1882_v13, 2  ;;  %v1889_v62 = vmax.f32 %v1887_v43, %v1888_v36 }
  0x8e   :  { %v8391_v39 = vld [vmem:[#allocation2 + $0x31] sm:$0xff]  ;;  %v1870_v41 = vmax.f32 %v1868_v7, %v1869_v54  ;;  %v1896_v44 = vmax.f32 %v1894_v0, %v1895_v20  ;;  %v1903_v50 = vmax.f32 %v1901_v18, %v1902_v37  ;;  %v1909_v32 = vrot.slane %v1908_v35, 4 }
  0x8f   :  { %v4087_v11 = vld [vmem:[#allocation2 + $0x30] sm:$0xff]  ;;  %4204 = vrot.lane.b32.xlu0 %v8391_v39, %s7702_s16  ;;  %v1864_v14 = vrot.slane %v1863_v30, 1  ;;  %v1877_v12 = vmax.f32 %v1875_v15, %v1876_v58  ;;  %v1884_v5 = vmax.f32 %v1882_v13, %v1883_v38  ;;  %v1890_v47 = vrot.slane %v1889_v62, 2 }
  0x90   :  { %4330 = vrot.lane.b32.xlu1 %v4087_v11, %s7704_s18  ;;  %v1871_v16 = vrot.slane %v1870_v41, 1  ;;  %v1897_v29 = vrot.slane %v1896_v44, 2  ;;  %v1904_v42 = vrot.slane %v1903_v50, 2  ;;  %v1910_v21 = vmax.f32 %v1908_v35, %v1909_v32  ;;  %v8410_v17 = vld [vmem:[#allocation2 + $0x32] sm:$0xff] }
  0x91   :  { %v8396_v55 = vmax.f32 %v1863_v30, %v1864_v14  ;;  %v1878_v33 = vrot.slane %v1877_v12, 1  ;;  %v1885_v34 = vrot.slane %v1884_v5, 1  ;;  %v1891_v61 = vmax.f32 %v1889_v62, %v1890_v47 }
  0x92   :  { %v8398_v22 = vmax.f32 %v1870_v41, %v1871_v16  ;;  %v1898_v23 = vmax.f32 %v1896_v44, %v1897_v29  ;;  %v1905_v9 = vmax.f32 %v1903_v50, %v1904_v42  ;;  %v1911_v2 = vrot.slane %v1910_v21, 2 }
  0x93   :  { %4456 = vrot.lane.b32.xlu0 %v8299_v45, %s7706_s20  ;;  %v8404_v53 = vmax.f32 %v1877_v12, %v1878_v33  ;;  %v8406_v28 = vmax.f32 %v1884_v5, %v1885_v34  ;;  %v1892_v19 = vrot.slane %v1891_v61, 1  ;;  %v1915_v52 = vsel %vm1522_vm0, %v8361_v25, -inf }
  0x94   :  { %4582 = vrot.lane.b32.xlu1 %v8255_v51, %s7708_s30  ;;  %v1899_v31 = vrot.slane %v1898_v23, 1  ;;  %v1906_v40 = vrot.slane %v1905_v9, 1  ;;  %v1912_v24 = vmax.f32 %v1910_v21, %v1911_v2  ;;  %v1916_v63 = vrot.slane %v1915_v52, 4 }
  0x95   :  { %v8412_v4 = vmax.f32 %v1891_v61, %v1892_v19  ;;  %v1922_v51 = vsel %vm1522_vm0, %v431_v26, -inf  ;;  %v1929_v1 = vsel %vm1522_vm0, %v8365_v56, -inf  ;;  %v1936_v8 = vsel %vm1522_vm0, %v432_v48, -inf }
  0x96   :  { %v8424_v49 = vmax.f32 %v1898_v23, %v1899_v31  ;;  %v8426_v46 = vmax.f32 %v1905_v9, %v1906_v40  ;;  %v1913_v7 = vrot.slane %v1912_v24, 1  ;;  %v1917_v43 = vmax.f32 %v1915_v52, %v1916_v63 }
  0x97   :  { %4268 = vrot.lane.b32.xlu0 %v8410_v17, %s7703_s17  ;;  %v1923_v25 = vrot.slane %v1922_v51, 4  ;;  %v1930_v26 = vrot.slane %v1929_v1, 4  ;;  %v1937_v0 = vrot.slane %v1936_v8, 4  ;;  %v1943_v56 = vsel %vm1522_vm0, %v8371_v57, -inf }
  0x98   :  { %4394 = vrot.lane.b32.xlu1 %v8391_v39, %s7705_s19  ;;  %v8434_v18 = vmax.f32 %v1912_v24, %v1913_v7  ;;  %v1918_v48 = vrot.slane %v1917_v43, 2  ;;  %v1944_v59 = vrot.slane %v1943_v56, 4  ;;  %v1950_v15 = vsel %vm1522_vm0, %v448_v3, -inf }
  0x99   :  { %v1924_v13 = vmax.f32 %v1922_v51, %v1923_v25  ;;  %v1931_v36 = vmax.f32 %v1929_v1, %v1930_v26  ;;  %v1938_v54 = vmax.f32 %v1936_v8, %v1937_v0  ;;  %v1951_v20 = vrot.slane %v1950_v15, 4 }
  0x9a   :  { %v1919_v37 = vmax.f32 %v1917_v43, %v1918_v48  ;;  %v1945_v35 = vmax.f32 %v1943_v56, %v1944_v59  ;;  %v1957_v30 = vsel %vm1522_vm0, %v8378_v60, -inf  ;;  %v1964_v58 = vsel %vm1522_vm0, %v449_v6, -inf }
  0x9b   :  { %4520 = vrot.lane.b32.xlu0 %v4087_v11, %s7707_s21  ;;  %v1925_v38 = vrot.slane %v1924_v13, 2  ;;  %v1932_v57 = vrot.slane %v1931_v36, 2  ;;  %v1939_v62 = vrot.slane %v1938_v54, 2  ;;  %v1952_v3 = vmax.f32 %v1950_v15, %v1951_v20 }
  0x9c   :  { %4646 = vrot.lane.b32.xlu1 %v8299_v45, %s7709_s22  ;;  %v1920_v41 = vrot.slane %v1919_v37, 1  ;;  %v1946_v44 = vrot.slane %v1945_v35, 2  ;;  %v1958_v50 = vrot.slane %v1957_v30, 4  ;;  %v1965_v32 = vrot.slane %v1964_v58, 4 }
  0x9d   :  { %v1926_v14 = vmax.f32 %v1924_v13, %v1925_v38  ;;  %v1933_v12 = vmax.f32 %v1931_v36, %v1932_v57  ;;  %v1940_v5 = vmax.f32 %v1938_v54, %v1939_v62  ;;  %v1953_v60 = vrot.slane %v1952_v3, 2  ;;  %v66_v54 = vld [vmem:[%s11771_s0 + $0x80] sm:$0xff] }
  0x9e   :  { %v1921_v47 = vmax.f32 %v1919_v37, %v1920_v41  ;;  %v1947_v6 = vmax.f32 %v1945_v35, %v1946_v44  ;;  %v1959_v16 = vmax.f32 %v1957_v30, %v1958_v50  ;;  %v1966_v11 = vmax.f32 %v1964_v58, %v1965_v32 }
  0x9f   :  { %v1927_v29 = vrot.slane %v1926_v14, 1  ;;  %v1934_v42 = vrot.slane %v1933_v12, 1  ;;  %v1941_v21 = vrot.slane %v1940_v5, 1  ;;  %v1954_v33 = vmax.f32 %v1952_v3, %v1953_v60 }
  0xa0   :  { %v1948_v34 = vrot.slane %v1947_v6, 1  ;;  %v1960_v61 = vrot.slane %v1959_v16, 2  ;;  %v1967_v23 = vrot.slane %v1966_v11, 2  ;;  %v3388_v45 = vsel %vm3315_vm1, %v8396_v55, -inf }
  0xa1   :  { %v1928_v9 = vmax.f32 %v1926_v14, %v1927_v29  ;;  %v1935_v2 = vmax.f32 %v1933_v12, %v1934_v42  ;;  %v1942_v19 = vmax.f32 %v1940_v5, %v1941_v21  ;;  %v1955_v52 = vrot.slane %v1954_v33, 1 }
  0xa2   :  { %v1949_v31 = vmax.f32 %v1947_v6, %v1948_v34  ;;  %v1961_v40 = vmax.f32 %v1959_v16, %v1960_v61  ;;  %v1968_v24 = vmax.f32 %v1966_v11, %v1967_v23  ;;  %v3389_v63 = vsel %vm3315_vm1, %v1921_v47, -inf }
  0xa3   :  { %v1956_v51 = vmax.f32 %v1954_v33, %v1955_v52  ;;  %v3390_v1 = vmax.f32 %v3388_v45, %v3389_v63  ;;  %v3391_v8 = vsel %vm3315_vm1, %v8398_v22, -inf  ;;  %v3392_v7 = vsel %vm3315_vm1, %v1928_v9, -inf }
  0xa4   :  { %v1962_v43 = vrot.slane %v1961_v40, 1  ;;  %v1969_v25 = vrot.slane %v1968_v24, 1  ;;  %v3393_v26 = vmax.f32 %v3391_v8, %v3392_v7  ;;  %v3394_v55 = vsel %vm3315_vm1, %v8404_v53, -inf }
  0xa5   :  { %v3395_v0 = vsel %vm3315_vm1, %v1935_v2, -inf  ;;  %v3397_v56 = vsel %vm3315_vm1, %v8406_v28, -inf  ;;  %v3398_v48 = vsel %vm3315_vm1, %v1942_v19, -inf  ;;  %v3400_v59 = vsel %vm3315_vm1, %v8412_v4, -inf  ;;  %v67_v4 = vld [vmem:[%s11771_s0 + $0x88] sm:$0xff] }
  0xa6   :  { %v1963_v15 = vmax.f32 %v1961_v40, %v1962_v43  ;;  %v1970_v22 = vmax.f32 %v1968_v24, %v1969_v25  ;;  %v3396_v13 = vmax.f32 %v3394_v55, %v3395_v0  ;;  %v3399_v36 = vmax.f32 %v3397_v56, %v3398_v48 }
  0xa7   :  { %v3401_v53 = vsel %vm3315_vm1, %v1949_v31, -inf  ;;  %v3403_v20 = vsel %vm3315_vm1, %v8424_v49, -inf  ;;  %v3404_v28 = vsel %vm3315_vm1, %v1956_v51, -inf  ;;  %v3406_v37 = vsel %vm3315_vm1, %v8426_v46, -inf  ;;  %v68_v49 = vld [vmem:[%s11771_s0 + $0x90] sm:$0xff] }
  0xa8   :  { %v3402_v35 = vmax.f32 %v3400_v59, %v3401_v53  ;;  %v3405_v30 = vmax.f32 %v3403_v20, %v3404_v28  ;;  %v3407_v58 = vsel %vm3315_vm1, %v1963_v15, -inf  ;;  %v3409_v38 = vsel %vm3315_vm1, %v8434_v18, -inf  ;;  %v69_v18 = vld [vmem:[%s11771_s0 + $0x98] sm:$0xff] }
  0xa9   :  { %v3408_v57 = vmax.f32 %v3406_v37, %v3407_v58  ;;  %v3410_v62 = vsel %vm3315_vm1, %v1970_v22, -inf  ;;  %v3906_v46 = vsel %vm3878_vm3, %v3393_v26, %v3390_v1  ;;  %v450_v3 = vcombine.high %v66_v54, %v66_v54 }
  0xaa   :  { %v3411_v41 = vmax.f32 %v3409_v38, %v3410_v62  ;;  %v3907_v44 = vsel %vm3880_vm4, %v3396_v13, %v3906_v46  ;;  %v457_v50 = vrot.slane %v66_v54, %v7962_v27  ;;  %v467_v32 = vcombine.high %v67_v4, %v67_v4 }
  0xab   :  { %v3908_v14 = vsel %vm3882_vm5, %v3399_v36, %v3907_v44  ;;  %v464_v12 = vrot.slane %v450_v3, %v7962_v27  ;;  %v474_v5 = vrot.slane %v67_v4, %v7962_v27  ;;  %v484_v60 = vcombine.high %v68_v49, %v68_v49 }
  0xac   :  { %v3909_v47 = vsel %vm3884_vm6, %v3402_v35, %v3908_v14  ;;  %v465_v6 = vcombine.high %v457_v50, %v457_v50  ;;  %v481_v16 = vrot.slane %v467_v32, %v7962_v27  ;;  %v8494_v11 = vrot.slane %v68_v49, %v7962_v27 }
  0xad   :  { %v3910_v29 = vsel %vm3886_vm7, %v3405_v30, %v3909_v47  ;;  %v466_v42 = vcombine.high %v464_v12, %v464_v12  ;;  %v482_v21 = vcombine.high %v474_v5, %v474_v5  ;;  %v8498_v33 = vrot.slane %v484_v60, %v7962_v27 }
  0xae   :  { %v3911_v34 = vsel %vm3888_vm8, %v3408_v57, %v3910_v29  ;;  %v483_v61 = vcombine.high %v481_v16, %v481_v16  ;;  %v499_v23 = vcombine.high %v8494_v11, %v8494_v11  ;;  %v501_v45 = vcombine.high %v69_v18, %v69_v18 }
  0xaf   :  { %v3912_v9 = vsel %vm11796_vm9, %v3411_v41, %v3911_v34  ;;  %v500_v2 = vcombine.high %v8498_v33, %v8498_v33  ;;  %v8507_v19 = vrot.slane %v69_v18, %v7962_v27  ;;  %v1971_v52 = vsel %vm1522_vm0, %v457_v50, -inf }
  0xb0   :  { %4017 = vst.msk [vmem:[#allocation2 + $0x41] sm:$0xff] %vm3315_vm1, %v3912_v9  ;;  %v8512_v31 = vrot.slane %v501_v45, %v7962_v27  ;;  %v1972_v40 = vrot.slane %v1971_v52, 4  ;;  %v1978_v24 = vsel %vm1522_vm0, %v465_v6, -inf  ;;  %v1985_v63 = vsel %vm1522_vm0, %v464_v12, -inf }
  0xb1   :  { %v516_v51 = vcombine.high %v8507_v19, %v8507_v19  ;;  %v1979_v1 = vrot.slane %v1978_v24, 4  ;;  %v1986_v8 = vrot.slane %v1985_v63, 4  ;;  %v1992_v7 = vsel %vm1522_vm0, %v466_v42, -inf }
  0xb2   :  { %v517_v43 = vcombine.high %v8512_v31, %v8512_v31  ;;  %v1973_v25 = vmax.f32 %v1971_v52, %v1972_v40  ;;  %v1993_v26 = vrot.slane %v1992_v7, 4  ;;  %v1999_v55 = vsel %vm1522_vm0, %v474_v5, -inf }
  0xb3   :  { %v1980_v0 = vmax.f32 %v1978_v24, %v1979_v1  ;;  %v1987_v56 = vmax.f32 %v1985_v63, %v1986_v8  ;;  %v2000_v48 = vrot.slane %v1999_v55, 4  ;;  %v2006_v59 = vsel %vm1522_vm0, %v482_v21, -inf }
  0xb4   :  { %v1974_v15 = vrot.slane %v1973_v25, 2  ;;  %v1994_v22 = vmax.f32 %v1992_v7, %v1993_v26  ;;  %v2007_v13 = vrot.slane %v2006_v59, 4  ;;  %v2013_v36 = vsel %vm1522_vm0, %v481_v16, -inf }
  0xb5   :  { %v1981_v54 = vrot.slane %v1980_v0, 2  ;;  %v1988_v53 = vrot.slane %v1987_v56, 2  ;;  %v2001_v20 = vmax.f32 %v1999_v55, %v2000_v48  ;;  %v2014_v28 = vrot.slane %v2013_v36, 4 }
  0xb6   :  { %v1975_v37 = vmax.f32 %v1973_v25, %v1974_v15  ;;  %v1995_v4 = vrot.slane %v1994_v22, 2  ;;  %v2008_v35 = vmax.f32 %v2006_v59, %v2007_v13  ;;  %v2020_v30 = vsel %vm1522_vm0, %v483_v61, -inf }
  0xb7   :  { %v8525_v58 = vld [vmem:[#allocation2 + $0x40] sm:$0xff]  ;;  %v1982_v49 = vmax.f32 %v1980_v0, %v1981_v54  ;;  %v1989_v57 = vmax.f32 %v1987_v56, %v1988_v53  ;;  %v2002_v62 = vrot.slane %v2001_v20, 2  ;;  %v2015_v46 = vmax.f32 %v2013_v36, %v2014_v28 }
  0xb8   :  { %v8527_v38 = vld [vmem:[#allocation2 + $0x41] sm:$0xff]  ;;  %4332 = vrot.lane.b32.xlu0 %v8525_v58, %s7704_s18  ;;  %v1976_v3 = vrot.slane %v1975_v37, 1  ;;  %v1996_v41 = vmax.f32 %v1994_v22, %v1995_v4  ;;  %v2009_v44 = vrot.slane %v2008_v35, 2  ;;  %v2021_v50 = vrot.slane %v2020_v30, 4 }
  0xb9   :  { %4396 = vrot.lane.b32.xlu1 %v8527_v38, %s7705_s19  ;;  %v1983_v32 = vrot.slane %v1982_v49, 1  ;;  %v1990_v14 = vrot.slane %v1989_v57, 1  ;;  %v2003_v18 = vmax.f32 %v2001_v20, %v2002_v62  ;;  %v2016_v12 = vrot.slane %v2015_v46, 2  ;;  %v8547_v52 = vld [vmem:[#allocation2 + $0x42] sm:$0xff] }
  0xba   :  { %v8533_v5 = vmax.f32 %v1975_v37, %v1976_v3  ;;  %v1997_v60 = vrot.slane %v1996_v41, 1  ;;  %v2010_v47 = vmax.f32 %v2008_v35, %v2009_v44  ;;  %v2022_v6 = vmax.f32 %v2020_v30, %v2021_v50 }
  0xbb   :  { %v8535_v16 = vmax.f32 %v1982_v49, %v1983_v32  ;;  %v8537_v29 = vmax.f32 %v1989_v57, %v1990_v14  ;;  %v2004_v42 = vrot.slane %v2003_v18, 1  ;;  %v2017_v21 = vmax.f32 %v2015_v46, %v2016_v12 }
  0xbc   :  { %4584 = vrot.lane.b32.xlu0 %v8391_v39, %s7708_s30  ;;  %v8543_v34 = vmax.f32 %v1996_v41, %v1997_v60  ;;  %v2011_v61 = vrot.slane %v2010_v47, 1  ;;  %v2023_v45 = vrot.slane %v2022_v6, 2  ;;  %v2027_v9 = vsel %vm1522_vm0, %v8494_v11, -inf }
  0xbd   :  { %4648 = vrot.lane.b32.xlu1 %v8410_v17, %s7709_s22  ;;  %v8549_v40 = vmax.f32 %v2003_v18, %v2004_v42  ;;  %v2018_v24 = vrot.slane %v2017_v21, 1  ;;  %v2028_v63 = vrot.slane %v2027_v9, 4  ;;  %v2034_v39 = vsel %vm1522_vm0, %v499_v23, -inf }
  0xbe   :  { %v8555_v1 = vmax.f32 %v2010_v47, %v2011_v61  ;;  %v2024_v8 = vmax.f32 %v2022_v6, %v2023_v45  ;;  %v2035_v7 = vrot.slane %v2034_v39, 4  ;;  %v2041_v25 = vsel %vm1522_vm0, %v8498_v33, -inf }
  0xbf   :  { %v8559_v26 = vmax.f32 %v2017_v21, %v2018_v24  ;;  %v2029_v55 = vmax.f32 %v2027_v9, %v2028_v63  ;;  %v2042_v0 = vrot.slane %v2041_v25, 4  ;;  %v2048_v56 = vsel %vm1522_vm0, %v500_v2, -inf }
  0xc0   :  { %4206 = vrot.lane.b32.xlu0 %v8527_v38, %s7702_s16  ;;  %v2025_v11 = vrot.slane %v2024_v8, 1  ;;  %v2036_v23 = vmax.f32 %v2034_v39, %v2035_v7  ;;  %v2049_v48 = vrot.slane %v2048_v56, 4  ;;  %v2055_v59 = vsel %vm1522_vm0, %v8507_v19, -inf }
  0xc1   :  { %4270 = vrot.lane.b32.xlu1 %v8547_v52, %s7703_s17  ;;  %v2030_v15 = vrot.slane %v2029_v55, 2  ;;  %v2043_v22 = vmax.f32 %v2041_v25, %v2042_v0  ;;  %v2056_v13 = vrot.slane %v2055_v59, 4  ;;  %v2062_v33 = vsel %vm1522_vm0, %v516_v51, -inf }
  0xc2   :  { %v8575_v2 = vmax.f32 %v2024_v8, %v2025_v11  ;;  %v2037_v36 = vrot.slane %v2036_v23, 2  ;;  %v2050_v54 = vmax.f32 %v2048_v56, %v2049_v48  ;;  %v2063_v53 = vrot.slane %v2062_v33, 4 }
  0xc3   :  { %v2031_v20 = vmax.f32 %v2029_v55, %v2030_v15  ;;  %v2044_v28 = vrot.slane %v2043_v22, 2  ;;  %v2057_v37 = vmax.f32 %v2055_v59, %v2056_v13  ;;  %v2069_v4 = vsel %vm1522_vm0, %v8512_v31, -inf }
  0xc4   :  { %4458 = vrot.lane.b32.xlu0 %v8410_v17, %s7706_s20  ;;  %v2038_v35 = vmax.f32 %v2036_v23, %v2037_v36  ;;  %v2051_v30 = vrot.slane %v2050_v54, 2  ;;  %v2064_v49 = vmax.f32 %v2062_v33, %v2063_v53  ;;  %v2070_v19 = vrot.slane %v2069_v4, 4  ;;  %v70_v36 = vld [vmem:[%s11771_s0 + $0xa0] sm:$0xff] }
  0xc5   :  { %4522 = vrot.lane.b32.xlu1 %v8525_v58, %s7707_s21  ;;  %v2032_v51 = vrot.slane %v2031_v20, 1  ;;  %v2045_v57 = vmax.f32 %v2043_v22, %v2044_v28  ;;  %v2058_v62 = vrot.slane %v2057_v37, 2  ;;  %v2076_v46 = vsel %vm1522_vm0, %v517_v43, -inf }
  0xc6   :  { %v2039_v3 = vrot.slane %v2038_v35, 1  ;;  %v2052_v41 = vmax.f32 %v2050_v54, %v2051_v30  ;;  %v2065_v44 = vrot.slane %v2064_v49, 2  ;;  %v2071_v50 = vmax.f32 %v2069_v4, %v2070_v19 }
  0xc7   :  { %v2033_v17 = vmax.f32 %v2031_v20, %v2032_v51  ;;  %v2046_v32 = vrot.slane %v2045_v57, 1  ;;  %v2059_v14 = vmax.f32 %v2057_v37, %v2058_v62  ;;  %v2077_v18 = vrot.slane %v2076_v46, 4  ;;  %v73_v62 = vld [vmem:[%s11771_s0 + $0xb8] sm:$0xff] }
  0xc8   :  { %v2040_v12 = vmax.f32 %v2038_v35, %v2039_v3  ;;  %v2053_v60 = vrot.slane %v2052_v41, 1  ;;  %v2066_v47 = vmax.f32 %v2064_v49, %v2065_v44  ;;  %v2072_v58 = vrot.slane %v2071_v50, 2 }
  0xc9   :  { %v2047_v6 = vmax.f32 %v2045_v57, %v2046_v32  ;;  %v2060_v42 = vrot.slane %v2059_v14, 1  ;;  %v2078_v21 = vmax.f32 %v2076_v46, %v2077_v18  ;;  %v3412_v31 = vsel %vm3315_vm1, %v8533_v5, -inf }
  0xca   :  { %v2054_v61 = vmax.f32 %v2052_v41, %v2053_v60  ;;  %v2067_v43 = vrot.slane %v2066_v47, 1  ;;  %v2073_v45 = vmax.f32 %v2071_v50, %v2072_v58  ;;  %v3413_v9 = vsel %vm3315_vm1, %v2033_v17, -inf }
  0xcb   :  { %v2061_v24 = vmax.f32 %v2059_v14, %v2060_v42  ;;  %v2079_v63 = vrot.slane %v2078_v21, 2  ;;  %v3414_v39 = vmax.f32 %v3412_v31, %v3413_v9  ;;  %v3415_v8 = vsel %vm3315_vm1, %v8535_v16, -inf }
  0xcc   :  { %v2068_v7 = vmax.f32 %v2066_v47, %v2067_v43  ;;  %v2074_v25 = vrot.slane %v2073_v45, 1  ;;  %v3416_v55 = vsel %vm3315_vm1, %v2040_v12, -inf  ;;  %v3418_v0 = vsel %vm3315_vm1, %v8537_v29, -inf }
  0xcd   :  { %v2080_v56 = vmax.f32 %v2078_v21, %v2079_v63  ;;  %v3417_v5 = vmax.f32 %v3415_v8, %v3416_v55  ;;  %v3419_v11 = vsel %vm3315_vm1, %v2047_v6, -inf  ;;  %v3421_v23 = vsel %vm3315_vm1, %v8543_v34, -inf  ;;  %v71_v34 = vld [vmem:[%s11771_s0 + $0xa8] sm:$0xff] }
  0xce   :  { %v2075_v48 = vmax.f32 %v2073_v45, %v2074_v25  ;;  %v3420_v59 = vmax.f32 %v3418_v0, %v3419_v11  ;;  %v3422_v15 = vsel %vm3315_vm1, %v2054_v61, -inf  ;;  %v3424_v16 = vsel %vm3315_vm1, %v8549_v40, -inf }
  0xcf   :  { %v2081_v22 = vrot.slane %v2080_v56, 1  ;;  %v3423_v13 = vmax.f32 %v3421_v23, %v3422_v15  ;;  %v3425_v33 = vsel %vm3315_vm1, %v2061_v24, -inf  ;;  %v3427_v29 = vsel %vm3315_vm1, %v8555_v1, -inf  ;;  %v72_v1 = vld [vmem:[%s11771_s0 + $0xb0] sm:$0xff] }
  0xd0   :  { %v3426_v54 = vmax.f32 %v3424_v16, %v3425_v33  ;;  %v3428_v53 = vsel %vm3315_vm1, %v2068_v7, -inf  ;;  %v3430_v40 = vsel %vm3315_vm1, %v8559_v26, -inf  ;;  %v3431_v20 = vsel %vm3315_vm1, %v2075_v48, -inf }
  0xd1   :  { %v2082_v28 = vmax.f32 %v2080_v56, %v2081_v22  ;;  %v3429_v37 = vmax.f32 %v3427_v29, %v3428_v53  ;;  %v3432_v4 = vmax.f32 %v3430_v40, %v3431_v20  ;;  %v3433_v35 = vsel %vm3315_vm1, %v8575_v2, -inf }
  0xd2   :  { %v3913_v30 = vsel %vm3878_vm3, %v3417_v5, %v3414_v39  ;;  %v518_v49 = vcombine.high %v70_v36, %v70_v36  ;;  %v525_v19 = vrot.slane %v70_v36, %v7962_v27  ;;  %v535_v51 = vcombine.high %v71_v34, %v71_v34 }
  0xd3   :  { %v3434_v26 = vsel %vm3315_vm1, %v2082_v28, -inf  ;;  %v3914_v57 = vsel %vm3880_vm4, %v3420_v59, %v3913_v30  ;;  %v542_v46 = vrot.slane %v71_v34, %v7962_v27  ;;  %v552_v3 = vcombine.high %v72_v1, %v72_v1 }
  0xd4   :  { %v3435_v41 = vmax.f32 %v3433_v35, %v3434_v26  ;;  %v3915_v2 = vsel %vm3882_vm5, %v3423_v13, %v3914_v57  ;;  %v532_v44 = vrot.slane %v518_v49, %v7962_v27  ;;  %v533_v50 = vcombine.high %v525_v19, %v525_v19 }
  0xd5   :  { %v3916_v17 = vsel %vm3884_vm6, %v3426_v54, %v3915_v2  ;;  %v549_v32 = vrot.slane %v535_v51, %v7962_v27  ;;  %v550_v14 = vcombine.high %v542_v46, %v542_v46  ;;  %v8632_v18 = vrot.slane %v72_v1, %v7962_v27 }
  0xd6   :  { %v3917_v12 = vsel %vm3886_vm7, %v3429_v37, %v3916_v17  ;;  %v534_v60 = vcombine.high %v532_v44, %v532_v44  ;;  %v8636_v47 = vrot.slane %v552_v3, %v7962_v27  ;;  %v569_v58 = vcombine.high %v73_v62, %v73_v62 }
  0xd7   :  { %v3918_v6 = vsel %vm3888_vm8, %v3432_v4, %v3917_v12  ;;  %v551_v42 = vcombine.high %v549_v32, %v549_v32  ;;  %v567_v21 = vcombine.high %v8632_v18, %v8632_v18  ;;  %v8642_v31 = vrot.slane %v73_v62, %v7962_v27 }
  0xd8   :  { %v3919_v61 = vsel %vm11796_vm9, %v3435_v41, %v3918_v6  ;;  %v568_v43 = vcombine.high %v8636_v47, %v8636_v47  ;;  %v8648_v45 = vrot.slane %v569_v58, %v7962_v27  ;;  %v2083_v9 = vsel %vm1522_vm0, %v525_v19, -inf }
  0xd9   :  { %4018 = vst.msk [vmem:[#allocation2 + $0x51] sm:$0xff] %vm3315_vm1, %v3919_v61  ;;  %v584_v24 = vcombine.high %v8642_v31, %v8642_v31  ;;  %v2084_v63 = vrot.slane %v2083_v9, 4  ;;  %v2090_v39 = vsel %vm1522_vm0, %v533_v50, -inf  ;;  %v2097_v8 = vsel %vm1522_vm0, %v532_v44, -inf }
  0xda   :  { %v585_v7 = vcombine.high %v8648_v45, %v8648_v45  ;;  %v2091_v25 = vrot.slane %v2090_v39, 4  ;;  %v2098_v55 = vrot.slane %v2097_v8, 4  ;;  %v2104_v0 = vsel %vm1522_vm0, %v534_v60, -inf }
  0xdb   :  { %v2085_v56 = vmax.f32 %v2083_v9, %v2084_v63  ;;  %v2105_v5 = vrot.slane %v2104_v0, 4  ;;  %v2111_v11 = vsel %vm1522_vm0, %v542_v46, -inf  ;;  %v2118_v23 = vsel %vm1522_vm0, %v550_v14, -inf }
  0xdc   :  { %v2092_v48 = vmax.f32 %v2090_v39, %v2091_v25  ;;  %v2099_v59 = vmax.f32 %v2097_v8, %v2098_v55  ;;  %v2112_v15 = vrot.slane %v2111_v11, 4  ;;  %v2119_v16 = vrot.slane %v2118_v23, 4 }
  0xdd   :  { %v2086_v22 = vrot.slane %v2085_v56, 2  ;;  %v2106_v13 = vmax.f32 %v2104_v0, %v2105_v5  ;;  %v2125_v33 = vsel %vm1522_vm0, %v549_v32, -inf  ;;  %v2132_v29 = vsel %vm1522_vm0, %v551_v42, -inf }
  0xde   :  { %v2093_v36 = vrot.slane %v2092_v48, 2  ;;  %v2100_v34 = vrot.slane %v2099_v59, 2  ;;  %v2113_v54 = vmax.f32 %v2111_v11, %v2112_v15  ;;  %v2120_v53 = vmax.f32 %v2118_v23, %v2119_v16 }
  0xdf   :  { %v2087_v40 = vmax.f32 %v2085_v56, %v2086_v22  ;;  %v2107_v20 = vrot.slane %v2106_v13, 2  ;;  %v2126_v1 = vrot.slane %v2125_v33, 4  ;;  %v2133_v28 = vrot.slane %v2132_v29, 4 }
  0xe0   :  { %v8663_v37 = vld [vmem:[#allocation2 + $0x51] sm:$0xff]  ;;  %v2094_v35 = vmax.f32 %v2092_v48, %v2093_v36  ;;  %v2101_v30 = vmax.f32 %v2099_v59, %v2100_v34  ;;  %v2114_v49 = vrot.slane %v2113_v54, 2  ;;  %v2121_v19 = vrot.slane %v2120_v53, 2 }
  0xe1   :  { %v4089_v4 = vld [vmem:[#allocation2 + $0x50] sm:$0xff]  ;;  %4208 = vrot.lane.b32.xlu0 %v8663_v37, %s7702_s16  ;;  %v2088_v51 = vrot.slane %v2087_v40, 1  ;;  %v2108_v26 = vmax.f32 %v2106_v13, %v2107_v20  ;;  %v2127_v57 = vmax.f32 %v2125_v33, %v2126_v1  ;;  %v2134_v62 = vmax.f32 %v2132_v29, %v2133_v28 }
  0xe2   :  { %4334 = vrot.lane.b32.xlu1 %v4089_v4, %s7704_s18  ;;  %v2095_v46 = vrot.slane %v2094_v35, 1  ;;  %v2102_v3 = vrot.slane %v2101_v30, 1  ;;  %v2115_v41 = vmax.f32 %v2113_v54, %v2114_v49  ;;  %v2122_v2 = vmax.f32 %v2120_v53, %v2121_v19  ;;  %v8682_v63 = vld [vmem:[#allocation2 + $0x52] sm:$0xff] }
  0xe3   :  { %v8668_v44 = vmax.f32 %v2087_v40, %v2088_v51  ;;  %v2109_v50 = vrot.slane %v2108_v26, 1  ;;  %v2128_v17 = vrot.slane %v2127_v57, 2  ;;  %v2135_v32 = vrot.slane %v2134_v62, 2 }
  0xe4   :  { %v8670_v14 = vmax.f32 %v2094_v35, %v2095_v46  ;;  %v8672_v12 = vmax.f32 %v2101_v30, %v2102_v3  ;;  %v2116_v60 = vrot.slane %v2115_v41, 1  ;;  %v2123_v58 = vrot.slane %v2122_v2, 1 }
  0xe5   :  { %4460 = vrot.lane.b32.xlu0 %v8547_v52, %s7706_s20  ;;  %v8678_v6 = vmax.f32 %v2108_v26, %v2109_v50  ;;  %v2129_v42 = vmax.f32 %v2127_v57, %v2128_v17  ;;  %v2136_v61 = vmax.f32 %v2134_v62, %v2135_v32  ;;  %v2139_v9 = vsel %vm1522_vm0, %v8632_v18, -inf }
  0xe6   :  { %4586 = vrot.lane.b32.xlu1 %v8527_v38, %s7708_s30  ;;  %v8684_v39 = vmax.f32 %v2115_v41, %v2116_v60  ;;  %v8686_v8 = vmax.f32 %v2122_v2, %v2123_v58  ;;  %v2140_v25 = vrot.slane %v2139_v9, 4  ;;  %v2146_v55 = vsel %vm1522_vm0, %v567_v21, -inf }
  0xe7   :  { %v2130_v38 = vrot.slane %v2129_v42, 1  ;;  %v2137_v0 = vrot.slane %v2136_v61, 1  ;;  %v2147_v56 = vrot.slane %v2146_v55, 4  ;;  %v2153_v5 = vsel %vm1522_vm0, %v8636_v47, -inf }
  0xe8   :  { %v2141_v11 = vmax.f32 %v2139_v9, %v2140_v25  ;;  %v2154_v23 = vrot.slane %v2153_v5, 4  ;;  %v2160_v48 = vsel %vm1522_vm0, %v568_v43, -inf  ;;  %v2167_v59 = vsel %vm1522_vm0, %v8642_v31, -inf }
  0xe9   :  { %4272 = vrot.lane.b32.xlu0 %v8682_v63, %s7703_s17  ;;  %v8704_v18 = vmax.f32 %v2129_v42, %v2130_v38  ;;  %v8706_v21 = vmax.f32 %v2136_v61, %v2137_v0  ;;  %v2148_v15 = vmax.f32 %v2146_v55, %v2147_v56  ;;  %v2161_v16 = vrot.slane %v2160_v48, 4 }
  0xea   :  { %4398 = vrot.lane.b32.xlu1 %v8663_v37, %s7705_s19  ;;  %v2142_v22 = vrot.slane %v2141_v11, 2  ;;  %v2155_v13 = vmax.f32 %v2153_v5, %v2154_v23  ;;  %v2168_v47 = vrot.slane %v2167_v59, 4  ;;  %v2174_v43 = vsel %vm1522_vm0, %v584_v24, -inf }
  0xeb   :  { %v2149_v33 = vrot.slane %v2148_v15, 2  ;;  %v2162_v29 = vmax.f32 %v2160_v48, %v2161_v16  ;;  %v2175_v36 = vrot.slane %v2174_v43, 4  ;;  %v2181_v34 = vsel %vm1522_vm0, %v8648_v45, -inf }
  0xec   :  { %v2143_v54 = vmax.f32 %v2141_v11, %v2142_v22  ;;  %v2156_v53 = vrot.slane %v2155_v13, 2  ;;  %v2169_v40 = vmax.f32 %v2167_v59, %v2168_v47  ;;  %v2182_v20 = vrot.slane %v2181_v34, 4  ;;  %v74_v47 = vld [vmem:[%s11771_s0 + $0xc0] sm:$0xff] }
  0xed   :  { %4524 = vrot.lane.b32.xlu0 %v4089_v4, %s7707_s21  ;;  %v2150_v1 = vmax.f32 %v2148_v15, %v2149_v33  ;;  %v2163_v28 = vrot.slane %v2162_v29, 2  ;;  %v2176_v35 = vmax.f32 %v2174_v43, %v2175_v36  ;;  %v2188_v31 = vsel %vm1522_vm0, %v585_v7, -inf }
  0xee   :  { %4650 = vrot.lane.b32.xlu1 %v8547_v52, %s7709_s22  ;;  %v2144_v24 = vrot.slane %v2143_v54, 1  ;;  %v2157_v30 = vmax.f32 %v2155_v13, %v2156_v53  ;;  %v2170_v49 = vrot.slane %v2169_v40, 2  ;;  %v2183_v19 = vmax.f32 %v2181_v34, %v2182_v20 }
  0xef   :  { %v2151_v51 = vrot.slane %v2150_v1, 1  ;;  %v2164_v26 = vmax.f32 %v2162_v29, %v2163_v28  ;;  %v2177_v57 = vrot.slane %v2176_v35, 2  ;;  %v2189_v62 = vrot.slane %v2188_v31, 4 }
  0xf0   :  { %v2145_v4 = vmax.f32 %v2143_v54, %v2144_v24  ;;  %v2158_v46 = vrot.slane %v2157_v30, 1  ;;  %v2171_v3 = vmax.f32 %v2169_v40, %v2170_v49  ;;  %v2184_v41 = vrot.slane %v2183_v19, 2 }
  0xf1   :  { %v2152_v2 = vmax.f32 %v2150_v1, %v2151_v51  ;;  %v2165_v50 = vrot.slane %v2164_v26, 1  ;;  %v2178_v45 = vmax.f32 %v2176_v35, %v2177_v57  ;;  %v2190_v17 = vmax.f32 %v2188_v31, %v2189_v62 }
  0xf2   :  { %v2159_v7 = vmax.f32 %v2157_v30, %v2158_v46  ;;  %v2172_v32 = vrot.slane %v2171_v3, 1  ;;  %v2185_v60 = vmax.f32 %v2183_v19, %v2184_v41  ;;  %v3436_v52 = vsel %vm3315_vm1, %v8668_v44, -inf }
  0xf3   :  { %v2166_v58 = vmax.f32 %v2164_v26, %v2165_v50  ;;  %v2179_v42 = vrot.slane %v2178_v45, 1  ;;  %v2191_v61 = vrot.slane %v2190_v17, 2  ;;  %v3437_v9 = vsel %vm3315_vm1, %v2145_v4, -inf }
  0xf4   :  { %v2173_v25 = vmax.f32 %v2171_v3, %v2172_v32  ;;  %v2186_v55 = vrot.slane %v2185_v60, 1  ;;  %v3438_v38 = vmax.f32 %v3436_v52, %v3437_v9  ;;  %v3439_v0 = vsel %vm3315_vm1, %v8670_v14, -inf }
  0xf5   :  { %v2180_v56 = vmax.f32 %v2178_v45, %v2179_v42  ;;  %v2192_v5 = vmax.f32 %v2190_v17, %v2191_v61  ;;  %v3440_v11 = vsel %vm3315_vm1, %v2152_v2, -inf  ;;  %v3442_v23 = vsel %vm3315_vm1, %v8672_v12, -inf }
  0xf6   :  { %v2187_v48 = vmax.f32 %v2185_v60, %v2186_v55  ;;  %v3441_v44 = vmax.f32 %v3439_v0, %v3440_v11  ;;  %v3443_v59 = vsel %vm3315_vm1, %v2159_v7, -inf  ;;  %v3445_v15 = vsel %vm3315_vm1, %v8678_v6, -inf }
  0xf7   :  { %v2193_v16 = vrot.slane %v2192_v5, 1  ;;  %v3444_v22 = vmax.f32 %v3442_v23, %v3443_v59  ;;  %v3446_v13 = vsel %vm3315_vm1, %v2166_v58, -inf  ;;  %v3448_v14 = vsel %vm3315_vm1, %v8684_v39, -inf  ;;  %v75_v39 = vld [vmem:[%s11771_s0 + $0xc8] sm:$0xff] }
  0xf8   :  { %v3447_v43 = vmax.f32 %v3445_v15, %v3446_v13  ;;  %v3449_v12 = vsel %vm3315_vm1, %v2173_v25, -inf  ;;  %v3451_v33 = vsel %vm3315_vm1, %v8686_v8, -inf  ;;  %v3452_v29 = vsel %vm3315_vm1, %v2180_v56, -inf  ;;  %v76_v8 = vld [vmem:[%s11771_s0 + $0xd0] sm:$0xff] }
  0xf9   :  { %v2194_v6 = vmax.f32 %v2192_v5, %v2193_v16  ;;  %v3450_v36 = vmax.f32 %v3448_v14, %v3449_v12  ;;  %v3453_v34 = vmax.f32 %v3451_v33, %v3452_v29  ;;  %v3454_v54 = vsel %vm3315_vm1, %v8704_v18, -inf }
  0xfa   :  { %v3455_v53 = vsel %vm3315_vm1, %v2187_v48, -inf  ;;  %v3457_v40 = vsel %vm3315_vm1, %v8706_v21, -inf  ;;  %v3920_v20 = vsel %vm3878_vm3, %v3441_v44, %v3438_v38  ;;  %v586_v1 = vcombine.high %v74_v47, %v74_v47  ;;  %v77_v21 = vld [vmem:[%s11771_s0 + $0xd8] sm:$0xff] }
  0xfb   :  { %v3456_v28 = vmax.f32 %v3454_v54, %v3455_v53  ;;  %v3458_v35 = vsel %vm3315_vm1, %v2194_v6, -inf  ;;  %v3921_v18 = vsel %vm3880_vm4, %v3444_v22, %v3920_v20  ;;  %v593_v31 = vrot.slane %v74_v47, %v7962_v27 }
  0xfc   :  { %v3459_v24 = vmax.f32 %v3457_v40, %v3458_v35  ;;  %v3922_v30 = vsel %vm3882_vm5, %v3447_v43, %v3921_v18  ;;  %v600_v49 = vrot.slane %v586_v1, %v7962_v27  ;;  %v603_v19 = vcombine.high %v75_v39, %v75_v39 }
  0xfd   :  { %v3923_v51 = vsel %vm3884_vm6, %v3450_v36, %v3922_v30  ;;  %v601_v26 = vcombine.high %v593_v31, %v593_v31  ;;  %v610_v57 = vrot.slane %v75_v39, %v7962_v27  ;;  %v620_v62 = vcombine.high %v76_v8, %v76_v8 }
  0xfe   :  { %v3924_v4 = vsel %vm3886_vm7, %v3453_v34, %v3923_v51  ;;  %v602_v46 = vcombine.high %v600_v49, %v600_v49  ;;  %v617_v3 = vrot.slane %v603_v19, %v7962_v27  ;;  %v8767_v41 = vrot.slane %v76_v8, %v7962_v27 }
  0xff   :  { %v3925_v2 = vsel %vm3888_vm8, %v3456_v28, %v3924_v4  ;;  %v618_v50 = vcombine.high %v610_v57, %v610_v57  ;;  %v8771_v45 = vrot.slane %v620_v62, %v7962_v27  ;;  %v637_v17 = vcombine.high %v77_v21, %v77_v21 }
 0x100   :  { %v3926_v7 = vsel %vm11796_vm9, %v3459_v24, %v3925_v2  ;;  %v619_v32 = vcombine.high %v617_v3, %v617_v3  ;;  %v635_v60 = vcombine.high %v8767_v41, %v8767_v41  ;;  %v8777_v52 = vrot.slane %v77_v21, %v7962_v27 }
 0x101   :  { %4019 = vst.msk [vmem:[#allocation2 + $0x61] sm:$0xff] %vm3315_vm1, %v3926_v7  ;;  %v636_v58 = vcombine.high %v8771_v45, %v8771_v45  ;;  %v8783_v42 = vrot.slane %v637_v17, %v7962_v27  ;;  %v2195_v61 = vsel %vm1522_vm0, %v593_v31, -inf  ;;  %v2202_v9 = vsel %vm1522_vm0, %v601_v26, -inf }
 0x102   :  { %v652_v25 = vcombine.high %v8777_v52, %v8777_v52  ;;  %v2196_v55 = vrot.slane %v2195_v61, 4  ;;  %v2203_v38 = vrot.slane %v2202_v9, 4  ;;  %v2209_v0 = vsel %vm1522_vm0, %v600_v49, -inf }
 0x103   :  { %v653_v56 = vcombine.high %v8783_v42, %v8783_v42  ;;  %v2210_v5 = vrot.slane %v2209_v0, 4  ;;  %v2216_v11 = vsel %vm1522_vm0, %v602_v46, -inf  ;;  %v2223_v23 = vsel %vm1522_vm0, %v610_v57, -inf }
 0x104   :  { %v2197_v48 = vmax.f32 %v2195_v61, %v2196_v55  ;;  %v2204_v44 = vmax.f32 %v2202_v9, %v2203_v38  ;;  %v2217_v59 = vrot.slane %v2216_v11, 4  ;;  %v2224_v15 = vrot.slane %v2223_v23, 4 }
 0x105   :  { %v2211_v16 = vmax.f32 %v2209_v0, %v2210_v5  ;;  %v2230_v22 = vsel %vm1522_vm0, %v618_v50, -inf  ;;  %v2237_v13 = vsel %vm1522_vm0, %v617_v3, -inf  ;;  %v2244_v14 = vsel %vm1522_vm0, %v619_v32, -inf }
 0x106   :  { %v2198_v47 = vrot.slane %v2197_v48, 2  ;;  %v2205_v43 = vrot.slane %v2204_v44, 2  ;;  %v2218_v12 = vmax.f32 %v2216_v11, %v2217_v59  ;;  %v2225_v33 = vmax.f32 %v2223_v23, %v2224_v15 }
 0x107   :  { %v2212_v29 = vrot.slane %v2211_v16, 2  ;;  %v2231_v6 = vrot.slane %v2230_v22, 4  ;;  %v2238_v36 = vrot.slane %v2237_v13, 4  ;;  %v2245_v34 = vrot.slane %v2244_v14, 4 }
 0x108   :  { %v8797_v54 = vld [vmem:[#allocation2 + $0x60] sm:$0xff]  ;;  %v2199_v53 = vmax.f32 %v2197_v48, %v2198_v47  ;;  %v2206_v40 = vmax.f32 %v2204_v44, %v2205_v43  ;;  %v2219_v20 = vrot.slane %v2218_v12, 2  ;;  %v2226_v8 = vrot.slane %v2225_v33, 2 }
 0x109   :  { %v8799_v39 = vld [vmem:[#allocation2 + $0x61] sm:$0xff]  ;;  %4336 = vrot.lane.b32.xlu0 %v8797_v54, %s7704_s18  ;;  %v2213_v1 = vmax.f32 %v2211_v16, %v2212_v29  ;;  %v2232_v28 = vmax.f32 %v2230_v22, %v2231_v6  ;;  %v2239_v35 = vmax.f32 %v2237_v13, %v2238_v36  ;;  %v2251_v18 = vsel %vm1522_vm0, %v8767_v41, -inf }
 0x10a   :  { %4400 = vrot.lane.b32.xlu1 %v8799_v39, %s7705_s19  ;;  %v2200_v31 = vrot.slane %v2199_v53, 1  ;;  %v2207_v24 = vrot.slane %v2206_v40, 1  ;;  %v2220_v30 = vmax.f32 %v2218_v12, %v2219_v20  ;;  %v2227_v21 = vmax.f32 %v2225_v33, %v2226_v8  ;;  %v8817_v7 = vld [vmem:[#allocation2 + $0x62] sm:$0xff] }
 0x10b   :  { %v2214_v49 = vrot.slane %v2213_v1, 1  ;;  %v2233_v19 = vrot.slane %v2232_v28, 2  ;;  %v2240_v51 = vrot.slane %v2239_v35, 2  ;;  %v2246_v26 = vmax.f32 %v2244_v14, %v2245_v34 }
 0x10c   :  { %v8807_v57 = vmax.f32 %v2199_v53, %v2200_v31  ;;  %v8809_v62 = vmax.f32 %v2206_v40, %v2207_v24  ;;  %v2221_v4 = vrot.slane %v2220_v30, 1  ;;  %v2228_v46 = vrot.slane %v2227_v21, 1 }
 0x10d   :  { %4588 = vrot.lane.b32.xlu0 %v8663_v37, %s7708_s30  ;;  %v8815_v3 = vmax.f32 %v2213_v1, %v2214_v49  ;;  %v2234_v2 = vmax.f32 %v2232_v28, %v2233_v19  ;;  %v2241_v50 = vmax.f32 %v2239_v35, %v2240_v51  ;;  %v2247_v17 = vrot.slane %v2246_v26, 2 }
 0x10e   :  { %4652 = vrot.lane.b32.xlu1 %v8682_v63, %s7709_s22  ;;  %v8819_v32 = vmax.f32 %v2220_v30, %v2221_v4  ;;  %v8821_v61 = vmax.f32 %v2227_v21, %v2228_v46  ;;  %v2252_v9 = vrot.slane %v2251_v18, 4  ;;  %v2258_v37 = vsel %vm1522_vm0, %v635_v60, -inf }
 0x10f   :  { %v2235_v55 = vrot.slane %v2234_v2, 1  ;;  %v2242_v38 = vrot.slane %v2241_v50, 1  ;;  %v2248_v0 = vmax.f32 %v2246_v26, %v2247_v17  ;;  %v2259_v5 = vrot.slane %v2258_v37, 4 }
 0x110   :  { %v2253_v11 = vmax.f32 %v2251_v18, %v2252_v9  ;;  %v2265_v23 = vsel %vm1522_vm0, %v8771_v45, -inf  ;;  %v2272_v48 = vsel %vm1522_vm0, %v636_v58, -inf  ;;  %v2279_v44 = vsel %vm1522_vm0, %v8777_v52, -inf }
 0x111   :  { %4210 = vrot.lane.b32.xlu0 %v8799_v39, %s7702_s16  ;;  %v8839_v41 = vmax.f32 %v2234_v2, %v2235_v55  ;;  %v8841_v60 = vmax.f32 %v2241_v50, %v2242_v38  ;;  %v2249_v59 = vrot.slane %v2248_v0, 1  ;;  %v2260_v15 = vmax.f32 %v2258_v37, %v2259_v5 }
 0x112   :  { %4274 = vrot.lane.b32.xlu1 %v8817_v7, %s7703_s17  ;;  %v2254_v16 = vrot.slane %v2253_v11, 2  ;;  %v2266_v22 = vrot.slane %v2265_v23, 4  ;;  %v2273_v45 = vrot.slane %v2272_v48, 4  ;;  %v2280_v13 = vrot.slane %v2279_v44, 4 }
 0x113   :  { %v8843_v58 = vmax.f32 %v2248_v0, %v2249_v59  ;;  %v2261_v14 = vrot.slane %v2260_v15, 2  ;;  %v2286_v47 = vsel %vm1522_vm0, %v652_v25, -inf  ;;  %v2293_v43 = vsel %vm1522_vm0, %v8783_v42, -inf }
 0x114   :  { %v2255_v12 = vmax.f32 %v2253_v11, %v2254_v16  ;;  %v2267_v33 = vmax.f32 %v2265_v23, %v2266_v22  ;;  %v2274_v29 = vmax.f32 %v2272_v48, %v2273_v45  ;;  %v2281_v6 = vmax.f32 %v2279_v44, %v2280_v13 }
 0x115   :  { %4462 = vrot.lane.b32.xlu0 %v8682_v63, %s7706_s20  ;;  %v2262_v36 = vmax.f32 %v2260_v15, %v2261_v14  ;;  %v2287_v34 = vrot.slane %v2286_v47, 4  ;;  %v2294_v53 = vrot.slane %v2293_v43, 4  ;;  %v2300_v52 = vsel %vm1522_vm0, %v653_v56, -inf }
 0x116   :  { %4526 = vrot.lane.b32.xlu1 %v8797_v54, %s7707_s21  ;;  %v2256_v25 = vrot.slane %v2255_v12, 1  ;;  %v2268_v40 = vrot.slane %v2267_v33, 2  ;;  %v2275_v20 = vrot.slane %v2274_v29, 2  ;;  %v2282_v8 = vrot.slane %v2281_v6, 2 }
 0x117   :  { %v2263_v1 = vrot.slane %v2262_v36, 1  ;;  %v2288_v28 = vmax.f32 %v2286_v47, %v2287_v34  ;;  %v2295_v35 = vmax.f32 %v2293_v43, %v2294_v53  ;;  %v2301_v18 = vrot.slane %v2300_v52, 4 }
 0x118   :  { %v2257_v63 = vmax.f32 %v2255_v12, %v2256_v25  ;;  %v2269_v31 = vmax.f32 %v2267_v33, %v2268_v40  ;;  %v2276_v24 = vmax.f32 %v2274_v29, %v2275_v20  ;;  %v2283_v30 = vmax.f32 %v2281_v6, %v2282_v8 }
 0x119   :  { %v2264_v21 = vmax.f32 %v2262_v36, %v2263_v1  ;;  %v2289_v49 = vrot.slane %v2288_v28, 2  ;;  %v2296_v42 = vrot.slane %v2295_v35, 2  ;;  %v2302_v19 = vmax.f32 %v2300_v52, %v2301_v18  ;;  %v79_v36 = vld [vmem:[%s11771_s0 + $0xe8] sm:$0xff]  ;;  %v81_v1 = vld [vmem:[%s11771_s0 + $0xf8] sm:$0xff] }
 0x11a   :  { %v2270_v56 = vrot.slane %v2269_v31, 1  ;;  %v2277_v51 = vrot.slane %v2276_v24, 1  ;;  %v2284_v26 = vrot.slane %v2283_v30, 1  ;;  %v3460_v54 = vsel %vm3315_vm1, %v8807_v57, -inf }
 0x11b   :  { %v2290_v4 = vmax.f32 %v2288_v28, %v2289_v49  ;;  %v2297_v46 = vmax.f32 %v2295_v35, %v2296_v42  ;;  %v2303_v2 = vrot.slane %v2302_v19, 2  ;;  %v3461_v50 = vsel %vm3315_vm1, %v2257_v63, -inf }
 0x11c   :  { %v2271_v17 = vmax.f32 %v2269_v31, %v2270_v56  ;;  %v2278_v9 = vmax.f32 %v2276_v24, %v2277_v51  ;;  %v2285_v37 = vmax.f32 %v2283_v30, %v2284_v26  ;;  %v3462_v55 = vmax.f32 %v3460_v54, %v3461_v50 }
 0x11d   :  { %v2291_v38 = vrot.slane %v2290_v4, 1  ;;  %v2298_v0 = vrot.slane %v2297_v46, 1  ;;  %v2304_v5 = vmax.f32 %v2302_v19, %v2303_v2  ;;  %v3463_v11 = vsel %vm3315_vm1, %v8809_v62, -inf }
 0x11e   :  { %v3464_v23 = vsel %vm3315_vm1, %v2264_v21, -inf  ;;  %v3466_v57 = vsel %vm3315_vm1, %v8815_v3, -inf  ;;  %v3467_v48 = vsel %vm3315_vm1, %v2271_v17, -inf  ;;  %v3469_v44 = vsel %vm3315_vm1, %v8819_v32, -inf  ;;  %v78_v32 = vld [vmem:[%s11771_s0 + $0xe0] sm:$0xff] }
 0x11f   :  { %v2292_v59 = vmax.f32 %v2290_v4, %v2291_v38  ;;  %v2299_v15 = vmax.f32 %v2297_v46, %v2298_v0  ;;  %v2305_v16 = vrot.slane %v2304_v5, 1  ;;  %v3465_v22 = vmax.f32 %v3463_v11, %v3464_v23 }
 0x120   :  { %v3468_v45 = vmax.f32 %v3466_v57, %v3467_v48  ;;  %v3470_v13 = vsel %vm3315_vm1, %v2278_v9, -inf  ;;  %v3472_v62 = vsel %vm3315_vm1, %v8821_v61, -inf  ;;  %v3473_v14 = vsel %vm3315_vm1, %v2285_v37, -inf }
 0x121   :  { %v2306_v47 = vmax.f32 %v2304_v5, %v2305_v16  ;;  %v3471_v43 = vmax.f32 %v3469_v44, %v3470_v13  ;;  %v3474_v3 = vmax.f32 %v3472_v62, %v3473_v14  ;;  %v3475_v12 = vsel %vm3315_vm1, %v8839_v41, -inf  ;;  %v80_v41 = vld [vmem:[%s11771_s0 + $0xf0] sm:$0xff] }
 0x122   :  { %v3476_v33 = vsel %vm3315_vm1, %v2292_v59, -inf  ;;  %v3478_v29 = vsel %vm3315_vm1, %v8841_v60, -inf  ;;  %v3479_v6 = vsel %vm3315_vm1, %v2299_v15, -inf  ;;  %v3481_v61 = vsel %vm3315_vm1, %v8843_v58, -inf }
 0x123   :  { %v3477_v34 = vmax.f32 %v3475_v12, %v3476_v33  ;;  %v3480_v53 = vmax.f32 %v3478_v29, %v3479_v6  ;;  %v3482_v52 = vsel %vm3315_vm1, %v2306_v47, -inf  ;;  %v3927_v25 = vsel %vm3878_vm3, %v3465_v22, %v3462_v55 }
 0x124   :  { %v3483_v60 = vmax.f32 %v3481_v61, %v3482_v52  ;;  %v3928_v40 = vsel %vm3880_vm4, %v3468_v45, %v3927_v25  ;;  %v654_v20 = vcombine.high %v78_v32, %v78_v32  ;;  %v661_v58 = vrot.slane %v78_v32, %v7962_v27 }
 0x125   :  { %v3929_v8 = vsel %vm3882_vm5, %v3471_v43, %v3928_v40  ;;  %v671_v28 = vcombine.high %v79_v36, %v79_v36  ;;  %v678_v35 = vrot.slane %v79_v36, %v7962_v27  ;;  %v688_v18 = vcombine.high %v80_v41, %v80_v41 }
 0x126   :  { %v3930_v63 = vsel %vm3884_vm6, %v3474_v3, %v3929_v8  ;;  %v668_v31 = vrot.slane %v654_v20, %v7962_v27  ;;  %v669_v24 = vcombine.high %v661_v58, %v661_v58  ;;  %v8903_v30 = vrot.slane %v80_v41, %v7962_v27 }
 0x127   :  { %v3931_v21 = vsel %vm3886_vm7, %v3477_v34, %v3930_v63  ;;  %v685_v49 = vrot.slane %v671_v28, %v7962_v27  ;;  %v686_v42 = vcombine.high %v678_v35, %v678_v35  ;;  %v8908_v19 = vrot.slane %v688_v18, %v7962_v27 }
 0x128   :  { %v3932_v56 = vsel %vm3888_vm8, %v3480_v53, %v3931_v21  ;;  %v670_v51 = vcombine.high %v668_v31, %v668_v31  ;;  %v703_v26 = vcombine.high %v8903_v30, %v8903_v30  ;;  %v705_v54 = vcombine.high %v81_v1, %v81_v1 }
 0x129   :  { %v3933_v4 = vsel %vm11796_vm9, %v3483_v60, %v3932_v56  ;;  %v687_v46 = vcombine.high %v685_v49, %v685_v49  ;;  %v704_v2 = vcombine.high %v8908_v19, %v8908_v19  ;;  %v8917_v50 = vrot.slane %v81_v1, %v7962_v27 }
 0x12a   :  { %4020 = vst.msk [vmem:[#allocation2 + $0x71] sm:$0xff] %vm3315_vm1, %v3933_v4  ;;  %v8921_v17 = vrot.slane %v705_v54, %v7962_v27  ;;  %v2307_v9 = vsel %vm1522_vm0, %v661_v58, -inf  ;;  %v2314_v37 = vsel %vm1522_vm0, %v669_v24, -inf  ;;  %v2321_v55 = vsel %vm1522_vm0, %v668_v31, -inf }
 0x12b   :  { %v720_v38 = vcombine.high %v8917_v50, %v8917_v50  ;;  %v2308_v0 = vrot.slane %v2307_v9, 4  ;;  %v2315_v5 = vrot.slane %v2314_v37, 4  ;;  %v2322_v11 = vrot.slane %v2321_v55, 4 }
 0x12c   :  { %v721_v23 = vcombine.high %v8921_v17, %v8921_v17  ;;  %v2328_v57 = vsel %vm1522_vm0, %v670_v51, -inf  ;;  %v2335_v48 = vsel %vm1522_vm0, %v678_v35, -inf  ;;  %v2342_v44 = vsel %vm1522_vm0, %v686_v42, -inf }
 0x12d   :  { %v2309_v59 = vmax.f32 %v2307_v9, %v2308_v0  ;;  %v2316_v15 = vmax.f32 %v2314_v37, %v2315_v5  ;;  %v2323_v16 = vmax.f32 %v2321_v55, %v2322_v11  ;;  %v2329_v22 = vrot.slane %v2328_v57, 4 }
 0x12e   :  { %v2336_v45 = vrot.slane %v2335_v48, 4  ;;  %v2343_v13 = vrot.slane %v2342_v44, 4  ;;  %v2349_v62 = vsel %vm1522_vm0, %v685_v49, -inf  ;;  %v2356_v14 = vsel %vm1522_vm0, %v687_v46, -inf }
 0x12f   :  { %v2310_v47 = vrot.slane %v2309_v59, 2  ;;  %v2317_v43 = vrot.slane %v2316_v15, 2  ;;  %v2324_v3 = vrot.slane %v2323_v16, 2  ;;  %v2330_v12 = vmax.f32 %v2328_v57, %v2329_v22 }
 0x130   :  { %v2337_v32 = vmax.f32 %v2335_v48, %v2336_v45  ;;  %v2344_v33 = vmax.f32 %v2342_v44, %v2343_v13  ;;  %v2350_v29 = vrot.slane %v2349_v62, 4  ;;  %v2357_v6 = vrot.slane %v2356_v14, 4 }
 0x131   :  { %v8935_v61 = vld [vmem:[#allocation2 + $0x71] sm:$0xff]  ;;  %v2311_v41 = vmax.f32 %v2309_v59, %v2310_v47  ;;  %v2318_v34 = vmax.f32 %v2316_v15, %v2317_v43  ;;  %v2325_v53 = vmax.f32 %v2323_v16, %v2324_v3  ;;  %v2331_v52 = vrot.slane %v2330_v12, 2 }
 0x132   :  { %v4091_v36 = vld [vmem:[#allocation2 + $0x70] sm:$0xff]  ;;  %4212 = vrot.lane.b32.xlu0 %v8935_v61, %s7702_s16  ;;  %v2338_v25 = vrot.slane %v2337_v32, 2  ;;  %v2345_v60 = vrot.slane %v2344_v33, 2  ;;  %v2351_v40 = vmax.f32 %v2349_v62, %v2350_v29  ;;  %v2358_v20 = vmax.f32 %v2356_v14, %v2357_v6 }
 0x133   :  { %4338 = vrot.lane.b32.xlu1 %v4091_v36, %s7704_s18  ;;  %v2312_v58 = vrot.slane %v2311_v41, 1  ;;  %v2319_v8 = vrot.slane %v2318_v34, 1  ;;  %v2326_v1 = vrot.slane %v2325_v53, 1  ;;  %v2332_v28 = vmax.f32 %v2330_v12, %v2331_v52  ;;  %v8950_v46 = vld [vmem:[#allocation2 + $0x72] sm:$0xff] }
 0x134   :  { %v2339_v35 = vmax.f32 %v2337_v32, %v2338_v25  ;;  %v2346_v18 = vmax.f32 %v2344_v33, %v2345_v60  ;;  %v2352_v63 = vrot.slane %v2351_v40, 2  ;;  %v2359_v31 = vrot.slane %v2358_v20, 2 }
 0x135   :  { %v8940_v24 = vmax.f32 %v2311_v41, %v2312_v58  ;;  %v8942_v21 = vmax.f32 %v2318_v34, %v2319_v8  ;;  %v8944_v49 = vmax.f32 %v2325_v53, %v2326_v1  ;;  %v2333_v42 = vrot.slane %v2332_v28, 1 }
 0x136   :  { %4464 = vrot.lane.b32.xlu0 %v8817_v7, %s7706_s20  ;;  %v2340_v56 = vrot.slane %v2339_v35, 1  ;;  %v2347_v51 = vrot.slane %v2346_v18, 1  ;;  %v2353_v54 = vmax.f32 %v2351_v40, %v2352_v63  ;;  %v2360_v4 = vmax.f32 %v2358_v20, %v2359_v31 }
 0x137   :  { %4590 = vrot.lane.b32.xlu1 %v8799_v39, %s7708_s30  ;;  %v8952_v9 = vmax.f32 %v2332_v28, %v2333_v42  ;;  %v2363_v37 = vsel %vm1522_vm0, %v8903_v30, -inf  ;;  %v2370_v55 = vsel %vm1522_vm0, %v703_v26, -inf  ;;  %v2377_v0 = vsel %vm1522_vm0, %v8908_v19, -inf }
 0x138   :  { %v8962_v39 = vmax.f32 %v2339_v35, %v2340_v56  ;;  %v8964_v5 = vmax.f32 %v2346_v18, %v2347_v51  ;;  %v2354_v11 = vrot.slane %v2353_v54, 1  ;;  %v2361_v57 = vrot.slane %v2360_v4, 1 }
 0x139   :  { %v2364_v48 = vrot.slane %v2363_v37, 4  ;;  %v2371_v44 = vrot.slane %v2370_v55, 4  ;;  %v2378_v59 = vrot.slane %v2377_v0, 4  ;;  %v2384_v15 = vsel %vm1522_vm0, %v704_v2, -inf }
 0x13a   :  { %4276 = vrot.lane.b32.xlu0 %v8950_v46, %s7703_s17  ;;  %v8974_v30 = vmax.f32 %v2353_v54, %v2354_v11  ;;  %v8976_v26 = vmax.f32 %v2360_v4, %v2361_v57  ;;  %v2385_v16 = vrot.slane %v2384_v15, 4  ;;  %v2391_v22 = vsel %vm1522_vm0, %v8917_v50, -inf }
 0x13b   :  { %4402 = vrot.lane.b32.xlu1 %v8935_v61, %s7705_s19  ;;  %v2365_v45 = vmax.f32 %v2363_v37, %v2364_v48  ;;  %v2372_v13 = vmax.f32 %v2370_v55, %v2371_v44  ;;  %v2379_v62 = vmax.f32 %v2377_v0, %v2378_v59  ;;  %v2392_v19 = vrot.slane %v2391_v22, 4 }
 0x13c   :  { %v2386_v14 = vmax.f32 %v2384_v15, %v2385_v16  ;;  %v2398_v2 = vsel %vm1522_vm0, %v720_v38, -inf  ;;  %v2405_v47 = vsel %vm1522_vm0, %v8921_v17, -inf  ;;  %v2412_v43 = vsel %vm1522_vm0, %v721_v23, -inf }
 0x13d   :  { %v2366_v3 = vrot.slane %v2365_v45, 2  ;;  %v2373_v12 = vrot.slane %v2372_v13, 2  ;;  %v2380_v32 = vrot.slane %v2379_v62, 2  ;;  %v2393_v33 = vmax.f32 %v2391_v22, %v2392_v19 }
 0x13e   :  { %4528 = vrot.lane.b32.xlu0 %v4091_v36, %s7707_s21  ;;  %v2387_v29 = vrot.slane %v2386_v14, 2  ;;  %v2399_v6 = vrot.slane %v2398_v2, 4  ;;  %v2406_v41 = vrot.slane %v2405_v47, 4  ;;  %v2413_v50 = vrot.slane %v2412_v43, 4 }
 0x13f   :  { %4654 = vrot.lane.b32.xlu1 %v8817_v7, %s7709_s22  ;;  %v2367_v38 = vmax.f32 %v2365_v45, %v2366_v3  ;;  %v2374_v34 = vmax.f32 %v2372_v13, %v2373_v12  ;;  %v2381_v53 = vmax.f32 %v2379_v62, %v2380_v32  ;;  %v2394_v52 = vrot.slane %v2393_v33, 2  ;;  %v4037_v3 = vld [vmem:[#allocation2] sm:$0xff] }
 0x140   :  { %v2388_v17 = vmax.f32 %v2386_v14, %v2387_v29  ;;  %v2400_v25 = vmax.f32 %v2398_v2, %v2399_v6  ;;  %v2407_v23 = vmax.f32 %v2405_v47, %v2406_v41  ;;  %v2414_v60 = vmax.f32 %v2412_v43, %v2413_v50  ;;  %v82_v12 = vld [vmem:[%s11771_s0 + $0x100] sm:$0xff] }
 0x141   :  { %v2368_v40 = vrot.slane %v2367_v38, 1  ;;  %v2375_v20 = vrot.slane %v2374_v34, 1  ;;  %v2382_v58 = vrot.slane %v2381_v53, 1  ;;  %v2395_v8 = vmax.f32 %v2393_v33, %v2394_v52 }
 0x142   :  { %v2389_v36 = vrot.slane %v2388_v17, 1  ;;  %v2401_v1 = vrot.slane %v2400_v25, 2  ;;  %v2408_v28 = vrot.slane %v2407_v23, 2  ;;  %v2415_v35 = vrot.slane %v2414_v60, 2 }
 0x143   :  { %v2369_v18 = vmax.f32 %v2367_v38, %v2368_v40  ;;  %v2376_v63 = vmax.f32 %v2374_v34, %v2375_v20  ;;  %v2383_v31 = vmax.f32 %v2381_v53, %v2382_v58  ;;  %v2396_v7 = vrot.slane %v2395_v8, 1  ;;  %v84_v34 = vld [vmem:[%s11771_s0 + $0x110] sm:$0xff]  ;;  %v85_v20 = vld [vmem:[%s11771_s0 + $0x118] sm:$0xff] }
 0x144   :  { %v2390_v42 = vmax.f32 %v2388_v17, %v2389_v36  ;;  %v2402_v56 = vmax.f32 %v2400_v25, %v2401_v1  ;;  %v2409_v51 = vmax.f32 %v2407_v23, %v2408_v28  ;;  %v2416_v54 = vmax.f32 %v2414_v60, %v2415_v35 }
 0x145   :  { %v2397_v4 = vmax.f32 %v2395_v8, %v2396_v7  ;;  %v3484_v37 = vsel %vm3315_vm1, %v8940_v24, -inf  ;;  %v3485_v55 = vsel %vm3315_vm1, %v2369_v18, -inf  ;;  %v3487_v0 = vsel %vm3315_vm1, %v8942_v21, -inf }
 0x146   :  { %v2403_v11 = vrot.slane %v2402_v56, 1  ;;  %v2410_v57 = vrot.slane %v2409_v51, 1  ;;  %v2417_v48 = vrot.slane %v2416_v54, 1  ;;  %v3486_v44 = vmax.f32 %v3484_v37, %v3485_v55 }
 0x147   :  { %v3488_v59 = vsel %vm3315_vm1, %v2376_v63, -inf  ;;  %v3490_v15 = vsel %vm3315_vm1, %v8944_v49, -inf  ;;  %v3491_v16 = vsel %vm3315_vm1, %v2383_v31, -inf  ;;  %v3493_v22 = vsel %vm3315_vm1, %v8952_v9, -inf  ;;  %v4199_v9 = vpop.permute.xlu0 %4198 }
 0x148   :  { %v2404_v24 = vmax.f32 %v2402_v56, %v2403_v11  ;;  %v2411_v45 = vmax.f32 %v2409_v51, %v2410_v57  ;;  %v2418_v13 = vmax.f32 %v2416_v54, %v2417_v48  ;;  %v3489_v62 = vmax.f32 %v3487_v0, %v3488_v59 }
 0x149   :  { %v3492_v19 = vmax.f32 %v3490_v15, %v3491_v16  ;;  %v3494_v21 = vsel %vm3315_vm1, %v2390_v42, -inf  ;;  %v3496_v14 = vsel %vm3315_vm1, %v8962_v39, -inf  ;;  %v3497_v2 = vsel %vm3315_vm1, %v2397_v4, -inf }
 0x14a   :  { %v3495_v47 = vmax.f32 %v3493_v22, %v3494_v21  ;;  %v3499_v49 = vsel %vm3315_vm1, %v8964_v5, -inf  ;;  %v3500_v43 = vsel %vm3315_vm1, %v2404_v24, -inf  ;;  %v3498_v32 = vmax.f32 %v3496_v14, %v3497_v2  ;;  %v83_v5 = vld [vmem:[%s11771_s0 + $0x108] sm:$0xff] }
 0x14b   :  { %v3502_v33 = vsel %vm3315_vm1, %v8974_v30, -inf  ;;  %v3503_v39 = vsel %vm3315_vm1, %v2411_v45, -inf  ;;  %v3505_v29 = vsel %vm3315_vm1, %v8976_v26, -inf  ;;  %v3501_v6 = vmax.f32 %v3499_v49, %v3500_v43 }
 0x14c   :  { %v3504_v41 = vmax.f32 %v3502_v33, %v3503_v39  ;;  %v3506_v50 = vsel %vm3315_vm1, %v2418_v13, -inf  ;;  %v3934_v38 = vsel %vm3878_vm3, %v3489_v62, %v3486_v44  ;;  %v9029_v53 = vsel %vm3315_vm1, %v4037_v3, %v4199_v9 }
 0x14d   :  { %v3935_v30 = vsel %vm3880_vm4, %v3492_v19, %v3934_v38  ;;  %vm4710_vm10 = vcmask 64512   ;;  %v722_v26 = vcombine.high %v82_v12, %v82_v12  ;;  %v3507_v52 = vmax.f32 %v3505_v29, %v3506_v50 }
 0x14e   :  { %v3936_v17 = vsel %vm3882_vm5, %v3495_v47, %v3935_v30  ;;  %v11808_v25 = vmov 0.0   ;;  %v729_v23 = vrot.slane %v82_v12, %v7962_v27  ;;  %v739_v60 = vcombine.high %v83_v5, %v83_v5 }
 0x14f   :  { %5222 = vst.msk [vmem:[#allocation3] sm:$0xff] %vm4710_vm10, %v11808_v25  ;;  %5225 = vst.msk [vmem:[#allocation3 + $0xa0] sm:$0xff] %vm4710_vm10, %v11808_v25  ;;  %v3937_v40 = vsel %vm3884_vm6, %v3498_v32, %v3936_v17  ;;  %v736_v58 = vrot.slane %v722_v26, %v7962_v27  ;;  %v746_v8 = vrot.slane %v83_v5, %v7962_v27  ;;  %vm11790_vm11 = vcmask 97280  }
 0x150   :  { %5228 = vst.msk [vmem:[#allocation3 + $0x90] sm:$0xff] %vm4710_vm10, %v11808_v25  ;;  %5230 = vst.msk [vmem:[#allocation3 + $0x130] sm:$0xff] %vm4710_vm10, %v11808_v25  ;;  %v756_v36 = vcombine.high %v84_v34, %v84_v34  ;;  %v3938_v1 = vsel %vm3886_vm7, %v3501_v6, %v3937_v40  ;;  %v737_v28 = vcombine.high %v729_v23, %v729_v23  ;;  %v2419_v0 = vsel %vm1522_vm0, %v729_v23, -inf }
 0x151   :  { %v753_v35 = vrot.slane %v739_v60, %v7962_v27  ;;  %v9050_v18 = vrot.slane %v84_v34, %v7962_v27  ;;  %v3939_v63 = vsel %vm3888_vm8, %v3504_v41, %v3938_v1  ;;  %v738_v31 = vcombine.high %v736_v58, %v736_v58 }
 0x152   :  { %v754_v7 = vcombine.high %v746_v8, %v746_v8  ;;  %v9054_v42 = vrot.slane %v756_v36, %v7962_v27  ;;  %v3940_v56 = vsel %vm11796_vm9, %v3507_v52, %v3939_v63  ;;  %v773_v4 = vcombine.high %v85_v20, %v85_v20 }
 0x153   :  { %v755_v51 = vcombine.high %v753_v35, %v753_v35  ;;  %v771_v54 = vcombine.high %v9050_v18, %v9050_v18  ;;  %4021 = vst.msk [vmem:[#allocation2 + $0x81] sm:$0xff] %vm3315_vm1, %v3940_v56  ;;  %v9063_v55 = vrot.slane %v85_v20, %v7962_v27  ;;  %v2426_v11 = vsel %vm1522_vm0, %v737_v28, -inf }
 0x154   :  { %v772_v37 = vcombine.high %v9054_v42, %v9054_v42  ;;  %v9068_v57 = vrot.slane %v773_v4, %v7962_v27  ;;  %v2420_v48 = vrot.slane %v2419_v0, 4  ;;  %v2427_v44 = vrot.slane %v2426_v11, 4  ;;  %v4061_v4 = vld [vmem:[#allocation2 + $0xa1] sm:$0xff] }
 0x155   :  { %v2433_v59 = vsel %vm1522_vm0, %v736_v58, -inf  ;;  %v788_v15 = vcombine.high %v9063_v55, %v9063_v55  ;;  %v2440_v22 = vsel %vm1522_vm0, %v738_v31, -inf  ;;  %v2447_v24 = vsel %vm1522_vm0, %v746_v8, -inf }
 0x156   :  { %v2434_v16 = vrot.slane %v2433_v59, 4  ;;  %v789_v45 = vcombine.high %v9068_v57, %v9068_v57  ;;  %v2421_v13 = vmax.f32 %v2419_v0, %v2420_v48  ;;  %v2428_v62 = vmax.f32 %v2426_v11, %v2427_v44  ;;  %v4077_v0 = vld [vmem:[#allocation2 + $0xa2] sm:$0xff] }
 0x157   :  { %v2441_v19 = vrot.slane %v2440_v22, 4  ;;  %v2448_v14 = vrot.slane %v2447_v24, 4  ;;  %v2454_v2 = vsel %vm1522_vm0, %v754_v7, -inf  ;;  %v2461_v47 = vsel %vm1522_vm0, %v753_v35, -inf }
 0x158   :  { %v2435_v21 = vmax.f32 %v2433_v59, %v2434_v16  ;;  %v2422_v49 = vrot.slane %v2421_v13, 2  ;;  %v2429_v43 = vrot.slane %v2428_v62, 2  ;;  %v2455_v9 = vrot.slane %v2454_v2, 4 }
 0x159   :  { %v2442_v3 = vmax.f32 %v2440_v22, %v2441_v19  ;;  %v2449_v32 = vmax.f32 %v2447_v24, %v2448_v14  ;;  %v2462_v33 = vrot.slane %v2461_v47, 4  ;;  %v2468_v39 = vsel %vm1522_vm0, %v755_v51, -inf }
 0x15a   :  { %v2436_v12 = vrot.slane %v2435_v21, 2  ;;  %v9080_v29 = vld [vmem:[#allocation2 + $0x80] sm:$0xff]  ;;  %v2423_v6 = vmax.f32 %v2421_v13, %v2422_v49  ;;  %v2430_v41 = vmax.f32 %v2428_v62, %v2429_v43  ;;  %v2456_v38 = vmax.f32 %v2454_v2, %v2455_v9 }
 0x15b   :  { %v9082_v5 = vld [vmem:[#allocation2 + $0x81] sm:$0xff]  ;;  %v2443_v50 = vrot.slane %v2442_v3, 2  ;;  %4340 = vrot.lane.b32.xlu0 %v9080_v29, %s7704_s18  ;;  %v2450_v30 = vrot.slane %v2449_v32, 2  ;;  %v2463_v26 = vmax.f32 %v2461_v47, %v2462_v33  ;;  %v2469_v52 = vrot.slane %v2468_v39, 4  ;;  %v9120_v47 = vpop.permute.xlu1 %4262 }
 0x15c   :  { %4404 = vrot.lane.b32.xlu1 %v9082_v5, %s7705_s19  ;;  %v2437_v34 = vmax.f32 %v2435_v21, %v2436_v12  ;;  %v2424_v17 = vrot.slane %v2423_v6, 1  ;;  %v2431_v23 = vrot.slane %v2430_v41, 1  ;;  %v2457_v40 = vrot.slane %v2456_v38, 2 }
 0x15d   :  { %v2444_v60 = vmax.f32 %v2442_v3, %v2443_v50  ;;  %v2451_v58 = vmax.f32 %v2449_v32, %v2450_v30  ;;  %v2464_v8 = vrot.slane %v2463_v26, 2  ;;  %v2470_v36 = vmax.f32 %v2468_v39, %v2469_v52 }
 0x15e   :  { %v2438_v20 = vrot.slane %v2437_v34, 1  ;;  %v9088_v1 = vmax.f32 %v2423_v6, %v2424_v17  ;;  %v9090_v28 = vmax.f32 %v2430_v41, %v2431_v23  ;;  %v2458_v63 = vmax.f32 %v2456_v38, %v2457_v40 }
 0x15f   :  { %v2445_v35 = vrot.slane %v2444_v60, 1  ;;  %4592 = vrot.lane.b32.xlu0 %v8935_v61, %s7708_s30  ;;  %v2452_v7 = vrot.slane %v2451_v58, 1  ;;  %v2465_v56 = vmax.f32 %v2463_v26, %v2464_v8  ;;  %v2471_v51 = vrot.slane %v2470_v36, 2 }
 0x160   :  { %4656 = vrot.lane.b32.xlu1 %v8950_v46, %s7709_s22  ;;  %v9096_v31 = vmax.f32 %v2437_v34, %v2438_v20  ;;  %v2459_v48 = vrot.slane %v2458_v63, 1  ;;  %v2475_v44 = vsel %vm1522_vm0, %v9050_v18, -inf  ;;  %v2482_v61 = vsel %vm1522_vm0, %v771_v54, -inf }
 0x161   :  { %v9098_v11 = vmax.f32 %v2444_v60, %v2445_v35  ;;  %v9106_v59 = vmax.f32 %v2451_v58, %v2452_v7  ;;  %v2466_v16 = vrot.slane %v2465_v56, 1  ;;  %v2472_v22 = vmax.f32 %v2470_v36, %v2471_v51  ;;  %v4265_v36 = vpop.permute.xlu1 %4264 }
 0x162   :  { %v2476_v24 = vrot.slane %v2475_v44, 4  ;;  %v9108_v13 = vmax.f32 %v2458_v63, %v2459_v48  ;;  %v2483_v62 = vrot.slane %v2482_v61, 4  ;;  %v2489_v19 = vsel %vm1522_vm0, %v9054_v42, -inf }
 0x163   :  { %v2496_v21 = vsel %vm1522_vm0, %v772_v37, -inf  ;;  %4214 = vrot.lane.b32.xlu0 %v4061_v4, %s7702_s16  ;;  %v9118_v18 = vmax.f32 %v2465_v56, %v2466_v16  ;;  %v2473_v54 = vrot.slane %v2472_v22, 1  ;;  %v2490_v2 = vrot.slane %v2489_v19, 4  ;;  %v4201_v56 = vpop.permute.xlu0 %4200 }
 0x164   :  { %4278 = vrot.lane.b32.xlu1 %v4077_v0, %s7703_s17  ;;  %v2477_v14 = vmax.f32 %v2475_v44, %v2476_v24  ;;  %v2484_v49 = vmax.f32 %v2482_v61, %v2483_v62  ;;  %v2497_v43 = vrot.slane %v2496_v21, 4  ;;  %v2503_v3 = vsel %vm1522_vm0, %v9063_v55, -inf }
 0x165   :  { %v2510_v42 = vsel %vm1522_vm0, %v788_v15, -inf  ;;  %v9128_v37 = vmax.f32 %v2472_v22, %v2473_v54  ;;  %v2491_v12 = vmax.f32 %v2489_v19, %v2490_v2  ;;  %v2504_v32 = vrot.slane %v2503_v3, 4 }
 0x166   :  { %v2478_v9 = vrot.slane %v2477_v14, 2  ;;  %v2485_v33 = vrot.slane %v2484_v49, 2  ;;  %v2498_v39 = vmax.f32 %v2496_v21, %v2497_v43  ;;  %v2511_v6 = vrot.slane %v2510_v42, 4 }
 0x167   :  { %v2517_v41 = vsel %vm1522_vm0, %v9068_v57, -inf  ;;  %4466 = vrot.lane.b32.xlu0 %v8950_v46, %s7706_s20  ;;  %v2492_v38 = vrot.slane %v2491_v12, 2  ;;  %v2505_v34 = vmax.f32 %v2503_v3, %v2504_v32  ;;  %v2524_v52 = vsel %vm1522_vm0, %v789_v45, -inf }
 0x168   :  { %v2479_v50 = vmax.f32 %v2477_v14, %v2478_v9  ;;  %v2518_v55 = vrot.slane %v2517_v41, 4  ;;  %4530 = vrot.lane.b32.xlu1 %v9080_v29, %s7707_s21  ;;  %v2486_v15 = vmax.f32 %v2484_v49, %v2485_v33  ;;  %v2499_v30 = vrot.slane %v2498_v39, 2  ;;  %v4327_v33 = vpop.permute.xlu0 %4326 }
 0x169   :  { %v2512_v26 = vmax.f32 %v2510_v42, %v2511_v6  ;;  %v2493_v23 = vmax.f32 %v2491_v12, %v2492_v38  ;;  %v2506_v60 = vrot.slane %v2505_v34, 2  ;;  %v2525_v8 = vrot.slane %v2524_v52, 4  ;;  %v4329_v42 = vpop.permute.xlu1 %4328 }
 0x16a   :  { %v2480_v17 = vrot.slane %v2479_v50, 1  ;;  %v2519_v40 = vmax.f32 %v2517_v41, %v2518_v55  ;;  %v2487_v46 = vrot.slane %v2486_v15, 1  ;;  %v2500_v20 = vmax.f32 %v2498_v39, %v2499_v30 }
 0x16b   :  { %v2513_v58 = vrot.slane %v2512_v26, 2  ;;  %v2494_v63 = vrot.slane %v2493_v23, 1  ;;  %v2507_v29 = vmax.f32 %v2505_v34, %v2506_v60  ;;  %v2526_v57 = vmax.f32 %v2524_v52, %v2525_v8 }
 0x16c   :  { %v2481_v35 = vmax.f32 %v2479_v50, %v2480_v17  ;;  %v2520_v7 = vrot.slane %v2519_v40, 2  ;;  %v2488_v51 = vmax.f32 %v2486_v15, %v2487_v46  ;;  %v2501_v4 = vrot.slane %v2500_v20, 1  ;;  %v4038_v50 = vld [vmem:[#allocation2 + $0x10] sm:$0xff]  ;;  %v4039_v46 = vld [vmem:[#allocation2 + $0x20] sm:$0xff]  ;;  %v4391_v8 = vpop.permute.xlu0 %4390 }
 0x16d   :  { %v2514_v0 = vmax.f32 %v2512_v26, %v2513_v58  ;;  %v2495_v48 = vmax.f32 %v2493_v23, %v2494_v63  ;;  %v2508_v45 = vrot.slane %v2507_v29, 1  ;;  %v3508_v61 = vsel %vm3315_vm1, %v9088_v1, -inf }
 0x16e   :  { %v2521_v44 = vmax.f32 %v2519_v40, %v2520_v7  ;;  %v2502_v16 = vmax.f32 %v2500_v20, %v2501_v4  ;;  %v2527_v24 = vrot.slane %v2526_v57, 2  ;;  %v3509_v62 = vsel %vm3315_vm1, %v2481_v35, -inf  ;;  %v4203_v20 = vpop.permute.xlu1 %4202  ;;  %v87_v7 = vld [vmem:[%s11771_s0 + $0x128] sm:$0xff] }
 0x16f   :  { %v2515_v22 = vrot.slane %v2514_v0, 1  ;;  %v2509_v19 = vmax.f32 %v2507_v29, %v2508_v45  ;;  %v3510_v54 = vmax.f32 %v3508_v61, %v3509_v62  ;;  %v3511_v14 = vsel %vm3315_vm1, %v9090_v28, -inf }
 0x170   :  { %v2522_v21 = vrot.slane %v2521_v44, 1  ;;  %v2528_v49 = vmax.f32 %v2526_v57, %v2527_v24  ;;  %v3512_v43 = vsel %vm3315_vm1, %v2488_v51, -inf  ;;  %v3514_v3 = vsel %vm3315_vm1, %v9096_v31, -inf }
 0x171   :  { %v2516_v2 = vmax.f32 %v2514_v0, %v2515_v22  ;;  %v3513_v9 = vmax.f32 %v3511_v14, %v3512_v43  ;;  %v3515_v12 = vsel %vm3315_vm1, %v2495_v48, -inf  ;;  %v3517_v32 = vsel %vm3315_vm1, %v9098_v11, -inf }
 0x172   :  { %v2523_v1 = vmax.f32 %v2521_v44, %v2522_v21  ;;  %v2529_v39 = vrot.slane %v2528_v49, 1  ;;  %v3516_v6 = vmax.f32 %v3514_v3, %v3515_v12  ;;  %v3518_v28 = vsel %vm3315_vm1, %v2502_v16, -inf }
 0x173   :  { %v3520_v41 = vsel %vm3315_vm1, %v9106_v59, -inf  ;;  %v3519_v38 = vmax.f32 %v3517_v32, %v3518_v28  ;;  %v3521_v31 = vsel %vm3315_vm1, %v2509_v19, -inf  ;;  %v3523_v34 = vsel %vm3315_vm1, %v9108_v13, -inf }
 0x174   :  { %v3524_v55 = vsel %vm3315_vm1, %v2516_v2, -inf  ;;  %v2530_v15 = vmax.f32 %v2528_v49, %v2529_v39  ;;  %v3522_v30 = vmax.f32 %v3520_v41, %v3521_v31  ;;  %v3526_v26 = vsel %vm3315_vm1, %v9118_v18, -inf }
 0x175   :  { %v3525_v11 = vmax.f32 %v3523_v34, %v3524_v55  ;;  %v3527_v52 = vsel %vm3315_vm1, %v2523_v1, -inf  ;;  %v3529_v59 = vsel %vm3315_vm1, %v9128_v37, -inf  ;;  %v3941_v17 = vsel %vm3878_vm3, %v3513_v9, %v3510_v54  ;;  %v86_v37 = vld [vmem:[%s11771_s0 + $0x120] sm:$0xff] }
 0x176   :  { %v4695_v23 = vsel %vm3315_vm1, %v4038_v50, %v4201_v56  ;;  %v3528_v60 = vmax.f32 %v3526_v26, %v3527_v52  ;;  %v3530_v13 = vsel %vm3315_vm1, %v2530_v15, -inf  ;;  %v3942_v40 = vsel %vm3880_vm4, %v3516_v6, %v3941_v17  ;;  %v88_v56 = vld [vmem:[%s11771_s0 + $0x130] sm:$0xff] }
 0x177   :  { %v3531_v58 = vmax.f32 %v3529_v59, %v3530_v13  ;;  %v3943_v18 = vsel %vm3882_vm5, %v3519_v38, %v3942_v40  ;;  %v4711_v35 = vsel %vm4710_vm10, %v9029_v53, %v9120_v47  ;;  %v4712_v29 = vsel %vm4710_vm10, %v4695_v23, %v4265_v36  ;;  %v89_v36 = vld [vmem:[%s11771_s0 + $0x138] sm:$0xff] }
 0x178   :  { %v3944_v63 = vsel %vm3884_vm6, %v3522_v30, %v3943_v18  ;;  %vm4744_vm12 = vcmask 130048   ;;  %v9184_v4 = vsel %vm11790_vm11, %v4712_v29, %v4329_v42  ;;  %v4728_v53 = vsel %vm11790_vm11, %v4711_v35, %v4327_v33 }
 0x179   :  { %v3945_v51 = vsel %vm3886_vm7, %v3525_v11, %v3944_v63  ;;  %v9188_v47 = vsel %vm3315_vm1, %v4039_v46, %v4203_v20  ;;  %v9195_v57 = vsel %vm4744_vm12, %v4728_v53, %v4391_v8  ;;  %v790_v48 = vcombine.high %v86_v37, %v86_v37 }
 0x17a   :  { %v3946_v0 = vsel %vm3888_vm8, %v3528_v60, %v3945_v51  ;;  %v797_v45 = vrot.slane %v86_v37, %v7962_v27  ;;  %v807_v61 = vcombine.high %v87_v7, %v87_v7  ;;  %v814_v16 = vrot.slane %v87_v7, %v7962_v27 }
 0x17b   :  { %v3947_v44 = vsel %vm11796_vm9, %v3531_v58, %v3946_v0  ;;  %v824_v22 = vcombine.high %v88_v56, %v88_v56  ;;  %v804_v24 = vrot.slane %v790_v48, %v7962_v27  ;;  %v9203_v19 = vrot.slane %v88_v56, %v7962_v27  ;;  %v4124_v58 = vld [vmem:[#allocation2 + $0x82] sm:$0xff] }
 0x17c   :  { %4022 = vst.msk [vmem:[#allocation2 + $0xb1] sm:$0xff] %vm3315_vm1, %v3947_v44  ;;  %v805_v62 = vcombine.high %v797_v45, %v797_v45  ;;  %v841_v21 = vcombine.high %v89_v36, %v89_v36  ;;  %v821_v54 = vrot.slane %v807_v61, %v7962_v27  ;;  %v822_v14 = vcombine.high %v814_v16, %v814_v16 }
 0x17d   :  { %v9207_v2 = vrot.slane %v824_v22, %v7962_v27  ;;  %v9210_v49 = vrot.slane %v89_v36, %v7962_v27  ;;  %v806_v43 = vcombine.high %v804_v24, %v804_v24  ;;  %v839_v3 = vcombine.high %v9203_v19, %v9203_v19 }
 0x17e   :  { %v9215_v42 = vrot.slane %v841_v21, %v7962_v27  ;;  %v2531_v1 = vsel %vm1522_vm0, %v797_v45, -inf  ;;  %v823_v9 = vcombine.high %v821_v54, %v821_v54  ;;  %v2538_v6 = vsel %vm1522_vm0, %v805_v62, -inf }
 0x17f   :  { %v840_v12 = vcombine.high %v9207_v2, %v9207_v2  ;;  %v856_v32 = vcombine.high %v9210_v49, %v9210_v49  ;;  %v2532_v33 = vrot.slane %v2531_v1, 4  ;;  %v2545_v28 = vsel %vm1522_vm0, %v804_v24, -inf }
 0x180   :  { %v857_v39 = vcombine.high %v9215_v42, %v9215_v42  ;;  %v2552_v41 = vsel %vm1522_vm0, %v806_v43, -inf  ;;  %v2539_v38 = vrot.slane %v2538_v6, 4  ;;  %v2546_v31 = vrot.slane %v2545_v28, 4 }
 0x181   :  { %v2533_v50 = vmax.f32 %v2531_v1, %v2532_v33  ;;  %v2553_v34 = vrot.slane %v2552_v41, 4  ;;  %v2559_v55 = vsel %vm1522_vm0, %v814_v16, -inf  ;;  %v2566_v15 = vsel %vm1522_vm0, %v822_v14, -inf }
 0x182   :  { %v2573_v30 = vsel %vm1522_vm0, %v821_v54, -inf  ;;  %v2580_v11 = vsel %vm1522_vm0, %v823_v9, -inf  ;;  %v2540_v17 = vmax.f32 %v2538_v6, %v2539_v38  ;;  %v2547_v23 = vmax.f32 %v2545_v28, %v2546_v31  ;;  %v9240_v54 = vpop.permute.xlu0 %4392 }
 0x183   :  { %v4062_v26 = vld [vmem:[#allocation2 + $0xb1] sm:$0xff]  ;;  %v2534_v59 = vrot.slane %v2533_v50, 2  ;;  %v2554_v60 = vmax.f32 %v2552_v41, %v2553_v34  ;;  %v2560_v13 = vrot.slane %v2559_v55, 4  ;;  %v2567_v40 = vrot.slane %v2566_v15, 4 }
 0x184   :  { %v4093_v52 = vld [vmem:[#allocation2 + $0xb0] sm:$0xff]  ;;  %4216 = vrot.lane.b32.xlu0 %v4062_v26, %s7702_s16  ;;  %v2574_v46 = vrot.slane %v2573_v30, 4  ;;  %v2581_v20 = vrot.slane %v2580_v11, 4  ;;  %v2541_v8 = vrot.slane %v2540_v17, 2  ;;  %v2548_v37 = vrot.slane %v2547_v23, 2 }
 0x185   :  { %4342 = vrot.lane.b32.xlu1 %v4093_v52, %s7704_s18  ;;  %v2535_v18 = vmax.f32 %v2533_v50, %v2534_v59  ;;  %v2555_v35 = vrot.slane %v2554_v60, 2  ;;  %v2561_v63 = vmax.f32 %v2559_v55, %v2560_v13  ;;  %v2568_v29 = vmax.f32 %v2566_v15, %v2567_v40  ;;  %v9236_v16 = vld [vmem:[#allocation2 + $0xb2] sm:$0xff] }
 0x186   :  { %v2575_v7 = vmax.f32 %v2573_v30, %v2574_v46  ;;  %v2582_v56 = vmax.f32 %v2580_v11, %v2581_v20  ;;  %v2542_v53 = vmax.f32 %v2540_v17, %v2541_v8  ;;  %v2549_v36 = vmax.f32 %v2547_v23, %v2548_v37  ;;  %v4141_v34 = vld [vmem:[#allocation2 + $0x90] sm:$0xff]  ;;  %v9271_v23 = vpop.permute.xlu1 %4454  ;;  %v9286_v20 = vpop.permute.xlu0 %4204 }
 0x187   :  { %v2536_v51 = vrot.slane %v2535_v18, 1  ;;  %v2556_v0 = vmax.f32 %v2554_v60, %v2555_v35  ;;  %v2562_v48 = vrot.slane %v2561_v63, 2  ;;  %v2569_v45 = vrot.slane %v2568_v29, 2 }
 0x188   :  { %4468 = vrot.lane.b32.xlu0 %v4124_v58, %s7706_s20  ;;  %v2576_v44 = vrot.slane %v2575_v7, 2  ;;  %v2583_v61 = vrot.slane %v2582_v56, 2  ;;  %v2543_v24 = vrot.slane %v2542_v53, 1  ;;  %v2550_v62 = vrot.slane %v2549_v36, 1 }
 0x189   :  { %4594 = vrot.lane.b32.xlu1 %v9082_v5, %s7708_s30  ;;  %v9238_v22 = vmax.f32 %v2535_v18, %v2536_v51  ;;  %v2557_v21 = vrot.slane %v2556_v0, 1  ;;  %v2563_v14 = vmax.f32 %v2561_v63, %v2562_v48  ;;  %v2570_v43 = vmax.f32 %v2568_v29, %v2569_v45 }
 0x18a   :  { %v2577_v1 = vmax.f32 %v2575_v7, %v2576_v44  ;;  %v2584_v9 = vmax.f32 %v2582_v56, %v2583_v61  ;;  %v9242_v33 = vmax.f32 %v2542_v53, %v2543_v24  ;;  %v9244_v5 = vmax.f32 %v2549_v36, %v2550_v62  ;;  %v9289_v61 = vpop.permute.xlu1 %4266 }
 0x18b   :  { %v9246_v6 = vmax.f32 %v2556_v0, %v2557_v21  ;;  %v2587_v28 = vsel %vm1522_vm0, %v9203_v19, -inf  ;;  %v2564_v41 = vrot.slane %v2563_v14, 1  ;;  %v2571_v50 = vrot.slane %v2570_v43, 1 }
 0x18c   :  { %4280 = vrot.lane.b32.xlu0 %v9236_v16, %s7703_s17  ;;  %v2578_v38 = vrot.slane %v2577_v1, 1  ;;  %v2585_v31 = vrot.slane %v2584_v9, 1  ;;  %v2588_v55 = vrot.slane %v2587_v28, 4  ;;  %v2594_v15 = vsel %vm1522_vm0, %v839_v3, -inf }
 0x18d   :  { %4406 = vrot.lane.b32.xlu1 %v4062_v26, %s7705_s19  ;;  %v2601_v30 = vsel %vm1522_vm0, %v9207_v2, -inf  ;;  %v2608_v11 = vsel %vm1522_vm0, %v840_v12, -inf  ;;  %v9263_v26 = vmax.f32 %v2563_v14, %v2564_v41  ;;  %v9265_v52 = vmax.f32 %v2570_v43, %v2571_v50  ;;  %v9291_v43 = vpop.permute.xlu0 %4456 }
 0x18e   :  { %v9267_v59 = vmax.f32 %v2577_v1, %v2578_v38  ;;  %v9269_v17 = vmax.f32 %v2584_v9, %v2585_v31  ;;  %v2589_v19 = vmax.f32 %v2587_v28, %v2588_v55  ;;  %v2595_v3 = vrot.slane %v2594_v15, 4 }
 0x18f   :  { %v2602_v60 = vrot.slane %v2601_v30, 4  ;;  %v2609_v13 = vrot.slane %v2608_v11, 4  ;;  %v2615_v2 = vsel %vm1522_vm0, %v9210_v49, -inf  ;;  %v2622_v12 = vsel %vm1522_vm0, %v856_v32, -inf }
 0x190   :  { %4532 = vrot.lane.b32.xlu0 %v4141_v34, %s7707_s21  ;;  %v2629_v40 = vsel %vm1522_vm0, %v9215_v42, -inf  ;;  %v2636_v46 = vsel %vm1522_vm0, %v857_v39, -inf  ;;  %v2590_v18 = vrot.slane %v2589_v19, 2  ;;  %v2596_v8 = vmax.f32 %v2594_v15, %v2595_v3 }
 0x191   :  { %4658 = vrot.lane.b32.xlu1 %v4124_v58, %s7709_s22  ;;  %v2603_v37 = vmax.f32 %v2601_v30, %v2602_v60  ;;  %v2610_v35 = vmax.f32 %v2608_v11, %v2609_v13  ;;  %v2616_v63 = vrot.slane %v2615_v2, 4  ;;  %v2623_v49 = vrot.slane %v2622_v12, 4 }
 0x192   :  { %v2630_v29 = vrot.slane %v2629_v40, 4  ;;  %v2637_v32 = vrot.slane %v2636_v46, 4  ;;  %v2591_v7 = vmax.f32 %v2589_v19, %v2590_v18  ;;  %v2597_v56 = vrot.slane %v2596_v8, 2  ;;  %v4519_v18 = vpop.permute.xlu1 %4518 }
 0x193   :  { %v2604_v51 = vrot.slane %v2603_v37, 2  ;;  %v2611_v53 = vrot.slane %v2610_v35, 2  ;;  %v2617_v36 = vmax.f32 %v2615_v2, %v2616_v63  ;;  %v2624_v42 = vmax.f32 %v2622_v12, %v2623_v49 }
 0x194   :  { %v2631_v0 = vmax.f32 %v2629_v40, %v2630_v29  ;;  %v2638_v39 = vmax.f32 %v2636_v46, %v2637_v32  ;;  %v2592_v48 = vrot.slane %v2591_v7, 1  ;;  %v2598_v45 = vmax.f32 %v2596_v8, %v2597_v56 }
 0x195   :  { %v2605_v44 = vmax.f32 %v2603_v37, %v2604_v51  ;;  %v2612_v58 = vmax.f32 %v2610_v35, %v2611_v53  ;;  %vm4761_vm13 = vcmask 162816   ;;  %v2618_v24 = vrot.slane %v2617_v36, 2 }
 0x196   :  { %v2625_v62 = vrot.slane %v2624_v42, 2  ;;  %v2632_v21 = vrot.slane %v2631_v0, 2  ;;  %v2639_v14 = vrot.slane %v2638_v39, 2  ;;  %v2593_v1 = vmax.f32 %v2591_v7, %v2592_v48 }
 0x197   :  { %v2599_v9 = vrot.slane %v2598_v45, 1  ;;  %v2606_v28 = vrot.slane %v2605_v44, 1  ;;  %v2613_v41 = vrot.slane %v2612_v58, 1  ;;  %v2619_v50 = vmax.f32 %v2617_v36, %v2618_v24 }
 0x198   :  { %v2626_v38 = vmax.f32 %v2624_v42, %v2625_v62  ;;  %v2633_v31 = vmax.f32 %v2631_v0, %v2632_v21  ;;  %v2640_v34 = vmax.f32 %v2638_v39, %v2639_v14  ;;  %v3532_v11 = vsel %vm3315_vm1, %v9238_v22, -inf  ;;  %v4269_v22 = vpop.permute.xlu0 %4268  ;;  %v4040_v39 = vld [vmem:[#allocation2 + $0x30] sm:$0xff] }
 0x199   :  { %v2600_v55 = vmax.f32 %v2598_v45, %v2599_v9  ;;  %v2607_v15 = vmax.f32 %v2605_v44, %v2606_v28  ;;  %v2614_v30 = vmax.f32 %v2612_v58, %v2613_v41  ;;  %v2620_v19 = vrot.slane %v2619_v50, 1  ;;  %v4331_v58 = vpop.permute.xlu1 %4330  ;;  %v92_v9 = vld [vmem:[%s11771_s0 + $0x150] sm:$0xff] }
 0x19a   :  { %v2627_v3 = vrot.slane %v2626_v38, 1  ;;  %v2634_v60 = vrot.slane %v2633_v31, 1  ;;  %v2641_v13 = vrot.slane %v2640_v34, 1  ;;  %v3533_v2 = vsel %vm3315_vm1, %v2593_v1, -inf }
 0x19b   :  { %v3535_v12 = vsel %vm3315_vm1, %v9242_v33, -inf  ;;  %v3536_v40 = vsel %vm3315_vm1, %v2600_v55, -inf  ;;  %v3538_v46 = vsel %vm3315_vm1, %v9244_v5, -inf  ;;  %v2621_v8 = vmax.f32 %v2619_v50, %v2620_v19 }
 0x19c   :  { %v2628_v37 = vmax.f32 %v2626_v38, %v2627_v3  ;;  %v2635_v35 = vmax.f32 %v2633_v31, %v2634_v60  ;;  %v2642_v63 = vmax.f32 %v2640_v34, %v2641_v13  ;;  %v3534_v49 = vmax.f32 %v3532_v11, %v3533_v2  ;;  %v4521_v21 = vpop.permute.xlu0 %4520  ;;  %v93_v31 = vld [vmem:[%s11771_s0 + $0x158] sm:$0xff] }
 0x19d   :  { %v3537_v29 = vmax.f32 %v3535_v12, %v3536_v40  ;;  %v3539_v32 = vsel %vm3315_vm1, %v2607_v15, -inf  ;;  %v3541_v7 = vsel %vm3315_vm1, %v9246_v6, -inf  ;;  %v3542_v33 = vsel %vm3315_vm1, %v2614_v30, -inf }
 0x19e   :  { %v3540_v56 = vmax.f32 %v3538_v46, %v3539_v32  ;;  %v3544_v51 = vsel %vm3315_vm1, %v9263_v26, -inf  ;;  %v3545_v5 = vsel %vm3315_vm1, %v2621_v8, -inf  ;;  %v4746_v53 = vsel %vm4744_vm12, %v9184_v4, %v9240_v54 }
 0x19f   :  { %v3543_v36 = vmax.f32 %v3541_v7, %v3542_v33  ;;  %v3547_v42 = vsel %vm3315_vm1, %v9265_v52, -inf  ;;  %v3548_v0 = vsel %vm3315_vm1, %v2628_v37, -inf  ;;  %v3546_v6 = vmax.f32 %v3544_v51, %v3545_v5 }
 0x1a0   :  { %v3550_v48 = vsel %vm3315_vm1, %v9267_v59, -inf  ;;  %v3551_v45 = vsel %vm3315_vm1, %v2635_v35, -inf  ;;  %v3553_v26 = vsel %vm3315_vm1, %v9269_v17, -inf  ;;  %v4762_v4 = vsel %vm4761_vm13, %v9195_v57, %v9271_v23  ;;  %v90_v17 = vld [vmem:[%s11771_s0 + $0x140] sm:$0xff] }
 0x1a1   :  { %v3549_v54 = vmax.f32 %v3547_v42, %v3548_v0  ;;  %v3554_v44 = vsel %vm3315_vm1, %v2642_v63, -inf  ;;  %v3948_v52 = vsel %vm3878_vm3, %v3537_v29, %v3534_v49  ;;  %v3552_v24 = vmax.f32 %v3550_v48, %v3551_v45 }
 0x1a2   :  { %v3949_v62 = vsel %vm3880_vm4, %v3540_v56, %v3948_v52  ;;  %v4697_v59 = vsel %vm3315_vm1, %v4040_v39, %v9286_v20  ;;  %vm11789_vm14 = vcmask 195584   ;;  %v3555_v14 = vmax.f32 %v3553_v26, %v3554_v44  ;;  %v91_v20 = vld [vmem:[%s11771_s0 + $0x148] sm:$0xff] }
 0x1a3   :  { %v3950_v57 = vsel %vm3882_vm5, %v3543_v36, %v3949_v62  ;;  %v4713_v23 = vsel %vm4710_vm10, %v9188_v47, %v9289_v61  ;;  %v9335_v1 = vsel %vm11789_vm14, %v4762_v4, %v4519_v18  ;;  %v4763_v41 = vsel %vm4761_vm13, %v4746_v53, %v9291_v43 }
 0x1a4   :  { %v3951_v28 = vsel %vm3884_vm6, %v3546_v6, %v3950_v57  ;;  %v9347_v50 = vsel %vm11790_vm11, %v4713_v23, %v4331_v58  ;;  %v9350_v47 = vsel %vm4710_vm10, %v4697_v59, %v4269_v22  ;;  %v9354_v38 = vsel %vm11789_vm14, %v4763_v41, %v4521_v21  ;;  %v4157_v57 = vld [vmem:[#allocation2 + $0x91] sm:$0xff] }
 0x1a5   :  { %v3952_v61 = vsel %vm3886_vm7, %v3549_v54, %v3951_v28  ;;  %v858_v34 = vcombine.high %v90_v17, %v90_v17  ;;  %v865_v55 = vrot.slane %v90_v17, %v7962_v27  ;;  %v875_v15 = vcombine.high %v91_v20, %v91_v20  ;;  %v4173_v23 = vld [vmem:[#allocation2 + $0x92] sm:$0xff] }
 0x1a6   :  { %v3953_v43 = vsel %vm3888_vm8, %v3552_v24, %v3952_v61  ;;  %v882_v30 = vrot.slane %v91_v20, %v7962_v27  ;;  %v892_v11 = vcombine.high %v92_v9, %v92_v9  ;;  %v9365_v13 = vrot.slane %v92_v9, %v7962_v27 }
 0x1a7   :  { %v3954_v19 = vsel %vm11796_vm9, %v3555_v14, %v3953_v43  ;;  %v872_v3 = vrot.slane %v858_v34, %v7962_v27  ;;  %v873_v60 = vcombine.high %v865_v55, %v865_v55  ;;  %v889_v2 = vrot.slane %v875_v15, %v7962_v27 }
 0x1a8   :  { %4023 = vst.msk [vmem:[#allocation2 + $0xc1] sm:$0xff] %vm3315_vm1, %v3954_v19  ;;  %v890_v12 = vcombine.high %v882_v30, %v882_v30  ;;  %v9370_v40 = vrot.slane %v892_v11, %v7962_v27  ;;  %v909_v46 = vcombine.high %v93_v31, %v93_v31  ;;  %v907_v8 = vcombine.high %v9365_v13, %v9365_v13 }
 0x1a9   :  { %v874_v18 = vcombine.high %v872_v3, %v872_v3  ;;  %v9375_v37 = vrot.slane %v93_v31, %v7962_v27  ;;  %v2643_v35 = vsel %vm1522_vm0, %v865_v55, -inf  ;;  %v891_v63 = vcombine.high %v889_v2, %v889_v2 }
 0x1aa   :  { %v908_v22 = vcombine.high %v9370_v40, %v9370_v40  ;;  %v9381_v49 = vrot.slane %v909_v46, %v7962_v27  ;;  %v2644_v29 = vrot.slane %v2643_v35, 4  ;;  %v2650_v7 = vsel %vm1522_vm0, %v873_v60, -inf }
 0x1ab   :  { %v924_v32 = vcombine.high %v9375_v37, %v9375_v37  ;;  %v2657_v56 = vsel %vm1522_vm0, %v872_v3, -inf  ;;  %v2664_v33 = vsel %vm1522_vm0, %v874_v18, -inf  ;;  %v2651_v53 = vrot.slane %v2650_v7, 4 }
 0x1ac   :  { %v925_v51 = vcombine.high %v9381_v49, %v9381_v49  ;;  %v2645_v5 = vmax.f32 %v2643_v35, %v2644_v29  ;;  %v2658_v36 = vrot.slane %v2657_v56, 4  ;;  %v2665_v42 = vrot.slane %v2664_v33, 4  ;;  %v9408_v29 = vpop.permute.xlu1 %4582 }
 0x1ad   :  { %v2671_v0 = vsel %vm1522_vm0, %v882_v30, -inf  ;;  %v2678_v39 = vsel %vm1522_vm0, %v890_v12, -inf  ;;  %v2685_v6 = vsel %vm1522_vm0, %v889_v2, -inf  ;;  %v2652_v45 = vmax.f32 %v2650_v7, %v2651_v53 }
 0x1ae   :  { %v2646_v48 = vrot.slane %v2645_v5, 2  ;;  %v2659_v26 = vmax.f32 %v2657_v56, %v2658_v36  ;;  %v2672_v4 = vrot.slane %v2671_v0, 4  ;;  %v2666_v52 = vmax.f32 %v2664_v33, %v2665_v42 }
 0x1af   :  { %v9393_v54 = vld [vmem:[#allocation2 + $0xc0] sm:$0xff]  ;;  %v2679_v58 = vrot.slane %v2678_v39, 4  ;;  %v2686_v24 = vrot.slane %v2685_v6, 4  ;;  %v2692_v62 = vsel %vm1522_vm0, %v891_v63, -inf  ;;  %v2653_v21 = vrot.slane %v2652_v45, 2 }
 0x1b0   :  { %v9395_v44 = vld [vmem:[#allocation2 + $0xc1] sm:$0xff]  ;;  %4344 = vrot.lane.b32.xlu0 %v9393_v54, %s7704_s18  ;;  %v2647_v59 = vmax.f32 %v2645_v5, %v2646_v48  ;;  %v2660_v17 = vrot.slane %v2659_v26, 2  ;;  %v2673_v14 = vmax.f32 %v2671_v0, %v2672_v4  ;;  %v2667_v20 = vrot.slane %v2666_v52, 2 }
 0x1b1   :  { %4408 = vrot.lane.b32.xlu1 %v9395_v44, %s7705_s19  ;;  %v2680_v9 = vmax.f32 %v2678_v39, %v2679_v58  ;;  %v2687_v28 = vmax.f32 %v2685_v6, %v2686_v24  ;;  %v2693_v41 = vrot.slane %v2692_v62, 4  ;;  %v2654_v31 = vmax.f32 %v2652_v45, %v2653_v21  ;;  %v9406_v12 = vld [vmem:[#allocation2 + $0xc2] sm:$0xff] }
 0x1b2   :  { %v2648_v61 = vrot.slane %v2647_v59, 1  ;;  %v2661_v34 = vmax.f32 %v2659_v26, %v2660_v17  ;;  %v2674_v55 = vrot.slane %v2673_v14, 2  ;;  %v2668_v43 = vmax.f32 %v2666_v52, %v2667_v20  ;;  %v9450_v20 = vpop.permute.xlu1 %4394 }
 0x1b3   :  { %v2681_v15 = vrot.slane %v2680_v9, 2  ;;  %v2688_v30 = vrot.slane %v2687_v28, 2  ;;  %v2694_v11 = vmax.f32 %v2692_v62, %v2693_v41  ;;  %v2655_v3 = vrot.slane %v2654_v31, 1 }
 0x1b4   :  { %4596 = vrot.lane.b32.xlu0 %v4157_v57, %s7708_s30  ;;  %v9404_v19 = vmax.f32 %v2647_v59, %v2648_v61  ;;  %v2662_v60 = vrot.slane %v2661_v34, 1  ;;  %v2675_v2 = vmax.f32 %v2673_v14, %v2674_v55  ;;  %v2669_v46 = vrot.slane %v2668_v43, 1 }
 0x1b5   :  { %4660 = vrot.lane.b32.xlu1 %v4173_v23, %s7709_s22  ;;  %v2682_v18 = vmax.f32 %v2680_v9, %v2681_v15  ;;  %v2689_v35 = vmax.f32 %v2687_v28, %v2688_v30  ;;  %v2695_v63 = vrot.slane %v2694_v11, 2  ;;  %v9410_v7 = vmax.f32 %v2654_v31, %v2655_v3 }
 0x1b6   :  { %v9412_v56 = vmax.f32 %v2661_v34, %v2662_v60  ;;  %v2676_v33 = vrot.slane %v2675_v2, 1  ;;  %v2699_v5 = vsel %vm1522_vm0, %v9365_v13, -inf  ;;  %v9416_v53 = vmax.f32 %v2668_v43, %v2669_v46 }
 0x1b7   :  { %v2683_v36 = vrot.slane %v2682_v18, 1  ;;  %v2690_v42 = vrot.slane %v2689_v35, 1  ;;  %v2696_v0 = vmax.f32 %v2694_v11, %v2695_v63  ;;  %v2700_v6 = vrot.slane %v2699_v5, 4 }
 0x1b8   :  { %4218 = vrot.lane.b32.xlu0 %v9395_v44, %s7702_s16  ;;  %v9422_v39 = vmax.f32 %v2675_v2, %v2676_v33  ;;  %v2706_v48 = vsel %vm1522_vm0, %v907_v8, -inf  ;;  %v2713_v45 = vsel %vm1522_vm0, %v9370_v40, -inf  ;;  %v2720_v59 = vsel %vm1522_vm0, %v908_v22, -inf }
 0x1b9   :  { %4282 = vrot.lane.b32.xlu1 %v9406_v12, %s7703_s17  ;;  %v9430_v26 = vmax.f32 %v2682_v18, %v2683_v36  ;;  %v9432_v4 = vmax.f32 %v2689_v35, %v2690_v42  ;;  %v2697_v52 = vrot.slane %v2696_v0, 1  ;;  %v2707_v58 = vrot.slane %v2706_v48, 4 }
 0x1ba   :  { %v2701_v24 = vmax.f32 %v2699_v5, %v2700_v6  ;;  %v2714_v62 = vrot.slane %v2713_v45, 4  ;;  %v2727_v13 = vsel %vm1522_vm0, %v9375_v37, -inf  ;;  %v2721_v17 = vrot.slane %v2720_v59, 4  ;;  %v4333_v6 = vpop.permute.xlu0 %4332 }
 0x1bb   :  { %v9440_v8 = vmax.f32 %v2696_v0, %v2697_v52  ;;  %v2708_v21 = vmax.f32 %v2706_v48, %v2707_v58  ;;  %v2728_v14 = vrot.slane %v2727_v13, 4  ;;  %v2734_v40 = vsel %vm1522_vm0, %v924_v32, -inf }
 0x1bc   :  { %4470 = vrot.lane.b32.xlu0 %v9236_v16, %s7706_s20  ;;  %v2702_v57 = vrot.slane %v2701_v24, 2  ;;  %v2715_v23 = vmax.f32 %v2713_v45, %v2714_v62  ;;  %v2741_v22 = vsel %vm1522_vm0, %v9381_v49, -inf  ;;  %v2722_v28 = vmax.f32 %v2720_v59, %v2721_v17  ;;  %v4647_v49 = vpop.permute.xlu1 %4646 }
 0x1bd   :  { %4534 = vrot.lane.b32.xlu1 %v9393_v54, %s7707_s21  ;;  %v2709_v9 = vrot.slane %v2708_v21, 2  ;;  %v2729_v41 = vmax.f32 %v2727_v13, %v2728_v14  ;;  %v2735_v61 = vrot.slane %v2734_v40, 4  ;;  %v2742_v34 = vrot.slane %v2741_v22, 4 }
 0x1be   :  { %v2703_v16 = vmax.f32 %v2701_v24, %v2702_v57  ;;  %v2716_v31 = vrot.slane %v2715_v23, 2  ;;  %v2748_v37 = vsel %vm1522_vm0, %v925_v51, -inf  ;;  %v2723_v55 = vrot.slane %v2722_v28, 2 }
 0x1bf   :  { %v2710_v32 = vmax.f32 %v2708_v21, %v2709_v9  ;;  %v2730_v43 = vrot.slane %v2729_v41, 2  ;;  %v2736_v15 = vmax.f32 %v2734_v40, %v2735_v61  ;;  %v2743_v3 = vmax.f32 %v2741_v22, %v2742_v34 }
 0x1c0   :  { %v2704_v30 = vrot.slane %v2703_v16, 1  ;;  %v2717_v11 = vmax.f32 %v2715_v23, %v2716_v31  ;;  %v2749_v54 = vrot.slane %v2748_v37, 4  ;;  %vm4795_vm15 = vcmask 228352  }
 0x1c1   :  { %v2711_v60 = vrot.slane %v2710_v32, 1  ;;  %v2724_v2 = vmax.f32 %v2722_v28, %v2723_v55  ;;  %v2731_v46 = vmax.f32 %v2729_v41, %v2730_v43  ;;  %v2737_v18 = vrot.slane %v2736_v15, 2 }
 0x1c2   :  { %v2705_v35 = vmax.f32 %v2703_v16, %v2704_v30  ;;  %v2718_v63 = vrot.slane %v2717_v11, 1  ;;  %v2744_v33 = vrot.slane %v2743_v3, 2  ;;  %v2750_v5 = vmax.f32 %v2748_v37, %v2749_v54  ;;  %v4397_v16 = vpop.permute.xlu1 %4396 }
 0x1c3   :  { %v2712_v36 = vmax.f32 %v2710_v32, %v2711_v60  ;;  %v2725_v51 = vrot.slane %v2724_v2, 1  ;;  %v2732_v42 = vrot.slane %v2731_v46, 1  ;;  %v2738_v0 = vmax.f32 %v2736_v15, %v2737_v18  ;;  %v4585_v32 = vpop.permute.xlu0 %4584 }
 0x1c4   :  { %v2719_v48 = vmax.f32 %v2717_v11, %v2718_v63  ;;  %v2745_v45 = vmax.f32 %v2743_v3, %v2744_v33  ;;  %v2751_v52 = vrot.slane %v2750_v5, 2  ;;  %v3556_v58 = vsel %vm3315_vm1, %v9404_v19, -inf  ;;  %v4033_v63 = vld [vmem:[%s11772_s1 + $0x18] sm:$0xff] }
 0x1c5   :  { %v2726_v24 = vmax.f32 %v2724_v2, %v2725_v51  ;;  %v2733_v62 = vmax.f32 %v2731_v46, %v2732_v42  ;;  %v2739_v59 = vrot.slane %v2738_v0, 1  ;;  %v3557_v13 = vsel %vm3315_vm1, %v2705_v35, -inf  ;;  %v4041_v35 = vld [vmem:[#allocation2 + $0x40] sm:$0xff]  ;;  %v95_v51 = vld [vmem:[%s11771_s0 + $0x168] sm:$0xff]  ;;  %v96_v42 = vld [vmem:[%s11771_s0 + $0x170] sm:$0xff] }
 0x1c6   :  { %v2746_v21 = vrot.slane %v2745_v45, 1  ;;  %v2752_v17 = vmax.f32 %v2750_v5, %v2751_v52  ;;  %v3558_v14 = vmax.f32 %v3556_v58, %v3557_v13  ;;  %v3559_v57 = vsel %vm3315_vm1, %v9410_v7, -inf  ;;  %v4649_v33 = vpop.permute.xlu1 %4648  ;;  %v94_v5 = vld [vmem:[%s11771_s0 + $0x160] sm:$0xff] }
 0x1c7   :  { %v2740_v23 = vmax.f32 %v2738_v0, %v2739_v59  ;;  %v3560_v40 = vsel %vm3315_vm1, %v2712_v36, -inf  ;;  %v3562_v22 = vsel %vm3315_vm1, %v9412_v56, -inf  ;;  %v3563_v9 = vsel %vm3315_vm1, %v2719_v48, -inf  ;;  %v97_v48 = vld [vmem:[%s11771_s0 + $0x178] sm:$0xff]  ;;  %v4031_v59 = vld [vmem:[%s11772_s1 + $0x8] sm:$0xff] }
 0x1c8   :  { %v2747_v19 = vmax.f32 %v2745_v45, %v2746_v21  ;;  %v2753_v28 = vrot.slane %v2752_v17, 1  ;;  %v3561_v41 = vmax.f32 %v3559_v57, %v3560_v40  ;;  %v3564_v61 = vmax.f32 %v3562_v22, %v3563_v9  ;;  %v4030_v22 = vld [vmem:[%s11772_s1] sm:$0xff] }
 0x1c9   :  { %v3565_v31 = vsel %vm3315_vm1, %v9416_v53, -inf  ;;  %v3566_v34 = vsel %vm3315_vm1, %v2726_v24, -inf  ;;  %v3568_v7 = vsel %vm3315_vm1, %v9422_v39, -inf  ;;  %v3569_v37 = vsel %vm3315_vm1, %v2733_v62, -inf }
 0x1ca   :  { %v2754_v55 = vmax.f32 %v2752_v17, %v2753_v28  ;;  %v3567_v56 = vmax.f32 %v3565_v31, %v3566_v34  ;;  %v3570_v43 = vmax.f32 %v3568_v7, %v3569_v37  ;;  %v3571_v15 = vsel %vm3315_vm1, %v9430_v26, -inf  ;;  %v4034_v26 = vld [vmem:[%s11772_s1 + $0x20] sm:$0xf] }
 0x1cb   :  { %v3572_v30 = vsel %vm3315_vm1, %v2740_v23, -inf  ;;  %v3574_v11 = vsel %vm3315_vm1, %v9432_v4, -inf  ;;  %v3575_v53 = vsel %vm3315_vm1, %v2747_v19, -inf  ;;  %v3577_v3 = vsel %vm3315_vm1, %v9440_v8, -inf }
 0x1cc   :  { %v4796_v39 = vsel %vm4795_vm15, %v9335_v1, %v9408_v29  ;;  %v3573_v54 = vmax.f32 %v3571_v15, %v3572_v30  ;;  %v3578_v60 = vsel %vm3315_vm1, %v2754_v55, -inf  ;;  %v3955_v2 = vsel %vm3878_vm3, %v3561_v41, %v3558_v14 }
 0x1cd   :  { %v3576_v46 = vmax.f32 %v3574_v11, %v3575_v53  ;;  %v3579_v4 = vmax.f32 %v3577_v3, %v3578_v60  ;;  %v3956_v18 = vsel %vm3880_vm4, %v3564_v61, %v3955_v2  ;;  %v9493_v8 = vsel %vm4744_vm12, %v9347_v50, %v9450_v20 }
 0x1ce   :  { %v3957_v1 = vsel %vm3882_vm5, %v3567_v56, %v3956_v18  ;;  %v4731_v29 = vsel %vm11790_vm11, %v9350_v47, %v4333_v6  ;;  %vm4878_vm2 = vcmask 1043456   ;;  %vm4812_vm14 = vcmask 261120   ;;  %v4207_v47 = vpop.permute.xlu0 %4206 }
 0x1cf   :  { %v3958_v50 = vsel %vm3884_vm6, %v3570_v43, %v3957_v1  ;;  %7495 = vmatprep.subr.msk.mxu0 %vm4878_vm2, %v4034_v26  ;;  %v4797_v20 = vsel %vm4795_vm15, %v9354_v38, %v4585_v32  ;;  %v4813_v36 = vsel %vm4812_vm14, %v4796_v39, %v4647_v49  ;;  %vm11791_vm11 = vcmask 293888   ;;  %v4032_v38 = vld [vmem:[%s11772_s1 + $0x10] sm:$0xff] }
 0x1d0   :  { %v3959_v0 = vsel %vm3886_vm7, %v3573_v54, %v3958_v50  ;;  %7496 = vmatpush3.msk.msra.mxu0 %vm4878_vm2, %v4034_v26  ;;  %7505 = vmatprep.mubr.msk.f32.mxu0 %vm11791_vm11, %v4813_v36  ;;  %v9520_v49 = vsel %vm4744_vm12, %v4731_v29, %v4397_v16  ;;  %v9523_v6 = vsel %vm3315_vm1, %v4041_v35, %v4207_v47  ;;  %v9566_v54 = vpop.permute.xlu1 %4270  ;;  %vm11809_vm2 = vcmask 195584  }
 0x1d1   :  { %v3960_v45 = vsel %vm3888_vm8, %v3576_v46, %v3959_v0  ;;  %7497 = vmatprep.subr.mxu0 %v4033_v63  ;;  %v4814_v52 = vsel %vm4812_vm14, %v4797_v20, %v4649_v33  ;;  %v926_v58 = vcombine.high %v94_v5, %v94_v5  ;;  %v933_v24 = vrot.slane %v94_v5, %v7962_v27 }
 0x1d2   :  { %v3961_v62 = vsel %vm11796_vm9, %v3579_v4, %v3960_v45  ;;  %7498 = vmatpush3.msra.mxu0 %v4033_v63  ;;  %v943_v13 = vcombine.high %v95_v51, %v95_v51  ;;  %v950_v21 = vrot.slane %v95_v51, %v7962_v27  ;;  %v960_v17 = vcombine.high %v96_v42, %v96_v42 }
 0x1d3   :  { %4024 = vst.msk [vmem:[#allocation2 + $0xd1] sm:$0xff] %vm3315_vm1, %v3961_v62  ;;  %7499 = vmatprep.subr.mxu0 %v4032_v38  ;;  %v940_v14 = vrot.slane %v926_v58, %v7962_v27  ;;  %v941_v57 = vcombine.high %v933_v24, %v933_v24  ;;  %v9539_v23 = vrot.slane %v96_v42, %v7962_v27  ;;  %v2755_v34 = vsel %vm1522_vm0, %v933_v24, -inf }
 0x1d4   :  { %v977_v40 = vcombine.high %v97_v48, %v97_v48  ;;  %7500 = vmatpush3.msra.mxu0 %v4032_v38  ;;  %v957_v9 = vrot.slane %v943_v13, %v7962_v27  ;;  %v958_v19 = vcombine.high %v950_v21, %v950_v21  ;;  %v9546_v28 = vrot.slane %v960_v17, %v7962_v27 }
 0x1d5   :  { %v9549_v41 = vrot.slane %v97_v48, %v7962_v27  ;;  %7501 = vmatprep.subr.mxu0 %v4031_v59  ;;  %v942_v61 = vcombine.high %v940_v14, %v940_v14  ;;  %v975_v16 = vcombine.high %v9539_v23, %v9539_v23  ;;  %v2756_v55 = vrot.slane %v2755_v34, 4 }
 0x1d6   :  { %v9554_v31 = vrot.slane %v977_v40, %v7962_v27  ;;  %7502 = vmatpush3.msra.mxu0 %v4031_v59  ;;  %v959_v7 = vcombine.high %v957_v9, %v957_v9  ;;  %v976_v37 = vcombine.high %v9546_v28, %v9546_v28  ;;  %v2762_v43 = vsel %vm1522_vm0, %v941_v57, -inf  ;;  %v9578_v59 = vpop.permute.xlu1 %4522 }
 0x1d7   :  { %v992_v32 = vcombine.high %v9549_v41, %v9549_v41  ;;  %7503 = vmatprep.subr.mxu0 %v4030_v22  ;;  %v2769_v15 = vsel %vm1522_vm0, %v940_v14, -inf  ;;  %v2776_v30 = vsel %vm1522_vm0, %v942_v61, -inf  ;;  %v2757_v11 = vmax.f32 %v2755_v34, %v2756_v55 }
 0x1d8   :  { %v993_v56 = vcombine.high %v9554_v31, %v9554_v31  ;;  %7504 = vmatpush3.msra.mxu0 %v4030_v22  ;;  %v2763_v53 = vrot.slane %v2762_v43, 4  ;;  %v2770_v3 = vrot.slane %v2769_v15, 4  ;;  %v2777_v39 = vrot.slane %v2776_v30, 4 }
 0x1d9   :  { %v2783_v60 = vsel %vm1522_vm0, %v950_v21, -inf  ;;  %v2790_v2 = vsel %vm1522_vm0, %v958_v19, -inf  ;;  %v2797_v26 = vsel %vm1522_vm0, %v957_v9, -inf  ;;  %v2804_v46 = vsel %vm1522_vm0, %v959_v7, -inf  ;;  %7506 = vmatmul.mubr.msk.f32.vlgmr.msra.gmra.mxu0 %vm11791_vm11, %v4814_v52 }
 0x1da   :  { %v9573_v4 = vld [vmem:[#allocation2 + $0xd1] sm:$0xff]  ;;  %v2758_v35 = vrot.slane %v2757_v11, 2  ;;  %v2764_v1 = vmax.f32 %v2762_v43, %v2763_v53  ;;  %v2771_v29 = vmax.f32 %v2769_v15, %v2770_v3  ;;  %v2778_v63 = vmax.f32 %v2776_v30, %v2777_v39 }
 0x1db   :  { %v4095_v18 = vld [vmem:[#allocation2 + $0xd0] sm:$0xff]  ;;  %4220 = vrot.lane.b32.xlu0 %v9573_v4, %s7702_s16  ;;  %v2784_v33 = vrot.slane %v2783_v60, 4  ;;  %v2791_v5 = vrot.slane %v2790_v2, 4  ;;  %v2798_v50 = vrot.slane %v2797_v26, 4  ;;  %v2805_v20 = vrot.slane %v2804_v46, 4 }
 0x1dc   :  { %4346 = vrot.lane.b32.xlu1 %v4095_v18, %s7704_s18  ;;  %v2759_v36 = vmax.f32 %v2757_v11, %v2758_v35  ;;  %v2765_v47 = vrot.slane %v2764_v1, 2  ;;  %v2772_v51 = vrot.slane %v2771_v29, 2  ;;  %v2779_v42 = vrot.slane %v2778_v63, 2  ;;  %v9584_v57 = vld [vmem:[#allocation2 + $0xd2] sm:$0xff]  ;;  %v9598_v11 = vpop.permute.xlu0 %4458 }
 0x1dd   :  { %v2785_v0 = vmax.f32 %v2783_v60, %v2784_v33  ;;  %v2792_v38 = vmax.f32 %v2790_v2, %v2791_v5  ;;  %v2799_v48 = vmax.f32 %v2797_v26, %v2798_v50  ;;  %v2806_v45 = vmax.f32 %v2804_v46, %v2805_v20 }
 0x1de   :  { %v2760_v52 = vrot.slane %v2759_v36, 1  ;;  %v2766_v58 = vmax.f32 %v2764_v1, %v2765_v47  ;;  %v2773_v24 = vmax.f32 %v2771_v29, %v2772_v51  ;;  %v2780_v62 = vmax.f32 %v2778_v63, %v2779_v42  ;;  %v9612_v1 = vpop.permute.xlu1 %4334 }
 0x1df   :  { %4472 = vrot.lane.b32.xlu0 %v9406_v12, %s7706_s20  ;;  %v2786_v13 = vrot.slane %v2785_v0, 2  ;;  %v2793_v21 = vrot.slane %v2792_v38, 2  ;;  %v2800_v17 = vrot.slane %v2799_v48, 2  ;;  %v2807_v14 = vrot.slane %v2806_v45, 2 }
 0x1e0   :  { %4598 = vrot.lane.b32.xlu1 %v9395_v44, %s7708_s30  ;;  %v9586_v40 = vmax.f32 %v2759_v36, %v2760_v52  ;;  %v2767_v22 = vrot.slane %v2766_v58, 1  ;;  %v2774_v9 = vrot.slane %v2773_v24, 1  ;;  %v2781_v19 = vrot.slane %v2780_v62, 1 }
 0x1e1   :  { %v2787_v61 = vmax.f32 %v2785_v0, %v2786_v13  ;;  %v2794_v34 = vmax.f32 %v2792_v38, %v2793_v21  ;;  %v2801_v7 = vmax.f32 %v2799_v48, %v2800_v17  ;;  %v2808_v55 = vmax.f32 %v2806_v45, %v2807_v14 }
 0x1e2   :  { %v9588_v43 = vmax.f32 %v2766_v58, %v2767_v22  ;;  %v9590_v15 = vmax.f32 %v2773_v24, %v2774_v9  ;;  %v9592_v44 = vmax.f32 %v2780_v62, %v2781_v19  ;;  %v2811_v30 = vsel %vm1522_vm0, %v9539_v23, -inf }
 0x1e3   :  { %4284 = vrot.lane.b32.xlu0 %v9584_v57, %s7703_s17  ;;  %v2788_v53 = vrot.slane %v2787_v61, 1  ;;  %v2795_v3 = vrot.slane %v2794_v34, 1  ;;  %v2802_v39 = vrot.slane %v2801_v7, 1  ;;  %v2809_v60 = vrot.slane %v2808_v55, 1 }
 0x1e4   :  { %4410 = vrot.lane.b32.xlu1 %v9573_v4, %s7705_s19  ;;  %v2812_v2 = vrot.slane %v2811_v30, 4  ;;  %v2818_v26 = vsel %vm1522_vm0, %v975_v16, -inf  ;;  %v2825_v46 = vsel %vm1522_vm0, %v9546_v28, -inf  ;;  %v2832_v35 = vsel %vm1522_vm0, %v976_v37, -inf }
 0x1e5   :  { %v9614_v29 = vmax.f32 %v2787_v61, %v2788_v53  ;;  %v9616_v63 = vmax.f32 %v2794_v34, %v2795_v3  ;;  %v9618_v33 = vmax.f32 %v2801_v7, %v2802_v39  ;;  %v9620_v5 = vmax.f32 %v2808_v55, %v2809_v60 }
 0x1e6   :  { %v2813_v23 = vmax.f32 %v2811_v30, %v2812_v2  ;;  %v2819_v16 = vrot.slane %v2818_v26, 4  ;;  %v2826_v50 = vrot.slane %v2825_v46, 4  ;;  %v2833_v20 = vrot.slane %v2832_v35, 4 }
 0x1e7   :  { %4536 = vrot.lane.b32.xlu0 %v4095_v18, %s7707_s21  ;;  %v2839_v28 = vsel %vm1522_vm0, %v9549_v41, -inf  ;;  %v2846_v37 = vsel %vm1522_vm0, %v992_v32, -inf  ;;  %v2853_v36 = vsel %vm1522_vm0, %v9554_v31, -inf  ;;  %v2860_v47 = vsel %vm1522_vm0, %v993_v56, -inf  ;;  %v9637_v32 = vpop.permute.xlu0 %4208  ;;  %v9639_v31 = vpop.permute.xlu1 %4586 }
 0x1e8   :  { %4662 = vrot.lane.b32.xlu1 %v9406_v12, %s7709_s22  ;;  %v2814_v18 = vrot.slane %v2813_v23, 2  ;;  %v2820_v51 = vmax.f32 %v2818_v26, %v2819_v16  ;;  %v2827_v42 = vmax.f32 %v2825_v46, %v2826_v50  ;;  %v2834_v0 = vmax.f32 %v2832_v35, %v2833_v20 }
 0x1e9   :  { %v2840_v38 = vrot.slane %v2839_v28, 4  ;;  %v2847_v48 = vrot.slane %v2846_v37, 4  ;;  %v2854_v41 = vrot.slane %v2853_v36, 4  ;;  %v2861_v45 = vrot.slane %v2860_v47, 4 }
 0x1ea   :  { %v2815_v52 = vmax.f32 %v2813_v23, %v2814_v18  ;;  %v2821_v58 = vrot.slane %v2820_v51, 2  ;;  %v2828_v24 = vrot.slane %v2827_v42, 2  ;;  %v2835_v62 = vrot.slane %v2834_v0, 2 }
 0x1eb   :  { %v2841_v56 = vmax.f32 %v2839_v28, %v2840_v38  ;;  %v2848_v13 = vmax.f32 %v2846_v37, %v2847_v48  ;;  %v2855_v21 = vmax.f32 %v2853_v36, %v2854_v41  ;;  %v2862_v12 = vmax.f32 %v2860_v47, %v2861_v45  ;;  %v4461_v46 = vpop.permute.xlu0 %4460  ;;  %v9643_v20 = vpop.permute.xlu1 %4398 }
 0x1ec   :  { %v2816_v17 = vrot.slane %v2815_v52, 1  ;;  %v2822_v14 = vmax.f32 %v2820_v51, %v2821_v58  ;;  %v2829_v22 = vmax.f32 %v2827_v42, %v2828_v24  ;;  %v2836_v9 = vmax.f32 %v2834_v0, %v2835_v62 }
 0x1ed   :  { %v2842_v19 = vrot.slane %v2841_v56, 2  ;;  %v2849_v61 = vrot.slane %v2848_v13, 2  ;;  %v2856_v34 = vrot.slane %v2855_v21, 2  ;;  %v2863_v7 = vrot.slane %v2862_v12, 2 }
 0x1ee   :  { %v2817_v55 = vmax.f32 %v2815_v52, %v2816_v17  ;;  %v2823_v30 = vrot.slane %v2822_v14, 1  ;;  %v2830_v53 = vrot.slane %v2829_v22, 1  ;;  %v2837_v3 = vrot.slane %v2836_v9, 1 }
 0x1ef   :  { %v2843_v39 = vmax.f32 %v2841_v56, %v2842_v19  ;;  %v2850_v60 = vmax.f32 %v2848_v13, %v2849_v61  ;;  %v2857_v2 = vmax.f32 %v2855_v21, %v2856_v34  ;;  %v2864_v26 = vmax.f32 %v2862_v12, %v2863_v7  ;;  %v98_v7 = vld [vmem:[%s11771_s0 + $0x180] sm:$0xff] }
 0x1f0   :  { %v2824_v35 = vmax.f32 %v2822_v14, %v2823_v30  ;;  %v2831_v23 = vmax.f32 %v2829_v22, %v2830_v53  ;;  %v2838_v16 = vmax.f32 %v2836_v9, %v2837_v3  ;;  %v3580_v50 = vsel %vm3315_vm1, %v9586_v40, -inf  ;;  %v9664_v22 = vpop.permute.xlu1 %4650  ;;  %v99_v53 = vld [vmem:[%s11771_s0 + $0x188] sm:$0xff] }
 0x1f1   :  { %v2844_v28 = vrot.slane %v2843_v39, 1  ;;  %v2851_v37 = vrot.slane %v2850_v60, 1  ;;  %v2858_v36 = vrot.slane %v2857_v2, 1  ;;  %v2865_v47 = vrot.slane %v2864_v26, 1 }
 0x1f2   :  { %v3581_v18 = vsel %vm3315_vm1, %v2817_v55, -inf  ;;  %v3583_v51 = vsel %vm3315_vm1, %v9588_v43, -inf  ;;  %v3584_v42 = vsel %vm3315_vm1, %v2824_v35, -inf  ;;  %v3586_v0 = vsel %vm3315_vm1, %v9590_v15, -inf  ;;  %v4273_v15 = vpop.permute.xlu0 %4272 }
 0x1f3   :  { %v2845_v38 = vmax.f32 %v2843_v39, %v2844_v28  ;;  %v2852_v48 = vmax.f32 %v2850_v60, %v2851_v37  ;;  %v2859_v41 = vmax.f32 %v2857_v2, %v2858_v36  ;;  %v2866_v40 = vmax.f32 %v2864_v26, %v2865_v47 }
 0x1f4   :  { %v3582_v45 = vmax.f32 %v3580_v50, %v3581_v18  ;;  %v3585_v52 = vmax.f32 %v3583_v51, %v3584_v42  ;;  %v3587_v58 = vsel %vm3315_vm1, %v2831_v23, -inf  ;;  %v3589_v24 = vsel %vm3315_vm1, %v9592_v44, -inf  ;;  %v4042_v44 = vld [vmem:[#allocation2 + $0x50] sm:$0xff]  ;;  %v9711_v50 = vpop.permute.xlu1 %4400 }
 0x1f5   :  { %v3588_v62 = vmax.f32 %v3586_v0, %v3587_v58  ;;  %v3590_v56 = vsel %vm3315_vm1, %v2838_v16, -inf  ;;  %v3592_v43 = vsel %vm3315_vm1, %v9614_v29, -inf  ;;  %v3593_v13 = vsel %vm3315_vm1, %v2845_v38, -inf }
 0x1f6   :  { %v4764_v21 = vsel %vm4761_vm13, %v9493_v8, %v9598_v11  ;;  %v3591_v12 = vmax.f32 %v3589_v24, %v3590_v56  ;;  %v3595_v17 = vsel %vm3315_vm1, %v9616_v63, -inf  ;;  %v3596_v14 = vsel %vm3315_vm1, %v2852_v48, -inf }
 0x1f7   :  { %v3594_v9 = vmax.f32 %v3592_v43, %v3593_v13  ;;  %v3598_v29 = vsel %vm3315_vm1, %v9618_v33, -inf  ;;  %v3599_v19 = vsel %vm3315_vm1, %v2859_v41, -inf  ;;  %v3601_v61 = vsel %vm3315_vm1, %v9620_v5, -inf }
 0x1f8   :  { %v3597_v34 = vmax.f32 %v3595_v17, %v3596_v14  ;;  %v3600_v8 = vmax.f32 %v3598_v29, %v3599_v19  ;;  %v3602_v11 = vsel %vm3315_vm1, %v2866_v40, -inf  ;;  %v3962_v63 = vsel %vm3878_vm3, %v3585_v52, %v3582_v45  ;;  %v9742_v17 = vpop.permute.xlu1 %4652 }
 0x1f9   :  { %v3603_v55 = vmax.f32 %v3601_v61, %v3602_v11  ;;  %v3963_v30 = vsel %vm3880_vm4, %v3588_v62, %v3962_v63  ;;  %v4715_v33 = vsel %vm4710_vm10, %v9523_v6, %v9566_v54  ;;  %v4699_v5 = vsel %vm3315_vm1, %v4042_v44, %v9637_v32  ;;  %v100_v6 = vld [vmem:[%s11771_s0 + $0x190] sm:$0xff] }
 0x1fa   :  { %v3964_v3 = vsel %vm3882_vm5, %v3591_v12, %v3963_v30  ;;  %v4781_v39 = vsel %vm11809_vm2, %v4764_v21, %v9578_v59  ;;  %v4765_v60 = vsel %vm4761_vm13, %v9520_v49, %v4461_v46  ;;  %vm11810_vm11 = vcmask 97280   ;;  %v4525_v59 = vpop.permute.xlu0 %4524 }
 0x1fb   :  { %v9692_v2 = vsel %vm11810_vm11, %v4715_v33, %v9612_v1  ;;  %v3965_v54 = vsel %vm3884_vm6, %v3594_v9, %v3964_v3  ;;  %v9699_v32 = vsel %vm4710_vm10, %v4699_v5, %v4273_v15  ;;  %v9703_v26 = vsel %vm4795_vm15, %v4781_v39, %v9639_v31  ;;  %v101_v1 = vld [vmem:[%s11771_s0 + $0x198] sm:$0xff]  ;;  %vm11811_vm11 = vmmov %vm11809_vm2 }
 0x1fc   :  { %v994_v35 = vcombine.high %v98_v7, %v98_v7  ;;  %v3966_v49 = vsel %vm3886_vm7, %v3597_v34, %v3965_v54  ;;  %v1001_v46 = vrot.slane %v98_v7, %v7962_v27  ;;  %v1011_v23 = vcombine.high %v99_v53, %v99_v53 }
 0x1fd   :  { %v1018_v16 = vrot.slane %v99_v53, %v7962_v27  ;;  %v3967_v28 = vsel %vm3888_vm8, %v3600_v8, %v3966_v49  ;;  %v1028_v37 = vcombine.high %v100_v6, %v100_v6  ;;  %v9716_v36 = vrot.slane %v100_v6, %v7962_v27 }
 0x1fe   :  { %v1008_v31 = vrot.slane %v994_v35, %v7962_v27  ;;  %v3968_v47 = vsel %vm11796_vm9, %v3603_v55, %v3967_v28  ;;  %v9720_v18 = vsel %vm11811_vm11, %v4765_v60, %v4525_v59  ;;  %v1009_v51 = vcombine.high %v1001_v46, %v1001_v46 }
 0x1ff   :  { %v1025_v42 = vrot.slane %v1011_v23, %v7962_v27  ;;  %4025 = vst.msk [vmem:[#allocation2 + $0xe1] sm:$0xff] %vm3315_vm1, %v3968_v47  ;;  %v1026_v38 = vcombine.high %v1018_v16, %v1018_v16  ;;  %v9725_v48 = vrot.slane %v1028_v37, %v7962_v27  ;;  %v1045_v41 = vcombine.high %v101_v1, %v101_v1  ;;  %v9757_v23 = vpop.permute.xlu1 %4274  ;;  %v9759_v47 = vpop.permute.xlu0 %4336 }
 0x200   :  { %v1010_v0 = vcombine.high %v1008_v31, %v1008_v31  ;;  %v1043_v40 = vcombine.high %v9716_v36, %v9716_v36  ;;  %v9730_v45 = vrot.slane %v101_v1, %v7962_v27  ;;  %v2867_v52 = vsel %vm1522_vm0, %v1001_v46, -inf }
 0x201   :  { %v2874_v58 = vsel %vm1522_vm0, %v1009_v51, -inf  ;;  %v1027_v24 = vcombine.high %v1025_v42, %v1025_v42  ;;  %v1044_v62 = vcombine.high %v9725_v48, %v9725_v48  ;;  %v2868_v56 = vrot.slane %v2867_v52, 4 }
 0x202   :  { %v2875_v43 = vrot.slane %v2874_v58, 4  ;;  %v9737_v13 = vrot.slane %v1045_v41, %v7962_v27  ;;  %v2881_v15 = vsel %vm1522_vm0, %v1008_v31, -inf  ;;  %v2888_v21 = vsel %vm1522_vm0, %v1010_v0, -inf }
 0x203   :  { %v2895_v12 = vsel %vm1522_vm0, %v1018_v16, -inf  ;;  %v1060_v14 = vcombine.high %v9730_v45, %v9730_v45  ;;  %v2869_v44 = vmax.f32 %v2867_v52, %v2868_v56  ;;  %v2882_v29 = vrot.slane %v2881_v15, 4 }
 0x204   :  { %v2876_v9 = vmax.f32 %v2874_v58, %v2875_v43  ;;  %v2889_v19 = vrot.slane %v2888_v21, 4  ;;  %v2896_v61 = vrot.slane %v2895_v12, 4  ;;  %v2902_v34 = vsel %vm1522_vm0, %v1026_v38, -inf }
 0x205   :  { %v2909_v8 = vsel %vm1522_vm0, %v1025_v42, -inf  ;;  %v2870_v11 = vrot.slane %v2869_v44, 2  ;;  %v2883_v7 = vmax.f32 %v2881_v15, %v2882_v29  ;;  %v2903_v55 = vrot.slane %v2902_v34, 4 }
 0x206   :  { %v2877_v63 = vrot.slane %v2876_v9, 2  ;;  %v9748_v30 = vld [vmem:[#allocation2 + $0xe0] sm:$0xff]  ;;  %v2890_v5 = vmax.f32 %v2888_v21, %v2889_v19  ;;  %v2897_v53 = vmax.f32 %v2895_v12, %v2896_v61  ;;  %v2910_v3 = vrot.slane %v2909_v8, 4 }
 0x207   :  { %v9750_v33 = vld [vmem:[#allocation2 + $0xe1] sm:$0xff]  ;;  %v2916_v39 = vsel %vm1522_vm0, %v1027_v24, -inf  ;;  %4348 = vrot.lane.b32.xlu0 %v9748_v30, %s7704_s18  ;;  %v2871_v60 = vmax.f32 %v2869_v44, %v2870_v11  ;;  %v2884_v54 = vrot.slane %v2883_v7, 2  ;;  %v2904_v59 = vmax.f32 %v2902_v34, %v2903_v55  ;;  %v9785_v11 = vpop.permute.xlu1 %4526  ;;  %v9795_v55 = vpop.permute.xlu0 %4588 }
 0x208   :  { %4412 = vrot.lane.b32.xlu1 %v9750_v33, %s7705_s19  ;;  %v2878_v6 = vmax.f32 %v2876_v9, %v2877_v63  ;;  %v2891_v35 = vrot.slane %v2890_v5, 2  ;;  %v2898_v49 = vrot.slane %v2897_v53, 2  ;;  %v2911_v1 = vmax.f32 %v2909_v8, %v2910_v3  ;;  %v9769_v56 = vld [vmem:[#allocation2 + $0xe2] sm:$0xff] }
 0x209   :  { %v2917_v46 = vrot.slane %v2916_v39, 4  ;;  %v2872_v16 = vrot.slane %v2871_v60, 1  ;;  %v2885_v31 = vmax.f32 %v2883_v7, %v2884_v54  ;;  %v2905_v37 = vrot.slane %v2904_v59, 2 }
 0x20a   :  { %v2879_v28 = vrot.slane %v2878_v6, 1  ;;  %v2892_v51 = vmax.f32 %v2890_v5, %v2891_v35  ;;  %v2899_v42 = vmax.f32 %v2897_v53, %v2898_v49  ;;  %v2912_v0 = vrot.slane %v2911_v1, 2 }
 0x20b   :  { %v2918_v38 = vmax.f32 %v2916_v39, %v2917_v46  ;;  %4600 = vrot.lane.b32.xlu0 %v9573_v4, %s7708_s30  ;;  %v1061_v41 = vcombine.high %v9737_v13, %v9737_v13  ;;  %v9767_v52 = vmax.f32 %v2871_v60, %v2872_v16  ;;  %v2886_v58 = vrot.slane %v2885_v31, 1 }
 0x20c   :  { %4664 = vrot.lane.b32.xlu1 %v9584_v57, %s7709_s22  ;;  %v2906_v24 = vmax.f32 %v2904_v59, %v2905_v37  ;;  %v2893_v43 = vrot.slane %v2892_v51, 1  ;;  %v2900_v15 = vrot.slane %v2899_v42, 1  ;;  %v2913_v21 = vmax.f32 %v2911_v1, %v2912_v0 }
 0x20d   :  { %v2919_v12 = vrot.slane %v2918_v38, 2  ;;  %v9771_v44 = vmax.f32 %v2878_v6, %v2879_v28  ;;  %v2923_v4 = vsel %vm1522_vm0, %v9716_v36, -inf  ;;  %v2930_v29 = vsel %vm1522_vm0, %v1043_v40, -inf }
 0x20e   :  { %v2907_v9 = vrot.slane %v2906_v24, 1  ;;  %v9779_v19 = vmax.f32 %v2885_v31, %v2886_v58  ;;  %v9781_v61 = vmax.f32 %v2892_v51, %v2893_v43  ;;  %v2914_v34 = vrot.slane %v2913_v21, 1  ;;  %v9821_v58 = vpop.permute.xlu0 %4210 }
 0x20f   :  { %v9783_v8 = vmax.f32 %v2918_v38, %v2919_v12  ;;  %4222 = vrot.lane.b32.xlu0 %v9750_v33, %s7702_s16  ;;  %v9791_v63 = vmax.f32 %v2899_v42, %v2900_v15  ;;  %v2924_v36 = vrot.slane %v2923_v4, 4  ;;  %v2931_v7 = vrot.slane %v2930_v29, 4 }
 0x210   :  { %4286 = vrot.lane.b32.xlu1 %v9769_v56, %s7703_s17  ;;  %v2937_v40 = vsel %vm1522_vm0, %v9725_v48, -inf  ;;  %v9797_v5 = vmax.f32 %v2906_v24, %v2907_v9  ;;  %v9799_v53 = vmax.f32 %v2913_v21, %v2914_v34  ;;  %v2944_v39 = vsel %vm1522_vm0, %v1044_v62, -inf }
 0x211   :  { %v2938_v3 = vrot.slane %v2937_v40, 4  ;;  %v2925_v60 = vmax.f32 %v2923_v4, %v2924_v36  ;;  %v2932_v6 = vmax.f32 %v2930_v29, %v2931_v7  ;;  %v2945_v54 = vrot.slane %v2944_v39, 4 }
 0x212   :  { %v2951_v59 = vsel %vm1522_vm0, %v9730_v45, -inf  ;;  %v2921_v35 = vrot.slane %v9783_v8, 1  ;;  %v2958_v46 = vsel %vm1522_vm0, %v1060_v14, -inf  ;;  %v2965_v51 = vsel %vm1522_vm0, %v9737_v13, -inf  ;;  %v9819_v45 = vpop.permute.xlu1 %4338 }
 0x213   :  { %v2939_v49 = vmax.f32 %v2937_v40, %v2938_v3  ;;  %v2952_v1 = vrot.slane %v2951_v59, 4  ;;  %4474 = vrot.lane.b32.xlu0 %v9584_v57, %s7706_s20  ;;  %v2926_v48 = vrot.slane %v2925_v60, 2  ;;  %v2933_v62 = vrot.slane %v2932_v6, 2 }
 0x214   :  { %v2946_v16 = vmax.f32 %v2944_v39, %v2945_v54  ;;  %v2959_v28 = vrot.slane %v2958_v46, 4  ;;  %4538 = vrot.lane.b32.xlu1 %v9748_v30, %s7707_s21  ;;  %v2972_v42 = vsel %vm1522_vm0, %v1061_v41, -inf  ;;  %v2966_v15 = vrot.slane %v2965_v51, 4 }
 0x215   :  { %v2940_v31 = vrot.slane %v2939_v49, 2  ;;  %v2953_v37 = vmax.f32 %v2951_v59, %v2952_v1  ;;  %v2927_v14 = vmax.f32 %v2925_v60, %v2926_v48  ;;  %v2934_v0 = vmax.f32 %v2932_v6, %v2933_v62  ;;  %v9828_v62 = vpop.permute.xlu0 %4462 }
 0x216   :  { %v2947_v38 = vrot.slane %v2946_v16, 2  ;;  %v2960_v57 = vmax.f32 %v2958_v46, %v2959_v28  ;;  %v2973_v21 = vrot.slane %v2972_v42, 4  ;;  %v2967_v34 = vmax.f32 %v2965_v51, %v2966_v15  ;;  %v9823_v59 = vpop.permute.xlu1 %4590 }
 0x217   :  { %v2941_v24 = vmax.f32 %v2939_v49, %v2940_v31  ;;  %v2954_v43 = vrot.slane %v2953_v37, 2  ;;  %v2928_v30 = vrot.slane %v2927_v14, 1  ;;  %v2935_v12 = vrot.slane %v2934_v0, 1 }
 0x218   :  { %v2948_v9 = vmax.f32 %v2946_v16, %v2947_v38  ;;  %v2961_v4 = vrot.slane %v2960_v57, 2  ;;  %v2974_v41 = vmax.f32 %v2972_v42, %v2973_v21  ;;  %v2968_v6 = vrot.slane %v2967_v34, 2 }
 0x219   :  { %v2942_v29 = vrot.slane %v2941_v24, 1  ;;  %v2955_v13 = vmax.f32 %v2953_v37, %v2954_v43  ;;  %v2929_v36 = vmax.f32 %v2927_v14, %v2928_v30  ;;  %v2936_v7 = vmax.f32 %v2934_v0, %v2935_v12 }
 0x21a   :  { %v2949_v40 = vrot.slane %v2948_v9, 1  ;;  %v2962_v3 = vmax.f32 %v2960_v57, %v2961_v4  ;;  %v2975_v54 = vrot.slane %v2974_v41, 2  ;;  %v3604_v46 = vsel %vm3315_vm1, %v9767_v52, -inf }
 0x21b   :  { %v2943_v39 = vmax.f32 %v2941_v24, %v2942_v29  ;;  %v2956_v60 = vrot.slane %v2955_v13, 1  ;;  %v3605_v48 = vsel %vm3315_vm1, %v2929_v36, -inf  ;;  %v2922_v16 = vmax.f32 %v9783_v8, %v2921_v35 }
 0x21c   :  { %v2950_v49 = vmax.f32 %v2948_v9, %v2949_v40  ;;  %v2963_v1 = vrot.slane %v2962_v3, 1  ;;  %v2969_v31 = vmax.f32 %v2967_v34, %v2968_v6  ;;  %v2976_v37 = vmax.f32 %v2974_v41, %v2975_v54 }
 0x21d   :  { %v2957_v28 = vmax.f32 %v2955_v13, %v2956_v60  ;;  %v3607_v42 = vsel %vm3315_vm1, %v9771_v44, -inf  ;;  %v3608_v14 = vsel %vm3315_vm1, %v2936_v7, -inf  ;;  %v3610_v0 = vsel %vm3315_vm1, %v9779_v19, -inf  ;;  %v9843_v19 = vpop.permute.xlu1 %4402  ;;  %v9850_v13 = vpop.permute.xlu0 %4212  ;;  %v102_v60 = vld [vmem:[%s11771_s0 + $0x1a0] sm:$0xff] }
 0x21e   :  { %v2964_v51 = vmax.f32 %v2962_v3, %v2963_v1  ;;  %v2970_v38 = vrot.slane %v2969_v31, 1  ;;  %v2977_v52 = vrot.slane %v2976_v37, 1  ;;  %v3606_v57 = vmax.f32 %v3604_v46, %v3605_v48  ;;  %v103_v1 = vld [vmem:[%s11771_s0 + $0x1a8] sm:$0xff]  ;;  %v104_v46 = vld [vmem:[%s11771_s0 + $0x1b0] sm:$0xff] }
 0x21f   :  { %v3611_v24 = vsel %vm3315_vm1, %v2943_v39, -inf  ;;  %v3609_v43 = vmax.f32 %v3607_v42, %v3608_v14  ;;  %v3613_v8 = vsel %vm3315_vm1, %v9781_v61, -inf  ;;  %v3614_v35 = vsel %vm3315_vm1, %v2950_v49, -inf }
 0x220   :  { %v3616_v15 = vsel %vm3315_vm1, %v9791_v63, -inf  ;;  %v2971_v44 = vmax.f32 %v2969_v31, %v2970_v38  ;;  %v2978_v21 = vmax.f32 %v2976_v37, %v2977_v52  ;;  %v3612_v30 = vmax.f32 %v3610_v0, %v3611_v24 }
 0x221   :  { %v3617_v12 = vsel %vm3315_vm1, %v2957_v28, -inf  ;;  %v3615_v9 = vmax.f32 %v3613_v8, %v3614_v35  ;;  %v3619_v4 = vsel %vm3315_vm1, %v9797_v5, -inf  ;;  %v3620_v29 = vsel %vm3315_vm1, %v2964_v51, -inf  ;;  %v4043_v5 = vld [vmem:[#allocation2 + $0x60] sm:$0xff]  ;;  %v9900_v37 = vpop.permute.xlu0 %4464 }
 0x222   :  { %v3622_v61 = vsel %vm3315_vm1, %v9799_v53, -inf  ;;  %v3618_v34 = vmax.f32 %v3616_v15, %v3617_v12  ;;  %v3623_v63 = vsel %vm3315_vm1, %v2971_v44, -inf  ;;  %v3625_v41 = vsel %vm3315_vm1, %v2922_v16, -inf }
 0x223   :  { %v3626_v36 = vsel %vm3315_vm1, %v2978_v21, -inf  ;;  %v3621_v7 = vmax.f32 %v3619_v4, %v3620_v29  ;;  %v3624_v40 = vmax.f32 %v3622_v61, %v3623_v63  ;;  %v3969_v39 = vsel %vm3878_vm3, %v3609_v43, %v3606_v57 }
 0x224   :  { %v3627_v3 = vmax.f32 %v3625_v41, %v3626_v36  ;;  %v3970_v53 = vsel %vm3880_vm4, %v3612_v30, %v3969_v39  ;;  %vm11812_vm2 = vcmask 97280   ;;  %v4815_v54 = vsel %vm4812_vm14, %v9703_v26, %v9664_v22 }
 0x225   :  { %v4733_v6 = vsel %vm11812_vm2, %v9699_v32, %v9759_v47  ;;  %v4799_v49 = vsel %vm4795_vm15, %v9720_v18, %v9795_v55  ;;  %v3971_v48 = vsel %vm3882_vm5, %v3615_v9, %v3970_v53  ;;  %v4749_v32 = vsel %vm4744_vm12, %v9692_v2, %v9643_v20  ;;  %v9893_v20 = vpop.permute.xlu1 %4654  ;;  %v9935_v36 = vpop.permute.xlu0 %4276 }
 0x226   :  { %vm11813_vm11 = vcmask 293888   ;;  %v9882_v22 = vsel %vm4744_vm12, %v4733_v6, %v9711_v50  ;;  %v4816_v26 = vsel %vm4812_vm14, %v4799_v49, %v9742_v17  ;;  %v3972_v18 = vsel %vm3884_vm6, %v3618_v34, %v3971_v48  ;;  %v105_v50 = vld [vmem:[%s11771_s0 + $0x1b8] sm:$0xff] }
 0x227   :  { %7508 = vmatprep.mubr.msk.f32.mxu0 %vm11813_vm11, %v4815_v54  ;;  %v9889_v47 = vsel %vm3315_vm1, %v4043_v5, %v9821_v58  ;;  %v1062_v55 = vcombine.high %v102_v60, %v102_v60  ;;  %v1069_v16 = vrot.slane %v102_v60, %v7962_v27  ;;  %vm11814_vm2 = vmmov %vm11813_vm11  ;;  %v3973_v2 = vsel %vm3886_vm7, %v3621_v7, %v3972_v18 }
 0x228   :  { %7509 = vmatmul.mubr.msk.f32.gmra.mxu0 %vm11814_vm2, %v4816_v26  ;;  %v1079_v17 = vcombine.high %v103_v1, %v103_v1  ;;  %v1086_v28 = vrot.slane %v103_v1, %v7962_v27  ;;  %v1096_v31 = vcombine.high %v104_v46, %v104_v46  ;;  %v3974_v58 = vsel %vm3888_vm8, %v3624_v40, %v3973_v2 }
 0x229   :  { %v1076_v51 = vrot.slane %v1062_v55, %v7962_v27  ;;  %v1077_v42 = vcombine.high %v1069_v16, %v1069_v16  ;;  %v9905_v14 = vrot.slane %v104_v46, %v7962_v27  ;;  %v3975_v0 = vsel %vm11796_vm9, %v3627_v3, %v3974_v58  ;;  %v9929_v29 = vpop.permute.xlu1 %4404 }
 0x22a   :  { %v1093_v38 = vrot.slane %v1079_v17, %v7962_v27  ;;  %v1094_v52 = vcombine.high %v1086_v28, %v1086_v28  ;;  %v9910_v57 = vrot.slane %v1096_v31, %v7962_v27  ;;  %4026 = vst.msk [vmem:[#allocation2 + $0xf1] sm:$0xff] %vm3315_vm1, %v3975_v0  ;;  %v9915_v24 = vsel %vm4761_vm13, %v4749_v32, %v9828_v62 }
 0x22b   :  { %v1078_v43 = vcombine.high %v1076_v51, %v1076_v51  ;;  %v1113_v8 = vcombine.high %v105_v50, %v105_v50  ;;  %v9918_v35 = vrot.slane %v105_v50, %v7962_v27  ;;  %v1111_v44 = vcombine.high %v9905_v14, %v9905_v14 }
 0x22c   :  { %v1095_v15 = vcombine.high %v1093_v38, %v1093_v38  ;;  %v2979_v21 = vsel %vm1522_vm0, %v1069_v16, -inf  ;;  %v2986_v30 = vsel %vm1522_vm0, %v1077_v42, -inf  ;;  %v1112_v12 = vcombine.high %v9910_v57, %v9910_v57 }
 0x22d   :  { %v9927_v9 = vrot.slane %v1113_v8, %v7962_v27  ;;  %v2980_v62 = vrot.slane %v2979_v21, 4  ;;  %v2987_v4 = vrot.slane %v2986_v30, 4  ;;  %v2993_v61 = vsel %vm1522_vm0, %v1076_v51, -inf  ;;  %v9949_v31 = vpop.permute.xlu1 %4656 }
 0x22e   :  { %v3000_v34 = vsel %vm1522_vm0, %v1078_v43, -inf  ;;  %v3007_v63 = vsel %vm1522_vm0, %v1086_v28, -inf  ;;  %v3014_v41 = vsel %vm1522_vm0, %v1094_v52, -inf  ;;  %v1128_v7 = vcombine.high %v9918_v35, %v9918_v35 }
 0x22f   :  { %v2981_v40 = vmax.f32 %v2979_v21, %v2980_v62  ;;  %v2988_v3 = vmax.f32 %v2986_v30, %v2987_v4  ;;  %v2994_v39 = vrot.slane %v2993_v61, 4  ;;  %v3001_v5 = vrot.slane %v3000_v34, 4 }
 0x230   :  { %v3008_v60 = vrot.slane %v3007_v63, 4  ;;  %v3015_v53 = vrot.slane %v3014_v41, 4  ;;  %v3021_v6 = vsel %vm1522_vm0, %v1093_v38, -inf  ;;  %v3028_v16 = vsel %vm1522_vm0, %v1095_v15, -inf  ;;  %v9951_v38 = vpop.permute.xlu0 %4528 }
 0x231   :  { %v2982_v54 = vrot.slane %v2981_v40, 2  ;;  %v2989_v49 = vrot.slane %v2988_v3, 2  ;;  %v2995_v1 = vmax.f32 %v2993_v61, %v2994_v39  ;;  %v3022_v46 = vrot.slane %v3021_v6, 4  ;;  %v9940_v48 = vld [vmem:[#allocation2 + $0xf1] sm:$0xff] }
 0x232   :  { %v9942_v32 = vld [vmem:[#allocation2 + $0xf0] sm:$0xff]  ;;  %v3002_v26 = vmax.f32 %v3000_v34, %v3001_v5  ;;  %v3009_v18 = vmax.f32 %v3007_v63, %v3008_v60  ;;  %v3016_v55 = vmax.f32 %v3014_v41, %v3015_v53  ;;  %4224 = vrot.lane.b32.xlu0 %v9940_v48, %s7702_s16  ;;  %v3029_v0 = vrot.slane %v3028_v16, 4 }
 0x233   :  { %4350 = vrot.lane.b32.xlu1 %v9942_v32, %s7704_s18  ;;  %v2983_v2 = vmax.f32 %v2981_v40, %v2982_v54  ;;  %v2990_v50 = vmax.f32 %v2988_v3, %v2989_v49  ;;  %v2996_v17 = vrot.slane %v2995_v1, 2  ;;  %v3023_v28 = vmax.f32 %v3021_v6, %v3022_v46  ;;  %v9961_v40 = vld [vmem:[#allocation2 + $0xf2] sm:$0xff]  ;;  %v9971_v49 = vpop.permute.xlu1 %4278 }
 0x234   :  { %v3003_v58 = vrot.slane %v3002_v26, 2  ;;  %v3010_v51 = vrot.slane %v3009_v18, 2  ;;  %v3017_v42 = vrot.slane %v3016_v55, 2  ;;  %v3030_v4 = vmax.f32 %v3028_v16, %v3029_v0 }
 0x235   :  { %v2984_v52 = vrot.slane %v2983_v2, 1  ;;  %v2991_v43 = vrot.slane %v2990_v50, 1  ;;  %v2997_v8 = vmax.f32 %v2995_v1, %v2996_v17  ;;  %v3024_v15 = vrot.slane %v3023_v28, 2 }
 0x236   :  { %v3004_v21 = vmax.f32 %v3002_v26, %v3003_v58  ;;  %v3011_v30 = vmax.f32 %v3009_v18, %v3010_v51  ;;  %v3018_v62 = vmax.f32 %v3016_v55, %v3017_v42  ;;  %4476 = vrot.lane.b32.xlu0 %v9769_v56, %s7706_s20  ;;  %v1129_v61 = vcombine.high %v9927_v9, %v9927_v9  ;;  %v9979_v55 = vpop.permute.xlu0 %4340 }
 0x237   :  { %4602 = vrot.lane.b32.xlu1 %v9750_v33, %s7708_s30  ;;  %v9959_v34 = vmax.f32 %v2983_v2, %v2984_v52  ;;  %v2998_v63 = vrot.slane %v2997_v8, 1  ;;  %v3025_v41 = vmax.f32 %v3023_v28, %v3024_v15  ;;  %v3031_v60 = vrot.slane %v3030_v4, 2 }
 0x238   :  { %v3005_v3 = vrot.slane %v3004_v21, 1  ;;  %v3012_v39 = vrot.slane %v3011_v30, 1  ;;  %v3019_v5 = vrot.slane %v3018_v62, 1  ;;  %v9963_v53 = vmax.f32 %v2990_v50, %v2991_v43 }
 0x239   :  { %v3026_v6 = vrot.slane %v3025_v41, 1  ;;  %v3035_v54 = vsel %vm1522_vm0, %v9905_v14, -inf  ;;  %v3042_v33 = vsel %vm1522_vm0, %v1111_v44, -inf  ;;  %v9973_v1 = vmax.f32 %v2997_v8, %v2998_v63 }
 0x23a   :  { %v9975_v46 = vmax.f32 %v3004_v21, %v3005_v3  ;;  %v9977_v26 = vmax.f32 %v3011_v30, %v3012_v39  ;;  %v3032_v18 = vmax.f32 %v3030_v4, %v3031_v60  ;;  %4288 = vrot.lane.b32.xlu0 %v9961_v40, %s7703_s17  ;;  %v9985_v14 = vmax.f32 %v3018_v62, %v3019_v5  ;;  %v10007_v4 = vpop.permute.xlu1 %4530  ;;  %v10010_v3 = vpop.permute.xlu0 %4592 }
 0x23b   :  { %4414 = vrot.lane.b32.xlu1 %v9940_v48, %s7705_s19  ;;  %v3036_v44 = vrot.slane %v3035_v54, 4  ;;  %v3043_v16 = vrot.slane %v3042_v33, 4  ;;  %v3049_v2 = vsel %vm1522_vm0, %v9910_v57, -inf  ;;  %v9989_v50 = vmax.f32 %v3025_v41, %v3026_v6 }
 0x23c   :  { %v3050_v17 = vrot.slane %v3049_v2, 4  ;;  %v3056_v28 = vsel %vm1522_vm0, %v1112_v12, -inf  ;;  %v3063_v58 = vsel %vm1522_vm0, %v9918_v35, -inf  ;;  %v3033_v43 = vrot.slane %v3032_v18, 1 }
 0x23d   :  { %v3037_v51 = vmax.f32 %v3035_v54, %v3036_v44  ;;  %v3044_v42 = vmax.f32 %v3042_v33, %v3043_v16  ;;  %v3057_v0 = vrot.slane %v3056_v28, 4  ;;  %v3064_v52 = vrot.slane %v3063_v58, 4 }
 0x23e   :  { %v3051_v8 = vmax.f32 %v3049_v2, %v3050_v17  ;;  %v3070_v15 = vsel %vm1522_vm0, %v1128_v7, -inf  ;;  %v3077_v21 = vsel %vm1522_vm0, %v9927_v9, -inf  ;;  %4540 = vrot.lane.b32.xlu0 %v9942_v32, %s7707_s21  ;;  %v3084_v7 = vsel %vm1522_vm0, %v1129_v61, -inf }
 0x23f   :  { %v3038_v57 = vrot.slane %v3037_v51, 2  ;;  %v3045_v12 = vrot.slane %v3044_v42, 2  ;;  %v3058_v30 = vmax.f32 %v3056_v28, %v3057_v0  ;;  %v3065_v62 = vmax.f32 %v3063_v58, %v3064_v52  ;;  %4666 = vrot.lane.b32.xlu1 %v9769_v56, %s7709_s22 }
 0x240   :  { %v3052_v63 = vrot.slane %v3051_v8, 2  ;;  %v3071_v41 = vrot.slane %v3070_v15, 4  ;;  %v3078_v35 = vrot.slane %v3077_v21, 4  ;;  %v3085_v33 = vrot.slane %v3084_v7, 4 }
 0x241   :  { %v3039_v9 = vmax.f32 %v3037_v51, %v3038_v57  ;;  %v3046_v39 = vmax.f32 %v3044_v42, %v3045_v12  ;;  %v3059_v5 = vrot.slane %v3058_v30, 2  ;;  %v3066_v32 = vrot.slane %v3065_v62, 2  ;;  %v10012_v51 = vpop.permute.xlu1 %4342 }
 0x242   :  { %v3053_v60 = vmax.f32 %v3051_v8, %v3052_v63  ;;  %v3072_v6 = vmax.f32 %v3070_v15, %v3071_v41  ;;  %v3079_v54 = vmax.f32 %v3077_v21, %v3078_v35  ;;  %v3086_v0 = vmax.f32 %v3084_v7, %v3085_v33  ;;  %v10014_v21 = vpop.permute.xlu0 %4214 }
 0x243   :  { %v3040_v44 = vrot.slane %v3039_v9, 1  ;;  %v3047_v16 = vrot.slane %v3046_v39, 1  ;;  %v3060_v56 = vmax.f32 %v3058_v30, %v3059_v5  ;;  %v3067_v2 = vmax.f32 %v3065_v62, %v3066_v32 }
 0x244   :  { %v3054_v17 = vrot.slane %v3053_v60, 1  ;;  %v3073_v28 = vrot.slane %v3072_v6, 2  ;;  %v3080_v58 = vrot.slane %v3079_v54, 2  ;;  %v3087_v15 = vrot.slane %v3086_v0, 2 }
 0x245   :  { %v3041_v52 = vmax.f32 %v3039_v9, %v3040_v44  ;;  %v3048_v61 = vmax.f32 %v3046_v39, %v3047_v16  ;;  %v3061_v10 = vrot.slane %v3060_v56, 1  ;;  %v3068_v25 = vrot.slane %v3067_v2, 1  ;;  %v10030_v33 = vpop.permute.xlu1 %4594 }
 0x246   :  { %v3055_v42 = vmax.f32 %v3053_v60, %v3054_v17  ;;  %v3074_v57 = vmax.f32 %v3072_v6, %v3073_v28  ;;  %v3081_v8 = vmax.f32 %v3079_v54, %v3080_v58  ;;  %v3034_v12 = vmax.f32 %v3032_v18, %v3033_v43  ;;  %v10035_v17 = vpop.permute.xlu0 %4466 }
 0x247   :  { %v3062_v63 = vmax.f32 %v3060_v56, %v3061_v10  ;;  %v3628_v30 = vsel %vm3315_vm1, %v9959_v34, -inf  ;;  %v3629_v62 = vsel %vm3315_vm1, %v3041_v52, -inf  ;;  %v3069_v41 = vmax.f32 %v3067_v2, %v3068_v25  ;;  %v4044_v2 = vld [vmem:[#allocation2 + $0x70] sm:$0xff] }
 0x248   :  { %v3075_v35 = vrot.slane %v3074_v57, 1  ;;  %v3082_v7 = vrot.slane %v3081_v8, 1  ;;  %v3088_v9 = vmax.f32 %v3086_v0, %v3087_v15  ;;  %v3631_v39 = vsel %vm3315_vm1, %v9963_v53, -inf }
 0x249   :  { %v3632_v5 = vsel %vm3315_vm1, %v3048_v61, -inf  ;;  %v3634_v32 = vsel %vm3315_vm1, %v9973_v1, -inf  ;;  %v3635_v18 = vsel %vm3315_vm1, %v3055_v42, -inf  ;;  %v3630_v34 = vmax.f32 %v3628_v30, %v3629_v62 }
 0x24a   :  { %v3076_v10 = vmax.f32 %v3074_v57, %v3075_v35  ;;  %v3083_v43 = vmax.f32 %v3081_v8, %v3082_v7  ;;  %v3089_v60 = vrot.slane %v3088_v9, 1  ;;  %v3633_v6 = vmax.f32 %v3631_v39, %v3632_v5  ;;  %v10084_v39 = vpop.permute.xlu0 %4216 }
 0x24b   :  { %v3637_v25 = vsel %vm3315_vm1, %v9975_v46, -inf  ;;  %v3638_v54 = vsel %vm3315_vm1, %v3062_v63, -inf  ;;  %v3640_v53 = vsel %vm3315_vm1, %v9977_v26, -inf  ;;  %v3636_v16 = vmax.f32 %v3634_v32, %v3635_v18  ;;  %v106_v63 = vld [vmem:[%s11771_s0 + $0x1c0] sm:$0xff] }
 0x24c   :  { %v3090_v44 = vmax.f32 %v3088_v9, %v3089_v60  ;;  %v3641_v1 = vsel %vm3315_vm1, %v3069_v41, -inf  ;;  %v3643_v56 = vsel %vm3315_vm1, %v9985_v14, -inf  ;;  %v3639_v28 = vmax.f32 %v3637_v25, %v3638_v54  ;;  %v108_v41 = vld [vmem:[%s11771_s0 + $0x1d0] sm:$0xff] }
 0x24d   :  { %v3644_v46 = vsel %vm3315_vm1, %v3076_v10, -inf  ;;  %v3646_v58 = vsel %vm3315_vm1, %v9989_v50, -inf  ;;  %v3647_v26 = vsel %vm3315_vm1, %v3083_v43, -inf  ;;  %v3642_v0 = vmax.f32 %v3640_v53, %v3641_v1  ;;  %v107_v50 = vld [vmem:[%s11771_s0 + $0x1c8] sm:$0xff] }
 0x24e   :  { %v3645_v52 = vmax.f32 %v3643_v56, %v3644_v46  ;;  %v3649_v61 = vsel %vm3315_vm1, %v3034_v12, -inf  ;;  %v3650_v42 = vsel %vm3315_vm1, %v3090_v44, -inf  ;;  %v3648_v57 = vmax.f32 %v3646_v58, %v3647_v26 }
 0x24f   :  { %v3651_v8 = vmax.f32 %v3649_v61, %v3650_v42  ;;  %v3976_v14 = vsel %vm3878_vm3, %v3633_v6, %v3630_v34  ;;  %v4701_v15 = vsel %vm3315_vm1, %v4044_v2, %v9850_v13  ;;  %v4717_v12 = vsel %vm4710_vm10, %v9889_v47, %v9757_v23  ;;  %v10119_v42 = vpop.permute.xlu0 %4468 }
 0x250   :  { %v3977_v30 = vsel %vm3880_vm4, %v3636_v16, %v3976_v14  ;;  %vm11815_vm11 = vcmask 195584   ;;  %v10062_v13 = vsel %vm4761_vm13, %v9882_v22, %v9900_v37  ;;  %vm11816_vm2 = vcmask 97280   ;;  %v10080_v22 = vpop.permute.xlu1 %4406 }
 0x251   :  { %v4783_v62 = vsel %vm11815_vm11, %v9915_v24, %v9785_v11  ;;  %v3978_v35 = vsel %vm3882_vm5, %v3639_v28, %v3977_v30  ;;  %v10070_v7 = vsel %vm11816_vm2, %v4717_v12, %v9819_v45  ;;  %v10074_v23 = vsel %vm4710_vm10, %v4701_v15, %v9935_v36  ;;  %11817 = vst [vmem:[#allocation5_spill] sm:$0xff] %v10080_v22  ;;  %v109_v36 = vld [vmem:[%s11771_s0 + $0x1d8] sm:$0xff] }
 0x252   :  { %v10078_v11 = vsel %vm4795_vm15, %v4783_v62, %v9823_v59  ;;  %v3979_v47 = vsel %vm3884_vm6, %v3642_v0, %v3978_v35  ;;  %v1130_v37 = vcombine.high %v106_v63, %v106_v63  ;;  %v1137_v24 = vrot.slane %v106_v63, %v7962_v27 }
 0x253   :  { %v1147_v9 = vcombine.high %v107_v50, %v107_v50  ;;  %v3980_v45 = vsel %vm3886_vm7, %v3645_v52, %v3979_v47  ;;  %v1154_v5 = vrot.slane %v107_v50, %v7962_v27  ;;  %v1164_v59 = vcombine.high %v108_v41, %v108_v41 }
 0x254   :  { %v10092_v32 = vrot.slane %v108_v41, %v7962_v27  ;;  %v3981_v18 = vsel %vm3888_vm8, %v3648_v57, %v3980_v45  ;;  %v1144_v10 = vrot.slane %v1130_v37, %v7962_v27  ;;  %v1145_v43 = vcombine.high %v1137_v24, %v1137_v24  ;;  %v10112_v58 = vpop.permute.xlu1 %4658 }
 0x255   :  { %v1161_v60 = vrot.slane %v1147_v9, %v7962_v27  ;;  %v3982_v34 = vsel %vm11796_vm9, %v3651_v8, %v3981_v18  ;;  %v1162_v6 = vcombine.high %v1154_v5, %v1154_v5  ;;  %v10099_v25 = vrot.slane %v1164_v59, %v7962_v27  ;;  %11818 = vst [vmem:[#allocation6_spill] sm:$0xff] %v10112_v58 }
 0x256   :  { %v1179_v54 = vcombine.high %v10092_v32, %v10092_v32  ;;  %4027 = vst.msk [vmem:[#allocation2 + $0x101] sm:$0xff] %vm3315_vm1, %v3982_v34  ;;  %v1146_v53 = vcombine.high %v1144_v10, %v1144_v10  ;;  %v1181_v16 = vcombine.high %v109_v36, %v109_v36  ;;  %v10105_v1 = vrot.slane %v109_v36, %v7962_v27 }
 0x257   :  { %v1163_v44 = vcombine.high %v1161_v60, %v1161_v60  ;;  %v1180_v56 = vcombine.high %v10099_v25, %v10099_v25  ;;  %v3091_v2 = vsel %vm1522_vm0, %v1137_v24, -inf  ;;  %v3098_v28 = vsel %vm1522_vm0, %v1145_v43, -inf }
 0x258   :  { %v3105_v46 = vsel %vm1522_vm0, %v1144_v10, -inf  ;;  %v10115_v26 = vrot.slane %v1181_v16, %v7962_v27  ;;  %v1196_v0 = vcombine.high %v10105_v1, %v10105_v1  ;;  %v3092_v52 = vrot.slane %v3091_v2, 4  ;;  %v10132_v34 = vpop.permute.xlu1 %4408 }
 0x259   :  { %v3099_v61 = vrot.slane %v3098_v28, 4  ;;  %v3106_v57 = vrot.slane %v3105_v46, 4  ;;  %v3112_v8 = vsel %vm1522_vm0, %v1146_v53, -inf  ;;  %v3119_v14 = vsel %vm1522_vm0, %v1154_v5, -inf  ;;  %11819 = vst [vmem:[#allocation7_spill] sm:$0xff] %v10132_v34 }
 0x25a   :  { %v3126_v15 = vsel %vm1522_vm0, %v1162_v6, -inf  ;;  %v1197_v63 = vcombine.high %v10115_v26, %v10115_v26  ;;  %v3093_v50 = vmax.f32 %v3091_v2, %v3092_v52  ;;  %v3113_v12 = vrot.slane %v3112_v8, 4  ;;  %v10138_v2 = vpop.permute.xlu0 %4280 }
 0x25b   :  { %v3100_v30 = vmax.f32 %v3098_v28, %v3099_v61  ;;  %v3107_v62 = vmax.f32 %v3105_v46, %v3106_v57  ;;  %v3120_v41 = vrot.slane %v3119_v14, 4  ;;  %v3127_v35 = vrot.slane %v3126_v15, 4 }
 0x25c   :  { %v3133_v47 = vsel %vm1522_vm0, %v1161_v60, -inf  ;;  %v3094_v37 = vrot.slane %v3093_v50, 2  ;;  %v3114_v9 = vmax.f32 %v3112_v8, %v3113_v12  ;;  %v3140_v43 = vsel %vm1522_vm0, %v1163_v44, -inf }
 0x25d   :  { %v3101_v24 = vrot.slane %v3100_v30, 2  ;;  %v3134_v45 = vrot.slane %v3133_v47, 4  ;;  %v10127_v36 = vld [vmem:[#allocation2 + $0x100] sm:$0xff]  ;;  %v3108_v59 = vrot.slane %v3107_v62, 2  ;;  %v3121_v18 = vmax.f32 %v3119_v14, %v3120_v41 }
 0x25e   :  { %v10129_v5 = vld [vmem:[#allocation2 + $0x101] sm:$0xff]  ;;  %v3128_v10 = vmax.f32 %v3126_v15, %v3127_v35  ;;  %4352 = vrot.lane.b32.xlu0 %v10127_v36, %s7704_s18  ;;  %v3095_v60 = vmax.f32 %v3093_v50, %v3094_v37  ;;  %v3115_v53 = vrot.slane %v3114_v9, 2  ;;  %v3141_v61 = vrot.slane %v3140_v43, 4 }
 0x25f   :  { %4416 = vrot.lane.b32.xlu1 %v10129_v5, %s7705_s19  ;;  %v3102_v6 = vmax.f32 %v3100_v30, %v3101_v24  ;;  %v3135_v16 = vmax.f32 %v3133_v47, %v3134_v45  ;;  %v3109_v28 = vmax.f32 %v3107_v62, %v3108_v59  ;;  %v3122_v46 = vrot.slane %v3121_v18, 2  ;;  %v10148_v37 = vld [vmem:[#allocation2 + $0x102] sm:$0xff] }
 0x260   :  { %v3129_v52 = vrot.slane %v3128_v10, 2  ;;  %v3096_v57 = vrot.slane %v3095_v60, 1  ;;  %v3116_v8 = vmax.f32 %v3114_v9, %v3115_v53  ;;  %v3142_v35 = vmax.f32 %v3140_v43, %v3141_v61 }
 0x261   :  { %v3103_v44 = vrot.slane %v3102_v6, 1  ;;  %v3136_v14 = vrot.slane %v3135_v16, 2  ;;  %v3110_v15 = vrot.slane %v3109_v28, 1  ;;  %v3123_v12 = vmax.f32 %v3121_v18, %v3122_v46  ;;  %v10152_v18 = vpop.permute.xlu1 %4660 }
 0x262   :  { %v3130_v41 = vmax.f32 %v3128_v10, %v3129_v52  ;;  %4604 = vrot.lane.b32.xlu0 %v9940_v48, %s7708_s30  ;;  %v10144_v50 = vmax.f32 %v3095_v60, %v3096_v57  ;;  %v3117_v62 = vrot.slane %v3116_v8, 1  ;;  %v3143_v59 = vrot.slane %v3142_v35, 2  ;;  %11820 = vst [vmem:[#allocation8_spill] sm:$0xff] %v10152_v18 }
 0x263   :  { %4668 = vrot.lane.b32.xlu1 %v9961_v40, %s7709_s22  ;;  %v10146_v30 = vmax.f32 %v3102_v6, %v3103_v44  ;;  %v3137_v47 = vmax.f32 %v3135_v16, %v3136_v14  ;;  %v10150_v24 = vmax.f32 %v3109_v28, %v3110_v15  ;;  %v3124_v9 = vrot.slane %v3123_v12, 1  ;;  %v10162_v6 = vpop.permute.xlu0 %4532 }
 0x264   :  { %v3131_v45 = vrot.slane %v3130_v41, 1  ;;  %v10154_v10 = vmax.f32 %v3116_v8, %v3117_v62  ;;  %v3147_v43 = vsel %vm1522_vm0, %v10092_v32, -inf  ;;  %v3154_v60 = vsel %vm1522_vm0, %v1179_v54, -inf  ;;  %11821 = vst [vmem:[#allocation9_spill] sm:$0xff] %v10162_v6 }
 0x265   :  { %v3138_v48 = vrot.slane %v3137_v47, 1  ;;  %v10164_v53 = vmax.f32 %v3123_v12, %v3124_v9  ;;  %v3144_v28 = vmax.f32 %v3142_v35, %v3143_v59  ;;  %v3148_v46 = vrot.slane %v3147_v43, 4  ;;  %v10190_v9 = vpop.permute.xlu1 %4282 }
 0x266   :  { %v10166_v16 = vmax.f32 %v3130_v41, %v3131_v45  ;;  %4226 = vrot.lane.b32.xlu0 %v10129_v5, %s7702_s16  ;;  %v3155_v61 = vrot.slane %v3154_v60, 4  ;;  %v3161_v32 = vsel %vm1522_vm0, %v10099_v25, -inf  ;;  %v3168_v54 = vsel %vm1522_vm0, %v1180_v56, -inf  ;;  %11822 = vst [vmem:[#allocation10_spill] sm:$0xff] %v10190_v9 }
 0x267   :  { %4290 = vrot.lane.b32.xlu1 %v10148_v37, %s7703_s17  ;;  %v10172_v52 = vmax.f32 %v3137_v47, %v3138_v48  ;;  %v3145_v57 = vrot.slane %v3144_v28, 1  ;;  %v3149_v44 = vmax.f32 %v3147_v43, %v3148_v46  ;;  %v3162_v8 = vrot.slane %v3161_v32, 4 }
 0x268   :  { %v3169_v14 = vrot.slane %v3168_v54, 4  ;;  %v3156_v15 = vmax.f32 %v3154_v60, %v3155_v61  ;;  %v3175_v12 = vsel %vm1522_vm0, %v10105_v1, -inf  ;;  %v3182_v41 = vsel %vm1522_vm0, %v1196_v0, -inf  ;;  %v10196_v1 = vpop.permute.xlu0 %4344 }
 0x269   :  { %v3189_v35 = vsel %vm1522_vm0, %v10115_v26, -inf  ;;  %v10188_v62 = vmax.f32 %v3144_v28, %v3145_v57  ;;  %v3150_v25 = vrot.slane %v3149_v44, 2  ;;  %v3163_v56 = vmax.f32 %v3161_v32, %v3162_v8  ;;  %11823 = vst [vmem:[#allocation11_spill] sm:$0xff] %v10196_v1  ;;  %v10202_v6 = vpop.permute.xlu1 %4534 }
 0x26a   :  { %v3170_v47 = vmax.f32 %v3168_v54, %v3169_v14  ;;  %4478 = vrot.lane.b32.xlu0 %v9961_v40, %s7706_s20  ;;  %v3157_v45 = vrot.slane %v3156_v15, 2  ;;  %v3176_v59 = vrot.slane %v3175_v12, 4  ;;  %v3183_v48 = vrot.slane %v3182_v41, 4 }
 0x26b   :  { %v3190_v43 = vrot.slane %v3189_v35, 4  ;;  %4542 = vrot.lane.b32.xlu1 %v10127_v36, %s7707_s21  ;;  %v3151_v0 = vmax.f32 %v3149_v44, %v3150_v25  ;;  %v3164_v60 = vrot.slane %v3163_v56, 2  ;;  %v3196_v46 = vsel %vm1522_vm0, %v1197_v63, -inf }
 0x26c   :  { %v3171_v28 = vrot.slane %v3170_v47, 2  ;;  %v3158_v61 = vmax.f32 %v3156_v15, %v3157_v45  ;;  %v3177_v32 = vmax.f32 %v3175_v12, %v3176_v59  ;;  %v3184_v40 = vmax.f32 %v3182_v41, %v3183_v48  ;;  %v10204_v41 = vpop.permute.xlu0 %4596 }
 0x26d   :  { %v3191_v54 = vmax.f32 %v3189_v35, %v3190_v43  ;;  %v3152_v57 = vrot.slane %v3151_v0, 1  ;;  %v3165_v8 = vmax.f32 %v3163_v56, %v3164_v60  ;;  %v3197_v9 = vrot.slane %v3196_v46, 4 }
 0x26e   :  { %v3172_v14 = vmax.f32 %v3170_v47, %v3171_v28  ;;  %v3159_v34 = vrot.slane %v3158_v61, 1  ;;  %v3178_v36 = vrot.slane %v3177_v32, 2  ;;  %v3185_v18 = vrot.slane %v3184_v40, 2 }
 0x26f   :  { %v3192_v1 = vrot.slane %v3191_v54, 2  ;;  %v3153_v44 = vmax.f32 %v3151_v0, %v3152_v57  ;;  %v3166_v25 = vrot.slane %v3165_v8, 1  ;;  %v3198_v22 = vmax.f32 %v3196_v46, %v3197_v9 }
 0x270   :  { %v3173_v58 = vrot.slane %v3172_v14, 1  ;;  %v3160_v26 = vmax.f32 %v3158_v61, %v3159_v34  ;;  %v3179_v63 = vmax.f32 %v3177_v32, %v3178_v36  ;;  %v3186_v15 = vmax.f32 %v3184_v40, %v3185_v18 }
 0x271   :  { %v3193_v12 = vmax.f32 %v3191_v54, %v3192_v1  ;;  %v3167_v35 = vmax.f32 %v3165_v8, %v3166_v25  ;;  %v3199_v47 = vrot.slane %v3198_v22, 2  ;;  %v3652_v45 = vsel %vm3315_vm1, %v10144_v50, -inf }
 0x272   :  { %v3174_v56 = vmax.f32 %v3172_v14, %v3173_v58  ;;  %v3180_v59 = vrot.slane %v3179_v63, 1  ;;  %v3187_v48 = vrot.slane %v3186_v15, 1  ;;  %v3653_v0 = vsel %vm3315_vm1, %v3153_v44, -inf  ;;  %v10223_v14 = vpop.permute.xlu0 %4218 }
 0x273   :  { %v3194_v43 = vrot.slane %v3193_v12, 1  ;;  %v3200_v9 = vmax.f32 %v3198_v22, %v3199_v47  ;;  %v3654_v60 = vmax.f32 %v3652_v45, %v3653_v0  ;;  %v3655_v34 = vsel %vm3315_vm1, %v10146_v30, -inf  ;;  %v10217_v22 = vpop.permute.xlu1 %4346 }
 0x274   :  { %v3656_v18 = vsel %vm3315_vm1, %v3160_v26, -inf  ;;  %v3181_v1 = vmax.f32 %v3179_v63, %v3180_v59  ;;  %v3188_v28 = vmax.f32 %v3186_v15, %v3187_v48  ;;  %v3658_v50 = vsel %vm3315_vm1, %v10150_v24, -inf }
 0x275   :  { %v3195_v46 = vmax.f32 %v3193_v12, %v3194_v43  ;;  %v3657_v58 = vmax.f32 %v3655_v34, %v3656_v18  ;;  %v3201_v61 = vrot.slane %v3200_v9, 1  ;;  %v3659_v32 = vsel %vm3315_vm1, %v3167_v35, -inf }
 0x276   :  { %v3661_v40 = vsel %vm3315_vm1, %v10154_v10, -inf  ;;  %v3660_v54 = vmax.f32 %v3658_v50, %v3659_v32  ;;  %v3662_v30 = vsel %vm3315_vm1, %v3174_v56, -inf  ;;  %v3664_v57 = vsel %vm3315_vm1, %v10164_v53, -inf }
 0x277   :  { %v3665_v8 = vsel %vm3315_vm1, %v3181_v1, -inf  ;;  %v3202_v36 = vmax.f32 %v3200_v9, %v3201_v61  ;;  %v3663_v44 = vmax.f32 %v3661_v40, %v3662_v30  ;;  %v3667_v25 = vsel %vm3315_vm1, %v10166_v16, -inf  ;;  %v4045_v16 = vld [vmem:[#allocation2 + $0xa0] sm:$0xff]  ;;  %v10260_v0 = vpop.permute.xlu1 %4598 }
 0x278   :  { %v3666_v24 = vmax.f32 %v3664_v57, %v3665_v8  ;;  %v3668_v10 = vsel %vm3315_vm1, %v3188_v28, -inf  ;;  %v3670_v26 = vsel %vm3315_vm1, %v10172_v52, -inf  ;;  %v3671_v63 = vsel %vm3315_vm1, %v3195_v46, -inf }
 0x279   :  { %v3673_v53 = vsel %vm3315_vm1, %v10188_v62, -inf  ;;  %v4784_v15 = vsel %vm11815_vm11, %v10062_v13, %v9951_v38  ;;  %v3669_v12 = vmax.f32 %v3667_v25, %v3668_v10  ;;  %v3674_v35 = vsel %vm3315_vm1, %v3202_v36, -inf  ;;  %v110_v62 = vld [vmem:[%s11771_s0 + $0x1e0] sm:$0xff]  ;;  %v111_v38 = vld [vmem:[%s11771_s0 + $0x1e8] sm:$0xff] }
 0x27a   :  { %v3983_v56 = vsel %vm3878_vm3, %v3657_v58, %v3654_v60  ;;  %v3672_v47 = vmax.f32 %v3670_v26, %v3671_v63  ;;  %v3675_v45 = vmax.f32 %v3673_v53, %v3674_v35  ;;  %v4751_v52 = vsel %vm4744_vm12, %v10070_v7, %v9843_v19  ;;  %v112_v7 = vld [vmem:[%s11771_s0 + $0x1f0] sm:$0xff]  ;;  %v113_v60 = vld [vmem:[%s11771_s0 + $0x1f8] sm:$0xff]  ;;  %s7710_s0 = smov 64  }
 0x27b   :  { %v3984_v59 = vsel %vm3880_vm4, %v3660_v54, %v3983_v56  ;;  %v4735_v48 = vsel %vm11816_vm2, %v10074_v23, %v9979_v55  ;;  %v4817_v43 = vsel %vm4812_vm14, %v10078_v11, %v9893_v20  ;;  %v4801_v19 = vsel %vm4795_vm15, %v4784_v15, %v10010_v3  ;;  %v10274_v23 = vpop.permute.xlu0 %4470 }
 0x27c   :  { %v3985_v13 = vsel %vm3882_vm5, %v3663_v44, %v3984_v59  ;;  %vm11824_vm11 = vcmask 293888   ;;  %v10266_v55 = vsel %vm4744_vm12, %v4735_v48, %v9929_v29  ;;  %v10270_v20 = vsel %vm3315_vm1, %v4045_v16, %v10014_v21 }
 0x27d   :  { %v3986_v9 = vsel %vm3884_vm6, %v3666_v24, %v3985_v13  ;;  %7511 = vmatprep.mubr.msk.f32.mxu0 %vm11824_vm11, %v4817_v43  ;;  %v4818_v3 = vsel %vm4812_vm14, %v4801_v19, %v9949_v31  ;;  %v1198_v34 = vcombine.high %v110_v62, %v110_v62  ;;  %v1205_v18 = vrot.slane %v110_v62, %v7962_v27  ;;  %vm11825_vm2 = vmmov %vm11824_vm11  ;;  %v10304_v24 = vpop.permute.xlu1 %4410 }
 0x27e   :  { %v3987_v11 = vsel %vm3886_vm7, %v3669_v12, %v3986_v9  ;;  %v1215_v29 = vcombine.high %v111_v38, %v111_v38  ;;  %7512 = vmatmul.mubr.msk.f32.gmra.mxu0 %vm11825_vm2, %v4818_v3  ;;  %v1222_v1 = vrot.slane %v111_v38, %v7962_v27  ;;  %v1232_v28 = vcombine.high %v112_v7, %v112_v7 }
 0x27f   :  { %v3988_v21 = vsel %vm3888_vm8, %v3672_v47, %v3987_v11  ;;  %v10285_v31 = vrot.slane %v112_v7, %v7962_v27  ;;  %v1212_v58 = vrot.slane %v1198_v34, %v7962_v27  ;;  %v1213_v61 = vcombine.high %v1205_v18, %v1205_v18  ;;  %v10309_v63 = vpop.permute.xlu0 %4220 }
 0x280   :  { %v3989_v46 = vsel %vm11796_vm9, %v3675_v45, %v3988_v21  ;;  %v1229_v50 = vrot.slane %v1215_v29, %v7962_v27  ;;  %v10293_v32 = vsel %vm4761_vm13, %v4751_v52, %v10035_v17  ;;  %v1230_v40 = vcombine.high %v1222_v1, %v1222_v1 }
 0x281   :  { %4028 = vst.msk [vmem:[#allocation2 + $0x111] sm:$0xff] %vm3315_vm1, %v3989_v46  ;;  %v10296_v54 = vrot.slane %v1232_v28, %v7962_v27  ;;  %v1249_v30 = vcombine.high %v113_v60, %v113_v60  ;;  %v1214_v57 = vcombine.high %v1212_v58, %v1212_v58  ;;  %v1247_v8 = vcombine.high %v10285_v31, %v10285_v31  ;;  %v10327_v34 = vpop.permute.xlu1 %4662 }
 0x282   :  { %v10301_v36 = vrot.slane %v113_v60, %v7962_v27  ;;  %v3203_v44 = vsel %vm1522_vm0, %v1205_v18, -inf  ;;  %v1231_v25 = vcombine.high %v1229_v50, %v1229_v50  ;;  %v3210_v26 = vsel %vm1522_vm0, %v1213_v61, -inf }
 0x283   :  { %v1248_v17 = vcombine.high %v10296_v54, %v10296_v54  ;;  %v3204_v10 = vrot.slane %v3203_v44, 4  ;;  %v10312_v53 = vrot.slane %v1249_v30, %v7962_v27  ;;  %v3211_v15 = vrot.slane %v3210_v26, 4  ;;  %v10333_v28 = vpop.permute.xlu0 %4472 }
 0x284   :  { %v3217_v12 = vsel %vm1522_vm0, %v1212_v58, -inf  ;;  %v3224_v35 = vsel %vm1522_vm0, %v1214_v57, -inf  ;;  %v1264_v56 = vcombine.high %v10301_v36, %v10301_v36  ;;  %v3231_v52 = vsel %vm1522_vm0, %v1222_v1, -inf }
 0x285   :  { %v3205_v16 = vmax.f32 %v3203_v44, %v3204_v10  ;;  %v3218_v47 = vrot.slane %v3217_v12, 4  ;;  %v3225_v45 = vrot.slane %v3224_v35, 4  ;;  %v3212_v59 = vmax.f32 %v3210_v26, %v3211_v15 }
 0x286   :  { %v3238_v62 = vsel %vm1522_vm0, %v1230_v40, -inf  ;;  %v3245_v38 = vsel %vm1522_vm0, %v1229_v50, -inf  ;;  %v3232_v43 = vrot.slane %v3231_v52, 4  ;;  %v1265_v9 = vcombine.high %v10312_v53, %v10312_v53 }
 0x287   :  { %v3206_v27 = vrot.slane %v3205_v16, 2  ;;  %v3219_v13 = vmax.f32 %v3217_v12, %v3218_v47  ;;  %v3226_v48 = vmax.f32 %v3224_v35, %v3225_v45  ;;  %v3213_v3 = vrot.slane %v3212_v59, 2 }
 0x288   :  { %v10321_v19 = vld [vmem:[#allocation2 + $0x111] sm:$0xff]  ;;  %v3239_v11 = vrot.slane %v3238_v62, 4  ;;  %v3246_v60 = vrot.slane %v3245_v38, 4  ;;  %v3233_v1 = vmax.f32 %v3231_v52, %v3232_v43  ;;  %v3252_v50 = vsel %vm1522_vm0, %v1231_v25, -inf }
 0x289   :  { %v10323_v7 = vld [vmem:[#allocation2 + $0x110] sm:$0xff]  ;;  %4228 = vrot.lane.b32.xlu0 %v10321_v19, %s7702_s16  ;;  %v3207_v18 = vmax.f32 %v3205_v16, %v3206_v27  ;;  %v3220_v29 = vrot.slane %v3219_v13, 2  ;;  %v3227_v21 = vrot.slane %v3226_v48, 2  ;;  %v3214_v46 = vmax.f32 %v3212_v59, %v3213_v3  ;;  %v10346_v27 = vpop.permute.xlu1 %4412  ;;  %v10354_v3 = vpop.permute.xlu0 %4284  ;;  %s7711_s16 = smov 48  }
 0x28a   :  { %11826 = vst [vmem:[#allocation12_spill] sm:$0xff] %v10323_v7  ;;  %4354 = vrot.lane.b32.xlu1 %v10323_v7, %s7704_s18  ;;  %v3240_v58 = vmax.f32 %v3238_v62, %v3239_v11  ;;  %v3247_v61 = vmax.f32 %v3245_v38, %v3246_v60  ;;  %v3234_v44 = vrot.slane %v3233_v1, 2  ;;  %v3253_v12 = vrot.slane %v3252_v50, 4  ;;  %v10342_v25 = vld [vmem:[#allocation2 + $0x112] sm:$0xff] }
 0x28b   :  { %v3208_v40 = vrot.slane %v3207_v18, 1  ;;  %v3221_v30 = vmax.f32 %v3219_v13, %v3220_v29  ;;  %v3228_v57 = vmax.f32 %v3226_v48, %v3227_v21  ;;  %v3215_v10 = vrot.slane %v3214_v46, 1 }
 0x28c   :  { %v3241_v26 = vrot.slane %v3240_v58, 2  ;;  %v3248_v15 = vrot.slane %v3247_v61, 2  ;;  %v3235_v45 = vmax.f32 %v3233_v1, %v3234_v44  ;;  %v3254_v38 = vmax.f32 %v3252_v50, %v3253_v12 }
 0x28d   :  { %4480 = vrot.lane.b32.xlu0 %v10148_v37, %s7706_s20  ;;  %v10340_v35 = vmax.f32 %v3207_v18, %v3208_v40  ;;  %v3222_v16 = vrot.slane %v3221_v30, 1  ;;  %v3229_v47 = vrot.slane %v3228_v57, 1  ;;  %v10344_v59 = vmax.f32 %v3214_v46, %v3215_v10 }
 0x28e   :  { %4606 = vrot.lane.b32.xlu1 %v10129_v5, %s7708_s30  ;;  %v3242_v52 = vmax.f32 %v3240_v58, %v3241_v26  ;;  %v3249_v62 = vmax.f32 %v3247_v61, %v3248_v15  ;;  %v3236_v43 = vrot.slane %v3235_v45, 1  ;;  %v3259_v5 = vsel %vm1522_vm0, %v10285_v31, -inf }
 0x28f   :  { %v10348_v13 = vmax.f32 %v3221_v30, %v3222_v16  ;;  %v10350_v48 = vmax.f32 %v3228_v57, %v3229_v47  ;;  %v3255_v18 = vrot.slane %v3254_v38, 2  ;;  %v3260_v29 = vrot.slane %v3259_v5, 4 }
 0x290   :  { %v3243_v11 = vrot.slane %v3242_v52, 1  ;;  %v3250_v60 = vrot.slane %v3249_v62, 1  ;;  %v10360_v21 = vmax.f32 %v3235_v45, %v3236_v43  ;;  %v3266_v1 = vsel %vm1522_vm0, %v1247_v8, -inf }
 0x291   :  { %4292 = vrot.lane.b32.xlu0 %v10342_v25, %s7703_s17  ;;  %v3273_v46 = vsel %vm1522_vm0, %v10296_v54, -inf  ;;  %v3280_v58 = vsel %vm1522_vm0, %v1248_v17, -inf  ;;  %v3256_v40 = vmax.f32 %v3254_v38, %v3255_v18  ;;  %v3261_v30 = vmax.f32 %v3259_v5, %v3260_v29  ;;  %v10382_v17 = vpop.permute.xlu1 %4664 }
 0x292   :  { %4418 = vrot.lane.b32.xlu1 %v10321_v19, %s7705_s19  ;;  %v10372_v61 = vmax.f32 %v3242_v52, %v3243_v11  ;;  %v10374_v50 = vmax.f32 %v3249_v62, %v3250_v60  ;;  %v3267_v57 = vrot.slane %v3266_v1, 4  ;;  %v3274_v44 = vrot.slane %v3273_v46, 4  ;;  %v10388_v52 = vpop.permute.xlu0 %4536 }
 0x293   :  { %v3281_v10 = vrot.slane %v3280_v58, 4  ;;  %v3287_v31 = vsel %vm1522_vm0, %v10301_v36, -inf  ;;  %v3257_v8 = vrot.slane %v3256_v40, 1  ;;  %v3262_v26 = vrot.slane %v3261_v30, 2 }
 0x294   :  { %v3288_v15 = vrot.slane %v3287_v31, 4  ;;  %v3294_v54 = vsel %vm1522_vm0, %v1264_v56, -inf  ;;  %v3268_v12 = vmax.f32 %v3266_v1, %v3267_v57  ;;  %v3275_v16 = vmax.f32 %v3273_v46, %v3274_v44 }
 0x295   :  { %4544 = vrot.lane.b32.xlu0 %v10323_v7, %s7707_s21  ;;  %v3282_v47 = vmax.f32 %v3280_v58, %v3281_v10  ;;  %v3295_v45 = vrot.slane %v3294_v54, 4  ;;  %v10390_v62 = vmax.f32 %v3256_v40, %v3257_v8  ;;  %v3263_v38 = vmax.f32 %v3261_v30, %v3262_v26  ;;  %v10400_v8 = vpop.permute.xlu1 %4286 }
 0x296   :  { %4670 = vrot.lane.b32.xlu1 %v10148_v37, %s7709_s22  ;;  %v3289_v36 = vmax.f32 %v3287_v31, %v3288_v15  ;;  %v3301_v56 = vsel %vm1522_vm0, %v10312_v53, -inf  ;;  %v3269_v43 = vrot.slane %v3268_v12, 2  ;;  %v3276_v5 = vrot.slane %v3275_v16, 2  ;;  %11827 = vst [vmem:[#allocation13_spill] sm:$0xff] %v10400_v8  ;;  %v10402_v53 = vpop.permute.xlu0 %4348 }
 0x297   :  { %v3283_v11 = vrot.slane %v3282_v47, 2  ;;  %v3296_v60 = vmax.f32 %v3294_v54, %v3295_v45  ;;  %v3264_v18 = vrot.slane %v3263_v38, 1  ;;  %v3302_v1 = vrot.slane %v3301_v56, 4 }
 0x298   :  { %v3290_v29 = vrot.slane %v3289_v36, 2  ;;  %v3308_v37 = vsel %vm1522_vm0, %v1265_v9, -inf  ;;  %v3270_v46 = vmax.f32 %v3268_v12, %v3269_v43  ;;  %v3277_v58 = vmax.f32 %v3275_v16, %v3276_v5 }
 0x299   :  { %v3284_v40 = vmax.f32 %v3282_v47, %v3283_v11  ;;  %v3297_v30 = vrot.slane %v3296_v60, 2  ;;  %v3265_v57 = vmax.f32 %v3263_v38, %v3264_v18  ;;  %v3303_v10 = vmax.f32 %v3301_v56, %v3302_v1 }
 0x29a   :  { %4482 = vrot.lane.b32.xlu1 %v10342_v25, %s7706_s20  ;;  %v3291_v44 = vmax.f32 %v3289_v36, %v3290_v29  ;;  %v3309_v31 = vrot.slane %v3308_v37, 4  ;;  %v3271_v26 = vrot.slane %v3270_v46, 1  ;;  %v3278_v15 = vrot.slane %v3277_v58, 1 }
 0x29b   :  { %v3285_v54 = vrot.slane %v3284_v40, 1  ;;  %v3298_v45 = vmax.f32 %v3296_v60, %v3297_v30  ;;  %v3304_v12 = vrot.slane %v3303_v10, 2  ;;  %v3676_v47 = vsel %vm3315_vm1, %v10340_v35, -inf }
 0x29c   :  { %v3292_v9 = vrot.slane %v3291_v44, 1  ;;  %v3310_v16 = vmax.f32 %v3308_v37, %v3309_v31  ;;  %v3272_v43 = vmax.f32 %v3270_v46, %v3271_v26  ;;  %v3279_v5 = vmax.f32 %v3277_v58, %v3278_v15  ;;  %v10412_v46 = vpop.permute.xlu1 %4538 }
 0x29d   :  { %v3286_v38 = vmax.f32 %v3284_v40, %v3285_v54  ;;  %v3299_v36 = vrot.slane %v3298_v45, 1  ;;  %v3305_v11 = vmax.f32 %v3303_v10, %v3304_v12  ;;  %v3677_v29 = vsel %vm3315_vm1, %v3265_v57, -inf }
 0x29e   :  { %v3293_v56 = vmax.f32 %v3291_v44, %v3292_v9  ;;  %v3311_v18 = vrot.slane %v3310_v16, 2  ;;  %v3678_v7 = vmax.f32 %v3676_v47, %v3677_v29  ;;  %v3679_v60 = vsel %vm3315_vm1, %v10344_v59, -inf  ;;  %v4601_v44 = vpop.permute.xlu0 %4600 }
 0x29f   :  { %v3300_v1 = vmax.f32 %v3298_v45, %v3299_v36  ;;  %v3680_v30 = vsel %vm3315_vm1, %v3272_v43, -inf  ;;  %v3306_v37 = vrot.slane %v3305_v11, 1  ;;  %v3682_v35 = vsel %vm3315_vm1, %v10348_v13, -inf  ;;  %v4046_v45 = vld [vmem:[#allocation2 + $0xb0] sm:$0xff] }
 0x2a0   :  { %v3312_v31 = vmax.f32 %v3310_v16, %v3311_v18  ;;  %v3681_v8 = vmax.f32 %v3679_v60, %v3680_v30  ;;  %v3683_v58 = vsel %vm3315_vm1, %v3279_v5, -inf  ;;  %v3685_v40 = vsel %vm3315_vm1, %v10350_v48, -inf  ;;  %v11830_v60 = vld [vmem:[#allocation9_spill] sm:$0xff] }
 0x2a1   :  { %v3686_v57 = vsel %vm3315_vm1, %v3286_v38, -inf  ;;  %v3688_v59 = vsel %vm3315_vm1, %v10360_v21, -inf  ;;  %v3307_v10 = vmax.f32 %v3305_v11, %v3306_v37  ;;  %v3684_v15 = vmax.f32 %v3682_v35, %v3683_v58 }
 0x2a2   :  { %v3313_v26 = vrot.slane %v3312_v31, 1  ;;  %v3687_v54 = vmax.f32 %v3685_v40, %v3686_v57  ;;  %v3689_v13 = vsel %vm3315_vm1, %v3293_v56, -inf  ;;  %v3691_v9 = vsel %vm3315_vm1, %v10372_v61, -inf  ;;  %v11837_v57 = vld [vmem:[#allocation8_spill] sm:$0xff] }
 0x2a3   :  { %v3692_v12 = vsel %vm3315_vm1, %v3300_v1, -inf  ;;  %v3694_v48 = vsel %vm3315_vm1, %v10374_v50, -inf  ;;  %v3690_v47 = vmax.f32 %v3688_v59, %v3689_v13  ;;  %v3695_v21 = vsel %vm3315_vm1, %v3307_v10, -inf  ;;  %v11841_v13 = vld [vmem:[#allocation10_spill] sm:$0xff] }
 0x2a4   :  { %v3314_v16 = vmax.f32 %v3312_v31, %v3313_v26  ;;  %v4719_v43 = vsel %vm4710_vm10, %v10270_v20, %v9971_v49  ;;  %v3693_v5 = vmax.f32 %v3691_v9, %v3692_v12  ;;  %v3697_v38 = vsel %vm3315_vm1, %v10390_v62, -inf  ;;  %v4047_v62 = vld [vmem:[#allocation2 + $0xc0] sm:$0xff] }
 0x2a5   :  { %v3990_v36 = vsel %vm3878_vm3, %v3681_v8, %v3678_v7  ;;  %v4703_v61 = vsel %vm3315_vm1, %v4046_v45, %v10084_v39  ;;  %v3696_v56 = vmax.f32 %v3694_v48, %v3695_v21  ;;  %vm11828_vm0 = vcmask 195584   ;;  %v10440_v29 = vpop.permute.xlu1 %4350  ;;  %v10448_v8 = vpop.permute.xlu0 %4222 }
 0x2a6   :  { %v3698_v50 = vsel %vm3315_vm1, %v3314_v16, -inf  ;;  %v3991_v11 = vsel %vm3880_vm4, %v3684_v15, %v3990_v36  ;;  %v4785_v18 = vsel %vm11828_vm0, %v10293_v32, %v10007_v4  ;;  %v4769_v7 = vsel %vm4761_vm13, %v10266_v55, %v10119_v42  ;;  %vm11831_vm2 = vmmov %vm11828_vm0  ;;  %v11832_v42 = vld [vmem:[#allocation5_spill] sm:$0xff]  ;;  %v11838_v15 = vld [vmem:[#allocation7_spill] sm:$0xff] }
 0x2a7   :  { %v3699_v49 = vmax.f32 %v3697_v38, %v3698_v50  ;;  %v3992_v20 = vsel %vm3882_vm5, %v3687_v54, %v3991_v11  ;;  %vm11829_vm11 = vcmask 97280   ;;  %v4720_v4 = vsel %vm4710_vm10, %v4703_v61, %v10138_v2  ;;  %v11834_v2 = vld [vmem:[#allocation11_spill] sm:$0xff]  ;;  %v4048_v50 = vld [vmem:[#allocation2 + $0xd0] sm:$0xff] }
 0x2a8   :  { %v4736_v39 = vsel %vm11829_vm11, %v4719_v43, %v10012_v51  ;;  %v3993_v1 = vsel %vm3884_vm6, %v3690_v47, %v3992_v20  ;;  %v4802_v32 = vsel %vm4795_vm15, %v4785_v18, %v10030_v33  ;;  %v4786_v30 = vsel %vm11831_vm2, %v4769_v7, %v11830_v60  ;;  %v11833_v51 = vld [vmem:[#allocation6_spill] sm:$0xff]  ;;  %vm11835_vm0 = vmmov %vm11829_vm11 }
 0x2a9   :  { %v3994_v37 = vsel %vm3886_vm7, %v3693_v5, %v3993_v1  ;;  %v4753_v55 = vsel %vm4744_vm12, %v4736_v39, %v11832_v42  ;;  %v4819_v31 = vsel %vm4812_vm14, %v4802_v32, %v11833_v51  ;;  %v4803_v35 = vsel %vm4795_vm15, %v4786_v30, %v10204_v41  ;;  %v4603_v10 = vpop.permute.xlu1 %4602  ;;  %v4181_v61 = vld [vmem:[#allocation2 + $0x132] sm:$0xff]  ;;  %v11848_v51 = vld [vmem:[#allocation13_spill] sm:$0xff] }
 0x2aa   :  { %v3995_v58 = vsel %vm3888_vm8, %v3696_v56, %v3994_v37  ;;  %v4737_v40 = vsel %vm11835_vm0, %v4720_v4, %v11834_v2  ;;  %vm11836_vm11 = vcmask 293888   ;;  %v4704_v33 = vsel %vm3315_vm1, %v4047_v62, %v10223_v14 }
 0x2ab   :  { %7514 = vmatprep.mubr.msk.f32.mxu0 %vm11836_vm11, %v4819_v31  ;;  %v4820_v59 = vsel %vm4812_vm14, %v4803_v35, %v11837_v57  ;;  %v3996_v26 = vsel %vm11796_vm9, %v3699_v49, %v3995_v58  ;;  %v4754_v54 = vsel %vm4744_vm12, %v4737_v40, %v11838_v15  ;;  %v4770_v41 = vsel %vm4761_vm13, %v4753_v55, %v10274_v23  ;;  %vm11839_vm2 = vmmov %vm11836_vm11  ;;  %v4475_v23 = vpop.permute.xlu0 %4474 }
 0x2ac   :  { %7515 = vmatmul.mubr.msk.f32.gmra.mxu0 %vm11839_vm2, %v4820_v59  ;;  %4029 = vst.msk [vmem:[#allocation2 + $0x121] sm:$0xff] %vm3315_vm1, %v3996_v26  ;;  %vm11840_vm0 = vcmask 195584   ;;  %v4771_v14 = vsel %vm4761_vm13, %v4754_v54, %v10333_v28  ;;  %v4721_v9 = vsel %vm4710_vm10, %v4704_v33, %v11841_v13  ;;  %vm11843_vm2 = vcmask 97280   ;;  %v4050_v13 = vld [vmem:[#allocation2 + $0xf0] sm:$0xff] }
 0x2ad   :  { %v4787_v45 = vsel %vm11840_vm0, %v4770_v41, %v10202_v6  ;;  %vm11842_vm11 = vmmov %vm11840_vm0  ;;  %v4738_v16 = vsel %vm11843_vm2, %v4721_v9, %v10217_v22  ;;  %v4415_v21 = vpop.permute.xlu1 %4414  ;;  %vm11844_vm0 = vcmask 293888   ;;  %vm11846_vm2 = vcmask 195584  }
 0x2ae   :  { %v4804_v12 = vsel %vm4795_vm15, %v4787_v45, %v10260_v0  ;;  %v4788_v48 = vsel %vm11842_vm11, %v4771_v14, %v10388_v52  ;;  %v4755_v28 = vsel %vm4744_vm12, %v4738_v16, %v10304_v24  ;;  %vm11845_vm11 = vmmov %vm11844_vm0  ;;  %v4149_v24 = vld [vmem:[#allocation2 + $0x130] sm:$0xff]  ;;  %v4705_v18 = vsel %vm3315_vm1, %v4048_v50, %v10309_v63 }
 0x2af   :  { %v4821_v47 = vsel %vm4812_vm14, %v4804_v12, %v10327_v34  ;;  %v4805_v6 = vsel %vm4795_vm15, %v4788_v48, %v4601_v44  ;;  %v4772_v52 = vsel %vm4761_vm13, %v4755_v28, %v4475_v23  ;;  %v10511_v36 = vpop.permute.xlu0 %4224  ;;  %v4722_v49 = vsel %vm4710_vm10, %v4705_v18, %v10354_v3 }
 0x2b0   :  { %7517 = vmatprep.mubr.msk.f32.mxu0 %vm11844_vm0, %v4821_v47  ;;  %v4822_v0 = vsel %vm4812_vm14, %v4805_v6, %v10382_v17  ;;  %v4789_v22 = vsel %vm11846_vm2, %v4772_v52, %v10412_v46  ;;  %v4165_v46 = vld [vmem:[#allocation2 + $0x131] sm:$0xff]  ;;  %vm5232_vm9 = vcmask 57344   ;;  %v11849_v41 = vmov 0.0  }
 0x2b1   :  { %7518 = vmatmul.mubr.msk.f32.gmra.mxu0 %vm11845_vm11, %v4822_v0  ;;  %v4806_v34 = vsel %vm4795_vm15, %v4789_v22, %v4603_v10  ;;  %v4667_v43 = vpop.permute.xlu1 %4666  ;;  %vm11847_vm11 = vcmask 97280   ;;  %5233 = vst.msk [vmem:[#allocation3] sm:$0x1] %vm5232_vm9, %v11849_v41  ;;  %5234 = vst.msk [vmem:[#allocation3 + $0x10] sm:$0x1] %vm5232_vm9, %v11849_v41  ;;  %v4707_v48 = vsel %vm3315_vm1, %v4050_v13, %v10511_v36  ;;  %v11851_v36 = vld [vmem:[#allocation12_spill] sm:$0xff] }
 0x2b2   :  { %v4823_v38 = vsel %vm4812_vm14, %v4806_v34, %v4667_v43  ;;  %v4739_v7 = vsel %vm11847_vm11, %v4722_v49, %v10402_v53  ;;  %v4049_v53 = vld [vmem:[#allocation2 + $0xe0] sm:$0xff]  ;;  %5235 = vst.msk [vmem:[#allocation3 + $0x20] sm:$0x1] %vm5232_vm9, %v11849_v41  ;;  %5236 = vst.msk [vmem:[#allocation3 + $0x30] sm:$0x1] %vm5232_vm9, %v11849_v41 }
 0x2b3   :  { %v4100_v44 = vld [vmem:[#allocation2 + $0x120] sm:$0xff]  ;;  %7520 = vmatprep.mubr.msk.f32.mxu0 %vm11844_vm0, %v4823_v38  ;;  %v4477_v56 = vpop.permute.xlu0 %4476  ;;  %v4756_v39 = vsel %vm4744_vm12, %v4739_v7, %v10346_v27  ;;  %v4706_v27 = vsel %vm3315_vm1, %v4049_v53, %v10448_v8  ;;  %5237 = vst.msk [vmem:[#allocation3 + $0x40] sm:$0x1] %vm5232_vm9, %v11849_v41  ;;  %5238 = vst.msk [vmem:[#allocation3 + $0x50] sm:$0x1] %vm5232_vm9, %v11849_v41 }
 0x2b4   :  { %v4132_v5 = vld [vmem:[#allocation2 + $0x122] sm:$0xff]  ;;  %4356 = vrot.lane.b32.xlu0 %v4100_v44, %s7704_s18  ;;  %v4773_v62 = vsel %vm4761_vm13, %v4756_v39, %v4477_v56  ;;  %v4723_v31 = vsel %vm4710_vm10, %v4706_v27, %v11848_v51  ;;  %5239 = vst.msk [vmem:[#allocation3 + $0x60] sm:$0x1] %vm5232_vm9, %v11849_v41  ;;  %5240 = vst.msk [vmem:[#allocation3 + $0x70] sm:$0x1] %vm5232_vm9, %v11849_v41  ;;  %s7712_s18 = smov 56   ;;  %v10699_v27 = vpop.f32.mrf.mxu0 }
 0x2b5   :  { %4484 = vrot.lane.b32.xlu1 %v4132_v5, %s7706_s20  ;;  %v4116_v17 = vld [vmem:[#allocation2 + $0x121] sm:$0xff]  ;;  %v4740_v58 = vsel %vm11847_vm11, %v4723_v31, %v10440_v29  ;;  %vm5223_vm11 = vcmask 58368   ;;  %5241 = vst.msk [vmem:[#allocation3 + $0x80] sm:$0x1] %vm5232_vm9, %v11849_v41  ;;  %5242 = vst.msk [vmem:[#allocation3 + $0x90] sm:$0x1] %vm5232_vm9, %v11849_v41 }
 0x2b6   :  { %v4757_v40 = vsel %vm4744_vm12, %v4740_v58, %v4415_v21  ;;  %5224 = vst.msk [vmem:[#allocation3 + $0x8] sm:$0x3] %vm5223_vm11, %v11849_v41  ;;  %5226 = vst.msk [vmem:[#allocation3 + $0xa8] sm:$0x3] %vm5223_vm11, %v11849_v41 }
 0x2b7   :  { %5229 = vst.msk [vmem:[#allocation3 + $0x98] sm:$0x3] %vm5223_vm11, %v11849_v41  ;;  %5231 = vst.msk [vmem:[#allocation3 + $0x138] sm:$0x3] %vm5223_vm11, %v11849_v41 }
 0x2b8   :  { %4608 = vrot.lane.b32.xlu0 %v10321_v19, %s7708_s30  ;;  %v10519_v19 = vpop.permute.xlu0 %4288  ;;  %5243 = vst.msk [vmem:[#allocation3 + $0xa0] sm:$0x1] %vm5232_vm9, %v11849_v41  ;;  %5244 = vst.msk [vmem:[#allocation3 + $0xb0] sm:$0x1] %vm5232_vm9, %v11849_v41 }
 0x2b9   :  { %4548 = vrot.lane.b32.xlu1 %v4149_v24, %s7707_s21  ;;  %5245 = vst.msk [vmem:[#allocation3 + $0xc0] sm:$0x1] %vm5232_vm9, %v11849_v41  ;;  %5246 = vst.msk [vmem:[#allocation3 + $0xd0] sm:$0x1] %vm5232_vm9, %v11849_v41  ;;  %v4724_v21 = vsel %vm4710_vm10, %v4707_v48, %v10519_v19  ;;  %v4051_v24 = vld [vmem:[#allocation2 + $0x100] sm:$0xff] }
 0x2ba   :  { %5247 = vst.msk [vmem:[#allocation3 + $0xe0] sm:$0x1] %vm5232_vm9, %v11849_v41  ;;  %5248 = vst.msk [vmem:[#allocation3 + $0xf0] sm:$0x1] %vm5232_vm9, %v11849_v41 }
 0x2bb   :  { %5249 = vst.msk [vmem:[#allocation3 + $0x100] sm:$0x1] %vm5232_vm9, %v11849_v41  ;;  %5250 = vst.msk [vmem:[#allocation3 + $0x110] sm:$0x1] %vm5232_vm9, %v11849_v41 }
 0x2bc   :  { %4420 = vrot.lane.b32.xlu0 %v4116_v17, %s7705_s19  ;;  %v4541_v11 = vpop.permute.xlu0 %4540  ;;  %5251 = vst.msk [vmem:[#allocation3 + $0x120] sm:$0x1] %vm5232_vm9, %v11849_v41  ;;  %5252 = vst.msk [vmem:[#allocation3 + $0x130] sm:$0x1] %vm5232_vm9, %v11849_v41 }
 0x2bd   :  { %4612 = vrot.lane.b32.xlu1 %v4165_v46, %s7708_s30  ;;  %v4790_v1 = vsel %vm11846_vm2, %v4773_v62, %v4541_v11  ;;  %5254 = vst.msk [vmem:[#allocation3 + $0x19] sm:$0x1] %vm5232_vm9, %v11849_v41  ;;  %5255 = vst.msk [vmem:[#allocation3 + $0x29] sm:$0x1] %vm5232_vm9, %v11849_v41  ;;  %v5317_v12 = vld [vmem:[#allocation3 + $0x1] sm:$0xff]  ;;  %v5405_v46 = vld [vmem:[#allocation3 + $0x90] sm:$0xff] }
 0x2be   :  { %5256 = vst.msk [vmem:[#allocation3 + $0x39] sm:$0x1] %vm5232_vm9, %v11849_v41  ;;  %5257 = vst.msk [vmem:[#allocation3 + $0x49] sm:$0x1] %vm5232_vm9, %v11849_v41  ;;  %v5325_v34 = vld [vmem:[#allocation3 + $0xa1] sm:$0xff]  ;;  %v5421_v11 = vld [vmem:[#allocation3 + $0x91] sm:$0xff] }
 0x2bf   :  { %5258 = vst.msk [vmem:[#allocation3 + $0x59] sm:$0x1] %vm5232_vm9, %v11849_v41  ;;  %5259 = vst.msk [vmem:[#allocation3 + $0x69] sm:$0x1] %vm5232_vm9, %v11849_v41 }
 0x2c0   :  { %4672 = vrot.lane.b32.xlu0 %v10342_v25, %s7709_s22  ;;  %5260 = vst.msk [vmem:[#allocation3 + $0x79] sm:$0x1] %vm5232_vm9, %v11849_v41  ;;  %5261 = vst.msk [vmem:[#allocation3 + $0x89] sm:$0x1] %vm5232_vm9, %v11849_v41 }
 0x2c1   :  { %4676 = vrot.lane.b32.xlu1 %v4181_v61, %s7709_s22  ;;  %5264 = vst.msk [vmem:[#allocation3 + $0xb9] sm:$0x1] %vm5232_vm9, %v11849_v41  ;;  %5265 = vst.msk [vmem:[#allocation3 + $0xc9] sm:$0x1] %vm5232_vm9, %v11849_v41 }
 0x2c2   :  { %5266 = vst.msk [vmem:[#allocation3 + $0xd9] sm:$0x1] %vm5232_vm9, %v11849_v41  ;;  %5267 = vst.msk [vmem:[#allocation3 + $0xe9] sm:$0x1] %vm5232_vm9, %v11849_v41 }
 0x2c3   :  { %5268 = vst.msk [vmem:[#allocation3 + $0xf9] sm:$0x1] %vm5232_vm9, %v11849_v41  ;;  %5269 = vst.msk [vmem:[#allocation3 + $0x109] sm:$0x1] %vm5232_vm9, %v11849_v41 }
 0x2c4   :  { %4546 = vrot.lane.b32.xlu0 %v4100_v44, %s7707_s21  ;;  %5270 = vst.msk [vmem:[#allocation3 + $0x119] sm:$0x1] %vm5232_vm9, %v11849_v41  ;;  %5271 = vst.msk [vmem:[#allocation3 + $0x129] sm:$0x1] %vm5232_vm9, %v11849_v41 }
 0x2c5   :  { %5253 = vst.msk [vmem:[#allocation3 + $0x9] sm:$0x1] %vm5232_vm9, %v11849_v41  ;;  %5262 = vst.msk [vmem:[#allocation3 + $0x99] sm:$0x1] %vm5232_vm9, %v11849_v41 }
 0x2c6   :  { %5263 = vst.msk [vmem:[#allocation3 + $0xa9] sm:$0x1] %vm5232_vm9, %v11849_v41  ;;  %5272 = vst.msk [vmem:[#allocation3 + $0x139] sm:$0x1] %vm5232_vm9, %v11849_v41  ;;  %vm11850_vm9 = vcmask 97280  }
 0x2c7   :  { %vm11852_vm11 = vmmov %vm11850_vm9 }
 0x2c8   :  { %4610 = vrot.lane.b32.xlu0 %v4116_v17, %s7708_s30 }
 0x2cc   :  { %4674 = vrot.lane.b32.xlu0 %v4132_v5, %s7709_s22  ;;  %v5333_v47 = vld [vmem:[#allocation3 + $0x2] sm:$0xff]  ;;  %v5437_v6 = vld [vmem:[#allocation3 + $0x92] sm:$0xff] }
 0x2cd   :  { %v5341_v16 = vld [vmem:[#allocation3 + $0xa2] sm:$0xff] }
 0x2ce   :  { %5542 = vrot.lane.b32.xlu1 %v5341_v16, %s7705_s19 }
 0x2d0   :  { %v10527_v20 = vpop.permute.xlu0 %4352  ;;  %5462 = vrot.lane.b32.xlu0 %v5317_v12, %s7703_s17 }
 0x2d1   :  { %v10529_v25 = vpop.permute.xlu1 %4416  ;;  %v4741_v28 = vsel %vm11850_vm9, %v4724_v21, %v10527_v20 }
 0x2d2   :  { %v4758_v52 = vsel %vm4744_vm12, %v4741_v28, %v10529_v25  ;;  %5924 = vrot.lane.b32.xlu1 %v5437_v6, %s7710_s0 }
 0x2d4   :  { %v4605_v4 = vpop.permute.xlu0 %4604  ;;  %5526 = vrot.lane.b32.xlu0 %v5333_v47, %s7705_s19 }
 0x2d5   :  { %v4669_v32 = vpop.permute.xlu1 %4668  ;;  %v4807_v63 = vsel %vm4795_vm15, %v4790_v1, %v4605_v4 }
 0x2d6   :  { %v4824_v3 = vsel %vm4812_vm14, %v4807_v63, %v4669_v32 }
 0x2d7   :  { %7521 = vmatmul.mubr.msk.f32.gmra.mxu0 %vm11844_vm0, %v4824_v3 }
 0x2d8   :  { %v10544_v42 = vpop.permute.xlu0 %4226  ;;  %5478 = vrot.lane.b32.xlu0 %v5325_v34, %s7703_s17 }
 0x2d9   :  { %v10540_v60 = vpop.permute.xlu1 %4290  ;;  %v4708_v19 = vsel %vm3315_vm1, %v4051_v24, %v10544_v42 }
 0x2da   :  { %v4725_v49 = vsel %vm4710_vm10, %v4708_v19, %v10540_v60 }
 0x2dc   :  { %v4479_v35 = vpop.permute.xlu0 %4478  ;;  %5796 = vrot.lane.b32.xlu0 %v5405_v46, %s7711_s16 }
 0x2dd   :  { %v4543_v30 = vpop.permute.xlu1 %4542  ;;  %v4774_v33 = vsel %vm4761_vm13, %v4757_v40, %v4479_v35 }
 0x2de   :  { %v4791_v57 = vsel %vm11846_vm2, %v4774_v33, %v4543_v30 }
 0x2e0   :  { %5860 = vrot.lane.b32.xlu0 %v5421_v11, %s7712_s18 }
 0x2fb   :  { %v10560_v26 = vpop.permute.xlu0 %4228 }
 0x2fc   :  { %v10542_v37 = vpop.permute.xlu1 %4354  ;;  %v4709_v61 = vsel %vm3315_vm1, %v11851_v36, %v10560_v26  ;;  %vm11853_vm1 = vmmov %vm11846_vm2 }
 0x2fd   :  { %v4742_v25 = vsel %vm11850_vm9, %v4725_v49, %v10542_v37  ;;  %vm6039_vm9 = vcmask 392192  }
 0x2ff   :  { %v10562_v15 = vpop.permute.xlu0 %4480 }
 0x300   :  { %v4607_v55 = vpop.permute.xlu1 %4606  ;;  %v4775_v43 = vsel %vm4761_vm13, %v4758_v52, %v10562_v15 }
 0x301   :  { %v4808_v59 = vsel %vm4795_vm15, %v4791_v57, %v4607_v55  ;;  %v10701_v55 = vpop.f32.mrf.mxu0  ;;  %v5028_v57 = vsel %vm4710_vm10, %v10699_v27, 0.0 }
 0x302   :  { %v5072_v35 = vmul.f32 %v10701_v55, %v10701_v55  ;;  %v5027_v40 = vsel %vm4710_vm10, %v10701_v55, 0.0 }
 0x303   :  { %v10564_v29 = vpop.permute.xlu0 %4292  ;;  %v10703_v51 = vpop.f32.mrf.mxu0 }
 0x304   :  { %v10552_v2 = vpop.permute.xlu1 %4418  ;;  %v4726_v18 = vsel %vm4710_vm10, %v4709_v61, %v10564_v29 }
 0x305   :  { %v4759_v62 = vsel %vm4744_vm12, %v4742_v25, %v10552_v2  ;;  %v10705_v31 = vpop.f32.mrf.mxu0  ;;  %v5073_v2 = vmul.f32 %v10699_v27, %v10699_v27 }
 0x306   :  { %v5074_v33 = vmul.f32 %v10705_v31, %v10705_v31 }
 0x307   :  { %v10566_v54 = vpop.permute.xlu0 %4544  ;;  %v5089_v15 = vsel %vm4710_vm10, %v5073_v2, 0.0  ;;  %v11856_v2 = vld [vmem:[#allocation4_spill] sm:$0xff] }
 0x308   :  { %v4671_v10 = vpop.permute.xlu1 %4670  ;;  %v4792_v44 = vsel %vm11846_vm2, %v4775_v43, %v10566_v54  ;;  %vm11854_vm2 = vmmov %vm11853_vm1  ;;  %v5091_v29 = vsel %vm4710_vm10, %v5074_v33, 0.0 }
 0x309   :  { %v4825_v8 = vsel %vm4812_vm14, %v4808_v59, %v4671_v10  ;;  %v5088_v59 = vsel %vm4710_vm10, %v5072_v35, 0.0  ;;  %v5030_v10 = vsel %vm4710_vm10, %v10705_v31, 0.0  ;;  %v10753_v35 = vld [vmem:[%s11773_s2] sm:$0x1]  ;;  %s7713_s2 = smov 40  }
 0x30a   :  { %7523 = vmatprep.mubr.msk.f32.mxu0 %vm11844_vm0, %v4825_v8  ;;  %v5029_v8 = vadd.f32 %v5028_v57, %v5027_v40  ;;  %v5090_v54 = vadd.f32 %v5089_v15, %v5088_v59  ;;  %v10756_v40 = vsub.s32 0, %v11856_v2  ;;  %v10764_v15 = vld [vmem:[%s11774_s3] ss:$0 sm:$0xff] }
 0x30c   :  { %v4483_v45 = vpop.permute.xlu1 %4482  ;;  %v5031_v41 = vadd.f32 %v5030_v10, %v5029_v8  ;;  %v5092_v13 = vadd.f32 %v5091_v29, %v5090_v54 }
 0x30d   :  { %v4776_v32 = vsel %vm4761_vm13, %v4759_v62, %v4483_v45  ;;  %v5075_v45 = vmul.f32 %v10703_v51, %v10703_v51 }
 0x326   :  { %v4357_v14 = vpop.permute.xlu0 %4356 }
 0x327   :  { %v4485_v9 = vpop.permute.xlu1 %4484  ;;  %v4743_v20 = vsel %vm11852_vm11, %v4726_v18, %v4357_v14  ;;  %vm11855_vm11 = vmmov %vm11844_vm0 }
 0x32a   :  { %v4609_v23 = vpop.permute.xlu0 %4608 }
 0x32b   :  { %v4549_v22 = vpop.permute.xlu1 %4548  ;;  %v4809_v5 = vsel %vm4795_vm15, %v4792_v44, %v4609_v23  ;;  %v5093_v23 = vsel %vm4710_vm10, %v5075_v45, 0.0 }
 0x32c   :  { %v5094_v6 = vadd.f32 %v5093_v23, %v5092_v13 }
 0x32e   :  { %v4421_v0 = vpop.permute.xlu0 %4420 }
 0x32f   :  { %v4613_v56 = vpop.permute.xlu1 %4612  ;;  %v4760_v7 = vsel %vm4744_vm12, %v4743_v20, %v4421_v0 }
 0x330   :  { %v4777_v1 = vsel %vm4761_vm13, %v4760_v7, %v4485_v9  ;;  %v5032_v9 = vsel %vm4710_vm10, %v10703_v51, 0.0  ;;  %vm6022_vm13 = vcmask 326656  }
 0x331   :  { %v4794_v63 = vsel %vm11853_vm1, %v4777_v1, %v4549_v22  ;;  %v5033_v48 = vadd.f32 %v5032_v9, %v5031_v41 }
 0x332   :  { %v4673_v38 = vpop.permute.xlu0 %4672  ;;  %v4811_v60 = vsel %vm4795_vm15, %v4794_v63, %v4613_v56 }
 0x333   :  { %v4826_v17 = vsel %vm4812_vm14, %v4809_v5, %v4673_v38  ;;  %v4677_v4 = vpop.permute.xlu1 %4676 }
 0x334   :  { %7524 = vmatmul.mubr.msk.f32.gmra.mxu0 %vm11844_vm0, %v4826_v17  ;;  %v4828_v37 = vsel %vm4812_vm14, %v4811_v60, %v4677_v4 }
 0x336   :  { %v4547_v50 = vpop.permute.xlu0 %4546 }
 0x337   :  { %v4793_v3 = vsel %vm11854_vm2, %v4776_v32, %v4547_v50  ;;  %vm6073_vm2 = vcmask 523264  }
 0x33a   :  { %v4611_v39 = vpop.permute.xlu0 %4610 }
 0x33b   :  { %v4810_v30 = vsel %vm4795_vm15, %v4793_v3, %v4611_v39  ;;  %vm11857_vm15 = vmmov %vm11853_vm1  ;;  %vm6056_vm1 = vcmask 457728  }
 0x33e   :  { %v4675_v53 = vpop.permute.xlu0 %4674  ;;  %v10709_v58 = vpop.f32.mrf.mxu0 }
 0x33f   :  { %v4827_v42 = vsel %vm4812_vm14, %v4810_v30, %v4675_v53  ;;  %v5077_v21 = vmul.f32 %v10709_v58, %v10709_v58  ;;  %v5036_v52 = vsel %vm4710_vm10, %v10709_v58, 0.0 }
 0x340   :  { %7526 = vmatprep.mubr.msk.f32.mxu0 %vm11844_vm0, %v4827_v42  ;;  %v10722_v26 = vpop.f32.mrf.mxu0  ;;  %vm6090_vm0 = vcmask 588800  }
 0x341   :  { %7527 = vmatmul.mubr.msk.f32.gmra.mxu0 %vm11855_vm11, %v4828_v37  ;;  %v5076_v14 = vmul.f32 %v10722_v26, %v10722_v26  ;;  %v5034_v12 = vsel %vm4710_vm10, %v10722_v26, 0.0  ;;  %v5097_v43 = vsel %vm4710_vm10, %v5077_v21, 0.0  ;;  %vm11858_vm11 = vmmov %vm11857_vm15 }
 0x342   :  { %v5035_v47 = vadd.f32 %v5034_v12, %v5033_v48 }
 0x343   :  { %v5095_v16 = vsel %vm4710_vm10, %v5076_v14, 0.0 }
 0x344   :  { %v5096_v28 = vadd.f32 %v5095_v16, %v5094_v6  ;;  %v5037_v34 = vadd.f32 %v5036_v52, %v5035_v47 }
 0x346   :  { %v5098_v17 = vadd.f32 %v5097_v43, %v5096_v28 }
 0x36c   :  { %v10738_v0 = vpop.f32.mrf.mxu0 }
 0x36d   :  { %v5079_v44 = vmul.f32 %v10738_v0, %v10738_v0  ;;  %v5040_v46 = vsel %vm4710_vm10, %v10738_v0, 0.0 }
 0x36e   :  { %v4978_v22 = vpop.f32.mrf.mxu0 }
 0x36f   :  { %v5038_v5 = vsel %vm4710_vm10, %v4978_v22, 0.0  ;;  %v5078_v38 = vmul.f32 %v4978_v22, %v4978_v22  ;;  %v5101_v19 = vsel %vm4710_vm10, %v5079_v44, 0.0 }
 0x370   :  { %v5039_v24 = vadd.f32 %v5038_v5, %v5037_v34 }
 0x371   :  { %v5099_v36 = vsel %vm4710_vm10, %v5078_v38, 0.0 }
 0x372   :  { %v5041_v61 = vadd.f32 %v5040_v46, %v5039_v24  ;;  %v5100_v56 = vadd.f32 %v5099_v36, %v5098_v17 }
 0x374   :  { %v5042_v50 = vrot.slane %v5041_v61, 4  ;;  %v5102_v11 = vadd.f32 %v5101_v19, %v5100_v56 }
 0x376   :  { %v5043_v18 = vadd.f32 %v5042_v50, %v5041_v61  ;;  %v5103_v49 = vrot.slane %v5102_v11, 4 }
 0x378   :  { %v5044_v20 = vrot.slane %v5043_v18, 2  ;;  %v5104_v25 = vadd.f32 %v5103_v49, %v5102_v11 }
 0x37a   :  { %v5045_v7 = vadd.f32 %v5044_v20, %v5043_v18  ;;  %v5105_v39 = vrot.slane %v5104_v25, 2 }
 0x37c   :  { %v5046_v62 = vrot.slane %v5045_v7, 1  ;;  %v5106_v1 = vadd.f32 %v5105_v39, %v5104_v25 }
 0x37e   :  { %v5047_v4 = vadd.f32 %v5046_v62, %v5045_v7  ;;  %v5107_v32 = vrot.slane %v5106_v1, 1 }
 0x380   :  { %v5070_v63 = vmul.f32 0.015625, %v5047_v4  ;;  %v5108_v3 = vadd.f32 %v5107_v32, %v5106_v1  ;;  %v5298_v4 = vld [vmem:[%s11775_s4 + $0x40] sm:$0xff]  ;;  %v5297_v32 = vld [vmem:[%s11775_s4 + $0x38] sm:$0xff] }
 0x381   :  { %7529 = vmatprep.subr.mxu1 %v5298_v4 }
 0x382   :  { %v5130_v60 = vmul.f32 0.015625, %v5108_v3  ;;  %v5132_v30 = vmul.f32 %v5070_v63, %v5070_v63  ;;  %v5150_v59 = vsub.f32 %v4978_v22, %v5070_v63  ;;  %v5144_v8 = vsub.f32 %v10701_v55, %v5070_v63  ;;  %7530 = vmatpush3.msra.mxu1 %v5298_v4  ;;  %v5296_v3 = vld [vmem:[%s11775_s4 + $0x30] sm:$0xff] }
 0x383   :  { %v5145_v29 = vsub.f32 %v10699_v27, %v5070_v63  ;;  %v5146_v54 = vsub.f32 %v10705_v31, %v5070_v63  ;;  %v5147_v14 = vsub.f32 %v10703_v51, %v5070_v63  ;;  %v5148_v13 = vsub.f32 %v10722_v26, %v5070_v63  ;;  %7531 = vmatprep.subr.mxu1 %v5297_v32 }
 0x384   :  { %v5134_v37 = vsub.f32 %v5130_v60, %v5132_v30  ;;  %v5149_v31 = vsub.f32 %v10709_v58, %v5070_v63  ;;  %v5151_v26 = vsub.f32 %v10738_v0, %v5070_v63  ;;  %v10851_v63 = vpop.f32.mrf.mxu0  ;;  %7532 = vmatpush3.msra.mxu1 %v5297_v32  ;;  %v5295_v30 = vld [vmem:[%s11775_s4 + $0x28] sm:$0xff] }
 0x385   :  { %7533 = vmatprep.subr.mxu1 %v5296_v3 }
 0x386   :  { %v5136_v53 = vmax.f32 %v5134_v37, 0.0  ;;  %v10858_v60 = vpop.f32.mrf.mxu0  ;;  %7534 = vmatpush3.msra.mxu1 %v5296_v3 }
 0x387   :  { %7535 = vmatprep.subr.mxu1 %v5295_v30 }
 0x388   :  { %v5138_v42 = vadd.f32 1e-05, %v5136_v53  ;;  %7536 = vmatpush3.msra.mxu1 %v5295_v30 }
 0x38a   :  { %7670 = vrsqrt.f32 %v5138_v42  ;;  %v5294_v42 = vld [vmem:[%s11775_s4 + $0x20] sm:$0xff] }
 0x38b   :  { %7537 = vmatprep.subr.mxu1 %v5294_v42 }
 0x38c   :  { %7538 = vmatpush3.msra.mxu1 %v5294_v42 }
 0x397   :  { %v7671_v33 = vpop.eup %7670  ;;  %v10865_v53 = vpop.f32.mrf.mxu0 }
 0x398   :  { %v5142_v57 = vmul.f32 %v7671_v33, %v10753_v35  ;;  %v5293_v33 = vld [vmem:[%s11775_s4 + $0x18] sm:$0xff] }
 0x399   :  { %7539 = vmatprep.subr.mxu1 %v5293_v33 }
 0x39a   :  { %v5163_v10 = vrot.slane %v5142_v57, %v10756_v40  ;;  %v10876_v57 = vpop.f32.mrf.mxu0  ;;  %7540 = vmatpush3.msra.mxu1 %v5293_v33 }
 0x39c   :  { %v5174_v41 = vmul.f32 %v5163_v10, %v5150_v59  ;;  %v5168_v45 = vmul.f32 %v5163_v10, %v5144_v8  ;;  %v5169_v9 = vmul.f32 %v5163_v10, %v5145_v29  ;;  %v5170_v12 = vmul.f32 %v5163_v10, %v5146_v54 }
 0x39d   :  { %v5171_v23 = vmul.f32 %v5163_v10, %v5147_v14  ;;  %v5172_v16 = vmul.f32 %v5163_v10, %v5148_v13  ;;  %v5173_v34 = vmul.f32 %v5163_v10, %v5149_v31  ;;  %v5175_v44 = vmul.f32 %v5163_v10, %v5151_v26  ;;  %v5292_v10 = vld [vmem:[%s11775_s4 + $0x10] sm:$0xff]  ;;  %v5291_v14 = vld [vmem:[%s11775_s4 + $0x8] sm:$0xff] }
 0x39e   :  { %v5196_v48 = vadd.f32 %v10764_v15, %v5174_v41  ;;  %v5190_v55 = vadd.f32 %v10764_v15, %v5168_v45  ;;  %v5191_v47 = vadd.f32 %v10764_v15, %v5169_v9  ;;  %v5192_v27 = vadd.f32 %v10764_v15, %v5170_v12  ;;  %7541 = vmatprep.subr.mxu1 %v5292_v10 }
 0x39f   :  { %v5193_v51 = vadd.f32 %v10764_v15, %v5171_v23  ;;  %v5194_v22 = vadd.f32 %v10764_v15, %v5172_v16  ;;  %v5195_v5 = vadd.f32 %v10764_v15, %v5173_v34  ;;  %v5197_v0 = vadd.f32 %v10764_v15, %v5175_v44  ;;  %7542 = vmatpush3.msra.mxu1 %v5292_v10 }
 0x3a0   :  { %v5212_v6 = vmax.f32 %v5196_v48, 0.0  ;;  %v5206_v21 = vmax.f32 %v5190_v55, 0.0  ;;  %v5207_v28 = vmax.f32 %v5191_v47, 0.0  ;;  %v5208_v52 = vmax.f32 %v5192_v27, 0.0  ;;  %7543 = vmatprep.subr.mxu1 %v5291_v14  ;;  %v5290_v27 = vld [vmem:[%s11775_s4] sm:$0xff] }
 0x3a1   :  { %v5209_v43 = vmax.f32 %v5193_v51, 0.0  ;;  %v5210_v58 = vmax.f32 %v5194_v22, 0.0  ;;  %v5211_v38 = vmax.f32 %v5195_v5, 0.0  ;;  %v5213_v24 = vmax.f32 %v5197_v0, 0.0  ;;  %7544 = vmatpush3.msra.mxu1 %v5291_v14 }
 0x3a2   :  { %5280 = vst.msk [vmem:[#allocation3 + $0x71] sm:$0xff] %vm4710_vm10, %v5212_v6  ;;  %5274 = vst.msk [vmem:[#allocation3 + $0x11] sm:$0xff] %vm4710_vm10, %v5206_v21  ;;  %v5080_v59 = vmul.f32 %v10858_v60, %v10858_v60  ;;  %v5081_v8 = vmul.f32 %v10851_v63, %v10851_v63  ;;  %v5048_v29 = vsel %vm4710_vm10, %v10858_v60, 0.0  ;;  %v5082_v54 = vmul.f32 %v10876_v57, %v10876_v57 }
 0x3a3   :  { %5275 = vst.msk [vmem:[#allocation3 + $0x21] sm:$0xff] %vm4710_vm10, %v5207_v28  ;;  %5276 = vst.msk [vmem:[#allocation3 + $0x31] sm:$0xff] %vm4710_vm10, %v5208_v52  ;;  %v5049_v13 = vsel %vm4710_vm10, %v10851_v63, 0.0  ;;  %v5051_v12 = vsel %vm4710_vm10, %v10876_v57, 0.0  ;;  %v5083_v21 = vmul.f32 %v10865_v53, %v10865_v53  ;;  %7545 = vmatprep.subr.mxu1 %v5290_v27  ;;  %v5053_v28 = vsel %vm4710_vm10, %v10865_v53, 0.0 }
 0x3a4   :  { %5277 = vst.msk [vmem:[#allocation3 + $0x41] sm:$0xff] %vm4710_vm10, %v5209_v43  ;;  %5278 = vst.msk [vmem:[#allocation3 + $0x51] sm:$0xff] %vm4710_vm10, %v5210_v58  ;;  %v5109_v9 = vsel %vm4710_vm10, %v5080_v59, 0.0  ;;  %v5050_v48 = vadd.f32 %v5049_v13, %v5048_v29  ;;  %v5110_v23 = vsel %vm4710_vm10, %v5081_v8, 0.0  ;;  %v5112_v16 = vsel %vm4710_vm10, %v5082_v54, 0.0  ;;  %7546 = vmatpush3.msra.mxu1 %v5290_v27  ;;  %v10935_v43 = vpop.permute.xlu0 %5462 }
 0x3a5   :  { %5279 = vst.msk [vmem:[#allocation3 + $0x61] sm:$0xff] %vm4710_vm10, %v5211_v38  ;;  %5281 = vst.msk [vmem:[#allocation3 + $0x81] sm:$0xff] %vm4710_vm10, %v5213_v24  ;;  %v5111_v31 = vadd.f32 %v5110_v23, %v5109_v9  ;;  %v5114_v44 = vsel %vm4710_vm10, %v5083_v21, 0.0 }
 0x3a6   :  { %v5052_v6 = vadd.f32 %v5051_v12, %v5050_v48 }
 0x3a7   :  { %v5113_v26 = vadd.f32 %v5112_v16, %v5111_v31  ;;  %v10979_v16 = vpop.permute.xlu1 %5542 }
 0x3a8   :  { %v5054_v34 = vadd.f32 %v5053_v28, %v5052_v6 }
 0x3a9   :  { %v10788_v17 = vld [vmem:[#allocation3 + $0x10] sm:$0xff]  ;;  %v5115_v0 = vadd.f32 %v5114_v44, %v5113_v26 }
 0x3aa   :  { %v5318_v46 = vld [vmem:[#allocation3 + $0x11] sm:$0xff]  ;;  %5590 = vrot.lane.b32.xlu0 %v10788_v17, %s7707_s21  ;;  %v5366_v61 = vld [vmem:[#allocation3 + $0x21] sm:$0xff] }
 0x3ab   :  { %5464 = vrot.lane.b32.xlu1 %v5318_v46, %s7703_s17  ;;  %v5334_v36 = vld [vmem:[#allocation3 + $0x12] sm:$0xff]  ;;  %v10795_v56 = vld [vmem:[#allocation3 + $0x20] sm:$0xff] }
 0x3ac   :  { %v5320_v19 = vld [vmem:[#allocation3 + $0x31] sm:$0xff]  ;;  %v5382_v50 = vld [vmem:[#allocation3 + $0x22] sm:$0xff] }
 0x3ad   :  { %v5336_v11 = vld [vmem:[#allocation3 + $0x32] sm:$0xff]  ;;  %v10812_v49 = vld [vmem:[#allocation3 + $0x40] sm:$0xff] }
 0x3ae   :  { %5654 = vrot.lane.b32.xlu0 %v5318_v46, %s7709_s22  ;;  %v10806_v18 = vld [vmem:[#allocation3 + $0x30] sm:$0xff]  ;;  %v5321_v20 = vld [vmem:[#allocation3 + $0x41] sm:$0xff] }
 0x3af   :  { %5528 = vrot.lane.b32.xlu1 %v5334_v36, %s7705_s19  ;;  %v5322_v25 = vld [vmem:[#allocation3 + $0x51] sm:$0xff]  ;;  %v5384_v7 = vld [vmem:[#allocation3 + $0x42] sm:$0xff] }
 0x3b0   :  { %v10828_v39 = vld [vmem:[#allocation3 + $0x52] sm:$0xff]  ;;  %v10839_v1 = vld [vmem:[#allocation3 + $0x60] sm:$0xff] }
 0x3b1   :  { %v10833_v62 = vld [vmem:[#allocation3 + $0x50] sm:$0xff]  ;;  %v10863_v37 = vld [vmem:[#allocation3 + $0x61] sm:$0xff] }
 0x3b2   :  { %5656 = vrot.lane.b32.xlu0 %v5366_v61, %s7709_s22  ;;  %v10894_v45 = vld [vmem:[#allocation3 + $0x71] sm:$0xff]  ;;  %v10912_v47 = vld [vmem:[#allocation3 + $0x62] sm:$0xff] }
 0x3b3   :  { %5592 = vrot.lane.b32.xlu1 %v10795_v56, %s7707_s21  ;;  %v10929_v22 = vld [vmem:[#allocation3 + $0x72] sm:$0xff]  ;;  %v5356_v4 = vld [vmem:[#allocation3 + $0x80] sm:$0xff] }
 0x3b4   :  { %v10941_v24 = vld [vmem:[#allocation3 + $0x70] sm:$0xff]  ;;  %v5388_v31 = vld [vmem:[#allocation3 + $0x82] sm:$0xff] }
 0x3b5   :  { %v5372_v26 = vld [vmem:[#allocation3 + $0x81] sm:$0xff] }
 0x3b6   :  { %5468 = vrot.lane.b32.xlu0 %v5320_v19, %s7703_s17 }
 0x3b7   :  { %5466 = vrot.lane.b32.xlu1 %v5366_v61, %s7703_s17 }
 0x3ba   :  { %5720 = vrot.lane.b32.xlu0 %v5382_v50, %s7713_s2 }
 0x3bb   :  { %5718 = vrot.lane.b32.xlu1 %v5334_v36, %s7713_s2 }
 0x3be   :  { %5532 = vrot.lane.b32.xlu0 %v5336_v11, %s7705_s19 }
 0x3bf   :  { %5530 = vrot.lane.b32.xlu1 %v5382_v50, %s7705_s19 }
 0x3c2   :  { %5784 = vrot.lane.b32.xlu0 %v10806_v18, %s7711_s16 }
 0x3c3   :  { %5782 = vrot.lane.b32.xlu1 %v10795_v56, %s7711_s16 }
 0x3c6   :  { %5596 = vrot.lane.b32.xlu0 %v10812_v49, %s7707_s21 }
 0x3c7   :  { %5594 = vrot.lane.b32.xlu1 %v10806_v18, %s7707_s21 }
 0x3ca   :  { %5848 = vrot.lane.b32.xlu0 %v5320_v19, %s7712_s18 }
 0x3cb   :  { %5846 = vrot.lane.b32.xlu1 %v5366_v61, %s7712_s18 }
 0x3ce   :  { %5470 = vrot.lane.b32.xlu0 %v5321_v20, %s7703_s17 }
 0x3cf   :  { %5658 = vrot.lane.b32.xlu1 %v5320_v19, %s7709_s22 }
 0x3d2   :  { %5722 = vrot.lane.b32.xlu0 %v5336_v11, %s7713_s2 }
 0x3d3   :  { %5910 = vrot.lane.b32.xlu1 %v5382_v50, %s7710_s0 }
 0x3d6   :  { %5472 = vrot.lane.b32.xlu0 %v5322_v25, %s7703_s17 }
 0x3d7   :  { %5660 = vrot.lane.b32.xlu1 %v5321_v20, %s7709_s22 }
 0x3da   :  { %5724 = vrot.lane.b32.xlu0 %v5384_v7, %s7713_s2 }
 0x3db   :  { %5912 = vrot.lane.b32.xlu1 %v5336_v11, %s7710_s0  ;;  %v10953_v11 = vpop.permute.xlu0 %5526 }
 0x3de   :  { %5536 = vrot.lane.b32.xlu0 %v10828_v39, %s7705_s19 }
 0x3df   :  { %5534 = vrot.lane.b32.xlu1 %v5384_v7, %s7705_s19  ;;  %v10973_v54 = vpop.permute.xlu0 %5478 }
 0x3e2   :  { %5788 = vrot.lane.b32.xlu0 %v10833_v62, %s7711_s16 }
 0x3e3   :  { %5786 = vrot.lane.b32.xlu1 %v10812_v49, %s7711_s16  ;;  %v10981_v27 = vpop.permute.xlu0 %5796 }
 0x3e6   :  { %5600 = vrot.lane.b32.xlu0 %v10839_v1, %s7707_s21 }
 0x3e7   :  { %5598 = vrot.lane.b32.xlu1 %v10833_v62, %s7707_s21 }
 0x3ea   :  { %5852 = vrot.lane.b32.xlu0 %v5322_v25, %s7712_s18 }
 0x3eb   :  { %5850 = vrot.lane.b32.xlu1 %v5321_v20, %s7712_s18 }
 0x3ee   :  { %5474 = vrot.lane.b32.xlu0 %v10863_v37, %s7703_s17 }
 0x3ef   :  { %5662 = vrot.lane.b32.xlu1 %v5322_v25, %s7709_s22 }
 0x3f2   :  { %5726 = vrot.lane.b32.xlu0 %v10828_v39, %s7713_s2 }
 0x3f3   :  { %5914 = vrot.lane.b32.xlu1 %v5384_v7, %s7710_s0 }
 0x3f4   :  { %v10892_v41 = vpop.f32.mrf.mxu0 }
 0x3f5   :  { %v5085_v38 = vmul.f32 %v10892_v41, %v10892_v41  ;;  %v5057_v61 = vsel %vm4710_vm10, %v10892_v41, 0.0 }
 0x3f6   :  { %5476 = vrot.lane.b32.xlu0 %v10894_v45, %s7703_s17  ;;  %v10908_v55 = vpop.f32.mrf.mxu0 }
 0x3f7   :  { %5664 = vrot.lane.b32.xlu1 %v10863_v37, %s7709_s22  ;;  %v5084_v51 = vmul.f32 %v10908_v55, %v10908_v55  ;;  %v5055_v52 = vsel %vm4710_vm10, %v10908_v55, 0.0  ;;  %v5118_v20 = vsel %vm4710_vm10, %v5085_v38, 0.0 }
 0x3f8   :  { %v5056_v5 = vadd.f32 %v5055_v52, %v5054_v34  ;;  %v10989_v34 = vpop.permute.xlu0 %5860 }
 0x3f9   :  { %v5116_v58 = vsel %vm4710_vm10, %v5084_v51, 0.0 }
 0x3fa   :  { %5728 = vrot.lane.b32.xlu0 %v10912_v47, %s7713_s2  ;;  %v5117_v46 = vadd.f32 %v5116_v58, %v5115_v0  ;;  %v5058_v50 = vadd.f32 %v5057_v61, %v5056_v5 }
 0x3fb   :  { %5916 = vrot.lane.b32.xlu1 %v10828_v39, %s7710_s0 }
 0x3fc   :  { %v5119_v3 = vadd.f32 %v5118_v20, %v5117_v46 }
 0x3fe   :  { %5540 = vrot.lane.b32.xlu0 %v10929_v22, %s7705_s19 }
 0x3ff   :  { %5538 = vrot.lane.b32.xlu1 %v10912_v47, %s7705_s19 }
 0x401   :  { %v10943_v36 = vpop.f32.mrf.mxu0 }
 0x402   :  { %5792 = vrot.lane.b32.xlu0 %v10941_v24, %s7711_s16  ;;  %v5087_v25 = vmul.f32 %v10943_v36, %v10943_v36  ;;  %v5061_v30 = vsel %vm4710_vm10, %v10943_v36, 0.0 }
 0x403   :  { %5790 = vrot.lane.b32.xlu1 %v10839_v1, %s7711_s16  ;;  %v10951_v19 = vpop.f32.mrf.mxu0 }
 0x404   :  { %v5059_v7 = vsel %vm4710_vm10, %v10951_v19, 0.0  ;;  %v5086_v39 = vmul.f32 %v10951_v19, %v10951_v19  ;;  %v5122_v10 = vsel %vm4710_vm10, %v5087_v25, 0.0 }
 0x405   :  { %v5060_v32 = vadd.f32 %v5059_v7, %v5058_v50 }
 0x406   :  { %5604 = vrot.lane.b32.xlu0 %v5356_v4, %s7707_s21  ;;  %v5120_v42 = vsel %vm4710_vm10, %v5086_v39, 0.0 }
 0x407   :  { %5602 = vrot.lane.b32.xlu1 %v10941_v24, %s7707_s21  ;;  %v5062_v33 = vadd.f32 %v5061_v30, %v5060_v32  ;;  %v5121_v59 = vadd.f32 %v5120_v42, %v5119_v3 }
 0x409   :  { %v5063_v8 = vrot.slane %v5062_v33, 4  ;;  %v5123_v29 = vadd.f32 %v5122_v10, %v5121_v59 }
 0x40a   :  { %5856 = vrot.lane.b32.xlu0 %v10894_v45, %s7712_s18 }
 0x40b   :  { %5854 = vrot.lane.b32.xlu1 %v10863_v37, %s7712_s18  ;;  %v5064_v14 = vadd.f32 %v5063_v8, %v5062_v33  ;;  %v5124_v13 = vrot.slane %v5123_v29, 4 }
 0x40d   :  { %v5065_v9 = vrot.slane %v5064_v14, 2  ;;  %v5125_v12 = vadd.f32 %v5124_v13, %v5123_v29 }
 0x40e   :  { %5730 = vrot.lane.b32.xlu0 %v10929_v22, %s7713_s2 }
 0x40f   :  { %5666 = vrot.lane.b32.xlu1 %v10894_v45, %s7709_s22  ;;  %v5066_v48 = vadd.f32 %v5065_v9, %v5064_v14  ;;  %v5126_v23 = vrot.slane %v5125_v12, 2  ;;  %v10987_v45 = vpop.permute.xlu1 %5924 }
 0x411   :  { %v5067_v37 = vrot.slane %v5066_v48, 1  ;;  %v5127_v6 = vadd.f32 %v5126_v23, %v5125_v12 }
 0x412   :  { %5732 = vrot.lane.b32.xlu0 %v5388_v31, %s7713_s2 }
 0x413   :  { %5918 = vrot.lane.b32.xlu1 %v10912_v47, %s7710_s0  ;;  %v5068_v21 = vadd.f32 %v5067_v37, %v5066_v48  ;;  %v5128_v51 = vrot.slane %v5127_v6, 1 }
 0x415   :  { %v5071_v28 = vmul.f32 0.015625, %v5068_v21  ;;  %v5129_v52 = vadd.f32 %v5128_v51, %v5127_v6 }
 0x417   :  { %5668 = vrot.lane.b32.xlu1 %v5372_v26, %s7709_s22  ;;  %v5131_v44 = vmul.f32 0.015625, %v5129_v52  ;;  %v5133_v58 = vmul.f32 %v5071_v28, %v5071_v28  ;;  %v5158_v30 = vsub.f32 %v10951_v19, %v5071_v28  ;;  %v5152_v33 = vsub.f32 %v10858_v60, %v5071_v28 }
 0x418   :  { %v5153_v59 = vsub.f32 %v10851_v63, %v5071_v28  ;;  %v5154_v10 = vsub.f32 %v10876_v57, %v5071_v28  ;;  %v5155_v14 = vsub.f32 %v10865_v53, %v5071_v28  ;;  %v5156_v13 = vsub.f32 %v10908_v55, %v5071_v28 }
 0x419   :  { %v5135_v5 = vsub.f32 %v5131_v44, %v5133_v58  ;;  %v5159_v19 = vsub.f32 %v10943_v36, %v5071_v28 }
 0x41b   :  { %5920 = vrot.lane.b32.xlu1 %v10929_v22, %s7710_s0  ;;  %v5137_v0 = vmax.f32 %v5135_v5, 0.0 }
 0x41c   :  { %v10993_v38 = vpop.permute.xlu0 %5590 }
 0x41d   :  { %v10995_v47 = vpop.permute.xlu1 %5464  ;;  %v5139_v46 = vadd.f32 1e-05, %v5137_v0 }
 0x41f   :  { %5794 = vrot.lane.b32.xlu1 %v5356_v4, %s7711_s16  ;;  %7672 = vrsqrt.f32 %v5139_v46 }
 0x420   :  { %v10998_v61 = vpop.permute.xlu0 %5654 }
 0x421   :  { %v11000_v50 = vpop.permute.xlu1 %5528 }
 0x423   :  { %5858 = vrot.lane.b32.xlu1 %v5372_v26, %s7712_s18 }
 0x424   :  { %v11003_v20 = vpop.permute.xlu0 %5656 }
 0x425   :  { %v11005_v25 = vpop.permute.xlu1 %5592 }
 0x427   :  { %5922 = vrot.lane.b32.xlu1 %v5388_v31, %s7710_s0 }
 0x428   :  { %v11008_v22 = vpop.permute.xlu0 %5468 }
 0x429   :  { %v11010_v7 = vpop.permute.xlu1 %5466 }
 0x42c   :  { %v11012_v39 = vpop.permute.xlu0 %5720  ;;  %v7673_v32 = vpop.eup %7672 }
 0x42d   :  { %v11014_v4 = vpop.permute.xlu1 %5718  ;;  %v5143_v3 = vmul.f32 %v7673_v32, %v10753_v35  ;;  %v5157_v35 = vsub.f32 %v10892_v41, %v5071_v28 }
 0x42f   :  { %v5167_v42 = vrot.slane %v5143_v3, %v10756_v40 }
 0x430   :  { %v11022_v8 = vpop.permute.xlu0 %5532 }
 0x431   :  { %v11024_v29 = vpop.permute.xlu1 %5530  ;;  %v5182_v9 = vmul.f32 %v5167_v42, %v5158_v30  ;;  %v5176_v12 = vmul.f32 %v5167_v42, %v5152_v33  ;;  %v5177_v48 = vmul.f32 %v5167_v42, %v5153_v59  ;;  %v5178_v60 = vmul.f32 %v5167_v42, %v5154_v10  ;;  %v5301_v30 = vld [vmem:[#allocation3] sm:$0xff] }
 0x432   :  { %v5179_v23 = vmul.f32 %v5167_v42, %v5155_v14  ;;  %v5180_v63 = vmul.f32 %v5167_v42, %v5156_v13  ;;  %v5181_v31 = vmul.f32 %v5167_v42, %v5157_v35  ;;  %v5183_v57 = vmul.f32 %v5167_v42, %v5159_v19 }
 0x433   :  { %v5204_v37 = vadd.f32 %v10764_v15, %v5182_v9  ;;  %v5198_v6 = vadd.f32 %v10764_v15, %v5176_v12  ;;  %v5199_v53 = vadd.f32 %v10764_v15, %v5177_v48  ;;  %v5200_v55 = vadd.f32 %v10764_v15, %v5178_v60 }
 0x434   :  { %v11034_v21 = vpop.permute.xlu0 %5784  ;;  %v5201_v36 = vadd.f32 %v10764_v15, %v5179_v23  ;;  %v5202_v51 = vadd.f32 %v10764_v15, %v5180_v63  ;;  %v5203_v0 = vadd.f32 %v10764_v15, %v5181_v31  ;;  %v5205_v46 = vadd.f32 %v10764_v15, %v5183_v57 }
 0x435   :  { %v5783_v41 = vpop.permute.xlu1 %5782  ;;  %v5220_v26 = vmax.f32 %v5204_v37, 0.0  ;;  %v5214_v28 = vmax.f32 %v5198_v6, 0.0  ;;  %v5215_v52 = vmax.f32 %v5199_v53, 0.0  ;;  %v5216_v44 = vmax.f32 %v5200_v55, 0.0 }
 0x436   :  { %v5217_v58 = vmax.f32 %v5201_v36, 0.0  ;;  %v5218_v5 = vmax.f32 %v5202_v51, 0.0  ;;  %v5219_v42 = vmax.f32 %v5203_v0, 0.0  ;;  %v5221_v33 = vmax.f32 %v5205_v46, 0.0 }
 0x437   :  { %5288 = vst.msk [vmem:[#allocation3 + $0x111] sm:$0xff] %vm4710_vm10, %v5220_v26  ;;  %5282 = vst.msk [vmem:[#allocation3 + $0xb1] sm:$0xff] %vm4710_vm10, %v5214_v28  ;;  %v5958_v15 = vsel %vm4710_vm10, %v5301_v30, %v10935_v43  ;;  %v5959_v60 = vsel %vm4710_vm10, %v10788_v17, %v10995_v47 }
 0x438   :  { %5283 = vst.msk [vmem:[#allocation3 + $0xc1] sm:$0xff] %vm4710_vm10, %v5215_v52  ;;  %5284 = vst.msk [vmem:[#allocation3 + $0xd1] sm:$0xff] %vm4710_vm10, %v5216_v44  ;;  %v11044_v32 = vpop.permute.xlu0 %5596  ;;  %v5974_v14 = vsel %vm4744_vm12, %v5958_v15, %v10953_v11  ;;  %v5975_v31 = vsel %vm4744_vm12, %v5959_v60, %v11000_v50 }
 0x439   :  { %v11046_v3 = vpop.permute.xlu1 %5594  ;;  %5285 = vst.msk [vmem:[#allocation3 + $0xe1] sm:$0xff] %vm4710_vm10, %v5217_v58  ;;  %5286 = vst.msk [vmem:[#allocation3 + $0xf1] sm:$0xff] %vm4710_vm10, %v5218_v5  ;;  %v5990_v35 = vsel %vm11857_vm15, %v5974_v14, %v10993_v38  ;;  %v5991_v57 = vsel %vm11858_vm11, %v5975_v31, %v11005_v25 }
 0x43a   :  { %5287 = vst.msk [vmem:[#allocation3 + $0x101] sm:$0xff] %vm4710_vm10, %v5219_v42  ;;  %5289 = vst.msk [vmem:[#allocation3 + $0x121] sm:$0xff] %vm4710_vm10, %v5221_v33  ;;  %v6006_v43 = vsel %vm4812_vm14, %v5990_v35, %v10998_v61  ;;  %v6007_v50 = vsel %vm4812_vm14, %v5991_v57, %v11003_v20  ;;  %v5960_v42 = vsel %vm4710_vm10, %v10795_v56, %v11010_v7 }
 0x43b   :  { %v6023_v11 = vsel %vm6022_vm13, %v6006_v43, %v11014_v4  ;;  %v6024_v53 = vsel %vm6022_vm13, %v6007_v50, %v11012_v39  ;;  %v5976_v33 = vsel %vm4744_vm12, %v5960_v42, %v11024_v29  ;;  %vm11859_vm15 = vmmov %vm11858_vm11 }
 0x43c   :  { %v5849_v59 = vpop.permute.xlu0 %5848  ;;  %v6040_v38 = vsel %vm6039_vm9, %v6023_v11, %v5783_v41  ;;  %v6041_v25 = vsel %vm6039_vm9, %v6024_v53, %v11034_v21  ;;  %v5992_v15 = vsel %vm11859_vm15, %v5976_v33, %v11046_v3  ;;  %v5961_v11 = vsel %vm4710_vm10, %v10806_v18, %v11008_v22  ;;  %vm11860_vm15 = vmmov %vm11858_vm11 }
 0x43d   :  { %v5847_v10 = vpop.permute.xlu1 %5846  ;;  %v6058_v41 = vsel %vm6056_vm1, %v6041_v25, %v5849_v59 }
 0x43e   :  { %v5326_v13 = vld [vmem:[#allocation3 + $0xb1] sm:$0xff]  ;;  %v6057_v61 = vsel %vm6056_vm1, %v6040_v38, %v5847_v10 }
 0x43f   :  { %5480 = vrot.lane.b32.xlu0 %v5326_v13, %s7703_s17  ;;  %v11059_v19 = vld [vmem:[#allocation3 + $0xb0] sm:$0xff]  ;;  %v11082_v37 = vld [vmem:[#allocation3 + $0xc0] sm:$0xff] }
 0x440   :  { %v11061_v9 = vpop.permute.xlu0 %5470  ;;  %5606 = vrot.lane.b32.xlu1 %v11059_v19, %s7707_s21  ;;  %v5342_v48 = vld [vmem:[#allocation3 + $0xb2] sm:$0xff]  ;;  %v5327_v17 = vld [vmem:[#allocation3 + $0xc1] sm:$0xff] }
 0x441   :  { %v5659_v12 = vpop.permute.xlu1 %5658  ;;  %v5390_v55 = vld [vmem:[#allocation3 + $0xc2] sm:$0xff]  ;;  %v5328_v21 = vld [vmem:[#allocation3 + $0xd1] sm:$0xff] }
 0x442   :  { %v11108_v28 = vld [vmem:[#allocation3 + $0xd0] sm:$0xff]  ;;  %v6008_v14 = vsel %vm4812_vm14, %v5992_v15, %v5659_v12  ;;  %v11134_v35 = vld [vmem:[#allocation3 + $0xe0] sm:$0xff] }
 0x443   :  { %5544 = vrot.lane.b32.xlu0 %v5342_v48, %s7705_s19  ;;  %v5344_v0 = vld [vmem:[#allocation3 + $0xd2] sm:$0xff]  ;;  %v5329_v7 = vld [vmem:[#allocation3 + $0xe1] sm:$0xff] }
 0x444   :  { %v5723_v23 = vpop.permute.xlu0 %5722  ;;  %5670 = vrot.lane.b32.xlu1 %v5326_v13, %s7709_s22  ;;  %v5392_v22 = vld [vmem:[#allocation3 + $0xe2] sm:$0xff]  ;;  %v11164_v50 = vld [vmem:[#allocation3 + $0xf0] sm:$0xff] }
 0x445   :  { %v5911_v63 = vpop.permute.xlu1 %5910  ;;  %v6025_v13 = vsel %vm6022_vm13, %v6008_v14, %v5723_v23 }
 0x446   :  { %v6074_v4 = vsel %vm6073_vm2, %v6057_v61, %v5911_v63 }
 0x447   :  { %7547 = vmatprep.mubr.msk.f32.mxu1 %vm6090_vm0, %v6074_v4  ;;  %5608 = vrot.lane.b32.xlu0 %v11082_v37, %s7707_s21 }
 0x448   :  { %v11086_v47 = vpop.permute.xlu0 %5472  ;;  %5672 = vrot.lane.b32.xlu1 %v5327_v17, %s7709_s22 }
 0x449   :  { %v5661_v6 = vpop.permute.xlu1 %5660  ;;  %v5963_v15 = vsel %vm4710_vm10, %v10833_v62, %v11086_v47 }
 0x44b   :  { %5482 = vrot.lane.b32.xlu0 %v5327_v17, %s7703_s17 }
 0x44c   :  { %v5725_v36 = vpop.permute.xlu0 %5724  ;;  %5546 = vrot.lane.b32.xlu1 %v5390_v55, %s7705_s19 }
 0x44d   :  { %v5913_v51 = vpop.permute.xlu1 %5912 }
 0x44e   :  { %v6075_v26 = vsel %vm6073_vm2, %v6058_v41, %v5913_v51  ;;  %v5346_v41 = vld [vmem:[#allocation3 + $0xf2] sm:$0xff]  ;;  %v5962_v51 = vsel %vm4710_vm10, %v10812_v49, %v11061_v9  ;;  %v5331_v9 = vld [vmem:[#allocation3 + $0x101] sm:$0xff] }
 0x44f   :  { %7548 = vmatmul.mubr.msk.f32.vlgmr.msra.gmra.mxu1 %vm6090_vm0, %v6075_v26  ;;  %5734 = vrot.lane.b32.xlu0 %v5342_v48, %s7713_s2  ;;  %v5977_v48 = vsel %vm4744_vm12, %v5961_v11, %v11022_v8 }
 0x450   :  { %v11101_v20 = vpop.permute.xlu0 %5536  ;;  %5798 = vrot.lane.b32.xlu1 %v11082_v37, %s7711_s16  ;;  %v5993_v38 = vsel %vm11858_vm11, %v5977_v48, %v11044_v32 }
 0x451   :  { %v11103_v39 = vpop.permute.xlu1 %5534  ;;  %v6009_v23 = vsel %vm4812_vm14, %v5993_v38, %v5661_v6  ;;  %v5330_v6 = vld [vmem:[#allocation3 + $0xf1] sm:$0xff] }
 0x452   :  { %v6026_v63 = vsel %vm6022_vm13, %v6009_v23, %v5725_v36 }
 0x453   :  { %5484 = vrot.lane.b32.xlu0 %v5328_v21, %s7703_s17 }
 0x454   :  { %v5789_v52 = vpop.permute.xlu0 %5788  ;;  %5610 = vrot.lane.b32.xlu1 %v11108_v28, %s7707_s21 }
 0x455   :  { %v5787_v44 = vpop.permute.xlu1 %5786  ;;  %v6043_v18 = vsel %vm6039_vm9, %v6026_v63, %v5789_v52 }
 0x456   :  { %v6042_v56 = vsel %vm6039_vm9, %v6025_v13, %v5787_v44 }
 0x457   :  { %5736 = vrot.lane.b32.xlu0 %v5390_v55, %s7713_s2 }
 0x458   :  { %v11113_v58 = vpop.permute.xlu0 %5600  ;;  %5862 = vrot.lane.b32.xlu1 %v5327_v17, %s7712_s18 }
 0x459   :  { %v11115_v5 = vpop.permute.xlu1 %5598 }
 0x45b   :  { %5548 = vrot.lane.b32.xlu0 %v5344_v0, %s7705_s19 }
 0x45c   :  { %v5853_v46 = vpop.permute.xlu0 %5852  ;;  %5674 = vrot.lane.b32.xlu1 %v5328_v21, %s7709_s22 }
 0x45d   :  { %v5851_v30 = vpop.permute.xlu1 %5850  ;;  %v6060_v8 = vsel %vm6056_vm1, %v6043_v18, %v5853_v46  ;;  %v5332_v18 = vld [vmem:[#allocation3 + $0x111] sm:$0xff] }
 0x45e   :  { %v6059_v29 = vsel %vm6056_vm1, %v6042_v56, %v5851_v30  ;;  %v11184_v30 = vld [vmem:[#allocation3 + $0x100] sm:$0xff] }
 0x45f   :  { %5800 = vrot.lane.b32.xlu0 %v11108_v28, %s7711_s16 }
 0x460   :  { %v11129_v59 = vpop.permute.xlu0 %5474  ;;  %5926 = vrot.lane.b32.xlu1 %v5390_v55, %s7710_s0 }
 0x461   :  { %v5663_v10 = vpop.permute.xlu1 %5662 }
 0x463   :  { %5612 = vrot.lane.b32.xlu0 %v11134_v35, %s7707_s21 }
 0x464   :  { %v5727_v3 = vpop.permute.xlu0 %5726  ;;  %5676 = vrot.lane.b32.xlu1 %v5329_v7, %s7709_s22 }
 0x465   :  { %v5915_v43 = vpop.permute.xlu1 %5914 }
 0x466   :  { %v6076_v12 = vsel %vm6073_vm2, %v6059_v29, %v5915_v43 }
 0x467   :  { %7550 = vmatprep.mubr.msk.f32.mxu1 %vm6090_vm0, %v6076_v12  ;;  %5864 = vrot.lane.b32.xlu0 %v5328_v21, %s7712_s18  ;;  %v5978_v21 = vsel %vm4744_vm12, %v5962_v51, %v11103_v39  ;;  %v5445_v51 = vld [vmem:[#allocation3 + $0x132] sm:$0xff] }
 0x468   :  { %v5477_v60 = vpop.permute.xlu0 %5476  ;;  %5928 = vrot.lane.b32.xlu1 %v5344_v0, %s7710_s0  ;;  %v5994_v52 = vsel %vm11860_vm15, %v5978_v21, %v11115_v5  ;;  %vm11861_vm15 = vmmov %vm11858_vm11 }
 0x469   :  { %v5665_v61 = vpop.permute.xlu1 %5664  ;;  %v5965_v62 = vsel %vm4710_vm10, %v10941_v24, %v5477_v60  ;;  %v5964_v24 = vsel %vm4710_vm10, %v10839_v1, %v11129_v59 }
 0x46b   :  { %5486 = vrot.lane.b32.xlu0 %v5329_v7, %s7703_s17 }
 0x46c   :  { %v5729_v31 = vpop.permute.xlu0 %5728  ;;  %5550 = vrot.lane.b32.xlu1 %v5392_v22, %s7705_s19 }
 0x46d   :  { %v5917_v4 = vpop.permute.xlu1 %5916 }
 0x46e   :  { %v6077_v32 = vsel %vm6073_vm2, %v6060_v8, %v5917_v4  ;;  %v11226_v8 = vld [vmem:[#allocation3 + $0x110] sm:$0xff] }
 0x46f   :  { %7551 = vmatmul.mubr.msk.f32.gmra.mxu1 %vm6090_vm0, %v6077_v32  ;;  %5738 = vrot.lane.b32.xlu0 %v5344_v0, %s7713_s2  ;;  %v6010_v0 = vsel %vm4812_vm14, %v5994_v52, %v5663_v10  ;;  %v5979_v10 = vsel %vm4744_vm12, %v5963_v15, %v11101_v20  ;;  %v5394_v20 = vld [vmem:[#allocation3 + $0x102] sm:$0xff] }
 0x470   :  { %5802 = vrot.lane.b32.xlu1 %v11134_v35, %s7711_s16  ;;  %v5541_v17 = vpop.permute.xlu0 %5540  ;;  %v6027_v46 = vsel %vm6022_vm13, %v6010_v0, %v5727_v3  ;;  %v5995_v14 = vsel %vm11858_vm11, %v5979_v10, %v11113_v58 }
 0x471   :  { %v5539_v57 = vpop.permute.xlu1 %5538  ;;  %v6011_v56 = vsel %vm4812_vm14, %v5995_v14, %v5665_v61  ;;  %v5981_v58 = vsel %vm4744_vm12, %v5965_v62, %v5541_v17 }
 0x472   :  { %v5980_v61 = vsel %vm4744_vm12, %v5964_v24, %v5539_v57 }
 0x473   :  { %5488 = vrot.lane.b32.xlu0 %v5330_v6, %s7703_s17 }
 0x474   :  { %5614 = vrot.lane.b32.xlu1 %v11164_v50, %s7707_s21  ;;  %v5793_v25 = vpop.permute.xlu0 %5792 }
 0x475   :  { %v5791_v53 = vpop.permute.xlu1 %5790 }
 0x476   :  { %v6044_v49 = vsel %vm6039_vm9, %v6027_v46, %v5791_v53  ;;  %v5348_v53 = vld [vmem:[#allocation3 + $0x112] sm:$0xff] }
 0x477   :  { %5740 = vrot.lane.b32.xlu0 %v5392_v22, %s7713_s2 }
 0x478   :  { %5866 = vrot.lane.b32.xlu1 %v5329_v7, %s7712_s18  ;;  %v5605_v26 = vpop.permute.xlu0 %5604  ;;  %v6028_v7 = vsel %vm6022_vm13, %v6011_v56, %v5729_v31 }
 0x479   :  { %v5603_v55 = vpop.permute.xlu1 %5602  ;;  %v6045_v47 = vsel %vm6039_vm9, %v6028_v7, %v5793_v25  ;;  %v5997_v12 = vsel %vm11861_vm15, %v5981_v58, %v5605_v26  ;;  %v5413_v25 = vld [vmem:[#allocation3 + $0x130] sm:$0xff]  ;;  %vm11862_vm15 = vmmov %vm11858_vm11 }
 0x47a   :  { %v5996_v63 = vsel %vm11858_vm11, %v5980_v61, %v5603_v55  ;;  %v5380_v55 = vld [vmem:[#allocation3 + $0x121] sm:$0xff] }
 0x47b   :  { %5552 = vrot.lane.b32.xlu0 %v5346_v41, %s7705_s19 }
 0x47c   :  { %5678 = vrot.lane.b32.xlu1 %v5330_v6, %s7709_s22  ;;  %v5857_v39 = vpop.permute.xlu0 %5856 }
 0x47d   :  { %v5855_v36 = vpop.permute.xlu1 %5854  ;;  %v6062_v3 = vsel %vm6056_vm1, %v6045_v47, %v5857_v39 }
 0x47e   :  { %v6061_v42 = vsel %vm6056_vm1, %v6044_v49, %v5855_v36 }
 0x47f   :  { %5804 = vrot.lane.b32.xlu0 %v11164_v50, %s7711_s16 }
 0x480   :  { %5930 = vrot.lane.b32.xlu1 %v5392_v22, %s7710_s0  ;;  %v5731_v29 = vpop.permute.xlu0 %5730 }
 0x481   :  { %v5667_v44 = vpop.permute.xlu1 %5666 }
 0x482   :  { %v6012_v22 = vsel %vm4812_vm14, %v5996_v63, %v5667_v44 }
 0x483   :  { %5616 = vrot.lane.b32.xlu0 %v11184_v30, %s7707_s21  ;;  %v6029_v31 = vsel %vm6022_vm13, %v6012_v22, %v5731_v29 }
 0x484   :  { %5680 = vrot.lane.b32.xlu1 %v5331_v9, %s7709_s22  ;;  %v5733_v38 = vpop.permute.xlu0 %5732 }
 0x485   :  { %v5919_v33 = vpop.permute.xlu1 %5918 }
 0x486   :  { %v6078_v5 = vsel %vm6073_vm2, %v6061_v42, %v5919_v33  ;;  %v5309_v42 = vld [vmem:[#allocation3 + $0xa0] sm:$0xff] }
 0x487   :  { %7553 = vmatprep.mubr.msk.f32.mxu1 %vm6090_vm0, %v6078_v5  ;;  %5868 = vrot.lane.b32.xlu0 %v5330_v6, %s7712_s18  ;;  %v5966_v15 = vsel %vm4710_vm10, %v5309_v42, %v10973_v54 }
 0x488   :  { %5932 = vrot.lane.b32.xlu1 %v5346_v41, %s7710_s0 }
 0x489   :  { %v5669_v13 = vpop.permute.xlu1 %5668 }
 0x48a   :  { %v6013_v48 = vsel %vm4812_vm14, %v5997_v12, %v5669_v13  ;;  %v5982_v13 = vsel %vm4744_vm12, %v5966_v15, %v10979_v16 }
 0x48b   :  { %5490 = vrot.lane.b32.xlu0 %v5331_v9, %s7703_s17  ;;  %v6030_v23 = vsel %vm6022_vm13, %v6013_v48, %v5733_v38 }
 0x48c   :  { %5554 = vrot.lane.b32.xlu1 %v5394_v20, %s7705_s19  ;;  %v6047_v1 = vsel %vm6039_vm9, %v6030_v23, %v10981_v27 }
 0x48d   :  { %v5921_v43 = vpop.permute.xlu1 %5920  ;;  %v6064_v32 = vsel %vm6056_vm1, %v6047_v1, %v10989_v34  ;;  %v5364_v34 = vld [vmem:[#allocation3 + $0x120] sm:$0xff] }
 0x48e   :  { %v6079_v11 = vsel %vm6073_vm2, %v6062_v3, %v5921_v43  ;;  %v6081_v6 = vsel %vm6073_vm2, %v6064_v32, %v10987_v45  ;;  %v5396_v45 = vld [vmem:[#allocation3 + $0x122] sm:$0xff] }
 0x48f   :  { %7554 = vmatmul.mubr.msk.f32.gmra.mxu1 %vm6090_vm0, %v6079_v11  ;;  %5742 = vrot.lane.b32.xlu0 %v5346_v41, %s7713_s2  ;;  %v5429_v41 = vld [vmem:[#allocation3 + $0x131] sm:$0xff] }
 0x490   :  { %5806 = vrot.lane.b32.xlu1 %v11184_v30, %s7711_s16 }
 0x491   :  { %v5795_v60 = vpop.permute.xlu1 %5794 }
 0x492   :  { %v6046_v4 = vsel %vm6039_vm9, %v6029_v31, %v5795_v60 }
 0x493   :  { %5492 = vrot.lane.b32.xlu0 %v5332_v18, %s7703_s17 }
 0x494   :  { %5618 = vrot.lane.b32.xlu1 %v11226_v8, %s7707_s21 }
 0x495   :  { %v5859_v59 = vpop.permute.xlu1 %5858 }
 0x496   :  { %v6063_v57 = vsel %vm6056_vm1, %v6046_v4, %v5859_v59 }
 0x497   :  { %5744 = vrot.lane.b32.xlu0 %v5394_v20, %s7713_s2 }
 0x498   :  { %5870 = vrot.lane.b32.xlu1 %v5331_v9, %s7712_s18 }
 0x499   :  { %v5923_v17 = vpop.permute.xlu1 %5922 }
 0x49a   :  { %v6080_v27 = vsel %vm6073_vm2, %v6063_v57, %v5923_v17 }
 0x49b   :  { %7556 = vmatprep.mubr.msk.f32.mxu1 %vm6090_vm0, %v6080_v27  ;;  %5556 = vrot.lane.b32.xlu0 %v5348_v53, %s7705_s19 }
 0x49c   :  { %7557 = vmatmul.mubr.msk.f32.gmra.mxu1 %vm6090_vm0, %v6081_v6  ;;  %5682 = vrot.lane.b32.xlu1 %v5332_v18, %s7709_s22 }
 0x49f   :  { %5808 = vrot.lane.b32.xlu0 %v11226_v8, %s7711_s16 }
 0x4a0   :  { %5934 = vrot.lane.b32.xlu1 %v5394_v20, %s7710_s0 }
 0x4a3   :  { %5620 = vrot.lane.b32.xlu0 %v5364_v34, %s7707_s21 }
 0x4a4   :  { %5746 = vrot.lane.b32.xlu1 %v5348_v53, %s7713_s2 }
 0x4a7   :  { %5872 = vrot.lane.b32.xlu0 %v5332_v18, %s7712_s18 }
 0x4a8   :  { %5748 = vrot.lane.b32.xlu1 %v5396_v45, %s7713_s2 }
 0x4ab   :  { %5684 = vrot.lane.b32.xlu0 %v5380_v55, %s7709_s22 }
 0x4ac   :  { %5812 = vrot.lane.b32.xlu1 %v5413_v25, %s7711_s16 }
 0x4af   :  { %5936 = vrot.lane.b32.xlu0 %v5348_v53, %s7710_s0 }
 0x4b0   :  { %5876 = vrot.lane.b32.xlu1 %v5429_v41, %s7712_s18 }
 0x4b1   :  { %v5481_v36 = vpop.permute.xlu0 %5480 }
 0x4b2   :  { %v5607_v26 = vpop.permute.xlu1 %5606  ;;  %v5967_v3 = vsel %vm4710_vm10, %v11059_v19, %v5481_v36 }
 0x4b3   :  { %5810 = vrot.lane.b32.xlu0 %v5364_v34, %s7711_s16  ;;  %v5998_v56 = vsel %vm11862_vm15, %v5982_v13, %v5607_v26  ;;  %vm11863_vm15 = vmmov %vm11858_vm11 }
 0x4b4   :  { %5940 = vrot.lane.b32.xlu1 %v5445_v51, %s7710_s0 }
 0x4b5   :  { %v5545_v21 = vpop.permute.xlu0 %5544 }
 0x4b6   :  { %v5671_v52 = vpop.permute.xlu1 %5670  ;;  %v5983_v12 = vsel %vm4744_vm12, %v5967_v3, %v5545_v21 }
 0x4b7   :  { %5874 = vrot.lane.b32.xlu0 %v5380_v55, %s7712_s18  ;;  %v6014_v7 = vsel %vm4812_vm14, %v5998_v56, %v5671_v52 }
 0x4b9   :  { %v5609_v44 = vpop.permute.xlu0 %5608 }
 0x4ba   :  { %v5673_v0 = vpop.permute.xlu1 %5672  ;;  %v5999_v11 = vsel %vm11858_vm11, %v5983_v12, %v5609_v44 }
 0x4bb   :  { %5938 = vrot.lane.b32.xlu0 %v5396_v45, %s7710_s0  ;;  %v6015_v48 = vsel %vm4812_vm14, %v5999_v11, %v5673_v0 }
 0x4bd   :  { %v5483_v46 = vpop.permute.xlu0 %5482 }
 0x4be   :  { %v5547_v49 = vpop.permute.xlu1 %5546  ;;  %v5968_v17 = vsel %vm4710_vm10, %v11082_v37, %v5483_v46 }
 0x4bf   :  { %v5984_v6 = vsel %vm4744_vm12, %v5968_v17, %v5547_v49 }
 0x4c1   :  { %v5735_v9 = vpop.permute.xlu0 %5734 }
 0x4c2   :  { %v5799_v39 = vpop.permute.xlu1 %5798  ;;  %v6031_v47 = vsel %vm6022_vm13, %v6014_v7, %v5735_v9 }
 0x4c3   :  { %v6048_v58 = vsel %vm6039_vm9, %v6031_v47, %v5799_v39 }
 0x4c5   :  { %v5485_v33 = vpop.permute.xlu0 %5484 }
 0x4c6   :  { %v5611_v5 = vpop.permute.xlu1 %5610  ;;  %v5969_v51 = vsel %vm4710_vm10, %v11108_v28, %v5485_v33 }
 0x4c7   :  { %v6000_v53 = vsel %vm11863_vm15, %v5984_v6, %v5611_v5  ;;  %vm11864_vm15 = vmmov %vm11858_vm11 }
 0x4c9   :  { %v5737_v10 = vpop.permute.xlu0 %5736 }
 0x4ca   :  { %v5863_v14 = vpop.permute.xlu1 %5862  ;;  %v6032_v60 = vsel %vm6022_vm13, %v6015_v48, %v5737_v10 }
 0x4cb   :  { %v6065_v54 = vsel %vm6056_vm1, %v6048_v58, %v5863_v14 }
 0x4cd   :  { %v5549_v29 = vpop.permute.xlu0 %5548 }
 0x4ce   :  { %v5675_v62 = vpop.permute.xlu1 %5674  ;;  %v5985_v21 = vsel %vm4744_vm12, %v5969_v51, %v5549_v29 }
 0x4cf   :  { %v6016_v34 = vsel %vm4812_vm14, %v6000_v53, %v5675_v62 }
 0x4d1   :  { %v5801_v20 = vpop.permute.xlu0 %5800 }
 0x4d2   :  { %v5927_v43 = vpop.permute.xlu1 %5926  ;;  %v6049_v61 = vsel %vm6039_vm9, %v6032_v60, %v5801_v20 }
 0x4d3   :  { %v6082_v16 = vsel %vm6073_vm2, %v6065_v54, %v5927_v43 }
 0x4d4   :  { %7559 = vmatprep.mubr.msk.f32.mxu1 %vm6090_vm0, %v6082_v16 }
 0x4d5   :  { %v5613_v24 = vpop.permute.xlu0 %5612 }
 0x4d6   :  { %v5677_v38 = vpop.permute.xlu1 %5676  ;;  %v6001_v44 = vsel %vm11858_vm11, %v5985_v21, %v5613_v24 }
 0x4d7   :  { %v6017_v0 = vsel %vm4812_vm14, %v6001_v44, %v5677_v38 }
 0x4d9   :  { %v5865_v19 = vpop.permute.xlu0 %5864 }
 0x4da   :  { %v6066_v23 = vsel %vm6056_vm1, %v6049_v61, %v5865_v19  ;;  %v5929_v63 = vpop.permute.xlu1 %5928 }
 0x4db   :  { %v6083_v18 = vsel %vm6073_vm2, %v6066_v23, %v5929_v63 }
 0x4dc   :  { %7560 = vmatmul.mubr.msk.f32.gmra.mxu1 %vm6090_vm0, %v6083_v18 }
 0x4dd   :  { %v5487_v22 = vpop.permute.xlu0 %5486 }
 0x4de   :  { %v5551_v1 = vpop.permute.xlu1 %5550  ;;  %v5970_v62 = vsel %vm4710_vm10, %v11134_v35, %v5487_v22 }
 0x4df   :  { %v5986_v20 = vsel %vm4744_vm12, %v5970_v62, %v5551_v1 }
 0x4e1   :  { %v5739_v59 = vpop.permute.xlu0 %5738 }
 0x4e2   :  { %v5803_v31 = vpop.permute.xlu1 %5802  ;;  %v6033_v55 = vsel %vm6022_vm13, %v6016_v34, %v5739_v59 }
 0x4e3   :  { %v6050_v36 = vsel %vm6039_vm9, %v6033_v55, %v5803_v31 }
 0x4e5   :  { %v5489_v4 = vpop.permute.xlu0 %5488 }
 0x4e6   :  { %v5615_v32 = vpop.permute.xlu1 %5614  ;;  %v5971_v61 = vsel %vm4710_vm10, %v11164_v50, %v5489_v4 }
 0x4e7   :  { %v6002_v58 = vsel %vm11864_vm15, %v5986_v20, %v5615_v32  ;;  %vm11865_vm15 = vmmov %vm11858_vm11 }
 0x4e9   :  { %v5741_v57 = vpop.permute.xlu0 %5740 }
 0x4ea   :  { %v5867_v27 = vpop.permute.xlu1 %5866  ;;  %v6034_v9 = vsel %vm6022_vm13, %v6017_v0, %v5741_v57 }
 0x4eb   :  { %v6067_v26 = vsel %vm6056_vm1, %v6050_v36, %v5867_v27 }
 0x4ed   :  { %v5553_v45 = vpop.permute.xlu0 %5552 }
 0x4ee   :  { %v5679_v25 = vpop.permute.xlu1 %5678  ;;  %v5987_v23 = vsel %vm4744_vm12, %v5971_v61, %v5553_v45 }
 0x4ef   :  { %v6018_v3 = vsel %vm4812_vm14, %v6002_v58, %v5679_v25 }
 0x4f1   :  { %v5805_v41 = vpop.permute.xlu0 %5804 }
 0x4f2   :  { %v5931_v37 = vpop.permute.xlu1 %5930  ;;  %v6051_v39 = vsel %vm6039_vm9, %v6034_v9, %v5805_v41 }
 0x4f3   :  { %v6084_v52 = vsel %vm6073_vm2, %v6067_v26, %v5931_v37 }
 0x4f4   :  { %7562 = vmatprep.mubr.msk.f32.mxu1 %vm6090_vm0, %v6084_v52 }
 0x4f5   :  { %v5617_v46 = vpop.permute.xlu0 %5616 }
 0x4f6   :  { %v5681_v49 = vpop.permute.xlu1 %5680  ;;  %v6003_v18 = vsel %vm11858_vm11, %v5987_v23, %v5617_v46 }
 0x4f7   :  { %v6019_v22 = vsel %vm4812_vm14, %v6003_v18, %v5681_v49 }
 0x4f9   :  { %v5869_v28 = vpop.permute.xlu0 %5868 }
 0x4fa   :  { %v6068_v42 = vsel %vm6056_vm1, %v6051_v39, %v5869_v28  ;;  %v5933_v33 = vpop.permute.xlu1 %5932 }
 0x4fb   :  { %v6085_v5 = vsel %vm6073_vm2, %v6068_v42, %v5933_v33 }
 0x4fc   :  { %7563 = vmatmul.mubr.msk.f32.gmra.mxu1 %vm6090_vm0, %v6085_v5 }
 0x4fd   :  { %v5491_v15 = vpop.permute.xlu0 %5490 }
 0x4fe   :  { %v5555_v10 = vpop.permute.xlu1 %5554  ;;  %v5972_v50 = vsel %vm4710_vm10, %v11184_v30, %v5491_v15 }
 0x4ff   :  { %v5988_v4 = vsel %vm4744_vm12, %v5972_v50, %v5555_v10 }
 0x501   :  { %v5743_v14 = vpop.permute.xlu0 %5742 }
 0x502   :  { %v5807_v13 = vpop.permute.xlu1 %5806  ;;  %v6035_v12 = vsel %vm6022_vm13, %v6018_v3, %v5743_v14 }
 0x503   :  { %v6052_v11 = vsel %vm6039_vm9, %v6035_v12, %v5807_v13 }
 0x505   :  { %v5493_v56 = vpop.permute.xlu0 %5492 }
 0x506   :  { %v5619_v7 = vpop.permute.xlu1 %5618  ;;  %v5973_v45 = vsel %vm4710_vm10, %v11226_v8, %v5493_v56 }
 0x507   :  { %v6004_v53 = vsel %vm11865_vm15, %v5988_v4, %v5619_v7 }
 0x509   :  { %v5745_v29 = vpop.permute.xlu0 %5744 }
 0x50a   :  { %v5871_v47 = vpop.permute.xlu1 %5870  ;;  %v6036_v31 = vsel %vm6022_vm13, %v6019_v22, %v5745_v29 }
 0x50b   :  { %v6069_v48 = vsel %vm6056_vm1, %v6052_v11, %v5871_v47 }
 0x50d   :  { %v5557_v54 = vpop.permute.xlu0 %5556 }
 0x50e   :  { %v5683_v43 = vpop.permute.xlu1 %5682  ;;  %v5989_v55 = vsel %vm4744_vm12, %v5973_v45, %v5557_v54  ;;  %vm11866_vm12 = vcmask 1047559  }
 0x50f   :  { %v6020_v25 = vsel %vm4812_vm14, %v6004_v53, %v5683_v43  ;;  %v11342_v9 = vpop.f32.mrf.mxu1 }
 0x510   :  { %v6329_v5 = vmul.f32 %v11342_v9, %v11342_v9  ;;  %v6285_v13 = vsel %vm4710_vm10, %v11342_v9, 0.0 }
 0x511   :  { %v5809_v16 = vpop.permute.xlu0 %5808  ;;  %v11344_v39 = vpop.f32.mrf.mxu1 }
 0x512   :  { %v5935_v24 = vpop.permute.xlu1 %5934  ;;  %v6053_v32 = vsel %vm6039_vm9, %v6036_v31, %v5809_v16  ;;  %v6328_v33 = vmul.f32 %v11344_v39, %v11344_v39  ;;  %v6284_v15 = vsel %vm4710_vm10, %v11344_v39, 0.0  ;;  %v6345_v47 = vsel %vm4710_vm10, %v6329_v5, 0.0 }
 0x513   :  { %v6086_v38 = vsel %vm6073_vm2, %v6069_v48, %v5935_v24  ;;  %v6286_v29 = vadd.f32 %v6285_v13, %v6284_v15  ;;  %v11391_v15 = vld [vmem:[%s11776_s5] sm:$0x1] }
 0x514   :  { %7565 = vmatprep.mubr.msk.f32.mxu1 %vm6090_vm0, %v6086_v38  ;;  %v6344_v56 = vsel %vm4710_vm10, %v6328_v33, 0.0 }
 0x515   :  { %v5621_v35 = vpop.permute.xlu0 %5620  ;;  %v6346_v58 = vadd.f32 %v6345_v47, %v6344_v56 }
 0x516   :  { %v5747_v60 = vpop.permute.xlu1 %5746  ;;  %v6005_v36 = vsel %vm11858_vm11, %v5989_v55, %v5621_v35 }
 0x517   :  { %v6037_v41 = vsel %vm6022_vm13, %v6020_v25, %v5747_v60 }
 0x519   :  { %v5873_v19 = vpop.permute.xlu0 %5872 }
 0x51a   :  { %v5749_v63 = vpop.permute.xlu1 %5748  ;;  %v6070_v57 = vsel %vm6056_vm1, %v6053_v32, %v5873_v19 }
 0x51d   :  { %v5685_v1 = vpop.permute.xlu0 %5684 }
 0x51e   :  { %v5813_v59 = vpop.permute.xlu1 %5812  ;;  %v6021_v30 = vsel %vm4812_vm14, %v6005_v36, %v5685_v1 }
 0x51f   :  { %v6038_v37 = vsel %vm6022_vm13, %v6021_v30, %v5749_v63 }
 0x520   :  { %v6055_v52 = vsel %vm6039_vm9, %v6038_v37, %v5813_v59 }
 0x521   :  { %v5937_v17 = vpop.permute.xlu0 %5936 }
 0x522   :  { %v6087_v27 = vsel %vm6073_vm2, %v6070_v57, %v5937_v17  ;;  %v5877_v6 = vpop.permute.xlu1 %5876 }
 0x523   :  { %7566 = vmatmul.mubr.msk.f32.gmra.mxu1 %vm6090_vm0, %v6087_v27  ;;  %v6072_v8 = vsel %vm6056_vm1, %v6055_v52, %v5877_v6 }
 0x525   :  { %v5811_v34 = vpop.permute.xlu0 %5810 }
 0x526   :  { %v6054_v26 = vsel %vm6039_vm9, %v6037_v41, %v5811_v34  ;;  %v5941_v21 = vpop.permute.xlu1 %5940 }
 0x527   :  { %v6089_v46 = vsel %vm6073_vm2, %v6072_v8, %v5941_v21 }
 0x529   :  { %v5875_v51 = vpop.permute.xlu0 %5874 }
 0x52a   :  { %v6071_v44 = vsel %vm6056_vm1, %v6054_v26, %v5875_v51 }
 0x52d   :  { %v5939_v0 = vpop.permute.xlu0 %5938 }
 0x52e   :  { %v6088_v49 = vsel %vm6073_vm2, %v6071_v44, %v5939_v0 }
 0x52f   :  { %7568 = vmatprep.mubr.msk.f32.mxu1 %vm6090_vm0, %v6088_v49  ;;  %v11346_v28 = vpop.f32.mrf.mxu1 }
 0x530   :  { %7569 = vmatmul.mubr.msk.f32.gmra.mxu1 %vm6090_vm0, %v6089_v46  ;;  %v6331_v54 = vmul.f32 %v11346_v28, %v11346_v28  ;;  %v6289_v16 = vsel %vm4710_vm10, %v11346_v28, 0.0 }
 0x531   :  { %v11348_v42 = vpop.f32.mrf.mxu1 }
 0x532   :  { %v6330_v10 = vmul.f32 %v11348_v42, %v11348_v42  ;;  %v6287_v7 = vsel %vm4710_vm10, %v11348_v42, 0.0  ;;  %v6349_v24 = vsel %vm4710_vm10, %v6331_v54, 0.0 }
 0x533   :  { %v6288_v3 = vadd.f32 %v6287_v7, %v6286_v29 }
 0x534   :  { %v6347_v20 = vsel %vm4710_vm10, %v6330_v10, 0.0 }
 0x535   :  { %v6348_v12 = vadd.f32 %v6347_v20, %v6346_v58  ;;  %v6290_v48 = vadd.f32 %v6289_v16, %v6288_v3  ;;  %v11401_v58 = vld [vmem:[%s11777_s6] ss:$0 sm:$0xff] }
 0x537   :  { %v6350_v60 = vadd.f32 %v6349_v24, %v6348_v12 }
 0x54f   :  { %v11358_v14 = vpop.f32.mrf.mxu1 }
 0x550   :  { %v6333_v61 = vmul.f32 %v11358_v14, %v11358_v14  ;;  %v6293_v63 = vsel %vm4710_vm10, %v11358_v14, 0.0 }
 0x551   :  { %v11365_v62 = vpop.f32.mrf.mxu1 }
 0x552   :  { %v6332_v43 = vmul.f32 %v11365_v62, %v11365_v62  ;;  %v6291_v11 = vsel %vm4710_vm10, %v11365_v62, 0.0  ;;  %v6353_v1 = vsel %vm4710_vm10, %v6333_v61, 0.0 }
 0x553   :  { %v6292_v35 = vadd.f32 %v6291_v11, %v6290_v48 }
 0x554   :  { %v6351_v38 = vsel %vm4710_vm10, %v6332_v43, 0.0 }
 0x555   :  { %v6352_v19 = vadd.f32 %v6351_v38, %v6350_v60  ;;  %v6294_v22 = vadd.f32 %v6293_v63, %v6292_v35 }
 0x557   :  { %v6354_v17 = vadd.f32 %v6353_v1, %v6352_v19 }
 0x55c   :  { %v7558_v23 = vpop.f32.mrf.mxu1 }
 0x55d   :  { %v6335_v59 = vmul.f32 %v7558_v23, %v7558_v23  ;;  %v6297_v27 = vsel %vm4710_vm10, %v7558_v23, 0.0 }
 0x55e   :  { %v6235_v18 = vpop.f32.mrf.mxu1 }
 0x55f   :  { %v6295_v31 = vsel %vm4710_vm10, %v6235_v18, 0.0  ;;  %v6334_v32 = vmul.f32 %v6235_v18, %v6235_v18  ;;  %v6357_v53 = vsel %vm4710_vm10, %v6335_v59, 0.0 }
 0x560   :  { %v6296_v57 = vadd.f32 %v6295_v31, %v6294_v22 }
 0x561   :  { %v6355_v50 = vsel %vm4710_vm10, %v6334_v32, 0.0 }
 0x562   :  { %v6298_v4 = vadd.f32 %v6297_v27, %v6296_v57  ;;  %v6356_v6 = vadd.f32 %v6355_v50, %v6354_v17 }
 0x564   :  { %v6299_v34 = vrot.slane %v6298_v4, 4  ;;  %v6358_v45 = vadd.f32 %v6357_v53, %v6356_v6 }
 0x566   :  { %v6300_v25 = vadd.f32 %v6299_v34, %v6298_v4  ;;  %v6359_v55 = vrot.slane %v6358_v45, 4 }
 0x568   :  { %v6301_v41 = vrot.slane %v6300_v25, 2  ;;  %v6360_v36 = vadd.f32 %v6359_v55, %v6358_v45 }
 0x56a   :  { %v6302_v30 = vadd.f32 %v6301_v41, %v6300_v25  ;;  %v6361_v51 = vrot.slane %v6360_v36, 2 }
 0x56c   :  { %v6303_v26 = vrot.slane %v6302_v30, 1  ;;  %v6362_v37 = vadd.f32 %v6361_v51, %v6360_v36 }
 0x56e   :  { %v6304_v21 = vadd.f32 %v6303_v26, %v6302_v30  ;;  %v6363_v52 = vrot.slane %v6362_v37, 1 }
 0x570   :  { %v6326_v8 = vmul.f32 0.015625, %v6304_v21  ;;  %v6364_v44 = vadd.f32 %v6363_v52, %v6362_v37 }
 0x572   :  { %v6386_v0 = vmul.f32 0.015625, %v6364_v44  ;;  %v6388_v46 = vmul.f32 %v6326_v8, %v6326_v8  ;;  %v6406_v56 = vsub.f32 %v6235_v18, %v6326_v8  ;;  %v6400_v29 = vsub.f32 %v11344_v39, %v6326_v8 }
 0x573   :  { %v6401_v47 = vsub.f32 %v11342_v9, %v6326_v8  ;;  %v6402_v20 = vsub.f32 %v11348_v42, %v6326_v8  ;;  %v6403_v3 = vsub.f32 %v11346_v28, %v6326_v8  ;;  %v6404_v54 = vsub.f32 %v11365_v62, %v6326_v8 }
 0x574   :  { %v6390_v49 = vsub.f32 %v6386_v0, %v6388_v46  ;;  %v6405_v43 = vsub.f32 %v11358_v14, %v6326_v8  ;;  %v6407_v12 = vsub.f32 %v7558_v23, %v6326_v8 }
 0x576   :  { %v6392_v33 = vmax.f32 %v6390_v49, 0.0 }
 0x578   :  { %v6394_v5 = vadd.f32 1e-05, %v6392_v33 }
 0x57a   :  { %7674 = vrsqrt.f32 %v6394_v5 }
 0x587   :  { %v7675_v10 = vpop.eup %7674 }
 0x588   :  { %v6398_v13 = vmul.f32 %v7675_v10, %v11391_v15 }
 0x58a   :  { %v6419_v7 = vrot.slane %v6398_v13, %v10756_v40 }
 0x58c   :  { %v6430_v16 = vmul.f32 %v6419_v7, %v6406_v56  ;;  %v6424_v11 = vmul.f32 %v6419_v7, %v6400_v29  ;;  %v6425_v48 = vmul.f32 %v6419_v7, %v6401_v47  ;;  %v6426_v39 = vmul.f32 %v6419_v7, %v6402_v20 }
 0x58d   :  { %v6427_v24 = vmul.f32 %v6419_v7, %v6403_v3  ;;  %v6428_v9 = vmul.f32 %v6419_v7, %v6404_v54  ;;  %v6429_v38 = vmul.f32 %v6419_v7, %v6405_v43  ;;  %v6431_v42 = vmul.f32 %v6419_v7, %v6407_v12 }
 0x58e   :  { %v11407_v35 = vadd.f32 %v11401_v58, %v6430_v16  ;;  %v11410_v60 = vadd.f32 %v11401_v58, %v6424_v11  ;;  %v11413_v28 = vadd.f32 %v11401_v58, %v6425_v48  ;;  %v11416_v14 = vadd.f32 %v11401_v58, %v6426_v39 }
 0x58f   :  { %v11419_v62 = vadd.f32 %v11401_v58, %v6427_v24  ;;  %v11422_v61 = vadd.f32 %v11401_v58, %v6428_v9  ;;  %v11425_v19 = vadd.f32 %v11401_v58, %v6429_v38  ;;  %v11428_v23 = vadd.f32 %v11401_v58, %v6431_v42 }
 0x590   :  { %v11798_v63 = vmax.f32 %v11407_v35, 0.0  ;;  %v6462_v18 = vmax.f32 %v11410_v60, 0.0  ;;  %v6463_v22 = vmax.f32 %v11413_v28, 0.0  ;;  %v6464_v1 = vmax.f32 %v11416_v14, 0.0 }
 0x591   :  { %v11804_v59 = vmax.f32 %v11419_v62, 0.0  ;;  %v11802_v31 = vmax.f32 %v11422_v61, 0.0  ;;  %v11800_v32 = vmax.f32 %v11425_v19, 0.0  ;;  %v11797_v57 = vmax.f32 %v11428_v23, 0.0 }
 0x592   :  { %v11441_v17 = vsel %vm4710_vm10, %v11798_v63, 0.0  ;;  %v11446_v27 = vsel %vm4710_vm10, %v6462_v18, 0.0  ;;  %v6485_v50 = vsel %vm4710_vm10, %v6463_v22, 0.0  ;;  %v11454_v4 = vsel %vm4710_vm10, %v6464_v1, 0.0 }
 0x593   :  { %v6521_v6 = vrot.slane %v11441_v17, 4  ;;  %v6479_v53 = vrot.slane %v11446_v27, 4  ;;  %v6486_v34 = vrot.slane %v6485_v50, 4  ;;  %v6493_v45 = vrot.slane %v11454_v4, 4 }
 0x594   :  { %v11462_v25 = vsel %vm4710_vm10, %v11804_v59, 0.0  ;;  %v11467_v55 = vsel %vm4710_vm10, %v11802_v31, 0.0  ;;  %v11472_v41 = vsel %vm4710_vm10, %v11800_v32, 0.0  ;;  %v11477_v36 = vsel %vm4710_vm10, %v11797_v57, 0.0 }
 0x595   :  { %v6522_v30 = vadd.f32 %v6521_v6, %v11441_v17  ;;  %v6480_v51 = vadd.f32 %v6479_v53, %v11446_v27  ;;  %v6487_v26 = vadd.f32 %v6486_v34, %v6485_v50  ;;  %v6494_v37 = vadd.f32 %v6493_v45, %v11454_v4 }
 0x596   :  { %v6500_v21 = vrot.slane %v11462_v25, 4  ;;  %v6507_v52 = vrot.slane %v11467_v55, 4  ;;  %v6514_v8 = vrot.slane %v11472_v41, 4  ;;  %v6528_v44 = vrot.slane %v11477_v36, 4 }
 0x597   :  { %v6523_v0 = vrot.slane %v6522_v30, 2  ;;  %v6481_v46 = vrot.slane %v6480_v51, 2  ;;  %v6488_v49 = vrot.slane %v6487_v26, 2  ;;  %v6495_v33 = vrot.slane %v6494_v37, 2 }
 0x598   :  { %v6501_v5 = vadd.f32 %v6500_v21, %v11462_v25  ;;  %v6508_v10 = vadd.f32 %v6507_v52, %v11467_v55  ;;  %v6515_v13 = vadd.f32 %v6514_v8, %v11472_v41  ;;  %v6529_v56 = vadd.f32 %v6528_v44, %v11477_v36 }
 0x599   :  { %v6482_v7 = vadd.f32 %v6481_v46, %v6480_v51  ;;  %v6489_v29 = vadd.f32 %v6488_v49, %v6487_v26  ;;  %v6496_v47 = vadd.f32 %v6495_v33, %v6494_v37  ;;  %v6524_v20 = vadd.f32 %v6523_v0, %v6522_v30 }
 0x59a   :  { %v6502_v3 = vrot.slane %v6501_v5, 2  ;;  %v6509_v54 = vrot.slane %v6508_v10, 2  ;;  %v6516_v43 = vrot.slane %v6515_v13, 2  ;;  %v6530_v12 = vrot.slane %v6529_v56, 2 }
 0x59b   :  { %v6483_v16 = vrot.slane %v6482_v7, 1  ;;  %v6490_v11 = vrot.slane %v6489_v29, 1  ;;  %v6497_v48 = vrot.slane %v6496_v47, 1  ;;  %v6525_v26 = vrot.slane %v6524_v20, 1 }
 0x59c   :  { %v6503_v39 = vadd.f32 %v6502_v3, %v6501_v5  ;;  %v6510_v24 = vadd.f32 %v6509_v54, %v6508_v10  ;;  %v6517_v9 = vadd.f32 %v6516_v43, %v6515_v13  ;;  %v6531_v38 = vadd.f32 %v6530_v12, %v6529_v56 }
 0x59d   :  { %v6484_v42 = vadd.f32 %v6483_v16, %v6482_v7  ;;  %v6491_v6 = vadd.f32 %v6490_v11, %v6489_v29  ;;  %v6498_v53 = vadd.f32 %v6497_v48, %v6496_v47  ;;  %v6526_v46 = vadd.f32 %v6525_v26, %v6524_v20 }
 0x59e   :  { %v6504_v34 = vrot.slane %v6503_v39, 1  ;;  %v6511_v45 = vrot.slane %v6510_v24, 1  ;;  %v6518_v51 = vrot.slane %v6517_v9, 1  ;;  %v6532_v37 = vrot.slane %v6531_v38, 1 }
 0x59f   :  { %v6591_v30 = vmul.f32 0.125, %v6484_v42  ;;  %v6592_v21 = vmul.f32 0.125, %v6491_v6  ;;  %v6593_v0 = vmul.f32 0.125, %v6498_v53  ;;  %v6607_v56 = vadd.f32 %v6485_v50, %v11446_v27 }
 0x5a0   :  { %v6505_v52 = vadd.f32 %v6504_v34, %v6503_v39  ;;  %v6512_v8 = vadd.f32 %v6511_v45, %v6510_v24  ;;  %v6519_v44 = vadd.f32 %v6518_v51, %v6517_v9  ;;  %v6533_v49 = vadd.f32 %v6532_v37, %v6531_v38 }
 0x5a1   :  { %v6647_v5 = vsel %vm3878_vm3, %v6592_v21, %v6591_v30  ;;  %v6597_v47 = vmul.f32 0.125, %v6526_v46  ;;  %v6608_v54 = vadd.f32 %v6607_v56, %v11454_v4  ;;  %v11510_v4 = vld [vmem:[%s11778_s7] sm:$0xff] }
 0x5a2   :  { %v6594_v33 = vmul.f32 0.125, %v6505_v52  ;;  %v6595_v10 = vmul.f32 0.125, %v6512_v8  ;;  %v6648_v13 = vsel %vm3880_vm4, %v6593_v0, %v6647_v5  ;;  %v6596_v7 = vmul.f32 0.125, %v6519_v44  ;;  %7571 = vmatprep.subr.mxu0 %v11510_v4 }
 0x5a3   :  { %v6598_v43 = vmul.f32 0.125, %v6533_v49  ;;  %v6609_v16 = vadd.f32 %v6608_v54, %v11462_v25  ;;  %7572 = vmatpush3.msra.mxu0 %v11510_v4  ;;  %v11515_v25 = vpop.f32.mrf.mxu1 }
 0x5a4   :  { %v6649_v29 = vsel %vm3882_vm5, %v6594_v33, %v6648_v13  ;;  %7576 = vmatprep.subr.mxu0 %v11510_v4  ;;  %v6337_v24 = vmul.f32 %v11515_v25, %v11515_v25  ;;  %v6306_v6 = vsel %vm4710_vm10, %v11515_v25, 0.0 }
 0x5a5   :  { %v6650_v3 = vsel %vm3884_vm6, %v6595_v10, %v6649_v29  ;;  %v6610_v27 = vadd.f32 %v6609_v16, %v11467_v55  ;;  %v11517_v55 = vpop.f32.mrf.mxu1 }
 0x5a6   :  { %v6651_v20 = vsel %vm3886_vm7, %v6596_v7, %v6650_v3  ;;  %v6305_v9 = vsel %vm4710_vm10, %v11517_v55, 0.0  ;;  %v6366_v26 = vsel %vm4710_vm10, %v6337_v24, 0.0 }
 0x5a7   :  { %v6652_v12 = vsel %vm3888_vm8, %v6597_v47, %v6651_v20  ;;  %v6611_v50 = vadd.f32 %v6610_v27, %v11472_v41  ;;  %v6307_v45 = vadd.f32 %v6306_v6, %v6305_v9 }
 0x5a8   :  { %v6653_v11 = vsel %vm11866_vm12, %v6598_v43, %v6652_v12 }
 0x5a9   :  { %7573 = vmatprep.mubr.msk.f32.mxu0 %vm4710_vm10, %v6653_v11  ;;  %v6612_v48 = vadd.f32 %v6611_v50, %v11441_v17 }
 0x5ab   :  { %v11505_v39 = vadd.f32 %v6612_v48, %v11477_v36  ;;  %v6336_v36 = vmul.f32 %v11517_v55, %v11517_v55 }
 0x5ad   :  { %v6365_v53 = vsel %vm4710_vm10, %v6336_v36, 0.0 }
 0x5ae   :  { %v6367_v30 = vadd.f32 %v6366_v26, %v6365_v53 }
 0x5bc   :  { %v11519_v41 = vpop.f32.mrf.mxu1 }
 0x5bd   :  { %v6339_v52 = vmul.f32 %v11519_v41, %v11519_v41  ;;  %v6310_v0 = vsel %vm4710_vm10, %v11519_v41, 0.0 }
 0x5be   :  { %v11521_v17 = vpop.f32.mrf.mxu1 }
 0x5bf   :  { %v6338_v38 = vmul.f32 %v11521_v17, %v11521_v17  ;;  %v6308_v34 = vsel %vm4710_vm10, %v11521_v17, 0.0  ;;  %v6370_v33 = vsel %vm4710_vm10, %v6339_v52, 0.0 }
 0x5c0   :  { %v6309_v21 = vadd.f32 %v6308_v34, %v6307_v45 }
 0x5c1   :  { %v6368_v37 = vsel %vm4710_vm10, %v6338_v38, 0.0 }
 0x5c2   :  { %v6369_v44 = vadd.f32 %v6368_v37, %v6367_v30  ;;  %v6311_v49 = vadd.f32 %v6310_v0, %v6309_v21 }
 0x5c4   :  { %v6371_v13 = vadd.f32 %v6370_v33, %v6369_v44 }
 0x5e3   :  { %v11531_v42 = vpop.f32.mrf.mxu1 }
 0x5e4   :  { %v6341_v56 = vmul.f32 %v11531_v42, %v11531_v42  ;;  %v6314_v47 = vsel %vm4710_vm10, %v11531_v42, 0.0 }
 0x5e5   :  { %v11538_v51 = vpop.f32.mrf.mxu1 }
 0x5e6   :  { %v6340_v8 = vmul.f32 %v11538_v51, %v11538_v51  ;;  %v6312_v46 = vsel %vm4710_vm10, %v11538_v51, 0.0  ;;  %v6374_v43 = vsel %vm4710_vm10, %v6341_v56, 0.0 }
 0x5e7   :  { %v6313_v10 = vadd.f32 %v6312_v46, %v6311_v49 }
 0x5e8   :  { %v6372_v5 = vsel %vm4710_vm10, %v6340_v8, 0.0 }
 0x5e9   :  { %v6373_v7 = vadd.f32 %v6372_v5, %v6371_v13  ;;  %v6315_v54 = vadd.f32 %v6314_v47, %v6313_v10 }
 0x5eb   :  { %v6375_v27 = vadd.f32 %v6374_v43, %v6373_v7 }
 0x5f0   :  { %v11554_v29 = vpop.f32.mrf.mxu1 }
 0x5f1   :  { %v6343_v20 = vmul.f32 %v11554_v29, %v11554_v29  ;;  %v6318_v50 = vsel %vm4710_vm10, %v11554_v29, 0.0 }
 0x5f2   :  { %v6275_v3 = vpop.f32.mrf.mxu1 }
 0x5f3   :  { %v6316_v12 = vsel %vm4710_vm10, %v6275_v3, 0.0  ;;  %v6342_v16 = vmul.f32 %v6275_v3, %v6275_v3  ;;  %v6378_v9 = vsel %vm4710_vm10, %v6343_v20, 0.0 }
 0x5f4   :  { %v6317_v11 = vadd.f32 %v6316_v12, %v6315_v54 }
 0x5f5   :  { %v6376_v48 = vsel %vm4710_vm10, %v6342_v16, 0.0 }
 0x5f6   :  { %v6319_v36 = vadd.f32 %v6318_v50, %v6317_v11  ;;  %v6377_v24 = vadd.f32 %v6376_v48, %v6375_v27 }
 0x5f8   :  { %v6320_v38 = vrot.slane %v6319_v36, 4  ;;  %v6379_v6 = vadd.f32 %v6378_v9, %v6377_v24 }
 0x5fa   :  { %v6321_v53 = vadd.f32 %v6320_v38, %v6319_v36  ;;  %v6380_v34 = vrot.slane %v6379_v6, 4 }
 0x5fc   :  { %v6322_v45 = vrot.slane %v6321_v53, 2  ;;  %v6381_v26 = vadd.f32 %v6380_v34, %v6379_v6 }
 0x5fe   :  { %v6323_v37 = vadd.f32 %v6322_v45, %v6321_v53  ;;  %v6382_v30 = vrot.slane %v6381_v26, 2 }
 0x600   :  { %v6324_v21 = vrot.slane %v6323_v37, 1  ;;  %v6383_v52 = vadd.f32 %v6382_v30, %v6381_v26 }
 0x602   :  { %v6325_v8 = vadd.f32 %v6324_v21, %v6323_v37  ;;  %v6384_v44 = vrot.slane %v6383_v52, 1 }
 0x604   :  { %v6327_v0 = vmul.f32 0.015625, %v6325_v8  ;;  %v6385_v46 = vadd.f32 %v6384_v44, %v6383_v52 }
 0x606   :  { %v6387_v49 = vmul.f32 0.015625, %v6385_v46  ;;  %v6389_v33 = vmul.f32 %v6327_v0, %v6327_v0  ;;  %v6408_v47 = vsub.f32 %v11517_v55, %v6327_v0  ;;  %v6409_v54 = vsub.f32 %v11515_v25, %v6327_v0 }
 0x607   :  { %v6410_v43 = vsub.f32 %v11521_v17, %v6327_v0  ;;  %v6411_v20 = vsub.f32 %v11519_v41, %v6327_v0  ;;  %v6412_v16 = vsub.f32 %v11538_v51, %v6327_v0  ;;  %v6413_v11 = vsub.f32 %v11531_v42, %v6327_v0 }
 0x608   :  { %v6391_v5 = vsub.f32 %v6387_v49, %v6389_v33  ;;  %v6414_v27 = vsub.f32 %v6275_v3, %v6327_v0  ;;  %v6415_v6 = vsub.f32 %v11554_v29, %v6327_v0 }
 0x60a   :  { %v6393_v10 = vmax.f32 %v6391_v5, 0.0 }
 0x60c   :  { %v6395_v13 = vadd.f32 1e-05, %v6393_v10 }
 0x60e   :  { %7676 = vrsqrt.f32 %v6395_v13 }
 0x61b   :  { %v7677_v56 = vpop.eup %7676 }
 0x61c   :  { %v6399_v7 = vmul.f32 %v7677_v56, %v11391_v15 }
 0x61e   :  { %v6423_v12 = vrot.slane %v6399_v7, %v10756_v40 }
 0x620   :  { %v6432_v50 = vmul.f32 %v6423_v12, %v6408_v47  ;;  %v6433_v48 = vmul.f32 %v6423_v12, %v6409_v54  ;;  %v6434_v36 = vmul.f32 %v6423_v12, %v6410_v43  ;;  %v6435_v24 = vmul.f32 %v6423_v12, %v6411_v20 }
 0x621   :  { %v6436_v15 = vmul.f32 %v6423_v12, %v6412_v16  ;;  %v6437_v9 = vmul.f32 %v6423_v12, %v6413_v11  ;;  %v6438_v55 = vmul.f32 %v6423_v12, %v6414_v27  ;;  %v6439_v52 = vmul.f32 %v6423_v12, %v6415_v6 }
 0x622   :  { %v11575_v25 = vadd.f32 %v11401_v58, %v6432_v50  ;;  %v11578_v17 = vadd.f32 %v11401_v58, %v6433_v48  ;;  %v11581_v41 = vadd.f32 %v11401_v58, %v6434_v36  ;;  %v11584_v51 = vadd.f32 %v11401_v58, %v6435_v24 }
 0x623   :  { %v11587_v42 = vadd.f32 %v11401_v58, %v6436_v15  ;;  %v11590_v3 = vadd.f32 %v11401_v58, %v6437_v9  ;;  %v11593_v38 = vadd.f32 %v11401_v58, %v6438_v55  ;;  %v11628_v27 = vadd.f32 %v11401_v58, %v6439_v52 }
 0x624   :  { %v6470_v53 = vmax.f32 %v11575_v25, 0.0  ;;  %v6471_v34 = vmax.f32 %v11578_v17, 0.0  ;;  %v6472_v45 = vmax.f32 %v11581_v41, 0.0  ;;  %v6473_v26 = vmax.f32 %v11584_v51, 0.0 }
 0x625   :  { %v11803_v37 = vmax.f32 %v11587_v42, 0.0  ;;  %v11801_v30 = vmax.f32 %v11590_v3, 0.0  ;;  %v11799_v21 = vmax.f32 %v11593_v38, 0.0  ;;  %v6477_v63 = vmax.f32 %v11628_v27, 0.0 }
 0x626   :  { %v6534_v8 = vsel %vm4710_vm10, %v6470_v53, 0.0  ;;  %v6541_v29 = vsel %vm4710_vm10, %v6471_v34, 0.0  ;;  %v6548_v44 = vsel %vm4710_vm10, %v6472_v45, 0.0  ;;  %v6555_v0 = vsel %vm4710_vm10, %v6473_v26, 0.0 }
 0x627   :  { %v6535_v46 = vrot.slane %v6534_v8, 4  ;;  %v6542_v49 = vrot.slane %v6541_v29, 4  ;;  %v6549_v33 = vrot.slane %v6548_v44, 4  ;;  %v6556_v5 = vrot.slane %v6555_v0, 4 }
 0x628   :  { %v6562_v10 = vsel %vm4710_vm10, %v11803_v37, 0.0  ;;  %v6569_v13 = vsel %vm4710_vm10, %v11801_v30, 0.0  ;;  %v11624_v56 = vsel %vm4710_vm10, %v11799_v21, 0.0  ;;  %v6614_v7 = vadd.f32 %v6541_v29, %v6534_v8 }
 0x629   :  { %v6536_v47 = vadd.f32 %v6535_v46, %v6534_v8  ;;  %v6543_v54 = vadd.f32 %v6542_v49, %v6541_v29  ;;  %v6550_v43 = vadd.f32 %v6549_v33, %v6548_v44  ;;  %v6557_v20 = vadd.f32 %v6556_v5, %v6555_v0 }
 0x62a   :  { %v6563_v12 = vrot.slane %v6562_v10, 4  ;;  %v6570_v16 = vrot.slane %v6569_v13, 4  ;;  %v6577_v11 = vrot.slane %v11624_v56, 4  ;;  %v6615_v6 = vadd.f32 %v6614_v7, %v6548_v44 }
 0x62b   :  { %v6537_v50 = vrot.slane %v6536_v47, 2  ;;  %v6544_v48 = vrot.slane %v6543_v54, 2  ;;  %v6551_v36 = vrot.slane %v6550_v43, 2  ;;  %v6558_v24 = vrot.slane %v6557_v20, 2 }
 0x62c   :  { %v6564_v15 = vadd.f32 %v6563_v12, %v6562_v10  ;;  %v6571_v9 = vadd.f32 %v6570_v16, %v6569_v13  ;;  %v6578_v55 = vadd.f32 %v6577_v11, %v11624_v56  ;;  %v6616_v30 = vadd.f32 %v6615_v6, %v6555_v0 }
 0x62d   :  { %v6538_v8 = vadd.f32 %v6537_v50, %v6536_v47  ;;  %v6545_v29 = vadd.f32 %v6544_v48, %v6543_v54  ;;  %v6552_v46 = vadd.f32 %v6551_v36, %v6550_v43  ;;  %v6559_v49 = vadd.f32 %v6558_v24, %v6557_v20 }
 0x62e   :  { %v6565_v33 = vrot.slane %v6564_v15, 2  ;;  %v6572_v5 = vrot.slane %v6571_v9, 2  ;;  %v6579_v57 = vrot.slane %v6578_v55, 2  ;;  %v6583_v43 = vsel %vm4710_vm10, %v6477_v63, 0.0 }
 0x62f   :  { %v6539_v58 = vrot.slane %v6538_v8, 1  ;;  %v6546_v52 = vrot.slane %v6545_v29, 1  ;;  %v6553_v21 = vrot.slane %v6552_v46, 1  ;;  %v6560_v32 = vrot.slane %v6559_v49, 1 }
 0x630   :  { %v6566_v31 = vadd.f32 %v6565_v33, %v6564_v15  ;;  %v6573_v12 = vadd.f32 %v6572_v5, %v6571_v9  ;;  %v6580_v16 = vadd.f32 %v6579_v57, %v6578_v55  ;;  %v6584_v24 = vrot.slane %v6583_v43, 4 }
 0x631   :  { %v6540_v37 = vadd.f32 %v6539_v58, %v6538_v8  ;;  %v6547_v11 = vadd.f32 %v6546_v52, %v6545_v29  ;;  %v6554_v44 = vadd.f32 %v6553_v21, %v6552_v46  ;;  %v6561_v7 = vadd.f32 %v6560_v32, %v6559_v49 }
 0x632   :  { %v6567_v47 = vrot.slane %v6566_v31, 1  ;;  %v6574_v54 = vrot.slane %v6573_v12, 1  ;;  %v6581_v59 = vrot.slane %v6580_v16, 1  ;;  %v6617_v0 = vadd.f32 %v6616_v30, %v6562_v10 }
 0x633   :  { %v6599_v20 = vmul.f32 0.125, %v6540_v37  ;;  %v6600_v50 = vmul.f32 0.125, %v6547_v11  ;;  %v6601_v48 = vmul.f32 0.125, %v6554_v44  ;;  %v6585_v9 = vadd.f32 %v6584_v24, %v6583_v43 }
 0x634   :  { %v6568_v36 = vadd.f32 %v6567_v47, %v6566_v31  ;;  %v6575_v57 = vadd.f32 %v6574_v54, %v6573_v12  ;;  %v6602_v55 = vmul.f32 0.125, %v6561_v7  ;;  %v6618_v29 = vadd.f32 %v6617_v0, %v6569_v13 }
 0x635   :  { %v6654_v15 = vsel %vm3878_vm3, %v6600_v50, %v6599_v20  ;;  %v6586_v6 = vrot.slane %v6585_v9, 2  ;;  %v6582_v46 = vadd.f32 %v6581_v59, %v6580_v16  ;;  %vm11867_vm3 = vmmov %vm11866_vm12  ;;  %v6621_v13 = vmul.f32 0.125, %v11505_v39  ;;  %v6900_v16 = vld [vmem:[%s11780_s11] sm:$0xff] }
 0x636   :  { %v6603_v21 = vmul.f32 0.125, %v6568_v36  ;;  %v6655_v32 = vsel %vm3880_vm4, %v6601_v48, %v6654_v15  ;;  %v6604_v31 = vmul.f32 0.125, %v6575_v57  ;;  %v6619_v10 = vadd.f32 %v6618_v29, %v11624_v56  ;;  %v7001_v56 = vld [vmem:[%s11779_s13] sm:$0xff] }
 0x637   :  { %v6656_v8 = vsel %vm3882_vm5, %v6602_v55, %v6655_v32  ;;  %v6587_v49 = vadd.f32 %v6586_v6, %v6585_v9  ;;  %v6605_v5 = vmul.f32 0.125, %v6582_v46  ;;  %7586 = vmatprep.subr.mxu1 %v7001_v56  ;;  %v7420_v39 = vld [vmem:[%s11781_s8] ss:$0 sm:$0xff] }
 0x638   :  { %v6657_v37 = vsel %vm3884_vm6, %v6603_v21, %v6656_v8  ;;  %v6620_v11 = vadd.f32 %v6619_v10, %v6583_v43  ;;  %7587 = vmatpush3.msra.mxu1 %v7001_v56 }
 0x639   :  { %v6588_v33 = vrot.slane %v6587_v49, 1  ;;  %v6658_v30 = vsel %vm3886_vm7, %v6604_v31, %v6657_v37 }
 0x63a   :  { %v6659_v52 = vsel %vm3888_vm8, %v6605_v5, %v6658_v30  ;;  %v6622_v59 = vmul.f32 0.125, %v6620_v11 }
 0x63b   :  { %v6589_v58 = vadd.f32 %v6588_v33, %v6587_v49 }
 0x63d   :  { %v6606_v12 = vmul.f32 0.125, %v6589_v58 }
 0x63f   :  { %v6660_v44 = vsel %vm11867_vm3, %v6606_v12, %v6659_v52 }
 0x640   :  { %7574 = vmatmul.mubr.msk.f32.vlgmr.msra.gmra.mxu0 %vm4710_vm10, %v6660_v44 }
 0x641   :  { %7577 = vmatpush3.msra.mxu0 %v11510_v4  ;;  %7578 = vmatprep.mubr.msk.f32.mxu0 %vm4710_vm10, %v6621_v13 }
 0x642   :  { %7581 = vmatprep.subr.mxu0 %v6900_v16 }
 0x644   :  { %7579 = vmatmul.mubr.msk.f32.vlgmr.msra.gmra.mxu0 %vm4710_vm10, %v6622_v59 }
 0x645   :  { %7582 = vmatpush3.msra.mxu0 %v6900_v16 }
 0x700   :  { %v7575_v4 = vpop.f32.mrf.mxu0 }
 0x701   :  { %v11657_v7 = vadd.f32 %v7575_v4, %v7420_v39 }
 0x702   :  { %v6731_v47 = vpop.f32.mrf.mxu0 }
 0x703   :  { %v6841_v54 = vmul.f32 %v11657_v7, %v11657_v7  ;;  %v11661_v43 = vadd.f32 %v7420_v39, %v6731_v47  ;;  %v6822_v50 = vsel %vm4710_vm10, %v11657_v7, 0.0 }
 0x704   :  { %v7580_v20 = vpop.f32.mrf.mxu0 }
 0x705   :  { %v6821_v48 = vsel %vm4710_vm10, %v11661_v43, 0.0  ;;  %v6840_v36 = vmul.f32 %v11661_v43, %v11661_v43  ;;  %v6818_v24 = vadd.f32 %v7580_v20, %v7420_v39  ;;  %v6843_v57 = vsel %vm4710_vm10, %v6841_v54, 0.0 }
 0x706   :  { %v6823_v0 = vadd.f32 %v6822_v50, %v6821_v48  ;;  %v6812_v15 = vpop.f32.mrf.mxu0 }
 0x707   :  { %v6842_v9 = vsel %vm4710_vm10, %v6840_v36, 0.0  ;;  %v6852_v55 = vmul.f32 %v6818_v24, %v6818_v24  ;;  %v6813_v21 = vadd.f32 %v7420_v39, %v6812_v15  ;;  %v6831_v8 = vsel %vm4710_vm10, %v6818_v24, 0.0 }
 0x708   :  { %v6824_v32 = vrot.slane %v6823_v0, 4  ;;  %v6844_v6 = vadd.f32 %v6843_v57, %v6842_v9 }
 0x709   :  { %v6830_v29 = vsel %vm4710_vm10, %v6813_v21, 0.0  ;;  %v6851_v46 = vmul.f32 %v6813_v21, %v6813_v21  ;;  %v6854_v33 = vsel %vm4710_vm10, %v6852_v55, 0.0 }
 0x70a   :  { %v6825_v37 = vadd.f32 %v6824_v32, %v6823_v0  ;;  %v6845_v49 = vrot.slane %v6844_v6, 4  ;;  %v6832_v31 = vadd.f32 %v6831_v8, %v6830_v29 }
 0x70b   :  { %v6853_v30 = vsel %vm4710_vm10, %v6851_v46, 0.0 }
 0x70c   :  { %v6826_v10 = vrot.slane %v6825_v37, 2  ;;  %v6846_v5 = vadd.f32 %v6845_v49, %v6844_v6  ;;  %v6833_v58 = vrot.slane %v6832_v31, 4  ;;  %v6855_v52 = vadd.f32 %v6854_v33, %v6853_v30  ;;  %v6871_v49 = vld [vmem:[%s11782_s9] sm:$0x1] }
 0x70e   :  { %v6827_v12 = vadd.f32 %v6826_v10, %v6825_v37  ;;  %v6847_v11 = vrot.slane %v6846_v5, 2  ;;  %v6834_v44 = vadd.f32 %v6833_v58, %v6832_v31  ;;  %v6856_v13 = vrot.slane %v6855_v52, 4 }
 0x710   :  { %v6848_v59 = vadd.f32 %v6847_v11, %v6846_v5  ;;  %v6835_v56 = vrot.slane %v6834_v44, 2  ;;  %v6857_v16 = vadd.f32 %v6856_v13, %v6855_v52  ;;  %v6828_v39 = vrot.slane %v6827_v12, 1 }
 0x712   :  { %v6836_v4 = vadd.f32 %v6835_v56, %v6834_v44  ;;  %v6858_v47 = vrot.slane %v6857_v16, 2  ;;  %v6849_v54 = vrot.slane %v6848_v59, 1  ;;  %v6829_v48 = vadd.f32 %v6828_v39, %v6827_v12  ;;  %v7425_v12 = vld [vmem:[%s11783_s10] ss:$0 sm:$0xff] }
 0x714   :  { %v6837_v20 = vrot.slane %v6836_v4, 1  ;;  %v6859_v50 = vadd.f32 %v6858_v47, %v6857_v16  ;;  %v6850_v15 = vadd.f32 %v6849_v54, %v6848_v59 }
 0x716   :  { %v6838_v36 = vadd.f32 %v6837_v20, %v6836_v4  ;;  %v6860_v0 = vrot.slane %v6859_v50, 1 }
 0x718   :  { %v6839_v57 = vadd.f32 %v6838_v36, %v6829_v48  ;;  %v6861_v9 = vadd.f32 %v6860_v0, %v6859_v50 }
 0x71a   :  { %v6862_v55 = vadd.f32 %v6861_v9, %v6850_v15  ;;  %v6864_v32 = vmul.f32 0.03125, %v6839_v57 }
 0x71c   :  { %v6865_v6 = vmul.f32 0.03125, %v6862_v55  ;;  %v6866_v8 = vmul.f32 %v6864_v32, %v6864_v32  ;;  %v6892_v30 = vsub.f32 %v6813_v21, %v6864_v32  ;;  %v6873_v5 = vsub.f32 %v11661_v43, %v6864_v32  ;;  %v7431_v43 = vld [vmem:[%s11785_s14] ss:$0 sm:$0xff] }
 0x71d   :  { %v6893_v58 = vsub.f32 %v6818_v24, %v6864_v32  ;;  %v6874_v52 = vsub.f32 %v11657_v7, %v6864_v32  ;;  %v7426_v7 = vld [vmem:[%s11784_s12] ss:$0 sm:$0xff] }
 0x71e   :  { %v6867_v29 = vsub.f32 %v6865_v6, %v6866_v8 }
 0x720   :  { %v6868_v46 = vmax.f32 %v6867_v29, 0.0 }
 0x722   :  { %v6869_v37 = vadd.f32 1e-05, %v6868_v46 }
 0x724   :  { %7678 = vrsqrt.f32 %v6869_v37 }
 0x731   :  { %v7679_v31 = vpop.eup %7678 }
 0x732   :  { %v6872_v33 = vmul.f32 %v7679_v31, %v6871_v49 }
 0x734   :  { %v6878_v10 = vrot.slane %v6872_v33, %v10756_v40  ;;  %v7714_v33 = vmov 1966171168  }
 0x736   :  { %v6894_v11 = vmul.f32 %v6892_v30, %v6878_v10  ;;  %v6879_v44 = vmul.f32 %v6878_v10, %v6873_v5  ;;  %v6895_v13 = vmul.f32 %v6893_v58, %v6878_v10  ;;  %v6880_v59 = vmul.f32 %v6878_v10, %v6874_v52 }
 0x737   :  { %v7106_v30 = vunpack.c.l.s4 %v7714_v33 }
 0x738   :  { %v6888_v56 = vadd.f32 %v7425_v12, %v6879_v44  ;;  %v6897_v16 = vadd.f32 %v7425_v12, %v6895_v13  ;;  %v6896_v39 = vadd.f32 %v7425_v12, %v6894_v11  ;;  %v6889_v4 = vadd.f32 %v7425_v12, %v6880_v59 }
 0x739   :  { %v7107_v52 = vunpack.c.0.s8 %v7106_v30 }
 0x73a   :  { %v6890_v21 = vmax.f32 %v6888_v56, 0.0  ;;  %v6899_v47 = vmax.f32 %v6897_v16, 0.0  ;;  %v6898_v54 = vmax.f32 %v6896_v39, 0.0  ;;  %v6891_v20 = vmax.f32 %v6889_v4, 0.0 }
 0x73b   :  { %v7110_v12 = vsub.s32 %v7107_v52, %v11856_v2 }
 0x73c   :  { %7583 = vmatprep.mubr.msk.f32.mxu0 %vm4710_vm10, %v6890_v21  ;;  %7588 = vmatprep.mubr.msk.f32.mxu1 %vm4710_vm10, %v6898_v54 }
 0x73d   :  { %7584 = vmatmul.mubr.msk.f32.vlgmr.msra.gmra.mxu0 %vm4710_vm10, %v6891_v20  ;;  %7589 = vmatmul.mubr.msk.f32.vlgmr.msra.gmra.mxu1 %vm4710_vm10, %v6899_v47 }
 0x7fd   :  { %v7585_v24 = vpop.f32.mrf.mxu0  ;;  %v7590_v50 = vpop.f32.mrf.mxu1 }
 0x7fe   :  { %v6986_v48 = vadd.f32 %v7585_v24, %v7426_v7  ;;  %v7087_v36 = vadd.f32 %v7590_v50, %v7431_v43 }
 0x7ff   :  { %v6980_v0 = vpop.f32.mrf.mxu0  ;;  %v7081_v15 = vpop.f32.mrf.mxu1 }
 0x800   :  { %v7430_v57 = vmul.f32 -1.442695, %v6986_v48  ;;  %v6981_v9 = vadd.f32 %v7426_v7, %v6980_v0  ;;  %v7082_v55 = vadd.f32 %v7431_v43, %v7081_v15  ;;  %v7435_v32 = vmul.f32 -1.442695, %v7087_v36 }
 0x802   :  { %7680 = vpow2.f32 %v7430_v57  ;;  %v7429_v6 = vmul.f32 -1.442695, %v6981_v9  ;;  %v7434_v8 = vmul.f32 -1.442695, %v7082_v55 }
 0x804   :  { %7682 = vpow2.f32 %v7429_v6 }
 0x805   :  { %7684 = vpow2.f32 %v7435_v32 }
 0x806   :  { %7686 = vpow2.f32 %v7434_v8 }
 0x80f   :  { %v7681_v29 = vpop.eup %7680 }
 0x810   :  { %v6996_v46 = vadd.f32 1.0, %v7681_v29 }
 0x811   :  { %v7683_v37 = vpop.eup %7682 }
 0x812   :  { %7688 = vrcp.f32 %v6996_v46  ;;  %v6995_v49 = vadd.f32 1.0, %v7683_v37  ;;  %v7685_v31 = vpop.eup %7684 }
 0x813   :  { %v7687_v10 = vpop.eup %7686  ;;  %v7097_v5 = vadd.f32 1.0, %v7685_v31 }
 0x814   :  { %7690 = vrcp.f32 %v6995_v49  ;;  %v7096_v58 = vadd.f32 1.0, %v7687_v10 }
 0x815   :  { %7692 = vrcp.f32 %v7097_v5 }
 0x816   :  { %7694 = vrcp.f32 %v7096_v58 }
 0x81f   :  { %v7689_v11 = vpop.eup %7688 }
 0x820   :  { %v7160_v44 = vrot.slane %v7689_v11, %v7110_v12  ;;  %v7153_v39 = vcombine.high %v7689_v11, %v7689_v11 }
 0x821   :  { %v7691_v13 = vpop.eup %7690 }
 0x822   :  { %v7176_v59 = vrot.slane %v7160_v44, %v7110_v12  ;;  %v7111_v56 = vrot.slane %v7691_v13, %v7110_v12  ;;  %v7168_v16 = vcombine.high %v7160_v44, %v7160_v44  ;;  %v7104_v7 = vcombine.high %v7691_v13, %v7691_v13  ;;  %v11700_v48 = vpop.eup %7692 }
 0x823   :  { %v7167_v57 = vrot.slane %v7153_v39, %v7110_v12  ;;  %v11709_v32 = vpop.eup %7694  ;;  %v11869_v13 = vmax.f32 %v11587_v42, 0.0 }
 0x824   :  { %v7237_v4 = vrot.slane %v7176_v59, %v10756_v40  ;;  %v7127_v21 = vrot.slane %v7111_v56, %v7110_v12  ;;  %v7190_v47 = vrot.slane %v7168_v16, %v7110_v12  ;;  %v7119_v54 = vcombine.high %v7111_v56, %v7111_v56 }
 0x825   :  { %v7198_v20 = vcombine.high %v7176_v59, %v7176_v59  ;;  %v7118_v37 = vrot.slane %v7104_v7, %v7110_v12  ;;  %v7183_v49 = vrot.slane %v7167_v57, %v7110_v12  ;;  %v11870_v16 = vmax.f32 %v11422_v61, 0.0 }
 0x826   :  { %v7290_v43 = vmul.f32 %v7237_v4, %v6470_v53  ;;  %v7205_v24 = vrot.slane %v7127_v21, %v10756_v40  ;;  %v7241_v2 = vrot.slane %v7190_v47, %v10756_v40  ;;  %v7141_v50 = vrot.slane %v7119_v54, %v7110_v12 }
 0x827   :  { %v7245_v36 = vrot.slane %v7198_v20, %v10756_v40  ;;  %v7149_v0 = vcombine.high %v7127_v21, %v7127_v21  ;;  %v7200_v15 = vcombine.high %v7190_v47, %v7190_v47  ;;  %v7120_v30 = vcombine.high %v7118_v37, %v7118_v37 }
 0x828   :  { %v7306_v9 = vmul.f32 %v11700_v48, %v7290_v43  ;;  %v7282_v55 = vmul.f32 %v7205_v24, %v6462_v18  ;;  %v7291_v25 = vmul.f32 %v7241_v2, %v6471_v34  ;;  %v7209_v53 = vrot.slane %v7141_v50, %v10756_v40 }
 0x829   :  { %v7213_v6 = vrot.slane %v7149_v0, %v10756_v40  ;;  %v7151_v46 = vcombine.high %v7141_v50, %v7141_v50  ;;  %v7292_v18 = vmul.f32 %v7245_v36, %v6472_v45  ;;  %v7249_v17 = vrot.slane %v7200_v15, %v10756_v40 }
 0x82a   :  { %7347 = vxpose.xlu1.b32.start [1/8] (short) (narrow) %v7306_v9, 8  ;;  %v7298_v8 = vmul.f32 %v11709_v32, %v7282_v55  ;;  %v7283_v29 = vmul.f32 %v7209_v53, %v6463_v22  ;;  %v7307_v60 = vmul.f32 %v11700_v48, %v7291_v25  ;;  %v7169_v34 = vcombine.high %v7167_v57, %v7167_v57 }
 0x82b   :  { %v7284_v31 = vmul.f32 %v7213_v6, %v6464_v1  ;;  %v7217_v28 = vrot.slane %v7151_v46, %v10756_v40  ;;  %v7134_v22 = vrot.slane %v7118_v37, %v7110_v12  ;;  %v7308_v10 = vmul.f32 %v11700_v48, %v7292_v18 }
 0x82c   :  { %7314 = vxpose.xlu0.b32.start [1/8] (short) (narrow) %v7298_v8, 8  ;;  %v7299_v33 = vmul.f32 %v11709_v32, %v7283_v29  ;;  %v7293_v41 = vmul.f32 %v7249_v17, %v6473_v26  ;;  %v7253_v45 = vrot.slane %v7183_v49, %v10756_v40  ;;  %v7197_v5 = vrot.slane %v7169_v34, %v7110_v12 }
 0x82d   :  { %v7300_v14 = vmul.f32 %v11709_v32, %v7284_v31  ;;  %v11868_v1 = vmax.f32 %v11419_v62, 0.0  ;;  %v7221_v52 = vrot.slane %v7134_v22, %v10756_v40  ;;  %v7148_v11 = vrot.slane %v7120_v30, %v7110_v12 }
 0x82e   :  { %7348 = vxpose.xlu1.b32.cont [2/8] (short) (narrow) %v7307_v60, 8  ;;  %v7309_v44 = vmul.f32 %v11700_v48, %v7293_v41  ;;  %v7294_v59 = vmul.f32 %v7253_v45, %v11869_v13  ;;  %v7257_v51 = vrot.slane %v7197_v5, %v10756_v40  ;;  %v7199_v26 = vcombine.high %v7183_v49, %v7183_v49 }
 0x82f   :  { %v7285_v58 = vmul.f32 %v7217_v28, %v11868_v1  ;;  %v7286_v39 = vmul.f32 %v7221_v52, %v11870_v16  ;;  %v7225_v62 = vrot.slane %v7148_v11, %v10756_v40  ;;  %v7150_v4 = vcombine.high %v7134_v22, %v7134_v22 }
 0x830   :  { %7315 = vxpose.xlu0.b32.cont [2/8] (short) (narrow) %v7299_v33, 8  ;;  %v7310_v12 = vmul.f32 %v11700_v48, %v7294_v59  ;;  %v11871_v21 = vmax.f32 %v11590_v3, 0.0  ;;  %v7261_v42 = vrot.slane %v7199_v26, %v10756_v40  ;;  %v7201_v54 = vcombine.high %v7197_v5, %v7197_v5 }
 0x831   :  { %v7301_v56 = vmul.f32 %v11709_v32, %v7285_v58  ;;  %v7302_v20 = vmul.f32 %v11709_v32, %v7286_v39  ;;  %v11872_v7 = vmax.f32 %v11425_v19, 0.0  ;;  %v7229_v61 = vrot.slane %v7150_v4, %v10756_v40 }
 0x832   :  { %7349 = vxpose.xlu1.b32.cont [3/8] (short) (narrow) %v7308_v10, 8  ;;  %v7295_v47 = vmul.f32 %v7257_v51, %v11871_v21  ;;  %v7152_v24 = vcombine.high %v7148_v11, %v7148_v11  ;;  %v11873_v50 = vmax.f32 %v11593_v38, 0.0  ;;  %v7265_v3 = vrot.slane %v7201_v54, %v10756_v40 }
 0x833   :  { %v7287_v43 = vmul.f32 %v7225_v62, %v11872_v7  ;;  %v11874_v15 = vmax.f32 %v11407_v35, 0.0  ;;  %v11875_v25 = vmax.f32 %v11428_v23, 0.0 }
 0x834   :  { %7316 = vxpose.xlu0.b32.cont [3/8] (short) (narrow) %v7300_v14, 8  ;;  %v7311_v2 = vmul.f32 %v11700_v48, %v7295_v47  ;;  %v7296_v36 = vmul.f32 %v7261_v42, %v11873_v50  ;;  %v7233_v19 = vrot.slane %v7152_v24, %v10756_v40  ;;  %v7297_v55 = vmul.f32 %v7265_v3, %v6477_v63 }
 0x835   :  { %v7303_v0 = vmul.f32 %v11709_v32, %v7287_v43  ;;  %v7288_v57 = vmul.f32 %v7229_v61, %v11874_v15 }
 0x836   :  { %7350 = vxpose.xlu1.b32.cont [4/8] (short) (narrow) %v7309_v44, 8  ;;  %v7312_v9 = vmul.f32 %v11700_v48, %v7296_v36  ;;  %v7289_v53 = vmul.f32 %v7233_v19, %v11875_v25  ;;  %v7313_v6 = vmul.f32 %v11700_v48, %v7297_v55 }
 0x837   :  { %v7304_v38 = vmul.f32 %v11709_v32, %v7288_v57 }
 0x838   :  { %7317 = vxpose.xlu0.b32.cont [4/8] (short) (narrow) %v7301_v56, 8  ;;  %v7305_v35 = vmul.f32 %v11709_v32, %v7289_v53 }
 0x83a   :  { %7351 = vxpose.xlu1.b32.cont [5/8] (short) (narrow) %v7310_v12, 8 }
 0x83c   :  { %7318 = vxpose.xlu0.b32.cont [5/8] (short) (narrow) %v7302_v20, 8 }
 0x83e   :  { %7352 = vxpose.xlu1.b32.cont [6/8] (short) (narrow) %v7311_v2, 8 }
 0x840   :  { %7319 = vxpose.xlu0.b32.cont [6/8] (short) (narrow) %v7303_v0, 8 }
 0x842   :  { %7353 = vxpose.xlu1.b32.cont [7/8] (short) (narrow) %v7312_v9, 8 }
 0x844   :  { %7320 = vxpose.xlu0.b32.cont [7/8] (short) (narrow) %v7304_v38, 8 }
 0x846   :  { %7354 = vxpose.xlu1.b32.end [8/8] (short) (narrow) %v7313_v6, 8 }
 0x848   :  { %7321 = vxpose.xlu0.b32.end [8/8] (short) (narrow) %v7305_v35, 8 }
 0x8a6   :  { %v7363_v40 = vpop.trf.xlu1 }
 0x8a7   :  { %7436 = vst.msk [vmem:[%s11786_s15 + $0x8] sm:$0xff] %vm6073_vm2, %v7363_v40 }
 0x8a8   :  { %v7330_v63 = vpop.trf.xlu0 }
 0x8a9   :  { %7346 = vst.msk [vmem:[%s11786_s15] sm:$0xff] %vm6073_vm2, %v7330_v63 }

</bundles_post_ra>
